<compile_context>
chip_gen: v7x
topology: tpu7x:2x2x1
jax: 0.10.0
libtpu: 0.0.40
codegen_flags: <defaults>
</compile_context>

<pallas_src>
import math

import jax
import jax.numpy as jnp
from jax.experimental import pallas as pl
from jax.experimental.pallas import tpu as pltpu


def _round_up(x, m):
    return (x + m - 1) // m * m


def _vmem_capacity_bytes():
    """Physical per-core VMEM; 128 MiB fallback if the query is unavailable."""
    try:
        return int(pltpu.get_tpu_info().vmem_capacity_bytes)
    except Exception:
        return 128 << 20


def _vmem_bytes(bb, Sp, Cp, Fp, has_memory, out_bytes):
    """Rough per-grid-step VMEM requirement (pipelined IO + weights + temps)."""
    n = bb * Sp
    # double-buffered activation streams: x(f32) + pos(bf16) + [v(bf16)] + out
    io = 2 * n * Cp * (4 + 2 + (2 if has_memory else 0) + out_bytes)
    # bf16 weights (wqk, w1, w2), single-buffered (constant index_map)
    weights = 2 * (2 * Cp * Cp + 2 * Cp * Fp)
    # f32 intermediates (qk, q/k, src2, y, ff, z, h) + ~2 live score copies
    interm = 28 * n * Cp + 6 * n * Fp + 8 * bb * Sp * Sp
    return io + weights + interm + (1 << 20)


def _pick_block_b(B, Sp, Cp, Fp, has_memory, vmem_cap, out_bytes):
    if vmem_cap <= (96 << 20):
        # v7x-like chip (64 MiB VMEM / TC, two TensorCores): keep several grid
        # steps alive when the batch allows so each core has pipeline depth,
        # and budget well inside the smaller VMEM.
        budget, rows_target, min_steps = (32 << 20), 256, 4
    else:
        # v5e / v6e (128 MiB, the grid is a serial loop on one TC): prefer
        # few, large steps (~1024 rows of matmul M) to amortize the ~0.35us
        # per-step cost and the resident weight set.
        budget, rows_target, min_steps = (80 << 20), 1024, 1
    bb = max(1, min(B, max(1, rows_target // Sp)))
    desired_steps = min(B, min_steps)
    if desired_steps > 1:
        bb = min(bb, max(1, B // desired_steps))
    while bb > 1 and _vmem_bytes(bb, Sp, Cp, Fp, has_memory, out_bytes) > budget:
        bb -= 1
    return bb


def _make_kernel(C_real, S_real, Cp, Sp, has_memory):
    eps = 1e-5
    neg_slope = 0.01                       # F.leaky_relu default
    inv_c = 1.0 / C_real

    def kernel(*refs):
        if has_memory:
            (x_ref, pos_ref, v_ref,
             wqk_ref, bq_ref, w1_ref, b1_ref, w2_ref, b2_ref,
             g1_ref, be1_ref, g2_ref, be2_ref, o_ref) = refs
        else:
            (x_ref, pos_ref,
             wqk_ref, bq_ref, w1_ref, b1_ref, w2_ref, b2_ref,
             g1_ref, be1_ref, g2_ref, be2_ref, o_ref) = refs
            v_ref = None

        Bt = x_ref.shape[0]
        N = Bt * Sp

        # Hoisted padded-lane mask, built once and reused by both LayerNorms.
        if Cp != C_real:
            lane = jax.lax.broadcasted_iota(jnp.int32, (1, Cp), 1)
            lane_mask = (lane < C_real).astype(jnp.float32)
        else:
            lane_mask = None

        def layer_norm(t, g, b):
            # Padded lanes of t are exactly 0, so plain sums give the true sum;
            # only the centered values need re-zeroing for the variance and
            # to keep the output's padded lanes at 0.
            mu = jnp.sum(t, axis=-1, keepdims=True) * inv_c
            cen = t - mu
            if lane_mask is not None:
                cen = cen * lane_mask
            var = jnp.sum(cen * cen, axis=-1, keepdims=True) * inv_c
            return cen * jax.lax.rsqrt(var + eps) * g + b

        # src = with_pos_embed(src, pos1); pos stream travels bf16 in HBM.
        x0 = x_ref[...]                                   # (Bt, Sp, Cp) f32, pre-pos (v when memory=None)
        x3 = x0 + pos_ref[...].astype(jnp.float32)
        x2 = x3.reshape(N, Cp)
        xb = x2.astype(jnp.bfloat16)

        # Fused Q|K projection: one (N, Cp) x (Cp, 2Cp) bf16 matmul, f32 acc.
        # 1/sqrt(C) is folded into Wq/bq; bk is dropped (row-constant after
        # softmax), so only the Q half gets a bias add.
        qk = jnp.dot(xb, wqk_ref[...], preferred_element_type=jnp.float32)
        q = (qk[:, :Cp] + bq_ref[...]).reshape(Bt, Sp, Cp).astype(jnp.bfloat16)
        k = qk[:, Cp:].reshape(Bt, Sp, Cp).astype(jnp.bfloat16)

        # Scores: contract the trailing axis of both operands (MXU-native
        # transposed-RHS form; no XLU transpose of k on the critical path).
        s = jnp.einsum('bqc,bkc->bqk', q, k, preferred_element_type=jnp.float32)
        if Sp != S_real:
            key_id = jax.lax.broadcasted_iota(jnp.int32, (1, 1, Sp), 2)
            s = s + jnp.where(key_id < S_real, 0.0, -1e30)   # single vadd on the Sp^2 tensor

        # softmax (f32); denominator reciprocal on the otherwise-idle EUP.
        s = s - jnp.max(s, axis=-1, keepdims=True)
        p = jnp.exp(s)
        attn = p * pl.reciprocal(jnp.sum(p, axis=-1, keepdims=True), approx=True)

        # src2 = bmm(attn, v);  src = src + dropout1(src2)  (dropout = identity)
        v = v_ref[...] if has_memory else x0.astype(jnp.bfloat16)
        src2 = jnp.einsum('bqk,bkc->bqc', attn.astype(jnp.bfloat16), v,
                          preferred_element_type=jnp.float32)
        y = x2 + src2.reshape(N, Cp)

        # src = norm1(src)
        y = layer_norm(y, g1_ref[...], be1_ref[...])

        # src2 = linear2(dropout(leaky_relu(linear1(src))))
        h = jnp.dot(y.astype(jnp.bfloat16), w1_ref[...],
                    preferred_element_type=jnp.float32) + b1_ref[...]
        h = jnp.where(h > 0, h, neg_slope * h)
        ff = jnp.dot(h.astype(jnp.bfloat16), w2_ref[...],
                     preferred_element_type=jnp.float32) + b2_ref[...]

        # src = norm2(src + dropout2(src2))
        z = layer_norm(y + ff, g2_ref[...], be2_ref[...])
        o_ref[...] = z.reshape(Bt, Sp, Cp).astype(o_ref.dtype)

    return kernel


def transformer_encoder_qk_layer(src_nchw, pos1_nchw, memory, params, *,
                                 block_b=None, out_dtype=jnp.float32):
    """Full forward pass.  Returns (S, B, C) like the PyTorch module."""
    B, C, H, W = src_nchw.shape
    S = H * W
    (wq, bq, wk, bk, w1, b1, w2, b2, g1, be1, g2, be2) = params
    F = w1.shape[1]
    has_memory = memory is not None
    del bk  # row-constant contribution, cancels in softmax

    # PyTorch: src.flatten(2).permute(2, 0, 1) -> (S, B, C); we keep (B, S, C)
    x_bsc = jnp.transpose(src_nchw.reshape(B, C, S), (0, 2, 1))
    pos_bsc = jnp.transpose(pos1_nchw.reshape(B, C, S), (0, 2, 1))

    # lane-dense padding: C, F -> multiples of 128; S -> multiple of 8
    Cp = _round_up(C, 128)
    Fp = _round_up(F, 128)
    Sp = _round_up(S, 8)

    out_bytes = jnp.dtype(out_dtype).itemsize
    vmem_cap = _vmem_capacity_bytes()
    if block_b is None:
        block_b = _pick_block_b(B, Sp, Cp, Fp, has_memory, vmem_cap, out_bytes)
    block_b = max(1, min(block_b, B))
    Bp = pl.cdiv(B, block_b) * block_b

    need = _vmem_bytes(block_b, Sp, Cp, Fp, has_memory, out_bytes)
    vmem_limit = int(min(int(0.75 * vmem_cap), max(32 << 20, need + (8 << 20))))

    def pad_act(a, dtype):
        a = jnp.pad(a, ((0, Bp - B), (0, Sp - S), (0, Cp - C)))
        return a.astype(dtype)

    xp = pad_act(x_bsc, jnp.float32)            # residual stream in f32
    posp = pad_act(pos_bsc, jnp.bfloat16)       # upcast in-kernel (halves HBM stream)

    def pad2(a, r, c):
        return jnp.pad(a, ((0, r - a.shape[0]), (0, c - a.shape[1])))

    # fused Q|K projection weights; 1/sqrt(C) folded into Wq/bq; bk dropped
    scale = 1.0 / math.sqrt(C)
    wqk = jnp.concatenate([pad2(wq * scale, Cp, Cp), pad2(wk, Cp, Cp)],
                          axis=1).astype(jnp.bfloat16)
    bqs = pad2(bq * scale, 1, Cp).astype(jnp.float32)
    w1p = pad2(w1, Cp, Fp).astype(jnp.bfloat16)
    b1p = pad2(b1, 1, Fp).astype(jnp.float32)
    w2p = pad2(w2, Fp, Cp).astype(jnp.bfloat16)
    b2p = pad2(b2, 1, Cp).astype(jnp.float32)
    g1p = pad2(g1, 1, Cp).astype(jnp.float32)
    be1p = pad2(be1, 1, Cp).astype(jnp.float32)
    g2p = pad2(g2, 1, Cp).astype(jnp.float32)
    be2p = pad2(be2, 1, Cp).astype(jnp.float32)

    kernel = _make_kernel(C, S, Cp, Sp, has_memory)

    act_spec = pl.BlockSpec((block_b, Sp, Cp), lambda b: (b, 0, 0))
    act_in_specs = [act_spec, act_spec]
    operands = [xp, posp]
    if has_memory:
        v_bsc = jnp.transpose(memory, (1, 0, 2))
        operands.append(pad_act(v_bsc, jnp.bfloat16))   # only feeds attn @ v
        act_in_specs.append(act_spec)

    weight_shapes = [
        (Cp, 2 * Cp), (1, Cp),      # Wq|Wk (fused), bq (scaled)
        (Cp, Fp), (1, Fp),          # W1, b1
        (Fp, Cp), (1, Cp),          # W2, b2
        (1, Cp), (1, Cp),           # ln1 gamma, beta
        (1, Cp), (1, Cp),           # ln2 gamma, beta
    ]
    operands += [wqk, bqs, w1p, b1p, w2p, b2p, g1p, be1p, g2p, be2p]

    def build(single_buffer_weights):
        def wspec(shape):
            if single_buffer_weights:
                # Constant index_map => the DMA runs exactly once; a single
                # VMEM buffer avoids wasting a second copy of every weight
                # (VMEM headroom, matters most on v7x's 64 MiB).
                return pl.BlockSpec(shape, lambda b: (0, 0),
                                    pipeline_mode=pl.Buffered(1))
            return pl.BlockSpec(shape, lambda b: (0, 0))

        return pl.pallas_call(
            kernel,
            out_shape=jax.ShapeDtypeStruct((Bp, Sp, Cp), out_dtype),
            grid_spec=pltpu.PrefetchScalarGridSpec(
                num_scalar_prefetch=0,
                grid=(Bp // block_b,),
                in_specs=act_in_specs + [wspec(s) for s in weight_shapes],
                out_specs=act_spec,
            ),
            compiler_params=pltpu.CompilerParams(
                dimension_semantics=("parallel",),
                vmem_limit_bytes=vmem_limit,
            ),
        )

    try:
        out = build(True)(*operands)
    except Exception:
        # Fallback if this Pallas build rejects single-buffered weight specs.
        out = build(False)(*operands)

    # un-pad and return in the PyTorch (S, B, C) convention
    return jnp.transpose(out[:B, :S, :C], (1, 0, 2))


def _reference(src_nchw, pos1_nchw, memory, params):
    """Pure-JAX f32 reference of the same forward pass (for verification)."""
    (wq, bq, wk, bk, w1, b1, w2, b2, g1, be1, g2, be2) = params
    B, C, H, W = src_nchw.shape
    S = H * W
    x = jnp.transpose(src_nchw.reshape(B, C, S), (0, 2, 1))
    pos = jnp.transpose(pos1_nchw.reshape(B, C, S), (0, 2, 1))
    v = jnp.transpose(memory, (1, 0, 2)) if memory is not None else x
    x = x + pos
    q = x @ wq + bq
    k = x @ wk + bk
    s = jnp.einsum("bqc,bkc->bqk", q, k) / math.sqrt(C)
    attn = jax.nn.softmax(s, axis=-1)
    y = x + jnp.einsum("bqk,bkc->bqc", attn, v)

    def ln(t, g, b):
        mu = jnp.mean(t, axis=-1, keepdims=True)
        var = jnp.mean((t - mu) ** 2, axis=-1, keepdims=True)
        return (t - mu) / jnp.sqrt(var + 1e-5) * g + b

    y = ln(y, g1, be1)
    h = y @ w1 + b1
    h = jnp.where(h > 0, h, 0.01 * h)
    z = ln(y + (h @ w2 + b2), g2, be2)
    return jnp.transpose(z, (1, 0, 2))


def make_params(key, d_model, dim_feedforward):
    ks = jax.random.split(key, 8)
    sc = 0.05
    wq = sc * jax.random.normal(ks[0], (d_model, d_model), jnp.float32)
    bq = sc * jax.random.normal(ks[1], (1, d_model), jnp.float32)
    wk = sc * jax.random.normal(ks[2], (d_model, d_model), jnp.float32)
    bk = sc * jax.random.normal(ks[3], (1, d_model), jnp.float32)
    w1 = sc * jax.random.normal(ks[4], (d_model, dim_feedforward), jnp.float32)
    b1 = sc * jax.random.normal(ks[5], (1, dim_feedforward), jnp.float32)
    w2 = sc * jax.random.normal(ks[6], (dim_feedforward, d_model), jnp.float32)
    b2 = sc * jax.random.normal(ks[7], (1, d_model), jnp.float32)
    g1 = jnp.ones((1, d_model), jnp.float32)
    be1 = jnp.zeros((1, d_model), jnp.float32)
    g2 = jnp.ones((1, d_model), jnp.float32)
    be2 = jnp.zeros((1, d_model), jnp.float32)
    return (wq, bq, wk, bk, w1, b1, w2, b2, g1, be1, g2, be2)


if __name__ == "__main__":
    # --- test 1: lane-aligned shapes (no padding path) -----------------------
    B, d_model, H, W = 2, 128, 8, 16          # S = 128, C = 128 (lane-dense)
    S = H * W
    dim_feedforward = 256

    key = jax.random.PRNGKey(0)
    k_src, k_pos, k_mem, k_par = jax.random.split(key, 4)
    src = jax.random.normal(k_src, (B, d_model, H, W), jnp.float32)
    pos1 = 0.1 * jax.random.normal(k_pos, (B, d_model, H, W), jnp.float32)
    memory = jax.random.normal(k_mem, (S, B, d_model), jnp.float32)
    params = make_params(k_par, d_model, dim_feedforward)

    out = jax.block_until_ready(transformer_encoder_qk_layer(src, pos1, memory, params))
    ref = _reference(src, pos1, memory, params)
    assert out.shape == (S, B, d_model)
    # bf16 matmul operands + bf16 pos stream + approx reciprocal -> loose tol
    assert float(jnp.max(jnp.abs(out - ref))) < 8e-2, "mismatch (aligned, memory)"

    # --- test 2: memory=None branch (v reused from x inside the kernel) ------
    out_nm = jax.block_until_ready(transformer_encoder_qk_layer(src, pos1, None, params))
    ref_nm = _reference(src, pos1, None, params)
    assert float(jnp.max(jnp.abs(out_nm - ref_nm))) < 8e-2, "mismatch (memory=None)"

    # --- test 3: unaligned shapes (exercises C/F/S padding + masked LN/softmax)
    B2, d2, H2, W2, F2 = 3, 64, 3, 5, 96      # S=15 -> 16, C=64 -> 128, F=96 -> 128
    S2 = H2 * W2
    k2 = jax.random.split(jax.random.PRNGKey(1), 4)
    src_u = jax.random.normal(k2[0], (B2, d2, H2, W2), jnp.float32)
    pos_u = 0.1 * jax.random.normal(k2[1], (B2, d2, H2, W2), jnp.float32)
    mem_u = jax.random.normal(k2[2], (S2, B2, d2), jnp.float32)
    params_u = make_params(k2[3], d2, F2)
    out_u = jax.block_until_ready(transformer_encoder_qk_layer(src_u, pos_u, mem_u, params_u))
    ref_u = _reference(src_u, pos_u, mem_u, params_u)
    assert out_u.shape == (S2, B2, d2)
    assert float(jnp.max(jnp.abs(out_u - ref_u))) < 8e-2, "mismatch (padded shapes)"

    print("KERNEL_OK")
</pallas_src>

<mosaic_0001>
module attributes {stable_mosaic.version = 11 : i64} {
  func.func @kernel(%arg0: i32, %arg1: memref<2x128x128xf32, #tpu.memory_space<vmem>>, %arg2: memref<2x128x128xbf16, #tpu.memory_space<vmem>>, %arg3: memref<2x128x128xbf16, #tpu.memory_space<vmem>>, %arg4: memref<128x256xbf16, #tpu.memory_space<vmem>>, %arg5: memref<1x128xf32, #tpu.memory_space<vmem>>, %arg6: memref<128x256xbf16, #tpu.memory_space<vmem>>, %arg7: memref<1x256xf32, #tpu.memory_space<vmem>>, %arg8: memref<256x128xbf16, #tpu.memory_space<vmem>>, %arg9: memref<1x128xf32, #tpu.memory_space<vmem>>, %arg10: memref<1x128xf32, #tpu.memory_space<vmem>>, %arg11: memref<1x128xf32, #tpu.memory_space<vmem>>, %arg12: memref<1x128xf32, #tpu.memory_space<vmem>>, %arg13: memref<1x128xf32, #tpu.memory_space<vmem>>, %arg14: memref<2x128x128xf32, #tpu.memory_space<vmem>>) attributes {dimension_semantics = [#tpu.dimension_semantics<parallel>], iteration_bounds = array<i64: 1>, scalar_prefetch = 0 : i64, scratch_operands = 0 : i64, tpu.core_type = #tpu.core_type<tc>, window_params = [{transform_indices = @transform_0, window_bounds = array<i64: 2, 128, 128>}, {transform_indices = @transform_1, window_bounds = array<i64: 2, 128, 128>}, {transform_indices = @transform_2, window_bounds = array<i64: 2, 128, 128>}, {pipeline_mode = #tpu.pipeline_mode<synchronous>, transform_indices = @transform_3, window_bounds = array<i64: 128, 256>}, {pipeline_mode = #tpu.pipeline_mode<synchronous>, transform_indices = @transform_4, window_bounds = array<i64: 1, 128>}, {pipeline_mode = #tpu.pipeline_mode<synchronous>, transform_indices = @transform_5, window_bounds = array<i64: 128, 256>}, {pipeline_mode = #tpu.pipeline_mode<synchronous>, transform_indices = @transform_6, window_bounds = array<i64: 1, 256>}, {pipeline_mode = #tpu.pipeline_mode<synchronous>, transform_indices = @transform_7, window_bounds = array<i64: 256, 128>}, {pipeline_mode = #tpu.pipeline_mode<synchronous>, transform_indices = @transform_8, window_bounds = array<i64: 1, 128>}, {pipeline_mode = #tpu.pipeline_mode<synchronous>, transform_indices = @transform_9, window_bounds = array<i64: 1, 128>}, {pipeline_mode = #tpu.pipeline_mode<synchronous>, transform_indices = @transform_10, window_bounds = array<i64: 1, 128>}, {pipeline_mode = #tpu.pipeline_mode<synchronous>, transform_indices = @transform_11, window_bounds = array<i64: 1, 128>}, {pipeline_mode = #tpu.pipeline_mode<synchronous>, transform_indices = @transform_12, window_bounds = array<i64: 1, 128>}, {transform_indices = @transform_13, window_bounds = array<i64: 2, 128, 128>}]} {
    %c0 = arith.constant 0 : index
    %c0_0 = arith.constant 0 : index
    %c0_1 = arith.constant 0 : index
    %0 = vector.load %arg1[%c0, %c0_0, %c0_1] : memref<2x128x128xf32, #tpu.memory_space<vmem>>, vector<2x128x128xf32>
    %c0_2 = arith.constant 0 : index
    %c0_3 = arith.constant 0 : index
    %c0_4 = arith.constant 0 : index
    %1 = vector.load %arg2[%c0_2, %c0_3, %c0_4] : memref<2x128x128xbf16, #tpu.memory_space<vmem>>, vector<2x128x128xbf16>
    %2 = arith.extf %1 : vector<2x128x128xbf16> to vector<2x128x128xf32>
    %3 = arith.addf %0, %2 : vector<2x128x128xf32>
    %4 = vector.shape_cast %3 : vector<2x128x128xf32> to vector<256x128xf32>
    %5 = arith.truncf %4 : vector<256x128xf32> to vector<256x128xbf16>
    %c0_5 = arith.constant 0 : index
    %c0_6 = arith.constant 0 : index
    %6 = vector.load %arg4[%c0_5, %c0_6] : memref<128x256xbf16, #tpu.memory_space<vmem>>, vector<128x256xbf16>
    %cst = arith.constant dense<0.000000e+00> : vector<256x256xf32>
    %7 = tpu.matmul %5, %6, %cst {dimension_numbers = #tpu.dot_dimension_numbers<[1], [0], [0], [1], [0, 0, 1, 1], [], []>} : vector<256x128xbf16>, vector<128x256xbf16>, vector<256x256xf32> -> vector<256x256xf32>
    %8 = vector.extract_strided_slice %7 {offsets = [0, 0], sizes = [256, 128], strides = [1, 1]} : vector<256x256xf32> to vector<256x128xf32>
    %c0_7 = arith.constant 0 : index
    %c0_8 = arith.constant 0 : index
    %9 = vector.load %arg5[%c0_7, %c0_8] : memref<1x128xf32, #tpu.memory_space<vmem>>, vector<1x128xf32>
    %10 = vector.broadcast %9 : vector<1x128xf32> to vector<256x128xf32>
    %11 = arith.addf %8, %10 : vector<256x128xf32>
    %12 = vector.shape_cast %11 : vector<256x128xf32> to vector<2x128x128xf32>
    %13 = arith.truncf %12 : vector<2x128x128xf32> to vector<2x128x128xbf16>
    %14 = vector.extract_strided_slice %7 {offsets = [0, 128], sizes = [256, 128], strides = [1, 1]} : vector<256x256xf32> to vector<256x128xf32>
    %15 = vector.shape_cast %14 : vector<256x128xf32> to vector<2x128x128xf32>
    %16 = arith.truncf %15 : vector<2x128x128xf32> to vector<2x128x128xbf16>
    "tpu.trace_start"() <{level = 10 : i32, message = "bqc,bkc->bqk"}> : () -> ()
    %cst_9 = arith.constant dense<0.000000e+00> : vector<2x128x128xf32>
    %17 = tpu.matmul %13, %16, %cst_9 {dimension_numbers = #tpu.dot_dimension_numbers<[2], [2], [1], [1], [0, 0, 0, 1, 1, 1], [0], [0]>} : vector<2x128x128xbf16>, vector<2x128x128xbf16>, vector<2x128x128xf32> -> vector<2x128x128xf32>
    "tpu.trace_stop"() : () -> ()
    %cst_10 = arith.constant dense<0xFF800000> : vector<2x128xf32>
    %18 = vector.multi_reduction <maximumf>, %17, %cst_10 [2] : vector<2x128x128xf32> to vector<2x128xf32>
    %19 = vector.shape_cast %18 : vector<2x128xf32> to vector<2x128x1xf32>
    %20 = vector.broadcast %19 : vector<2x128x1xf32> to vector<2x128x128xf32>
    %21 = arith.subf %17, %20 : vector<2x128x128xf32>
    %22 = math.exp %21 : vector<2x128x128xf32>
    %cst_11 = arith.constant dense<0.000000e+00> : vector<2x128xf32>
    %23 = vector.multi_reduction <add>, %22, %cst_11 [2] : vector<2x128x128xf32> to vector<2x128xf32>
    %24 = vector.shape_cast %23 : vector<2x128xf32> to vector<2x128x1xf32>
    %25 = tpu.reciprocal %24 {approx = true} : vector<2x128x1xf32> -> vector<2x128x1xf32>
    %26 = vector.broadcast %25 : vector<2x128x1xf32> to vector<2x128x128xf32>
    %27 = arith.mulf %22, %26 : vector<2x128x128xf32>
    %c0_12 = arith.constant 0 : index
    %c0_13 = arith.constant 0 : index
    %c0_14 = arith.constant 0 : index
    %28 = vector.load %arg3[%c0_12, %c0_13, %c0_14] : memref<2x128x128xbf16, #tpu.memory_space<vmem>>, vector<2x128x128xbf16>
    %29 = arith.truncf %27 : vector<2x128x128xf32> to vector<2x128x128xbf16>
    "tpu.trace_start"() <{level = 10 : i32, message = "bqk,bkc->bqc"}> : () -> ()
    %cst_15 = arith.constant dense<0.000000e+00> : vector<2x128x128xf32>
    %30 = tpu.matmul %29, %28, %cst_15 {dimension_numbers = #tpu.dot_dimension_numbers<[2], [1], [1], [2], [0, 0, 0, 1, 1, 2], [0], [0]>} : vector<2x128x128xbf16>, vector<2x128x128xbf16>, vector<2x128x128xf32> -> vector<2x128x128xf32>
    "tpu.trace_stop"() : () -> ()
    %31 = vector.shape_cast %30 : vector<2x128x128xf32> to vector<256x128xf32>
    %32 = arith.addf %4, %31 : vector<256x128xf32>
    %c0_16 = arith.constant 0 : index
    %c0_17 = arith.constant 0 : index
    %33 = vector.load %arg10[%c0_16, %c0_17] : memref<1x128xf32, #tpu.memory_space<vmem>>, vector<1x128xf32>
    %c0_18 = arith.constant 0 : index
    %c0_19 = arith.constant 0 : index
    %34 = vector.load %arg11[%c0_18, %c0_19] : memref<1x128xf32, #tpu.memory_space<vmem>>, vector<1x128xf32>
    %cst_20 = arith.constant dense<0.000000e+00> : vector<256xf32>
    %35 = vector.multi_reduction <add>, %32, %cst_20 [1] : vector<256x128xf32> to vector<256xf32>
    %36 = vector.shape_cast %35 : vector<256xf32> to vector<256x1xf32>
    %cst_21 = arith.constant 7.812500e-03 : f32
    %37 = vector.broadcast %cst_21 : f32 to vector<256x1xf32>
    %38 = arith.mulf %36, %37 : vector<256x1xf32>
    %39 = vector.broadcast %38 : vector<256x1xf32> to vector<256x128xf32>
    %40 = arith.subf %32, %39 : vector<256x128xf32>
    %41 = arith.mulf %40, %40 : vector<256x128xf32>
    %cst_22 = arith.constant dense<0.000000e+00> : vector<256xf32>
    %42 = vector.multi_reduction <add>, %41, %cst_22 [1] : vector<256x128xf32> to vector<256xf32>
    %43 = vector.shape_cast %42 : vector<256xf32> to vector<256x1xf32>
    %cst_23 = arith.constant 7.812500e-03 : f32
    %44 = vector.broadcast %cst_23 : f32 to vector<256x1xf32>
    %45 = arith.mulf %43, %44 : vector<256x1xf32>
    %cst_24 = arith.constant 9.99999974E-6 : f32
    %46 = vector.broadcast %cst_24 : f32 to vector<256x1xf32>
    %47 = arith.addf %45, %46 : vector<256x1xf32>
    %48 = math.rsqrt %47 : vector<256x1xf32>
    %49 = vector.broadcast %48 : vector<256x1xf32> to vector<256x128xf32>
    %50 = arith.mulf %40, %49 : vector<256x128xf32>
    %51 = vector.broadcast %33 : vector<1x128xf32> to vector<256x128xf32>
    %52 = arith.mulf %50, %51 : vector<256x128xf32>
    %53 = vector.broadcast %34 : vector<1x128xf32> to vector<256x128xf32>
    %54 = arith.addf %52, %53 : vector<256x128xf32>
    %55 = arith.truncf %54 : vector<256x128xf32> to vector<256x128xbf16>
    %c0_25 = arith.constant 0 : index
    %c0_26 = arith.constant 0 : index
    %56 = vector.load %arg6[%c0_25, %c0_26] : memref<128x256xbf16, #tpu.memory_space<vmem>>, vector<128x256xbf16>
    %cst_27 = arith.constant dense<0.000000e+00> : vector<256x256xf32>
    %57 = tpu.matmul %55, %56, %cst_27 {dimension_numbers = #tpu.dot_dimension_numbers<[1], [0], [0], [1], [0, 0, 1, 1], [], []>} : vector<256x128xbf16>, vector<128x256xbf16>, vector<256x256xf32> -> vector<256x256xf32>
    %c0_28 = arith.constant 0 : index
    %c0_29 = arith.constant 0 : index
    %58 = vector.load %arg7[%c0_28, %c0_29] : memref<1x256xf32, #tpu.memory_space<vmem>>, vector<1x256xf32>
    %59 = vector.broadcast %58 : vector<1x256xf32> to vector<256x256xf32>
    %60 = arith.addf %57, %59 : vector<256x256xf32>
    %cst_30 = arith.constant 0.000000e+00 : f32
    %61 = vector.broadcast %cst_30 : f32 to vector<256x256xf32>
    %62 = arith.cmpf ogt, %60, %61 : vector<256x256xf32>
    %cst_31 = arith.constant 0.00999999977 : f32
    %63 = vector.broadcast %cst_31 : f32 to vector<256x256xf32>
    %64 = arith.mulf %63, %60 : vector<256x256xf32>
    %65 = arith.select %62, %60, %64 : vector<256x256xi1>, vector<256x256xf32>
    %66 = arith.truncf %65 : vector<256x256xf32> to vector<256x256xbf16>
    %c0_32 = arith.constant 0 : index
    %c0_33 = arith.constant 0 : index
    %67 = vector.load %arg8[%c0_32, %c0_33] : memref<256x128xbf16, #tpu.memory_space<vmem>>, vector<256x128xbf16>
    %cst_34 = arith.constant dense<0.000000e+00> : vector<256x128xf32>
    %68 = tpu.matmul %66, %67, %cst_34 {dimension_numbers = #tpu.dot_dimension_numbers<[1], [0], [0], [1], [0, 0, 1, 1], [], []>} : vector<256x256xbf16>, vector<256x128xbf16>, vector<256x128xf32> -> vector<256x128xf32>
    %c0_35 = arith.constant 0 : index
    %c0_36 = arith.constant 0 : index
    %69 = vector.load %arg9[%c0_35, %c0_36] : memref<1x128xf32, #tpu.memory_space<vmem>>, vector<1x128xf32>
    %70 = vector.broadcast %69 : vector<1x128xf32> to vector<256x128xf32>
    %71 = arith.addf %68, %70 : vector<256x128xf32>
    %72 = arith.addf %54, %71 : vector<256x128xf32>
    %c0_37 = arith.constant 0 : index
    %c0_38 = arith.constant 0 : index
    %73 = vector.load %arg12[%c0_37, %c0_38] : memref<1x128xf32, #tpu.memory_space<vmem>>, vector<1x128xf32>
    %c0_39 = arith.constant 0 : index
    %c0_40 = arith.constant 0 : index
    %74 = vector.load %arg13[%c0_39, %c0_40] : memref<1x128xf32, #tpu.memory_space<vmem>>, vector<1x128xf32>
    %cst_41 = arith.constant dense<0.000000e+00> : vector<256xf32>
    %75 = vector.multi_reduction <add>, %72, %cst_41 [1] : vector<256x128xf32> to vector<256xf32>
    %76 = vector.shape_cast %75 : vector<256xf32> to vector<256x1xf32>
    %cst_42 = arith.constant 7.812500e-03 : f32
    %77 = vector.broadcast %cst_42 : f32 to vector<256x1xf32>
    %78 = arith.mulf %76, %77 : vector<256x1xf32>
    %79 = vector.broadcast %78 : vector<256x1xf32> to vector<256x128xf32>
    %80 = arith.subf %72, %79 : vector<256x128xf32>
    %81 = arith.mulf %80, %80 : vector<256x128xf32>
    %cst_43 = arith.constant dense<0.000000e+00> : vector<256xf32>
    %82 = vector.multi_reduction <add>, %81, %cst_43 [1] : vector<256x128xf32> to vector<256xf32>
    %83 = vector.shape_cast %82 : vector<256xf32> to vector<256x1xf32>
    %cst_44 = arith.constant 7.812500e-03 : f32
    %84 = vector.broadcast %cst_44 : f32 to vector<256x1xf32>
    %85 = arith.mulf %83, %84 : vector<256x1xf32>
    %cst_45 = arith.constant 9.99999974E-6 : f32
    %86 = vector.broadcast %cst_45 : f32 to vector<256x1xf32>
    %87 = arith.addf %85, %86 : vector<256x1xf32>
    %88 = math.rsqrt %87 : vector<256x1xf32>
    %89 = vector.broadcast %88 : vector<256x1xf32> to vector<256x128xf32>
    %90 = arith.mulf %80, %89 : vector<256x128xf32>
    %91 = vector.broadcast %73 : vector<1x128xf32> to vector<256x128xf32>
    %92 = arith.mulf %90, %91 : vector<256x128xf32>
    %93 = vector.broadcast %74 : vector<1x128xf32> to vector<256x128xf32>
    %94 = arith.addf %92, %93 : vector<256x128xf32>
    %95 = vector.shape_cast %94 : vector<256x128xf32> to vector<2x128x128xf32>
    %c0_46 = arith.constant 0 : index
    %c0_47 = arith.constant 0 : index
    %c0_48 = arith.constant 0 : index
    %96 = vector.load %arg14[%c0_46, %c0_47, %c0_48] : memref<2x128x128xf32, #tpu.memory_space<vmem>>, vector<2x128x128xf32>
    tpu.vector_store %arg14[%c0_46, %c0_47, %c0_48], %95 {strides = array<i32>} : memref<2x128x128xf32, #tpu.memory_space<vmem>>, vector<2x128x128xf32>,
    return
  }
  func.func @transform_0(%arg0: i32) -> (i32, i32, i32) {
    %c0_i32 = arith.constant 0 : i32
    %c0_i32_0 = arith.constant 0 : i32
    %c0_i32_1 = arith.constant 0 : i32
    return %arg0, %c0_i32, %c0_i32_0 : i32, i32, i32
  }
  func.func @transform_1(%arg0: i32) -> (i32, i32, i32) {
    %c0_i32 = arith.constant 0 : i32
    %c0_i32_0 = arith.constant 0 : i32
    %c0_i32_1 = arith.constant 0 : i32
    return %arg0, %c0_i32, %c0_i32_0 : i32, i32, i32
  }
  func.func @transform_2(%arg0: i32) -> (i32, i32, i32) {
    %c0_i32 = arith.constant 0 : i32
    %c0_i32_0 = arith.constant 0 : i32
    %c0_i32_1 = arith.constant 0 : i32
    return %arg0, %c0_i32, %c0_i32_0 : i32, i32, i32
  }
  func.func @transform_3(%arg0: i32) -> (i32, i32) {
    %c0_i32 = arith.constant 0 : i32
    %c0_i32_0 = arith.constant 0 : i32
    %c0_i32_1 = arith.constant 0 : i32
    return %c0_i32, %c0_i32_0 : i32, i32
  }
  func.func @transform_4(%arg0: i32) -> (i32, i32) {
    %c0_i32 = arith.constant 0 : i32
    %c0_i32_0 = arith.constant 0 : i32
    %c0_i32_1 = arith.constant 0 : i32
    return %c0_i32, %c0_i32_0 : i32, i32
  }
  func.func @transform_5(%arg0: i32) -> (i32, i32) {
    %c0_i32 = arith.constant 0 : i32
    %c0_i32_0 = arith.constant 0 : i32
    %c0_i32_1 = arith.constant 0 : i32
    return %c0_i32, %c0_i32_0 : i32, i32
  }
  func.func @transform_6(%arg0: i32) -> (i32, i32) {
    %c0_i32 = arith.constant 0 : i32
    %c0_i32_0 = arith.constant 0 : i32
    %c0_i32_1 = arith.constant 0 : i32
    return %c0_i32, %c0_i32_0 : i32, i32
  }
  func.func @transform_7(%arg0: i32) -> (i32, i32) {
    %c0_i32 = arith.constant 0 : i32
    %c0_i32_0 = arith.constant 0 : i32
    %c0_i32_1 = arith.constant 0 : i32
    return %c0_i32, %c0_i32_0 : i32, i32
  }
  func.func @transform_8(%arg0: i32) -> (i32, i32) {
    %c0_i32 = arith.constant 0 : i32
    %c0_i32_0 = arith.constant 0 : i32
    %c0_i32_1 = arith.constant 0 : i32
    return %c0_i32, %c0_i32_0 : i32, i32
  }
  func.func @transform_9(%arg0: i32) -> (i32, i32) {
    %c0_i32 = arith.constant 0 : i32
    %c0_i32_0 = arith.constant 0 : i32
    %c0_i32_1 = arith.constant 0 : i32
    return %c0_i32, %c0_i32_0 : i32, i32
  }
  func.func @transform_10(%arg0: i32) -> (i32, i32) {
    %c0_i32 = arith.constant 0 : i32
    %c0_i32_0 = arith.constant 0 : i32
    %c0_i32_1 = arith.constant 0 : i32
    return %c0_i32, %c0_i32_0 : i32, i32
  }
  func.func @transform_11(%arg0: i32) -> (i32, i32) {
    %c0_i32 = arith.constant 0 : i32
    %c0_i32_0 = arith.constant 0 : i32
    %c0_i32_1 = arith.constant 0 : i32
    return %c0_i32, %c0_i32_0 : i32, i32
  }
  func.func @transform_12(%arg0: i32) -> (i32, i32) {
    %c0_i32 = arith.constant 0 : i32
    %c0_i32_0 = arith.constant 0 : i32
    %c0_i32_1 = arith.constant 0 : i32
    return %c0_i32, %c0_i32_0 : i32, i32
  }
  func.func @transform_13(%arg0: i32) -> (i32, i32, i32) {
    %c0_i32 = arith.constant 0 : i32
    %c0_i32_0 = arith.constant 0 : i32
    %c0_i32_1 = arith.constant 0 : i32
    return %arg0, %c0_i32, %c0_i32_0 : i32, i32, i32
  }
}

module attributes {stable_mosaic.version = 11 : i64} {
  func.func @kernel(%arg0: i32, %arg1: memref<2x128x128xf32, #tpu.memory_space<vmem>>, %arg2: memref<2x128x128xbf16, #tpu.memory_space<vmem>>, %arg3: memref<2x128x128xbf16, #tpu.memory_space<vmem>>, %arg4: memref<128x256xbf16, #tpu.memory_space<vmem>>, %arg5: memref<1x128xf32, #tpu.memory_space<vmem>>, %arg6: memref<128x256xbf16, #tpu.memory_space<vmem>>, %arg7: memref<1x256xf32, #tpu.memory_space<vmem>>, %arg8: memref<256x128xbf16, #tpu.memory_space<vmem>>, %arg9: memref<1x128xf32, #tpu.memory_space<vmem>>, %arg10: memref<1x128xf32, #tpu.memory_space<vmem>>, %arg11: memref<1x128xf32, #tpu.memory_space<vmem>>, %arg12: memref<1x128xf32, #tpu.memory_space<vmem>>, %arg13: memref<1x128xf32, #tpu.memory_space<vmem>>, %arg14: memref<2x128x128xf32, #tpu.memory_space<vmem>>) attributes {dimension_semantics = [#tpu.dimension_semantics<parallel>], iteration_bounds = array<i64: 1>, scalar_prefetch = 0 : i64, scratch_operands = 0 : i64, tpu.core_type = #tpu.core_type<tc>, window_params = [{transform_indices = @transform_0, window_bounds = array<i64: 2, 128, 128>}, {transform_indices = @transform_1, window_bounds = array<i64: 2, 128, 128>}, {transform_indices = @transform_2, window_bounds = array<i64: 2, 128, 128>}, {pipeline_mode = #tpu.pipeline_mode<synchronous>, transform_indices = @transform_3, window_bounds = array<i64: 128, 256>}, {pipeline_mode = #tpu.pipeline_mode<synchronous>, transform_indices = @transform_4, window_bounds = array<i64: 1, 128>}, {pipeline_mode = #tpu.pipeline_mode<synchronous>, transform_indices = @transform_5, window_bounds = array<i64: 128, 256>}, {pipeline_mode = #tpu.pipeline_mode<synchronous>, transform_indices = @transform_6, window_bounds = array<i64: 1, 256>}, {pipeline_mode = #tpu.pipeline_mode<synchronous>, transform_indices = @transform_7, window_bounds = array<i64: 256, 128>}, {pipeline_mode = #tpu.pipeline_mode<synchronous>, transform_indices = @transform_8, window_bounds = array<i64: 1, 128>}, {pipeline_mode = #tpu.pipeline_mode<synchronous>, transform_indices = @transform_9, window_bounds = array<i64: 1, 128>}, {pipeline_mode = #tpu.pipeline_mode<synchronous>, transform_indices = @transform_10, window_bounds = array<i64: 1, 128>}, {pipeline_mode = #tpu.pipeline_mode<synchronous>, transform_indices = @transform_11, window_bounds = array<i64: 1, 128>}, {pipeline_mode = #tpu.pipeline_mode<synchronous>, transform_indices = @transform_12, window_bounds = array<i64: 1, 128>}, {transform_indices = @transform_13, window_bounds = array<i64: 2, 128, 128>}]} {
    %c0 = arith.constant 0 : index
    %c0_0 = arith.constant 0 : index
    %c0_1 = arith.constant 0 : index
    %0 = vector.load %arg1[%c0, %c0_0, %c0_1] : memref<2x128x128xf32, #tpu.memory_space<vmem>>, vector<2x128x128xf32>
    %c0_2 = arith.constant 0 : index
    %c0_3 = arith.constant 0 : index
    %c0_4 = arith.constant 0 : index
    %1 = vector.load %arg2[%c0_2, %c0_3, %c0_4] : memref<2x128x128xbf16, #tpu.memory_space<vmem>>, vector<2x128x128xbf16>
    %2 = arith.extf %1 : vector<2x128x128xbf16> to vector<2x128x128xf32>
    %3 = arith.addf %0, %2 : vector<2x128x128xf32>
    %4 = vector.shape_cast %3 : vector<2x128x128xf32> to vector<256x128xf32>
    %5 = arith.truncf %4 : vector<256x128xf32> to vector<256x128xbf16>
    %c0_5 = arith.constant 0 : index
    %c0_6 = arith.constant 0 : index
    %6 = vector.load %arg4[%c0_5, %c0_6] : memref<128x256xbf16, #tpu.memory_space<vmem>>, vector<128x256xbf16>
    %cst = arith.constant dense<0.000000e+00> : vector<256x256xf32>
    %7 = tpu.matmul %5, %6, %cst {dimension_numbers = #tpu.dot_dimension_numbers<[1], [0], [0], [1], [0, 0, 1, 1], [], []>} : vector<256x128xbf16>, vector<128x256xbf16>, vector<256x256xf32> -> vector<256x256xf32>
    %8 = vector.extract_strided_slice %7 {offsets = [0, 0], sizes = [256, 128], strides = [1, 1]} : vector<256x256xf32> to vector<256x128xf32>
    %c0_7 = arith.constant 0 : index
    %c0_8 = arith.constant 0 : index
    %9 = vector.load %arg5[%c0_7, %c0_8] : memref<1x128xf32, #tpu.memory_space<vmem>>, vector<1x128xf32>
    %10 = vector.broadcast %9 : vector<1x128xf32> to vector<256x128xf32>
    %11 = arith.addf %8, %10 : vector<256x128xf32>
    %12 = vector.shape_cast %11 : vector<256x128xf32> to vector<2x128x128xf32>
    %13 = arith.truncf %12 : vector<2x128x128xf32> to vector<2x128x128xbf16>
    %14 = vector.extract_strided_slice %7 {offsets = [0, 128], sizes = [256, 128], strides = [1, 1]} : vector<256x256xf32> to vector<256x128xf32>
    %15 = vector.shape_cast %14 : vector<256x128xf32> to vector<2x128x128xf32>
    %16 = arith.truncf %15 : vector<2x128x128xf32> to vector<2x128x128xbf16>
    "tpu.trace_start"() <{level = 10 : i32, message = "bqc,bkc->bqk"}> : () -> ()
    %cst_9 = arith.constant dense<0.000000e+00> : vector<2x128x128xf32>
    %17 = tpu.matmul %13, %16, %cst_9 {dimension_numbers = #tpu.dot_dimension_numbers<[2], [2], [1], [1], [0, 0, 0, 1, 1, 1], [0], [0]>} : vector<2x128x128xbf16>, vector<2x128x128xbf16>, vector<2x128x128xf32> -> vector<2x128x128xf32>
    "tpu.trace_stop"() : () -> ()
    %cst_10 = arith.constant dense<0xFF800000> : vector<2x128xf32>
    %18 = vector.multi_reduction <maximumf>, %17, %cst_10 [2] : vector<2x128x128xf32> to vector<2x128xf32>
    %19 = vector.shape_cast %18 : vector<2x128xf32> to vector<2x128x1xf32>
    %20 = vector.broadcast %19 : vector<2x128x1xf32> to vector<2x128x128xf32>
    %21 = arith.subf %17, %20 : vector<2x128x128xf32>
    %22 = math.exp %21 : vector<2x128x128xf32>
    %cst_11 = arith.constant dense<0.000000e+00> : vector<2x128xf32>
    %23 = vector.multi_reduction <add>, %22, %cst_11 [2] : vector<2x128x128xf32> to vector<2x128xf32>
    %24 = vector.shape_cast %23 : vector<2x128xf32> to vector<2x128x1xf32>
    %25 = tpu.reciprocal %24 {approx = true} : vector<2x128x1xf32> -> vector<2x128x1xf32>
    %26 = vector.broadcast %25 : vector<2x128x1xf32> to vector<2x128x128xf32>
    %27 = arith.mulf %22, %26 : vector<2x128x128xf32>
    %c0_12 = arith.constant 0 : index
    %c0_13 = arith.constant 0 : index
    %c0_14 = arith.constant 0 : index
    %28 = vector.load %arg3[%c0_12, %c0_13, %c0_14] : memref<2x128x128xbf16, #tpu.memory_space<vmem>>, vector<2x128x128xbf16>
    %29 = arith.truncf %27 : vector<2x128x128xf32> to vector<2x128x128xbf16>
    "tpu.trace_start"() <{level = 10 : i32, message = "bqk,bkc->bqc"}> : () -> ()
    %cst_15 = arith.constant dense<0.000000e+00> : vector<2x128x128xf32>
    %30 = tpu.matmul %29, %28, %cst_15 {dimension_numbers = #tpu.dot_dimension_numbers<[2], [1], [1], [2], [0, 0, 0, 1, 1, 2], [0], [0]>} : vector<2x128x128xbf16>, vector<2x128x128xbf16>, vector<2x128x128xf32> -> vector<2x128x128xf32>
    "tpu.trace_stop"() : () -> ()
    %31 = vector.shape_cast %30 : vector<2x128x128xf32> to vector<256x128xf32>
    %32 = arith.addf %4, %31 : vector<256x128xf32>
    %c0_16 = arith.constant 0 : index
    %c0_17 = arith.constant 0 : index
    %33 = vector.load %arg10[%c0_16, %c0_17] : memref<1x128xf32, #tpu.memory_space<vmem>>, vector<1x128xf32>
    %c0_18 = arith.constant 0 : index
    %c0_19 = arith.constant 0 : index
    %34 = vector.load %arg11[%c0_18, %c0_19] : memref<1x128xf32, #tpu.memory_space<vmem>>, vector<1x128xf32>
    %cst_20 = arith.constant dense<0.000000e+00> : vector<256xf32>
    %35 = vector.multi_reduction <add>, %32, %cst_20 [1] : vector<256x128xf32> to vector<256xf32>
    %36 = vector.shape_cast %35 : vector<256xf32> to vector<256x1xf32>
    %cst_21 = arith.constant 7.812500e-03 : f32
    %37 = vector.broadcast %cst_21 : f32 to vector<256x1xf32>
    %38 = arith.mulf %36, %37 : vector<256x1xf32>
    %39 = vector.broadcast %38 : vector<256x1xf32> to vector<256x128xf32>
    %40 = arith.subf %32, %39 : vector<256x128xf32>
    %41 = arith.mulf %40, %40 : vector<256x128xf32>
    %cst_22 = arith.constant dense<0.000000e+00> : vector<256xf32>
    %42 = vector.multi_reduction <add>, %41, %cst_22 [1] : vector<256x128xf32> to vector<256xf32>
    %43 = vector.shape_cast %42 : vector<256xf32> to vector<256x1xf32>
    %cst_23 = arith.constant 7.812500e-03 : f32
    %44 = vector.broadcast %cst_23 : f32 to vector<256x1xf32>
    %45 = arith.mulf %43, %44 : vector<256x1xf32>
    %cst_24 = arith.constant 9.99999974E-6 : f32
    %46 = vector.broadcast %cst_24 : f32 to vector<256x1xf32>
    %47 = arith.addf %45, %46 : vector<256x1xf32>
    %48 = math.rsqrt %47 : vector<256x1xf32>
    %49 = vector.broadcast %48 : vector<256x1xf32> to vector<256x128xf32>
    %50 = arith.mulf %40, %49 : vector<256x128xf32>
    %51 = vector.broadcast %33 : vector<1x128xf32> to vector<256x128xf32>
    %52 = arith.mulf %50, %51 : vector<256x128xf32>
    %53 = vector.broadcast %34 : vector<1x128xf32> to vector<256x128xf32>
    %54 = arith.addf %52, %53 : vector<256x128xf32>
    %55 = arith.truncf %54 : vector<256x128xf32> to vector<256x128xbf16>
    %c0_25 = arith.constant 0 : index
    %c0_26 = arith.constant 0 : index
    %56 = vector.load %arg6[%c0_25, %c0_26] : memref<128x256xbf16, #tpu.memory_space<vmem>>, vector<128x256xbf16>
    %cst_27 = arith.constant dense<0.000000e+00> : vector<256x256xf32>
    %57 = tpu.matmul %55, %56, %cst_27 {dimension_numbers = #tpu.dot_dimension_numbers<[1], [0], [0], [1], [0, 0, 1, 1], [], []>} : vector<256x128xbf16>, vector<128x256xbf16>, vector<256x256xf32> -> vector<256x256xf32>
    %c0_28 = arith.constant 0 : index
    %c0_29 = arith.constant 0 : index
    %58 = vector.load %arg7[%c0_28, %c0_29] : memref<1x256xf32, #tpu.memory_space<vmem>>, vector<1x256xf32>
    %59 = vector.broadcast %58 : vector<1x256xf32> to vector<256x256xf32>
    %60 = arith.addf %57, %59 : vector<256x256xf32>
    %cst_30 = arith.constant 0.000000e+00 : f32
    %61 = vector.broadcast %cst_30 : f32 to vector<256x256xf32>
    %62 = arith.cmpf ogt, %60, %61 : vector<256x256xf32>
    %cst_31 = arith.constant 0.00999999977 : f32
    %63 = vector.broadcast %cst_31 : f32 to vector<256x256xf32>
    %64 = arith.mulf %63, %60 : vector<256x256xf32>
    %65 = arith.select %62, %60, %64 : vector<256x256xi1>, vector<256x256xf32>
    %66 = arith.truncf %65 : vector<256x256xf32> to vector<256x256xbf16>
    %c0_32 = arith.constant 0 : index
    %c0_33 = arith.constant 0 : index
    %67 = vector.load %arg8[%c0_32, %c0_33] : memref<256x128xbf16, #tpu.memory_space<vmem>>, vector<256x128xbf16>
    %cst_34 = arith.constant dense<0.000000e+00> : vector<256x128xf32>
    %68 = tpu.matmul %66, %67, %cst_34 {dimension_numbers = #tpu.dot_dimension_numbers<[1], [0], [0], [1], [0, 0, 1, 1], [], []>} : vector<256x256xbf16>, vector<256x128xbf16>, vector<256x128xf32> -> vector<256x128xf32>
    %c0_35 = arith.constant 0 : index
    %c0_36 = arith.constant 0 : index
    %69 = vector.load %arg9[%c0_35, %c0_36] : memref<1x128xf32, #tpu.memory_space<vmem>>, vector<1x128xf32>
    %70 = vector.broadcast %69 : vector<1x128xf32> to vector<256x128xf32>
    %71 = arith.addf %68, %70 : vector<256x128xf32>
    %72 = arith.addf %54, %71 : vector<256x128xf32>
    %c0_37 = arith.constant 0 : index
    %c0_38 = arith.constant 0 : index
    %73 = vector.load %arg12[%c0_37, %c0_38] : memref<1x128xf32, #tpu.memory_space<vmem>>, vector<1x128xf32>
    %c0_39 = arith.constant 0 : index
    %c0_40 = arith.constant 0 : index
    %74 = vector.load %arg13[%c0_39, %c0_40] : memref<1x128xf32, #tpu.memory_space<vmem>>, vector<1x128xf32>
    %cst_41 = arith.constant dense<0.000000e+00> : vector<256xf32>
    %75 = vector.multi_reduction <add>, %72, %cst_41 [1] : vector<256x128xf32> to vector<256xf32>
    %76 = vector.shape_cast %75 : vector<256xf32> to vector<256x1xf32>
    %cst_42 = arith.constant 7.812500e-03 : f32
    %77 = vector.broadcast %cst_42 : f32 to vector<256x1xf32>
    %78 = arith.mulf %76, %77 : vector<256x1xf32>
    %79 = vector.broadcast %78 : vector<256x1xf32> to vector<256x128xf32>
    %80 = arith.subf %72, %79 : vector<256x128xf32>
    %81 = arith.mulf %80, %80 : vector<256x128xf32>
    %cst_43 = arith.constant dense<0.000000e+00> : vector<256xf32>
    %82 = vector.multi_reduction <add>, %81, %cst_43 [1] : vector<256x128xf32> to vector<256xf32>
    %83 = vector.shape_cast %82 : vector<256xf32> to vector<256x1xf32>
    %cst_44 = arith.constant 7.812500e-03 : f32
    %84 = vector.broadcast %cst_44 : f32 to vector<256x1xf32>
    %85 = arith.mulf %83, %84 : vector<256x1xf32>
    %cst_45 = arith.constant 9.99999974E-6 : f32
    %86 = vector.broadcast %cst_45 : f32 to vector<256x1xf32>
    %87 = arith.addf %85, %86 : vector<256x1xf32>
    %88 = math.rsqrt %87 : vector<256x1xf32>
    %89 = vector.broadcast %88 : vector<256x1xf32> to vector<256x128xf32>
    %90 = arith.mulf %80, %89 : vector<256x128xf32>
    %91 = vector.broadcast %73 : vector<1x128xf32> to vector<256x128xf32>
    %92 = arith.mulf %90, %91 : vector<256x128xf32>
    %93 = vector.broadcast %74 : vector<1x128xf32> to vector<256x128xf32>
    %94 = arith.addf %92, %93 : vector<256x128xf32>
    %95 = vector.shape_cast %94 : vector<256x128xf32> to vector<2x128x128xf32>
    %c0_46 = arith.constant 0 : index
    %c0_47 = arith.constant 0 : index
    %c0_48 = arith.constant 0 : index
    %96 = vector.load %arg14[%c0_46, %c0_47, %c0_48] : memref<2x128x128xf32, #tpu.memory_space<vmem>>, vector<2x128x128xf32>
    tpu.vector_store %arg14[%c0_46, %c0_47, %c0_48], %95 {strides = array<i32>} : memref<2x128x128xf32, #tpu.memory_space<vmem>>, vector<2x128x128xf32>,
    return
  }
  func.func @transform_0(%arg0: i32) -> (i32, i32, i32) {
    %c0_i32 = arith.constant 0 : i32
    %c0_i32_0 = arith.constant 0 : i32
    %c0_i32_1 = arith.constant 0 : i32
    return %arg0, %c0_i32, %c0_i32_0 : i32, i32, i32
  }
  func.func @transform_1(%arg0: i32) -> (i32, i32, i32) {
    %c0_i32 = arith.constant 0 : i32
    %c0_i32_0 = arith.constant 0 : i32
    %c0_i32_1 = arith.constant 0 : i32
    return %arg0, %c0_i32, %c0_i32_0 : i32, i32, i32
  }
  func.func @transform_2(%arg0: i32) -> (i32, i32, i32) {
    %c0_i32 = arith.constant 0 : i32
    %c0_i32_0 = arith.constant 0 : i32
    %c0_i32_1 = arith.constant 0 : i32
    return %arg0, %c0_i32, %c0_i32_0 : i32, i32, i32
  }
  func.func @transform_3(%arg0: i32) -> (i32, i32) {
    %c0_i32 = arith.constant 0 : i32
    %c0_i32_0 = arith.constant 0 : i32
    %c0_i32_1 = arith.constant 0 : i32
    return %c0_i32, %c0_i32_0 : i32, i32
  }
  func.func @transform_4(%arg0: i32) -> (i32, i32) {
    %c0_i32 = arith.constant 0 : i32
    %c0_i32_0 = arith.constant 0 : i32
    %c0_i32_1 = arith.constant 0 : i32
    return %c0_i32, %c0_i32_0 : i32, i32
  }
  func.func @transform_5(%arg0: i32) -> (i32, i32) {
    %c0_i32 = arith.constant 0 : i32
    %c0_i32_0 = arith.constant 0 : i32
    %c0_i32_1 = arith.constant 0 : i32
    return %c0_i32, %c0_i32_0 : i32, i32
  }
  func.func @transform_6(%arg0: i32) -> (i32, i32) {
    %c0_i32 = arith.constant 0 : i32
    %c0_i32_0 = arith.constant 0 : i32
    %c0_i32_1 = arith.constant 0 : i32
    return %c0_i32, %c0_i32_0 : i32, i32
  }
  func.func @transform_7(%arg0: i32) -> (i32, i32) {
    %c0_i32 = arith.constant 0 : i32
    %c0_i32_0 = arith.constant 0 : i32
    %c0_i32_1 = arith.constant 0 : i32
    return %c0_i32, %c0_i32_0 : i32, i32
  }
  func.func @transform_8(%arg0: i32) -> (i32, i32) {
    %c0_i32 = arith.constant 0 : i32
    %c0_i32_0 = arith.constant 0 : i32
    %c0_i32_1 = arith.constant 0 : i32
    return %c0_i32, %c0_i32_0 : i32, i32
  }
  func.func @transform_9(%arg0: i32) -> (i32, i32) {
    %c0_i32 = arith.constant 0 : i32
    %c0_i32_0 = arith.constant 0 : i32
    %c0_i32_1 = arith.constant 0 : i32
    return %c0_i32, %c0_i32_0 : i32, i32
  }
  func.func @transform_10(%arg0: i32) -> (i32, i32) {
    %c0_i32 = arith.constant 0 : i32
    %c0_i32_0 = arith.constant 0 : i32
    %c0_i32_1 = arith.constant 0 : i32
    return %c0_i32, %c0_i32_0 : i32, i32
  }
  func.func @transform_11(%arg0: i32) -> (i32, i32) {
    %c0_i32 = arith.constant 0 : i32
    %c0_i32_0 = arith.constant 0 : i32
    %c0_i32_1 = arith.constant 0 : i32
    return %c0_i32, %c0_i32_0 : i32, i32
  }
  func.func @transform_12(%arg0: i32) -> (i32, i32) {
    %c0_i32 = arith.constant 0 : i32
    %c0_i32_0 = arith.constant 0 : i32
    %c0_i32_1 = arith.constant 0 : i32
    return %c0_i32, %c0_i32_0 : i32, i32
  }
  func.func @transform_13(%arg0: i32) -> (i32, i32, i32) {
    %c0_i32 = arith.constant 0 : i32
    %c0_i32_0 = arith.constant 0 : i32
    %c0_i32_1 = arith.constant 0 : i32
    return %arg0, %c0_i32, %c0_i32_0 : i32, i32, i32
  }
}

</mosaic_0001>

<bundles_post_ra>
// kernel: tpu_custom_call.1
= control target key start
LH: loop header
LB: loop body
LE: loop exit
PB: predicated region body
PF: predicated region fallthrough
CT: control target
= control target key end

     0   :  { %18 = vsyncpa [#allocation3], 0  ;;  %s5866_s0 = inlined_call_operand.hbm [shape: f32[2,128,128], index: 0, kind: input, shape index: {}]   ;;  %s5867_s1 = inlined_call_operand.hbm [shape: bf16[2,128,128], index: 1, kind: input, shape index: {}]   ;;  %s5868_s2 = inlined_call_operand.hbm [shape: bf16[2,128,128], index: 2, kind: input, shape index: {}]   ;;  %s5869_s3 = inlined_call_operand.hbm [shape: bf16[128,256], index: 3, kind: input, shape index: {}]   ;;  %s5870_s4 = inlined_call_operand.vmem [shape: f32[1,128], index: 4, kind: input, shape index: {}]   ;;  %s5871_s5 = inlined_call_operand.hbm [shape: bf16[128,256], index: 5, kind: input, shape index: {}]   ;;  %s5872_s6 = inlined_call_operand.vmem [shape: f32[1,256], index: 6, kind: input, shape index: {}]   ;;  %s5873_s7 = inlined_call_operand.hbm [shape: bf16[256,128], index: 7, kind: input, shape index: {}]   ;;  %s5874_s8 = inlined_call_operand.vmem [shape: f32[1,128], index: 8, kind: input, shape index: {}]   ;;  %s5875_s9 = inlined_call_operand.vmem [shape: f32[1,128], index: 9, kind: input, shape index: {}]   ;;  %s5876_s10 = inlined_call_operand.vmem [shape: f32[1,128], index: 10, kind: input, shape index: {}]   ;;  %s5877_s11 = inlined_call_operand.vmem [shape: f32[1,128], index: 11, kind: input, shape index: {}]   ;;  %s5878_s12 = inlined_call_operand.vmem [shape: f32[1,128], index: 12, kind: input, shape index: {}]   ;;  %s5879_s13 = inlined_call_operand.hbm [shape: f32[2,128,128], index: 13, kind: output, shape index: {}]  }
   0x1   :  { %19 = vsyncpa [#allocation6], 0 }
   0x2   :  { %20 = vsyncpa [#allocation9], 0 }
   0x3   :  { %21 = vsyncpa [#allocation12], 0 }
   0x4   :  { %22 = vsyncpa [#allocation4], 0  ;;  %s4230_s25 = smov [#allocation5]   ;;  %s4066_s29 = scalar_lea.hbm %s5867_s1, 2048 }
   0x5   :  { %s40_s26 = sshll.u32 %s4230_s25, 4  ;;  %p4067_p0 = scmp.ne.s32.totalorder %s5867_s1, %s4066_s29  ;;  %s41_s26 = int_to_ptr.vmem [resolvable:$true] %s40_s26 }
   0x6   :  { %p4070_p1 = scmp.lt.u32.totalorder %s4066_s29, %s5867_s1 }
   0x8   :  { %p4072_p2 = pnand %p4070_p1, %p4067_p0 }
   0xa   :  { %4075 = shalt.err (!%p4072_p2)
}
   0xb   :  { %s4076_s17 = scalar_lea.vmem %s41_s26, 2048  ;;  %p4081_p4 = scmp.lt.s32.totalorder %s41_s26, %s41_s26 }
   0xc   :  { %p4077_p3 = scmp.ne.s32.totalorder %s41_s26, %s4076_s17  ;;  %p4082_p5 = scmp.lt.s32.totalorder %s4076_s17, %s4076_s17 }
   0xe   :  { %p4083_p6 = por %p4082_p5, %p4081_p4 }
  0x10   :  { %p4084_p7 = pnand %p4083_p6, %p4077_p3 }
  0x12   :  { %4087 = shalt.err (!%p4084_p7)
}
  0x13   :  { %s4231_s18 = smov 64   ;;  %s4232_s19 = smov 4  }
  0x14   :  { %46 = dma.hbm_to_vmem [thread:$0]  %s5867_s1, 2048, %s41_s26, [#allocation6], %s4231_s18, %s4231_s18, %s4232_s19  }
  0x15   :  { %s4233_s22 = smov [#allocation8]   ;;  %s4234_s24 = smov [#allocation2]  }
  0x16   :  { %s64_s23 = sshll.u32 %s4233_s22, 4  ;;  %s28_s25 = sshll.u32 %s4234_s24, 4  ;;  %s65_s23 = int_to_ptr.vmem [resolvable:$true] %s64_s23  ;;  %s29_s25 = int_to_ptr.vmem [resolvable:$true] %s28_s25 }
  0x17   :  { %s4088_s29 = scalar_lea.hbm %s5869_s3, 2048 }
  0x18   :  { %p4089_p8 = scmp.ne.s32.totalorder %s5869_s3, %s4088_s29  ;;  %p4092_p9 = scmp.lt.u32.totalorder %s4088_s29, %s5869_s3 }
  0x1a   :  { %p4094_p10 = pnand %p4092_p9, %p4089_p8 }
  0x1c   :  { %4097 = shalt.err (!%p4094_p10)
}
  0x1d   :  { %s4098_s1 = scalar_lea.vmem %s65_s23, 2048  ;;  %p4103_p12 = scmp.lt.s32.totalorder %s65_s23, %s65_s23 }
  0x1e   :  { %p4099_p11 = scmp.ne.s32.totalorder %s65_s23, %s4098_s1  ;;  %p4104_p13 = scmp.lt.s32.totalorder %s4098_s1, %s4098_s1 }
  0x20   :  { %p4105_p0 = por %p4104_p13, %p4103_p12 }
  0x22   :  { %p4106_p1 = pnand %p4105_p0, %p4099_p11 }
  0x24   :  { %4109 = shalt.err (!%p4106_p1)
}
  0x25   :  { %s4235_s26 = smov 128   ;;  %s4236_s17 = smov 8  }
  0x26   :  { %70 = dma.hbm_to_vmem [thread:$0]  %s5869_s3, 2048, %s65_s23, [#allocation9], %s4235_s26, %s4235_s26, %s4236_s17  }
  0x27   :  { %s4110_s27 = scalar_lea.hbm %s5866_s0, 4096 }
  0x28   :  { %p4111_p2 = scmp.ne.s32.totalorder %s5866_s0, %s4110_s27  ;;  %p4114_p3 = scmp.lt.u32.totalorder %s4110_s27, %s5866_s0 }
  0x2a   :  { %p4116_p4 = pnand %p4114_p3, %p4111_p2 }
  0x2c   :  { %4119 = shalt.err (!%p4116_p4)
}
  0x2d   :  { %s4120_s15 = scalar_lea.vmem %s29_s25, 4096  ;;  %p4125_p6 = scmp.lt.s32.totalorder %s29_s25, %s29_s25 }
  0x2e   :  { %p4121_p5 = scmp.ne.s32.totalorder %s29_s25, %s4120_s15  ;;  %p4126_p7 = scmp.lt.s32.totalorder %s4120_s15, %s4120_s15 }
  0x30   :  { %p4127_p8 = por %p4126_p7, %p4125_p6 }
  0x32   :  { %p4128_p9 = pnand %p4127_p8, %p4121_p5 }
  0x34   :  { %4131 = shalt.err (!%p4128_p9)
}
  0x35   :  { %34 = dma.hbm_to_vmem [thread:$0]  %s5866_s0, 4096, %s29_s25, [#allocation3], %s4235_s26, %s4235_s26, %s4236_s17  }
  0x36   :  { %s4237_s16 = smov [#allocation7]   ;;  %s4238_s20 = smov [#allocation10]  }
  0x37   :  { %s52_s1 = sshll.u32 %s4237_s16, 4  ;;  %s78_s21 = sshll.u32 %s4238_s20, 4  ;;  %s53_s1 = int_to_ptr.vmem [resolvable:$true] %s52_s1  ;;  %s79_s21 = int_to_ptr.vmem [resolvable:$true] %s78_s21 }
  0x38   :  { %s4132_s27 = scalar_lea.hbm %s5868_s2, 2048 }
  0x39   :  { %p4133_p10 = scmp.ne.s32.totalorder %s5868_s2, %s4132_s27  ;;  %p4136_p11 = scmp.lt.u32.totalorder %s4132_s27, %s5868_s2 }
  0x3b   :  { %p4138_p12 = pnand %p4136_p11, %p4133_p10 }
  0x3d   :  { %4141 = shalt.err (!%p4138_p12)
}
  0x3e   :  { %s4142_s0 = scalar_lea.vmem %s53_s1, 2048  ;;  %p4147_p0 = scmp.lt.s32.totalorder %s53_s1, %s53_s1 }
  0x3f   :  { %p4143_p13 = scmp.ne.s32.totalorder %s53_s1, %s4142_s0  ;;  %p4148_p1 = scmp.lt.s32.totalorder %s4142_s0, %s4142_s0 }
  0x41   :  { %p4149_p2 = por %p4148_p1, %p4147_p0 }
  0x43   :  { %p4150_p3 = pnand %p4149_p2, %p4143_p13 }
  0x45   :  { %4153 = shalt.err (!%p4150_p3)
}
  0x46   :  { %58 = dma.hbm_to_vmem [thread:$0]  %s5868_s2, 2048, %s53_s1, [#allocation6], %s4231_s18, %s4231_s18, %s4232_s19  }
  0x47   :  { %s4154_s16 = scalar_lea.hbm %s5871_s5, 2048 }
  0x48   :  { %p4155_p4 = scmp.ne.s32.totalorder %s5871_s5, %s4154_s16  ;;  %p4158_p5 = scmp.lt.u32.totalorder %s4154_s16, %s5871_s5 }
  0x4a   :  { %p4160_p6 = pnand %p4158_p5, %p4155_p4 }
  0x4c   :  { %4163 = shalt.err (!%p4160_p6)
}
  0x4d   :  { %s4164_s28 = scalar_lea.vmem %s79_s21, 2048  ;;  %p4169_p8 = scmp.lt.s32.totalorder %s79_s21, %s79_s21 }
  0x4e   :  { %p4165_p7 = scmp.ne.s32.totalorder %s79_s21, %s4164_s28  ;;  %p4170_p9 = scmp.lt.s32.totalorder %s4164_s28, %s4164_s28 }
  0x50   :  { %p4171_p10 = por %p4170_p9, %p4169_p8 }
  0x52   :  { %p4172_p11 = pnand %p4171_p10, %p4165_p7 }
  0x54   :  { %4175 = shalt.err (!%p4172_p11)
}
  0x55   :  { %84 = dma.hbm_to_vmem [thread:$0]  %s5871_s5, 2048, %s79_s21, [#allocation9], %s4235_s26, %s4235_s26, %s4236_s17  }
  0x56   :  { %s4239_s29 = smov [#allocation11]   ;;  %s4176_s25 = scalar_lea.hbm %s5873_s7, 2048 }
  0x57   :  { %s92_s30 = sshll.u32 %s4239_s29, 4  ;;  %p4177_p12 = scmp.ne.s32.totalorder %s5873_s7, %s4176_s25  ;;  %s93_s30 = int_to_ptr.vmem [resolvable:$true] %s92_s30 }
  0x58   :  { %p4180_p13 = scmp.lt.u32.totalorder %s4176_s25, %s5873_s7 }
  0x5a   :  { %p4182_p0 = pnand %p4180_p13, %p4177_p12 }
  0x5c   :  { %4185 = shalt.err (!%p4182_p0)
}
  0x5d   :  { %s4186_s20 = scalar_lea.vmem %s93_s30, 2048  ;;  %p4191_p2 = scmp.lt.s32.totalorder %s93_s30, %s93_s30 }
  0x5e   :  { %p4187_p1 = scmp.ne.s32.totalorder %s93_s30, %s4186_s20  ;;  %p4192_p3 = scmp.lt.s32.totalorder %s4186_s20, %s4186_s20 }
  0x60   :  { %p4193_p4 = por %p4192_p3, %p4191_p2 }
  0x62   :  { %p4194_p5 = pnand %p4193_p4, %p4187_p1 }
  0x64   :  { %4197 = shalt.err (!%p4194_p5)
}
  0x65   :  { %98 = dma.hbm_to_vmem [thread:$0]  %s5873_s7, 2048, %s93_s30, [#allocation12], %s4231_s18, %s4231_s18, %s4232_s19  }
  0x66   :  { %4220 = dma.done.wait [#allocation3], 4096  }
  0x67   :  { %4221 = vsyncadd [#allocation3], 4294963200 }
  0x68   :  { %4222 = dma.done.wait [#allocation6], 4096  }
  0x69   :  { %4223 = vsyncadd [#allocation6], 4294963200 }
  0x6a   :  { %4224 = dma.done.wait [#allocation9], 4096  }
  0x6b   :  { %4225 = vsyncadd [#allocation9], 4294963200 }
  0x6c   :  { %4226 = dma.done.wait [#allocation12], 2048  }
  0x6d   :  { %4227 = vsyncadd [#allocation12], 4294965248  ;;  %v5880_v0 = vmov 0   ;;  %v3730_v1 = vld [vmem:[#allocation8 + $0x4] ss:$8 sps:$4 sm:$0xff]   ;;  %v130_v25 = vld [vmem:[#allocation2 + $0x10] sm:$0xff] }
  0x6e   :  { %400 = vmatprep.mubr.bf16.mxu0 %v5880_v0  ;;  %v3732_v2 = vld [vmem:[#allocation8] ss:$8 sps:$4 sm:$0xff]   ;;  %368 = vmatprep.subr.bf16.mxu0 %v3730_v1  ;;  %v3733_v3 = vld [vmem:[#allocation8 + $0x14] ss:$8 sps:$4 sm:$0xff]   ;;  %v3735_v4 = vld [vmem:[#allocation8 + $0x10] ss:$8 sps:$4 sm:$0xff]  }
  0x6f   :  { %369 = vmatpush1.bf16.msra.mxu0 %v3732_v2  ;;  %v3736_v5 = vld [vmem:[#allocation8 + $0x24] ss:$8 sps:$4 sm:$0xff]   ;;  %v3738_v6 = vld [vmem:[#allocation8 + $0x20] ss:$8 sps:$4 sm:$0xff]   ;;  %v3739_v7 = vld [vmem:[#allocation8 + $0x34] ss:$8 sps:$4 sm:$0xff]  }
  0x70   :  { %370 = vmatprep.subr.bf16.mxu0 %v3733_v3  ;;  %v3741_v8 = vld [vmem:[#allocation8 + $0x30] ss:$8 sps:$4 sm:$0xff]   ;;  %v3742_v9 = vld [vmem:[#allocation8 + $0x44] ss:$8 sps:$4 sm:$0xff]   ;;  %v3744_v10 = vld [vmem:[#allocation8 + $0x40] ss:$8 sps:$4 sm:$0xff]  }
  0x71   :  { %v3745_v11 = vld [vmem:[#allocation8 + $0x54] ss:$8 sps:$4 sm:$0xff]   ;;  %v3747_v12 = vld [vmem:[#allocation8 + $0x50] ss:$8 sps:$4 sm:$0xff]   ;;  %v3336_v13 = vld [vmem:[#allocation5] sm:$0xff]  }
  0x72   :  { %v3748_v14 = vld [vmem:[#allocation8 + $0x64] ss:$8 sps:$4 sm:$0xff]   ;;  %v3337_v15 = vunpack.c.l.bf16 %v3336_v13  ;;  %v3338_v16 = vunpack.c.h.bf16 %v3336_v13  ;;  %v3750_v17 = vld [vmem:[#allocation8 + $0x60] ss:$8 sps:$4 sm:$0xff]   ;;  %v3751_v20 = vld [vmem:[#allocation8 + $0x74] ss:$8 sps:$4 sm:$0xff]  }
  0x73   :  { %371 = vmatpush1.bf16.msra.mxu0 %v3735_v4  ;;  %v128_v18 = vld [vmem:[#allocation2] sm:$0xff]  ;;  %v129_v19 = vld [vmem:[#allocation2 + $0x8] sm:$0xff]  ;;  %v3753_v21 = vld [vmem:[#allocation8 + $0x70] ss:$8 sps:$4 sm:$0xff]  }
  0x74   :  { %372 = vmatprep.subr.bf16.mxu0 %v3736_v5  ;;  %v4403_v22 = vadd.f32 %v3337_v15, %v128_v18  ;;  %v4405_v23 = vadd.f32 %v3338_v16, %v129_v19  ;;  %v3399_v24 = vld [vmem:[#allocation5 + $0x8] sm:$0xff]   ;;  %v131_v26 = vld [vmem:[#allocation2 + $0x18] sm:$0xff]  ;;  %v3400_v30 = vld [vmem:[#allocation5 + $0x10] sm:$0xff]  }
  0x75   :  { %v3341_v28 = vunpack.c.l.bf16 %v3399_v24  ;;  %v3342_v29 = vunpack.c.h.bf16 %v3399_v24  ;;  %v132_v33 = vld [vmem:[#allocation2 + $0x20] sm:$0xff]  ;;  %v133_v34 = vld [vmem:[#allocation2 + $0x28] sm:$0xff]  ;;  %v3345_v36 = vunpack.c.l.bf16 %v3400_v30  ;;  %v3346_v37 = vunpack.c.h.bf16 %v3400_v30  ;;  %v3401_v38 = vld [vmem:[#allocation5 + $0x18] sm:$0xff]  }
  0x76   :  { %v256_v27 = vpack.c.bf16 %v4405_v23, %v4403_v22  ;;  %v134_v41 = vld [vmem:[#allocation2 + $0x30] sm:$0xff]  ;;  %v135_v42 = vld [vmem:[#allocation2 + $0x38] sm:$0xff]  ;;  %v3349_v44 = vunpack.c.l.bf16 %v3401_v38  ;;  %v3350_v45 = vunpack.c.h.bf16 %v3401_v38  ;;  %v3402_v46 = vld [vmem:[#allocation5 + $0x20] sm:$0xff]  }
  0x77   :  { %373 = vmatpush1.bf16.msra.mxu0 %v3738_v6  ;;  %v4409_v31 = vadd.f32 %v3341_v28, %v130_v25  ;;  %v4411_v32 = vadd.f32 %v3342_v29, %v131_v26  ;;  %v4416_v39 = vadd.f32 %v3345_v36, %v132_v33  ;;  %v4418_v40 = vadd.f32 %v3346_v37, %v133_v34  ;;  %v136_v52 = vld [vmem:[#allocation2 + $0x40] sm:$0xff]  ;;  %v137_v53 = vld [vmem:[#allocation2 + $0x48] sm:$0xff]  ;;  %v138_v60 = vld [vmem:[#allocation2 + $0x50] sm:$0xff] }
  0x78   :  { %374 = vmatprep.subr.bf16.mxu0 %v3739_v7  ;;  %v4423_v47 = vadd.f32 %v3349_v44, %v134_v41  ;;  %v4425_v48 = vadd.f32 %v3350_v45, %v135_v42  ;;  %v3353_v50 = vunpack.c.l.bf16 %v3402_v46  ;;  %v3354_v51 = vunpack.c.h.bf16 %v3402_v46  ;;  %v3403_v56 = vld [vmem:[#allocation5 + $0x28] sm:$0xff]   ;;  %v139_v61 = vld [vmem:[#allocation2 + $0x58] sm:$0xff]  ;;  %v3404_v1 = vld [vmem:[#allocation5 + $0x30] sm:$0xff]  }
  0x79   :  { %v257_v35 = vpack.c.bf16 %v4411_v32, %v4409_v31  ;;  %v258_v43 = vpack.c.bf16 %v4418_v40, %v4416_v39  ;;  %v3357_v58 = vunpack.c.l.bf16 %v3403_v56  ;;  %v3358_v59 = vunpack.c.h.bf16 %v3403_v56  ;;  %v140_v5 = vld [vmem:[#allocation2 + $0x60] sm:$0xff]  ;;  %v141_v6 = vld [vmem:[#allocation2 + $0x68] sm:$0xff]  ;;  %v142_v13 = vld [vmem:[#allocation2 + $0x70] sm:$0xff] }
  0x7a   :  { %v259_v49 = vpack.c.bf16 %v4425_v48, %v4423_v47  ;;  %v4430_v54 = vadd.f32 %v3353_v50, %v136_v52  ;;  %v4432_v55 = vadd.f32 %v3354_v51, %v137_v53  ;;  %v3361_v3 = vunpack.c.l.bf16 %v3404_v1  ;;  %v145_v24 = vld [vmem:[#allocation2 + $0x88] sm:$0xff]  ;;  %v146_v33 = vld [vmem:[#allocation2 + $0x90] sm:$0xff]  ;;  %v147_v34 = vld [vmem:[#allocation2 + $0x98] sm:$0xff] }
  0x7b   :  { %375 = vmatpush1.bf16.msra.mxu0 %v3741_v8  ;;  %v4437_v62 = vadd.f32 %v3357_v58, %v138_v60  ;;  %v4439_v63 = vadd.f32 %v3358_v59, %v139_v61  ;;  %v3362_v4 = vunpack.c.h.bf16 %v3404_v1  ;;  %v3408_v37 = vld [vmem:[#allocation5 + $0x50] sm:$0xff]   ;;  %v149_v44 = vld [vmem:[#allocation2 + $0xa8] sm:$0xff]  ;;  %v151_v56 = vld [vmem:[#allocation2 + $0xb8] sm:$0xff] }
  0x7c   :  { %376 = vmatprep.subr.bf16.mxu0 %v3742_v9  ;;  %v260_v57 = vpack.c.bf16 %v4432_v55, %v4430_v54  ;;  %v4444_v7 = vadd.f32 %v3361_v3, %v140_v5  ;;  %v3405_v9 = vld [vmem:[#allocation5 + $0x38] sm:$0xff]   ;;  %v3377_v41 = vunpack.c.l.bf16 %v3408_v37  ;;  %v3378_v42 = vunpack.c.h.bf16 %v3408_v37  ;;  %v150_v53 = vld [vmem:[#allocation2 + $0xb0] sm:$0xff]  ;;  %v3410_v59 = vld [vmem:[#allocation5 + $0x60] sm:$0xff]  }
  0x7d   :  { %v261_v2 = vpack.c.bf16 %v4439_v63, %v4437_v62  ;;  %v4446_v8 = vadd.f32 %v3362_v4, %v141_v6  ;;  %v3385_v61 = vunpack.c.l.bf16 %v3410_v59  ;;  %v3386_v1 = vunpack.c.h.bf16 %v3410_v59  ;;  %v153_v3 = vld [vmem:[#allocation2 + $0xc8] sm:$0xff] }
  0x7e   :  { %v4474_v46 = vadd.f32 %v3378_v42, %v149_v44  ;;  %v3411_v6 = vld [vmem:[#allocation5 + $0x68] sm:$0xff]  }
  0x7f   :  { %377 = vmatpush1.bf16.msra.mxu0 %v3744_v10  ;;  %v262_v10 = vpack.c.bf16 %v4446_v8, %v4444_v7  ;;  %v4488_v5 = vadd.f32 %v3386_v1, %v153_v3 }
  0x80   :  { %378 = vmatprep.subr.bf16.mxu0 %v3745_v11  ;;  %v3365_v11 = vunpack.c.l.bf16 %v3405_v9  ;;  %5901 = vst [vmem:[#allocation23_spill] sm:$0xff] %v4474_v46 }
  0x81   :  { %5905 = vst [vmem:[#allocation27_spill] sm:$0xff] %v4488_v5 }
  0x82   :  { %v4451_v15 = vadd.f32 %v3365_v11, %v142_v13  ;;  %v3390_v11 = vunpack.c.h.bf16 %v3411_v6  ;;  %v155_v13 = vld [vmem:[#allocation2 + $0xd8] sm:$0xff] }
  0x83   :  { %379 = vmatpush1.bf16.msra.mxu0 %v3747_v12  ;;  %v3366_v12 = vunpack.c.h.bf16 %v3405_v9 }
  0x84   :  { %380 = vmatprep.subr.bf16.mxu0 %v3748_v14  ;;  %v143_v14 = vld [vmem:[#allocation2 + $0x78] sm:$0xff] }
  0x85   :  { %v4453_v16 = vadd.f32 %v3366_v12, %v143_v14  ;;  %v154_v12 = vld [vmem:[#allocation2 + $0xd0] sm:$0xff] }
  0x87   :  { %381 = vmatpush1.bf16.msra.mxu0 %v3750_v17  ;;  %v3406_v17 = vld [vmem:[#allocation5 + $0x40] sm:$0xff]   ;;  %v263_v18 = vpack.c.bf16 %v4453_v16, %v4451_v15 }
  0x88   :  { %382 = vmatprep.subr.bf16.mxu0 %v3751_v20  ;;  %v3369_v19 = vunpack.c.l.bf16 %v3406_v17  ;;  %v3370_v20 = vunpack.c.h.bf16 %v3406_v17  ;;  %v4495_v17 = vadd.f32 %v3390_v11, %v155_v13 }
  0x8a   :  { %v4460_v26 = vadd.f32 %v3370_v20, %v145_v24  ;;  %5907 = vst [vmem:[#allocation29_spill] sm:$0xff] %v4495_v17  ;;  %v156_v24 = vld [vmem:[#allocation2 + $0xe0] sm:$0xff] }
  0x8b   :  { %383 = vmatpush1.bf16.msra.mxu0 %v3753_v21  ;;  %v144_v21 = vld [vmem:[#allocation2 + $0x80] sm:$0xff] }
  0x8c   :  { %v4458_v25 = vadd.f32 %v3369_v19, %v144_v21  ;;  %5897 = vst [vmem:[#allocation19_spill] sm:$0xff] %v4460_v26 }
  0x8e   :  { %401 = vmatmul.mubr.bf16.vlgmr.msra.gmra.mrb[0].mxu0 %v256_v27  ;;  %v3407_v27 = vld [vmem:[#allocation5 + $0x48] sm:$0xff]   ;;  %v264_v28 = vpack.c.bf16 %v4460_v26, %v4458_v25 }
  0x8f   :  { %410 = vmatprep.mubr.bf16.mxu0 %v5880_v0  ;;  %v3373_v29 = vunpack.c.l.bf16 %v3407_v27  ;;  %v3374_v30 = vunpack.c.h.bf16 %v3407_v27  ;;  %v157_v27 = vld [vmem:[#allocation2 + $0xe8] sm:$0xff] }
  0x91   :  { %v4467_v36 = vadd.f32 %v3374_v30, %v147_v34  ;;  %v3413_v30 = vld [vmem:[#allocation5 + $0x78] sm:$0xff]  }
  0x92   :  { %v3397_v34 = vunpack.c.l.bf16 %v3413_v30  ;;  %v3398_v37 = vunpack.c.h.bf16 %v3413_v30 }
  0x93   :  { %5899 = vst [vmem:[#allocation21_spill] sm:$0xff] %v4467_v36 }
  0x96   :  { %411 = vmatmul.mubr.bf16.gmra.mrb[4].mxu0 %v257_v35  ;;  %v4465_v35 = vadd.f32 %v3373_v29, %v146_v33 }
  0x97   :  { %420 = vmatprep.mubr.bf16.mxu0 %v5880_v0 }
  0x98   :  { %5898 = vst [vmem:[#allocation20_spill] sm:$0xff] %v4465_v35  ;;  %v265_v38 = vpack.c.bf16 %v4467_v36, %v4465_v35 }
  0x9e   :  { %421 = vmatmul.mubr.bf16.gmra.mrb[8].mxu0 %v258_v43  ;;  %v148_v43 = vld [vmem:[#allocation2 + $0xa0] sm:$0xff] }
  0x9f   :  { %430 = vmatprep.mubr.bf16.mxu0 %v5880_v0  ;;  %v4472_v45 = vadd.f32 %v3377_v41, %v148_v43  ;;  %v159_v41 = vld [vmem:[#allocation2 + $0xf8] sm:$0xff] }
  0xa0   :  { %v4509_v43 = vadd.f32 %v3398_v37, %v159_v41 }
  0xa1   :  { %5900 = vst [vmem:[#allocation22_spill] sm:$0xff] %v4472_v45  ;;  %v266_v50 = vpack.c.bf16 %v4474_v46, %v4472_v45 }
  0xa2   :  { %5911 = vst [vmem:[#allocation33_spill] sm:$0xff] %v4509_v43 }
  0xa6   :  { %431 = vmatmul.mubr.bf16.gmra.mrb[12].mxu0 %v259_v49  ;;  %v3409_v49 = vld [vmem:[#allocation5 + $0x58] sm:$0xff]  }
  0xa7   :  { %440 = vmatprep.mubr.bf16.mxu0 %v5880_v0  ;;  %v3381_v51 = vunpack.c.l.bf16 %v3409_v49  ;;  %v3382_v52 = vunpack.c.h.bf16 %v3409_v49 }
  0xa9   :  { %v4481_v58 = vadd.f32 %v3382_v52, %v151_v56 }
  0xab   :  { %5903 = vst [vmem:[#allocation25_spill] sm:$0xff] %v4481_v58 }
  0xae   :  { %441 = vmatmul.mubr.bf16.gmra.mrb[16].mxu0 %v260_v57  ;;  %v4479_v57 = vadd.f32 %v3381_v51, %v150_v53 }
  0xaf   :  { %450 = vmatprep.mubr.bf16.mxu0 %v5880_v0 }
  0xb0   :  { %5902 = vst [vmem:[#allocation24_spill] sm:$0xff] %v4479_v57  ;;  %v267_v60 = vpack.c.bf16 %v4481_v58, %v4479_v57 }
  0xb6   :  { %451 = vmatmul.mubr.bf16.gmra.mrb[20].mxu0 %v261_v2  ;;  %v152_v2 = vld [vmem:[#allocation2 + $0xc0] sm:$0xff] }
  0xb7   :  { %460 = vmatprep.mubr.bf16.mxu0 %v5880_v0  ;;  %v4486_v4 = vadd.f32 %v3385_v61, %v152_v2 }
  0xb9   :  { %5904 = vst [vmem:[#allocation26_spill] sm:$0xff] %v4486_v4  ;;  %v268_v9 = vpack.c.bf16 %v4488_v5, %v4486_v4 }
  0xbe   :  { %461 = vmatmul.mubr.bf16.gmra.mrb[24].mxu0 %v262_v10  ;;  %v3389_v10 = vunpack.c.l.bf16 %v3411_v6 }
  0xbf   :  { %470 = vmatprep.mubr.bf16.mxu0 %v5880_v0 }
  0xc0   :  { %v4493_v14 = vadd.f32 %v3389_v10, %v154_v12 }
  0xc2   :  { %5906 = vst [vmem:[#allocation28_spill] sm:$0xff] %v4493_v14  ;;  %v269_v19 = vpack.c.bf16 %v4495_v17, %v4493_v14  ;;  %v3759_v17 = vld [vmem:[#allocation7 + $0x28] sm:$0xff]   ;;  %v3760_v14 = vld [vmem:[#allocation7 + $0x30] sm:$0xff]  }
  0xc6   :  { %471 = vmatmul.mubr.bf16.gmra.mrb[28].mxu0 %v263_v18  ;;  %v3412_v18 = vld [vmem:[#allocation5 + $0x70] sm:$0xff]  }
  0xc7   :  { %480 = vmatprep.mubr.bf16.mxu0 %v5880_v0  ;;  %v3393_v20 = vunpack.c.l.bf16 %v3412_v18  ;;  %v3394_v21 = vunpack.c.h.bf16 %v3412_v18 }
  0xc9   :  { %v4502_v29 = vadd.f32 %v3394_v21, %v157_v27 }
  0xcb   :  { %5909 = vst [vmem:[#allocation31_spill] sm:$0xff] %v4502_v29 }
  0xce   :  { %481 = vmatmul.mubr.bf16.gmra.mrb[32].mxu0 %v264_v28  ;;  %v4500_v28 = vadd.f32 %v3393_v20, %v156_v24 }
  0xcf   :  { %490 = vmatprep.mubr.bf16.mxu0 %v5880_v0 }
  0xd0   :  { %5908 = vst [vmem:[#allocation30_spill] sm:$0xff] %v4500_v28  ;;  %v270_v33 = vpack.c.bf16 %v4502_v29, %v4500_v28  ;;  %v3757_v29 = vld [vmem:[#allocation7 + $0x18] sm:$0xff]   ;;  %v3758_v28 = vld [vmem:[#allocation7 + $0x20] sm:$0xff]  }
  0xd6   :  { %491 = vmatmul.mubr.bf16.gmra.mrb[36].mxu0 %v265_v38  ;;  %v158_v38 = vld [vmem:[#allocation2 + $0xf0] sm:$0xff] }
  0xd7   :  { %500 = vmatprep.mubr.bf16.mxu0 %v5880_v0  ;;  %v4507_v42 = vadd.f32 %v3397_v34, %v158_v38 }
  0xd9   :  { %5910 = vst [vmem:[#allocation32_spill] sm:$0xff] %v4507_v42  ;;  %v271_v44 = vpack.c.bf16 %v4509_v43, %v4507_v42  ;;  %v3756_v42 = vld [vmem:[#allocation7 + $0x10] sm:$0xff]  }
  0xde   :  { %501 = vmatmul.mubr.bf16.gmra.mrb[40].mxu0 %v266_v50  ;;  %v4517_v50 = vld [vmem:[%s5870_s4] ss:$0 sm:$0xff] }
  0xdf   :  { %510 = vmatprep.mubr.bf16.mxu0 %v5880_v0 }
  0xe6   :  { %511 = vmatmul.mubr.bf16.gmra.mrb[44].mxu0 %v267_v60 }
  0xe7   :  { %520 = vmatprep.mubr.bf16.mxu0 %v5880_v0 }
  0xee   :  { %521 = vmatmul.mubr.bf16.gmra.mrb[48].mxu0 %v268_v9 }
  0xef   :  { %530 = vmatprep.mubr.bf16.mxu0 %v5880_v0 }
  0xf6   :  { %531 = vmatmul.mubr.bf16.gmra.mrb[52].mxu0 %v269_v19 }
  0xf7   :  { %540 = vmatprep.mubr.bf16.mxu0 %v5880_v0 }
  0xfe   :  { %541 = vmatmul.mubr.bf16.gmra.mrb[56].mxu0 %v270_v33 }
  0xff   :  { %550 = vmatprep.mubr.bf16.mxu0 %v5880_v0 }
 0x106   :  { %551 = vmatmul.mubr.bf16.gmra.mrb[60].mxu0 %v271_v44 }
 0x161   :  { %v402_v49 = vpop.f32.mrb[0].mxu0 }
 0x162   :  { %v404_v51 = vpop.f32.mrb[1].mxu0  ;;  %v568_v53 = vadd.f32 %v4517_v50, %v402_v49 }
 0x163   :  { %v406_v52 = vpop.f32.mrb[2].mxu0 }
 0x164   :  { %v569_v56 = vadd.f32 %v4517_v50, %v406_v52  ;;  %v408_v59 = vpop.f32.mrb[3].mxu0 }
 0x165   :  { %v616_v60 = vpack.c.bf16 %v408_v59, %v404_v51 }
 0x166   :  { %v600_v61 = vpack.c.bf16 %v569_v56, %v568_v53 }
 0x167   :  { %3590 = vmatprep.subr.bf16.mxu1 %v616_v60 }
 0x168   :  { %3591 = vmatpush3.bf16.xpose.msra.mxu1 %v616_v60  ;;  %3606 = vmatprep.mubr.bf16.mxu1 %v600_v61 }
 0x169   :  { %v412_v1 = vpop.f32.mrb[4].mxu0 }
 0x16a   :  { %v414_v2 = vpop.f32.mrb[5].mxu0  ;;  %v4522_v6 = vadd.f32 %v4517_v50, %v412_v1 }
 0x16b   :  { %v416_v3 = vpop.f32.mrb[6].mxu0 }
 0x16c   :  { %v4525_v9 = vadd.f32 %v4517_v50, %v416_v3  ;;  %v418_v10 = vpop.f32.mrb[7].mxu0 }
 0x16d   :  { %v617_v11 = vpack.c.bf16 %v418_v10, %v414_v2 }
 0x16e   :  { %v601_v12 = vpack.c.bf16 %v4525_v9, %v4522_v6 }
 0x16f   :  { %3592 = vmatprep.subr.bf16.mxu1 %v617_v11 }
 0x170   :  { %3593 = vmatpush3.bf16.xpose.msra.mxu1 %v617_v11 }
 0x171   :  { %v422_v13 = vpop.f32.mrb[8].mxu0 }
 0x172   :  { %v424_v18 = vpop.f32.mrb[9].mxu0  ;;  %v4530_v20 = vadd.f32 %v4517_v50, %v422_v13 }
 0x173   :  { %v426_v19 = vpop.f32.mrb[10].mxu0 }
 0x174   :  { %v4533_v21 = vadd.f32 %v4517_v50, %v426_v19  ;;  %v428_v24 = vpop.f32.mrb[11].mxu0 }
 0x175   :  { %v618_v27 = vpack.c.bf16 %v428_v24, %v424_v18 }
 0x176   :  { %v602_v30 = vpack.c.bf16 %v4533_v21, %v4530_v20 }
 0x177   :  { %3594 = vmatprep.subr.bf16.mxu1 %v618_v27 }
 0x178   :  { %3595 = vmatpush3.bf16.xpose.msra.mxu1 %v618_v27 }
 0x179   :  { %v432_v33 = vpop.f32.mrb[12].mxu0 }
 0x17a   :  { %v434_v34 = vpop.f32.mrb[13].mxu0  ;;  %v4538_v38 = vadd.f32 %v4517_v50, %v432_v33 }
 0x17b   :  { %v436_v37 = vpop.f32.mrb[14].mxu0 }
 0x17c   :  { %v4541_v41 = vadd.f32 %v4517_v50, %v436_v37  ;;  %v438_v44 = vpop.f32.mrb[15].mxu0 }
 0x17d   :  { %v619_v49 = vpack.c.bf16 %v438_v44, %v434_v34 }
 0x17e   :  { %v603_v51 = vpack.c.bf16 %v4541_v41, %v4538_v38 }
 0x17f   :  { %3596 = vmatprep.subr.bf16.mxu1 %v619_v49 }
 0x180   :  { %3597 = vmatpush3.bf16.xpose.msra.mxu1 %v619_v49 }
 0x181   :  { %v442_v52 = vpop.f32.mrb[16].mxu0 }
 0x182   :  { %v444_v53 = vpop.f32.mrb[17].mxu0  ;;  %v576_v59 = vadd.f32 %v4517_v50, %v442_v52 }
 0x183   :  { %v446_v56 = vpop.f32.mrb[18].mxu0 }
 0x184   :  { %v577_v60 = vadd.f32 %v4517_v50, %v446_v56  ;;  %v448_v61 = vpop.f32.mrb[19].mxu0 }
 0x185   :  { %v620_v1 = vpack.c.bf16 %v448_v61, %v444_v53 }
 0x186   :  { %v604_v2 = vpack.c.bf16 %v577_v60, %v576_v59 }
 0x187   :  { %3598 = vmatprep.subr.bf16.mxu1 %v620_v1 }
 0x188   :  { %3599 = vmatpush3.bf16.xpose.msra.mxu1 %v620_v1 }
 0x189   :  { %v452_v3 = vpop.f32.mrb[20].mxu0 }
 0x18a   :  { %v454_v10 = vpop.f32.mrb[21].mxu0  ;;  %v578_v13 = vadd.f32 %v4517_v50, %v452_v3 }
 0x18b   :  { %v456_v11 = vpop.f32.mrb[22].mxu0 }
 0x18c   :  { %v579_v18 = vadd.f32 %v4517_v50, %v456_v11  ;;  %v458_v19 = vpop.f32.mrb[23].mxu0 }
 0x18d   :  { %v621_v20 = vpack.c.bf16 %v458_v19, %v454_v10 }
 0x18e   :  { %v605_v21 = vpack.c.bf16 %v579_v18, %v578_v13 }
 0x18f   :  { %3600 = vmatprep.subr.bf16.mxu1 %v621_v20 }
 0x190   :  { %3601 = vmatpush3.bf16.xpose.msra.mxu1 %v621_v20 }
 0x191   :  { %v462_v24 = vpop.f32.mrb[24].mxu0 }
 0x192   :  { %v464_v27 = vpop.f32.mrb[25].mxu0  ;;  %v580_v34 = vadd.f32 %v4517_v50, %v462_v24 }
 0x193   :  { %v466_v33 = vpop.f32.mrb[26].mxu0 }
 0x194   :  { %v581_v37 = vadd.f32 %v4517_v50, %v466_v33  ;;  %v468_v44 = vpop.f32.mrb[27].mxu0 }
 0x195   :  { %v622_v49 = vpack.c.bf16 %v468_v44, %v464_v27 }
 0x196   :  { %v606_v52 = vpack.c.bf16 %v581_v37, %v580_v34 }
 0x197   :  { %3602 = vmatprep.subr.bf16.mxu1 %v622_v49 }
 0x198   :  { %3603 = vmatpush3.bf16.xpose.msra.mxu1 %v622_v49 }
 0x199   :  { %v472_v53 = vpop.f32.mrb[28].mxu0 }
 0x19a   :  { %v474_v56 = vpop.f32.mrb[29].mxu0  ;;  %v582_v60 = vadd.f32 %v4517_v50, %v472_v53 }
 0x19b   :  { %v476_v59 = vpop.f32.mrb[30].mxu0 }
 0x19c   :  { %v583_v61 = vadd.f32 %v4517_v50, %v476_v59  ;;  %v478_v1 = vpop.f32.mrb[31].mxu0 }
 0x19d   :  { %v623_v3 = vpack.c.bf16 %v478_v1, %v474_v56 }
 0x19e   :  { %v607_v10 = vpack.c.bf16 %v583_v61, %v582_v60 }
 0x19f   :  { %3604 = vmatprep.subr.bf16.mxu1 %v623_v3 }
 0x1a0   :  { %3605 = vmatpush3.bf16.xpose.msra.mxu1 %v623_v3 }
 0x1a1   :  { %v482_v11 = vpop.f32.mrb[32].mxu0 }
 0x1a2   :  { %v584_v13 = vadd.f32 %v4517_v50, %v482_v11  ;;  %v484_v18 = vpop.f32.mrb[33].mxu0 }
 0x1a3   :  { %v486_v19 = vpop.f32.mrb[34].mxu0 }
 0x1a4   :  { %v585_v20 = vadd.f32 %v4517_v50, %v486_v19  ;;  %v488_v24 = vpop.f32.mrb[35].mxu0 }
 0x1a5   :  { %v624_v27 = vpack.c.bf16 %v488_v24, %v484_v18 }
 0x1a6   :  { %v608_v33 = vpack.c.bf16 %v585_v20, %v584_v13 }
 0x1a7   :  { %3607 = vmatmul.mubr.bf16.vlgmr.msra.gmra.mrb[0].mxu1 %v601_v12  ;;  %3622 = vmatprep.subr.bf16.mxu1 %v624_v27 }
 0x1a8   :  { %3610 = vmatprep.mubr.bf16.mxu1 %v602_v30  ;;  %3623 = vmatpush3.bf16.xpose.msra.mxu1 %v624_v27 }
 0x1a9   :  { %v492_v34 = vpop.f32.mrb[36].mxu0 }
 0x1aa   :  { %v4559_v37 = vadd.f32 %v4517_v50, %v492_v34  ;;  %v494_v44 = vpop.f32.mrb[37].mxu0 }
 0x1ab   :  { %v496_v49 = vpop.f32.mrb[38].mxu0 }
 0x1ac   :  { %v4562_v53 = vadd.f32 %v4517_v50, %v496_v49  ;;  %v498_v56 = vpop.f32.mrb[39].mxu0 }
 0x1ad   :  { %v625_v59 = vpack.c.bf16 %v498_v56, %v494_v44 }
 0x1ae   :  { %v609_v60 = vpack.c.bf16 %v4562_v53, %v4559_v37 }
 0x1af   :  { %3611 = vmatmul.mubr.bf16.gmra.mrb[4].mxu1 %v603_v51  ;;  %3624 = vmatprep.subr.bf16.mxu1 %v625_v59 }
 0x1b0   :  { %3614 = vmatprep.mubr.bf16.mxu1 %v604_v2  ;;  %3625 = vmatpush3.bf16.xpose.msra.mxu1 %v625_v59 }
 0x1b1   :  { %v502_v6 = vpop.f32.mrb[40].mxu0 }
 0x1b2   :  { %v4570_v9 = vadd.f32 %v4517_v50, %v502_v6  ;;  %v504_v12 = vpop.f32.mrb[41].mxu0 }
 0x1b3   :  { %v506_v30 = vpop.f32.mrb[42].mxu0 }
 0x1b4   :  { %v589_v61 = vadd.f32 %v4517_v50, %v506_v30  ;;  %v508_v1 = vpop.f32.mrb[43].mxu0 }
 0x1b5   :  { %v626_v3 = vpack.c.bf16 %v508_v1, %v504_v12 }
 0x1b6   :  { %v610_v11 = vpack.c.bf16 %v589_v61, %v4570_v9 }
 0x1b7   :  { %3615 = vmatmul.mubr.bf16.gmra.mrb[8].mxu1 %v605_v21  ;;  %3626 = vmatprep.subr.bf16.mxu1 %v626_v3 }
 0x1b8   :  { %3618 = vmatprep.mubr.bf16.mxu1 %v606_v52  ;;  %3627 = vmatpush3.bf16.xpose.msra.mxu1 %v626_v3 }
 0x1b9   :  { %v512_v38 = vpop.f32.mrb[44].mxu0 }
 0x1ba   :  { %v590_v41 = vadd.f32 %v4517_v50, %v512_v38  ;;  %v514_v51 = vpop.f32.mrb[45].mxu0 }
 0x1bb   :  { %v516_v2 = vpop.f32.mrb[46].mxu0 }
 0x1bc   :  { %v591_v13 = vadd.f32 %v4517_v50, %v516_v2  ;;  %v518_v18 = vpop.f32.mrb[47].mxu0 }
 0x1bd   :  { %v627_v19 = vpack.c.bf16 %v518_v18, %v514_v51 }
 0x1be   :  { %v611_v20 = vpack.c.bf16 %v591_v13, %v590_v41 }
 0x1bf   :  { %3619 = vmatmul.mubr.bf16.gmra.mrb[12].mxu1 %v607_v10  ;;  %3628 = vmatprep.subr.bf16.mxu1 %v627_v19 }
 0x1c0   :  { %3629 = vmatpush3.bf16.xpose.msra.mxu1 %v627_v19  ;;  %3638 = vmatprep.mubr.bf16.mxu1 %v608_v33 }
 0x1c1   :  { %v522_v24 = vpop.f32.mrb[48].mxu0 }
 0x1c2   :  { %v592_v21 = vadd.f32 %v4517_v50, %v522_v24  ;;  %v524_v27 = vpop.f32.mrb[49].mxu0 }
 0x1c3   :  { %v526_v52 = vpop.f32.mrb[50].mxu0 }
 0x1c4   :  { %v593_v34 = vadd.f32 %v4517_v50, %v526_v52  ;;  %v528_v44 = vpop.f32.mrb[51].mxu0 }
 0x1c5   :  { %v628_v49 = vpack.c.bf16 %v528_v44, %v524_v27 }
 0x1c6   :  { %v612_v56 = vpack.c.bf16 %v593_v34, %v592_v21 }
 0x1c7   :  { %3630 = vmatprep.subr.bf16.mxu1 %v628_v49 }
 0x1c8   :  { %3631 = vmatpush3.bf16.xpose.msra.mxu1 %v628_v49 }
 0x1c9   :  { %v532_v59 = vpop.f32.mrb[52].mxu0 }
 0x1ca   :  { %v594_v6 = vadd.f32 %v4517_v50, %v532_v59  ;;  %v534_v9 = vpop.f32.mrb[53].mxu0 }
 0x1cb   :  { %v536_v10 = vpop.f32.mrb[54].mxu0 }
 0x1cc   :  { %v595_v12 = vadd.f32 %v4517_v50, %v536_v10  ;;  %v538_v33 = vpop.f32.mrb[55].mxu0 }
 0x1cd   :  { %v629_v30 = vpack.c.bf16 %v538_v33, %v534_v9 }
 0x1ce   :  { %v613_v61 = vpack.c.bf16 %v595_v12, %v594_v6 }
 0x1cf   :  { %3632 = vmatprep.subr.bf16.mxu1 %v629_v30 }
 0x1d0   :  { %3633 = vmatpush3.bf16.xpose.msra.mxu1 %v629_v30 }
 0x1d1   :  { %v542_v1 = vpop.f32.mrb[56].mxu0 }
 0x1d2   :  { %v596_v3 = vadd.f32 %v4517_v50, %v542_v1  ;;  %v544_v38 = vpop.f32.mrb[57].mxu0 }
 0x1d3   :  { %v546_v41 = vpop.f32.mrb[58].mxu0 }
 0x1d4   :  { %v597_v51 = vadd.f32 %v4517_v50, %v546_v41  ;;  %v548_v2 = vpop.f32.mrb[59].mxu0 }
 0x1d5   :  { %v630_v13 = vpack.c.bf16 %v548_v2, %v544_v38 }
 0x1d6   :  { %v614_v18 = vpack.c.bf16 %v597_v51, %v596_v3  ;;  %v3754_v3 = vld [vmem:[#allocation7] sm:$0xff]  }
 0x1d7   :  { %3634 = vmatprep.subr.bf16.mxu1 %v630_v13  ;;  %3654 = vmatprep.subr.bf16.mxu0 %v3754_v3 }
 0x1d8   :  { %3635 = vmatpush3.bf16.xpose.msra.mxu1 %v630_v13  ;;  %3655 = vmatpush3.bf16.msra.mxu0 %v3754_v3 }
 0x1d9   :  { %v552_v19 = vpop.f32.mrb[60].mxu0 }
 0x1da   :  { %v598_v24 = vadd.f32 %v4517_v50, %v552_v19  ;;  %v554_v21 = vpop.f32.mrb[61].mxu0 }
 0x1db   :  { %v556_v27 = vpop.f32.mrb[62].mxu0 }
 0x1dc   :  { %v599_v52 = vadd.f32 %v4517_v50, %v556_v27  ;;  %v558_v34 = vpop.f32.mrb[63].mxu0 }
 0x1dd   :  { %v631_v44 = vpack.c.bf16 %v558_v34, %v554_v21 }
 0x1de   :  { %v615_v49 = vpack.c.bf16 %v599_v52, %v598_v24 }
 0x1df   :  { %3636 = vmatprep.subr.bf16.mxu1 %v631_v44 }
 0x1e0   :  { %3637 = vmatpush3.bf16.xpose.msra.mxu1 %v631_v44  ;;  %v3755_v44 = vld [vmem:[#allocation7 + $0x8] sm:$0xff]  }
 0x1e1   :  { %3656 = vmatprep.subr.bf16.mxu0 %v3755_v44 }
 0x1e2   :  { %3657 = vmatpush3.bf16.msra.mxu0 %v3755_v44 }
 0x1e3   :  { %3658 = vmatprep.subr.bf16.mxu0 %v3756_v42 }
 0x1e6   :  { %3659 = vmatpush3.bf16.msra.mxu0 %v3756_v42 }
 0x1e7   :  { %3639 = vmatmul.mubr.bf16.vlgmr.msra.gmra.mrb[16].mxu1 %v609_v60  ;;  %3660 = vmatprep.subr.bf16.mxu0 %v3757_v29 }
 0x1e8   :  { %3642 = vmatprep.mubr.bf16.mxu1 %v610_v11 }
 0x1ea   :  { %3661 = vmatpush3.bf16.msra.mxu0 %v3757_v29 }
 0x1eb   :  { %3662 = vmatprep.subr.bf16.mxu0 %v3758_v28 }
 0x1ee   :  { %3663 = vmatpush3.bf16.msra.mxu0 %v3758_v28 }
 0x1ef   :  { %3643 = vmatmul.mubr.bf16.gmra.mrb[20].mxu1 %v611_v20  ;;  %3664 = vmatprep.subr.bf16.mxu0 %v3759_v17 }
 0x1f0   :  { %3646 = vmatprep.mubr.bf16.mxu1 %v612_v56 }
 0x1f2   :  { %3665 = vmatpush3.bf16.msra.mxu0 %v3759_v17 }
 0x1f3   :  { %3666 = vmatprep.subr.bf16.mxu0 %v3760_v14 }
 0x1f6   :  { %3667 = vmatpush3.bf16.msra.mxu0 %v3760_v14 }
 0x1f7   :  { %3647 = vmatmul.mubr.bf16.gmra.mrb[24].mxu1 %v613_v61 }
 0x1f8   :  { %3650 = vmatprep.mubr.bf16.mxu1 %v614_v18 }
 0x1ff   :  { %3651 = vmatmul.mubr.bf16.gmra.mrb[28].mxu1 %v615_v49 }
 0x27a   :  { %v4587_v59 = vpop.f32.mrb[0].mxu1 }
 0x27b   :  { %830 = vmax.xlane.f32.xlu1 %v4587_v59  ;;  %v4590_v50 = vpop.f32.mrb[1].mxu1 }
 0x27c   :  { %826 = vmax.xlane.f32.xlu0 %v4590_v50  ;;  %v4593_v6 = vpop.f32.mrb[2].mxu1 }
 0x27d   :  { %v4595_v9 = vpop.f32.mrb[3].mxu1 }
 0x27f   :  { %832 = vmax.xlane.f32.xlu1 %v4593_v6 }
 0x280   :  { %828 = vmax.xlane.f32.xlu0 %v4595_v9 }
 0x282   :  { %v4599_v37 = vpop.f32.mrb[4].mxu1 }
 0x283   :  { %v4601_v53 = vpop.f32.mrb[5].mxu1 }
 0x284   :  { %834 = vmax.xlane.f32.xlu0 %v4601_v53  ;;  %v4604_v60 = vpop.f32.mrb[6].mxu1 }
 0x285   :  { %v4606_v11 = vpop.f32.mrb[7].mxu1 }
 0x286   :  { %836 = vmax.xlane.f32.xlu1 %v4606_v11 }
 0x288   :  { %838 = vmax.xlane.f32.xlu0 %v4599_v37 }
 0x28a   :  { %840 = vmax.xlane.f32.xlu1 %v4604_v60  ;;  %v4611_v20 = vpop.f32.mrb[8].mxu1 }
 0x28b   :  { %v4613_v56 = vpop.f32.mrb[9].mxu1 }
 0x28c   :  { %842 = vmax.xlane.f32.xlu0 %v4613_v56  ;;  %v4616_v10 = vpop.f32.mrb[10].mxu1 }
 0x28d   :  { %v4618_v12 = vpop.f32.mrb[11].mxu1 }
 0x28e   :  { %844 = vmax.xlane.f32.xlu1 %v4618_v12 }
 0x290   :  { %846 = vmax.xlane.f32.xlu0 %v4611_v20 }
 0x292   :  { %848 = vmax.xlane.f32.xlu1 %v4616_v10  ;;  %v4623_v33 = vpop.f32.mrb[12].mxu1 }
 0x293   :  { %v4625_v30 = vpop.f32.mrb[13].mxu1 }
 0x294   :  { %850 = vmax.xlane.f32.xlu0 %v4625_v30  ;;  %v4628_v61 = vpop.f32.mrb[14].mxu1 }
 0x295   :  { %v4630_v1 = vpop.f32.mrb[15].mxu1 }
 0x296   :  { %852 = vmax.xlane.f32.xlu1 %v4630_v1 }
 0x298   :  { %854 = vmax.xlane.f32.xlu0 %v4623_v33 }
 0x29a   :  { %856 = vmax.xlane.f32.xlu1 %v4628_v61 }
 0x2ba   :  { %v4635_v38 = vpop.f32.mrb[16].mxu1 }
 0x2bb   :  { %v4637_v41 = vpop.f32.mrb[17].mxu1 }
 0x2bc   :  { %858 = vmax.xlane.f32.xlu0 %v4637_v41  ;;  %v4640_v51 = vpop.f32.mrb[18].mxu1 }
 0x2bd   :  { %v4642_v2 = vpop.f32.mrb[19].mxu1 }
 0x2be   :  { %860 = vmax.xlane.f32.xlu1 %v4642_v2 }
 0x2c0   :  { %862 = vmax.xlane.f32.xlu0 %v4635_v38 }
 0x2c2   :  { %864 = vmax.xlane.f32.xlu1 %v4640_v51  ;;  %v4647_v13 = vpop.f32.mrb[20].mxu1 }
 0x2c3   :  { %v4649_v18 = vpop.f32.mrb[21].mxu1 }
 0x2c4   :  { %870 = vmax.xlane.f32.xlu0 %v4647_v13  ;;  %v4652_v19 = vpop.f32.mrb[22].mxu1 }
 0x2c5   :  { %v4654_v24 = vpop.f32.mrb[23].mxu1 }
 0x2c6   :  { %872 = vmax.xlane.f32.xlu1 %v4652_v19 }
 0x2c8   :  { %866 = vmax.xlane.f32.xlu0 %v4649_v18 }
 0x2ca   :  { %868 = vmax.xlane.f32.xlu1 %v4654_v24  ;;  %v4659_v21 = vpop.f32.mrb[24].mxu1 }
 0x2cb   :  { %v4661_v27 = vpop.f32.mrb[25].mxu1 }
 0x2cc   :  { %v4663_v52 = vpop.f32.mrb[26].mxu1 }
 0x2cd   :  { %v4665_v34 = vpop.f32.mrb[27].mxu1 }
 0x2d2   :  { %v4667_v49 = vpop.f32.mrb[28].mxu1 }
 0x2d3   :  { %v4669_v3 = vpop.f32.mrb[29].mxu1 }
 0x2d4   :  { %v4671_v0 = vpop.f32.mrb[30].mxu1 }
 0x2d5   :  { %v4673_v43 = vpop.f32.mrb[31].mxu1 }
 0x308   :  { %v831_v44 = vpop.xlane.xlu1 %830 }
 0x309   :  { %v892_v5 = vsub.f32 %v4587_v59, %v831_v44  ;;  %v827_v4 = vpop.xlane.xlu0 %826 }
 0x30a   :  { %v890_v58 = vsub.f32 %v4590_v50, %v827_v4 }
 0x30b   :  { %v926_v46 = vmul.f32 1.442695, %v892_v5 }
 0x30c   :  { %v922_v57 = vmul.f32 1.442695, %v890_v58  ;;  %v833_v42 = vpop.xlane.xlu1 %832 }
 0x30d   :  { %v829_v45 = vpop.xlane.xlu0 %828  ;;  %v893_v29 = vsub.f32 %v4593_v6, %v833_v42 }
 0x30e   :  { %3810 = vpow2.f32 %v922_v57  ;;  %v891_v28 = vsub.f32 %v4595_v9, %v829_v45 }
 0x30f   :  { %3812 = vpow2.f32 %v926_v46  ;;  %v928_v35 = vmul.f32 1.442695, %v893_v29 }
 0x310   :  { %v924_v36 = vmul.f32 1.442695, %v891_v28 }
 0x311   :  { %v835_v17 = vpop.xlane.xlu0 %834 }
 0x312   :  { %3814 = vpow2.f32 %v924_v36  ;;  %v894_v59 = vsub.f32 %v4601_v53, %v835_v17 }
 0x313   :  { %v837_v14 = vpop.xlane.xlu1 %836  ;;  %3816 = vpow2.f32 %v928_v35 }
 0x314   :  { %v895_v58 = vsub.f32 %v4606_v11, %v837_v14  ;;  %v930_v57 = vmul.f32 1.442695, %v894_v59 }
 0x315   :  { %v839_v44 = vpop.xlane.xlu0 %838 }
 0x316   :  { %v896_v5 = vsub.f32 %v4599_v37, %v839_v44  ;;  %v932_v36 = vmul.f32 1.442695, %v895_v58  ;;  %3818 = vpow2.f32 %v930_v57 }
 0x317   :  { %v841_v46 = vpop.xlane.xlu1 %840 }
 0x318   :  { %v4680_v4 = vpop.eup %3810  ;;  %v934_v35 = vmul.f32 1.442695, %v896_v5  ;;  %v897_v9 = vsub.f32 %v4604_v60, %v841_v46  ;;  %3820 = vpow2.f32 %v932_v36 }
 0x319   :  { %986 = vadd.xlane.f32.xlu0 %v4680_v4  ;;  %v4685_v45 = vpop.eup %3812  ;;  %v843_v6 = vpop.xlane.xlu0 %842 }
 0x31a   :  { %3822 = vpow2.f32 %v934_v35  ;;  %v936_v37 = vmul.f32 1.442695, %v897_v9  ;;  %v898_v29 = vsub.f32 %v4613_v56, %v843_v6 }
 0x31b   :  { %v845_v11 = vpop.xlane.xlu1 %844 }
 0x31c   :  { %v4687_v50 = vpop.eup %3814  ;;  %3824 = vpow2.f32 %v936_v37  ;;  %v899_v17 = vsub.f32 %v4618_v12, %v845_v11  ;;  %v938_v59 = vmul.f32 1.442695, %v898_v29 }
 0x31d   :  { %990 = vadd.xlane.f32.xlu0 %v4685_v45  ;;  %988 = vadd.xlane.f32.xlu1 %v4687_v50  ;;  %v4692_v53 = vpop.eup %3816  ;;  %v847_v42 = vpop.xlane.xlu0 %846 }
 0x31e   :  { %v900_v44 = vsub.f32 %v4611_v20, %v847_v42  ;;  %v940_v5 = vmul.f32 1.442695, %v899_v17  ;;  %3826 = vpow2.f32 %v938_v59 }
 0x31f   :  { %v849_v28 = vpop.xlane.xlu1 %848 }
 0x320   :  { %v4699_v60 = vpop.eup %3818  ;;  %v901_v56 = vsub.f32 %v4616_v10, %v849_v28  ;;  %v942_v12 = vmul.f32 1.442695, %v900_v44  ;;  %3828 = vpow2.f32 %v940_v5 }
 0x321   :  { %992 = vadd.xlane.f32.xlu1 %v4692_v53  ;;  %874 = vmax.xlane.f32.xlu0 %v4661_v27  ;;  %v851_v14 = vpop.xlane.xlu0 %850 }
 0x322   :  { %v4705_v58 = vpop.eup %3820  ;;  %v902_v36 = vsub.f32 %v4625_v30, %v851_v14  ;;  %v944_v20 = vmul.f32 1.442695, %v901_v56  ;;  %3830 = vpow2.f32 %v942_v12 }
 0x323   :  { %v853_v46 = vpop.xlane.xlu1 %852 }
 0x324   :  { %v4707_v57 = vpop.eup %3822  ;;  %v903_v9 = vsub.f32 %v4630_v1, %v853_v46  ;;  %v946_v10 = vmul.f32 1.442695, %v902_v36  ;;  %3832 = vpow2.f32 %v944_v20  ;;  %v3761_v1 = vld [vmem:[#allocation7 + $0x38] sm:$0xff]  }
 0x325   :  { %878 = vmax.xlane.f32.xlu0 %v4659_v21  ;;  %876 = vmax.xlane.f32.xlu1 %v4665_v34  ;;  %v855_v6 = vpop.xlane.xlu0 %854 }
 0x326   :  { %v4713_v35 = vpop.eup %3824  ;;  %v904_v11 = vsub.f32 %v4623_v33, %v855_v6  ;;  %v948_v42 = vmul.f32 1.442695, %v903_v9  ;;  %3834 = vpow2.f32 %v946_v10  ;;  %3668 = vmatprep.subr.bf16.mxu0 %v3761_v1 }
 0x327   :  { %v857_v37 = vpop.xlane.xlu1 %856  ;;  %3669 = vmatpush3.bf16.msra.mxu0 %v3761_v1 }
 0x328   :  { %v950_v30 = vmul.f32 1.442695, %v904_v11  ;;  %v905_v29 = vsub.f32 %v4628_v61, %v857_v37  ;;  %v4722_v28 = vpop.eup %3826  ;;  %3836 = vpow2.f32 %v948_v42 }
 0x329   :  { %994 = vadd.xlane.f32.xlu0 %v4699_v60  ;;  %880 = vmax.xlane.f32.xlu1 %v4663_v52 }
 0x32a   :  { %3838 = vpow2.f32 %v950_v30  ;;  %v952_v33 = vmul.f32 1.442695, %v905_v29  ;;  %v4726_v17 = vpop.eup %3828 }
 0x32c   :  { %v4728_v14 = vpop.eup %3830  ;;  %3840 = vpow2.f32 %v952_v33 }
 0x32d   :  { %998 = vadd.xlane.f32.xlu0 %v4707_v57  ;;  %996 = vadd.xlane.f32.xlu1 %v4705_v58 }
 0x32e   :  { %v4732_v61 = vpop.eup %3832 }
 0x330   :  { %v4734_v59 = vpop.eup %3834 }
 0x331   :  { %1000 = vadd.xlane.f32.xlu1 %v4713_v35  ;;  %882 = vmax.xlane.f32.xlu0 %v4669_v3 }
 0x332   :  { %v4738_v44 = vpop.eup %3836 }
 0x334   :  { %v4740_v5 = vpop.eup %3838 }
 0x335   :  { %886 = vmax.xlane.f32.xlu0 %v4667_v49  ;;  %884 = vmax.xlane.f32.xlu1 %v4673_v43 }
 0x336   :  { %v4744_v56 = vpop.eup %3840 }
 0x339   :  { %1002 = vadd.xlane.f32.xlu0 %v4722_v28  ;;  %888 = vmax.xlane.f32.xlu1 %v4671_v0 }
 0x33d   :  { %1006 = vadd.xlane.f32.xlu0 %v4728_v14  ;;  %1004 = vadd.xlane.f32.xlu1 %v4726_v17 }
 0x341   :  { %1010 = vadd.xlane.f32.xlu0 %v4734_v59  ;;  %1008 = vadd.xlane.f32.xlu1 %v4732_v61 }
 0x345   :  { %1014 = vadd.xlane.f32.xlu0 %v4740_v5  ;;  %1012 = vadd.xlane.f32.xlu1 %v4738_v44 }
 0x349   :  { %v859_v46 = vpop.xlane.xlu0 %858  ;;  %1016 = vadd.xlane.f32.xlu1 %v4744_v56 }
 0x34a   :  { %v906_v12 = vsub.f32 %v4637_v41, %v859_v46 }
 0x34b   :  { %v861_v36 = vpop.xlane.xlu1 %860 }
 0x34c   :  { %v954_v6 = vmul.f32 1.442695, %v906_v12  ;;  %v907_v20 = vsub.f32 %v4642_v2, %v861_v36 }
 0x34d   :  { %v863_v9 = vpop.xlane.xlu0 %862 }
 0x34e   :  { %3842 = vpow2.f32 %v954_v6  ;;  %v956_v10 = vmul.f32 1.442695, %v907_v20  ;;  %v908_v11 = vsub.f32 %v4635_v38, %v863_v9 }
 0x34f   :  { %v865_v37 = vpop.xlane.xlu1 %864 }
 0x350   :  { %3844 = vpow2.f32 %v956_v10  ;;  %v958_v42 = vmul.f32 1.442695, %v908_v11  ;;  %v909_v30 = vsub.f32 %v4640_v51, %v865_v37  ;;  %v3762_v11 = vld [vmem:[#allocation7 + $0x40] sm:$0xff]   ;;  %v3764_v37 = vld [vmem:[#allocation7 + $0x50] sm:$0xff]  }
 0x351   :  { %v871_v29 = vpop.xlane.xlu0 %870  ;;  %3686 = vmatprep.subr.bf16.mxu1 %v3762_v11 }
 0x352   :  { %3846 = vpow2.f32 %v958_v42  ;;  %v960_v1 = vmul.f32 1.442695, %v909_v30  ;;  %v912_v46 = vsub.f32 %v4647_v13, %v871_v29  ;;  %3687 = vmatpush3.bf16.msra.mxu1 %v3762_v11  ;;  %v3765_v29 = vld [vmem:[#allocation7 + $0x58] sm:$0xff]  }
 0x353   :  { %v873_v33 = vpop.xlane.xlu1 %872 }
 0x354   :  { %3848 = vpow2.f32 %v960_v1  ;;  %v913_v38 = vsub.f32 %v4652_v19, %v873_v33  ;;  %v966_v9 = vmul.f32 1.442695, %v912_v46  ;;  %v3767_v46 = vld [vmem:[#allocation7 + $0x68] sm:$0xff]  }
 0x355   :  { %v867_v41 = vpop.xlane.xlu0 %866 }
 0x356   :  { %v910_v2 = vsub.f32 %v4649_v18, %v867_v41  ;;  %v968_v18 = vmul.f32 1.442695, %v913_v38  ;;  %v3766_v41 = vld [vmem:[#allocation7 + $0x60] sm:$0xff]  }
 0x357   :  { %v869_v12 = vpop.xlane.xlu1 %868 }
 0x358   :  { %v4753_v36 = vpop.eup %3842  ;;  %v962_v6 = vmul.f32 1.442695, %v910_v2  ;;  %v911_v20 = vsub.f32 %v4654_v24, %v869_v12  ;;  %v3763_v24 = vld [vmem:[#allocation7 + $0x48] sm:$0xff]   ;;  %v3768_v2 = vld [vmem:[#allocation7 + $0x70] sm:$0xff]   ;;  %v3769_v12 = vld [vmem:[#allocation7 + $0x78] sm:$0xff]  }
 0x359   :  { %1018 = vadd.xlane.f32.xlu0 %v4753_v36  ;;  %3688 = vmatprep.subr.bf16.mxu1 %v3763_v24 }
 0x35a   :  { %v4758_v51 = vpop.eup %3844  ;;  %3850 = vpow2.f32 %v962_v6  ;;  %v964_v10 = vmul.f32 1.442695, %v911_v20  ;;  %3689 = vmatpush3.bf16.msra.mxu1 %v3763_v24 }
 0x35b   :  { %1020 = vadd.xlane.f32.xlu1 %v4758_v51  ;;  %3690 = vmatprep.subr.bf16.mxu1 %v3764_v37 }
 0x35c   :  { %v4761_v13 = vpop.eup %3846  ;;  %3852 = vpow2.f32 %v964_v10 }
 0x35d   :  { %1022 = vadd.xlane.f32.xlu0 %v4761_v13  ;;  %3854 = vpow2.f32 %v966_v9 }
 0x35e   :  { %v4764_v19 = vpop.eup %3848  ;;  %3856 = vpow2.f32 %v968_v18  ;;  %3691 = vmatpush3.bf16.msra.mxu1 %v3764_v37 }
 0x35f   :  { %1024 = vadd.xlane.f32.xlu1 %v4764_v19  ;;  %3692 = vmatprep.subr.bf16.mxu1 %v3765_v29 }
 0x362   :  { %3693 = vmatpush3.bf16.msra.mxu1 %v3765_v29 }
 0x363   :  { %3694 = vmatprep.subr.bf16.mxu1 %v3766_v41 }
 0x364   :  { %v4767_v42 = vpop.eup %3850 }
 0x365   :  { %1026 = vadd.xlane.f32.xlu0 %v4767_v42 }
 0x366   :  { %v4770_v30 = vpop.eup %3852  ;;  %3695 = vmatpush3.bf16.msra.mxu1 %v3766_v41 }
 0x367   :  { %1028 = vadd.xlane.f32.xlu1 %v4770_v30  ;;  %v4773_v1 = vpop.eup %3854  ;;  %3696 = vmatprep.subr.bf16.mxu1 %v3767_v46 }
 0x368   :  { %v4776_v33 = vpop.eup %3856 }
 0x369   :  { %1030 = vadd.xlane.f32.xlu0 %v4773_v1 }
 0x36a   :  { %3697 = vmatpush3.bf16.msra.mxu1 %v3767_v46 }
 0x36b   :  { %1032 = vadd.xlane.f32.xlu1 %v4776_v33  ;;  %3698 = vmatprep.subr.bf16.mxu1 %v3768_v2 }
 0x36e   :  { %3699 = vmatpush3.bf16.msra.mxu1 %v3768_v2 }
 0x36f   :  { %3700 = vmatprep.subr.bf16.mxu1 %v3769_v12 }
 0x372   :  { %3701 = vmatpush3.bf16.msra.mxu1 %v3769_v12 }
 0x3a6   :  { %v987_v38 = vpop.xlane.xlu0 %986 }
 0x3a7   :  { %3858 = vrcp.f32 %v987_v38 }
 0x3aa   :  { %v991_v6 = vpop.xlane.xlu0 %990  ;;  %v989_v20 = vpop.xlane.xlu1 %988 }
 0x3ab   :  { %3860 = vrcp.f32 %v989_v20 }
 0x3ac   :  { %3862 = vrcp.f32 %v991_v6 }
 0x3ae   :  { %v993_v9 = vpop.xlane.xlu1 %992  ;;  %v875_v10 = vpop.xlane.xlu0 %874 }
 0x3af   :  { %3864 = vrcp.f32 %v993_v9  ;;  %v914_v18 = vsub.f32 %v4661_v27, %v875_v10 }
 0x3b1   :  { %v970_v11 = vmul.f32 1.442695, %v914_v18  ;;  %v3859_v46 = vpop.eup %3858 }
 0x3b2   :  { %v879_v24 = vpop.xlane.xlu0 %878  ;;  %v877_v37 = vpop.xlane.xlu1 %876  ;;  %v1082_v27 = vmul.f32 %v3859_v46, %v4680_v4 }
 0x3b3   :  { %3866 = vpow2.f32 %v970_v11  ;;  %v916_v29 = vsub.f32 %v4659_v21, %v879_v24  ;;  %v915_v41 = vsub.f32 %v4665_v34, %v877_v37 }
 0x3b5   :  { %v974_v2 = vmul.f32 1.442695, %v916_v29  ;;  %v972_v12 = vmul.f32 1.442695, %v915_v41  ;;  %v3861_v38 = vpop.eup %3860 }
 0x3b6   :  { %v995_v26 = vpop.xlane.xlu0 %994  ;;  %v881_v20 = vpop.xlane.xlu1 %880  ;;  %v1083_v10 = vmul.f32 %v3861_v38, %v4687_v50 }
 0x3b7   :  { %v3863_v6 = vpop.eup %3862  ;;  %3868 = vpow2.f32 %v974_v2  ;;  %v917_v9 = vsub.f32 %v4663_v52, %v881_v20 }
 0x3b8   :  { %3870 = vpow2.f32 %v972_v12  ;;  %v1146_v21 = vpack.c.bf16 %v1083_v10, %v1082_v27  ;;  %v1084_v34 = vmul.f32 %v3863_v6, %v4685_v45 }
 0x3b9   :  { %v3865_v18 = vpop.eup %3864  ;;  %v976_v11 = vmul.f32 1.442695, %v917_v9  ;;  %3872 = vrcp.f32 %v995_v26 }
 0x3ba   :  { %v1085_v24 = vmul.f32 %v3865_v18, %v4692_v53  ;;  %v999_v37 = vpop.xlane.xlu0 %998  ;;  %v997_v29 = vpop.xlane.xlu1 %996  ;;  %3670 = vmatprep.mubr.bf16.mxu0 %v1146_v21 }
 0x3bb   :  { %3874 = vpow2.f32 %v976_v11 }
 0x3bc   :  { %3876 = vrcp.f32 %v999_v37  ;;  %v1147_v41 = vpack.c.bf16 %v1085_v24, %v1084_v34 }
 0x3bd   :  { %v4787_v52 = vpop.eup %3866  ;;  %3878 = vrcp.f32 %v997_v29 }
 0x3be   :  { %3671 = vmatmul.mubr.bf16.vlgmr.msra.gmra.mrb[64].mxu0 %v1147_v41  ;;  %v1001_v4 = vpop.xlane.xlu1 %1000  ;;  %1034 = vadd.xlane.f32.xlu0 %v4787_v52  ;;  %v883_v50 = vpop.xlane.xlu0 %882 }
 0x3bf   :  { %3880 = vrcp.f32 %v1001_v4  ;;  %v918_v45 = vsub.f32 %v4669_v3, %v883_v50 }
 0x3c1   :  { %v4791_v46 = vpop.eup %3868  ;;  %v978_v26 = vmul.f32 1.442695, %v918_v45 }
 0x3c2   :  { %v4793_v53 = vpop.eup %3870  ;;  %1038 = vadd.xlane.f32.xlu0 %v4791_v46  ;;  %v887_v2 = vpop.xlane.xlu0 %886 }
 0x3c3   :  { %v885_v12 = vpop.xlane.xlu1 %884  ;;  %3882 = vpow2.f32 %v978_v26  ;;  %v920_v38 = vsub.f32 %v4667_v49, %v887_v2  ;;  %1036 = vadd.xlane.f32.xlu1 %v4793_v53  ;;  %v3873_v6 = vpop.eup %3872 }
 0x3c4   :  { %v919_v20 = vsub.f32 %v4673_v43, %v885_v12  ;;  %v1086_v49 = vmul.f32 %v3873_v6, %v4699_v60 }
 0x3c5   :  { %v4799_v9 = vpop.eup %3874  ;;  %v982_v3 = vmul.f32 1.442695, %v920_v38 }
 0x3c6   :  { %v980_v27 = vmul.f32 1.442695, %v919_v20  ;;  %v3877_v10 = vpop.eup %3876  ;;  %v1003_v18 = vpop.xlane.xlu0 %1002 }
 0x3c7   :  { %v889_v11 = vpop.xlane.xlu1 %888  ;;  %v3879_v21 = vpop.eup %3878  ;;  %3884 = vpow2.f32 %v982_v3  ;;  %1040 = vadd.xlane.f32.xlu1 %v4799_v9  ;;  %v1088_v50 = vmul.f32 %v3877_v10, %v4707_v57 }
 0x3c8   :  { %v921_v34 = vsub.f32 %v4671_v0, %v889_v11  ;;  %3886 = vpow2.f32 %v980_v27  ;;  %v1087_v24 = vmul.f32 %v3879_v21, %v4705_v58 }
 0x3c9   :  { %v3881_v43 = vpop.eup %3880  ;;  %3888 = vrcp.f32 %v1003_v18 }
 0x3ca   :  { %v984_v37 = vmul.f32 1.442695, %v921_v34  ;;  %v1148_v29 = vpack.c.bf16 %v1087_v24, %v1086_v49  ;;  %v1007_v41 = vpop.xlane.xlu0 %1006  ;;  %v1089_v45 = vmul.f32 %v3881_v43, %v4713_v35 }
 0x3cb   :  { %v1005_v4 = vpop.xlane.xlu1 %1004 }
 0x3cc   :  { %3890 = vpow2.f32 %v984_v37  ;;  %3674 = vmatprep.mubr.bf16.mxu0 %v1148_v29  ;;  %v1149_v26 = vpack.c.bf16 %v1089_v45, %v1088_v50 }
 0x3cd   :  { %v4807_v2 = vpop.eup %3882  ;;  %3892 = vrcp.f32 %v1005_v4 }
 0x3ce   :  { %3894 = vrcp.f32 %v1007_v41  ;;  %3675 = vmatmul.mubr.bf16.gmra.mrb[68].mxu0 %v1149_v26  ;;  %1042 = vadd.xlane.f32.xlu0 %v4807_v2  ;;  %v1011_v0 = vpop.xlane.xlu0 %1010 }
 0x3cf   :  { %v1009_v60 = vpop.xlane.xlu1 %1008 }
 0x3d0   :  { %3896 = vrcp.f32 %v1009_v60 }
 0x3d1   :  { %v4810_v58 = vpop.eup %3884  ;;  %3898 = vrcp.f32 %v1011_v0  ;;  %v5912_v0 = vmov 0  }
 0x3d2   :  { %v4812_v12 = vpop.eup %3886  ;;  %1046 = vadd.xlane.f32.xlu0 %v4810_v58  ;;  %v1015_v57 = vpop.xlane.xlu0 %1014 }
 0x3d3   :  { %v1013_v35 = vpop.xlane.xlu1 %1012  ;;  %1044 = vadd.xlane.f32.xlu1 %v4812_v12  ;;  %v3889_v38 = vpop.eup %3888 }
 0x3d4   :  { %3900 = vrcp.f32 %v1013_v35  ;;  %v1090_v10 = vmul.f32 %v3889_v38, %v4722_v28 }
 0x3d5   :  { %3902 = vrcp.f32 %v1015_v57 }
 0x3d6   :  { %v4816_v20 = vpop.eup %3890 }
 0x3d7   :  { %v1017_v6 = vpop.xlane.xlu1 %1016  ;;  %v3893_v3 = vpop.eup %3892  ;;  %1048 = vadd.xlane.f32.xlu1 %v4816_v20 }
 0x3d8   :  { %3904 = vrcp.f32 %v1017_v6  ;;  %v3895_v27 = vpop.eup %3894  ;;  %v1091_v18 = vmul.f32 %v3893_v3, %v4726_v17 }
 0x3d9   :  { %v1092_v34 = vmul.f32 %v3895_v27, %v4728_v14 }
 0x3da   :  { %v3897_v11 = vpop.eup %3896  ;;  %v1150_v21 = vpack.c.bf16 %v1091_v18, %v1090_v10 }
 0x3db   :  { %v1093_v49 = vmul.f32 %v3897_v11, %v4732_v61  ;;  %v3899_v24 = vpop.eup %3898 }
 0x3dc   :  { %3678 = vmatprep.mubr.bf16.mxu0 %v1150_v21  ;;  %v1094_v41 = vmul.f32 %v3899_v24, %v4734_v59 }
 0x3dd   :  { %v1151_v43 = vpack.c.bf16 %v1093_v49, %v1092_v34 }
 0x3de   :  { %v3901_v37 = vpop.eup %3900 }
 0x3df   :  { %v3903_v29 = vpop.eup %3902  ;;  %3679 = vmatmul.mubr.bf16.gmra.mrb[72].mxu0 %v1151_v43  ;;  %v1095_v4 = vmul.f32 %v3901_v37, %v4738_v44 }
 0x3e0   :  { %v1096_v17 = vmul.f32 %v3903_v29, %v4740_v5 }
 0x3e1   :  { %v1152_v28 = vpack.c.bf16 %v1095_v4, %v1094_v41 }
 0x3e2   :  { %v3905_v50 = vpop.eup %3904 }
 0x3e3   :  { %v1097_v45 = vmul.f32 %v3905_v50, %v4744_v56  ;;  %3682 = vmatprep.mubr.bf16.mxu0 %v1152_v28 }
 0x3e5   :  { %v1153_v14 = vpack.c.bf16 %v1097_v45, %v1096_v17 }
 0x3e6   :  { %v1019_v26 = vpop.xlane.xlu0 %1018 }
 0x3e7   :  { %3906 = vrcp.f32 %v1019_v26  ;;  %3683 = vmatmul.mubr.bf16.gmra.mrb[76].mxu0 %v1153_v14 }
 0x3e8   :  { %v1021_v61 = vpop.xlane.xlu1 %1020  ;;  %2070 = vmatprep.mubr.bf16.mxu0 %v5912_v0 }
 0x3e9   :  { %3908 = vrcp.f32 %v1021_v61 }
 0x3ea   :  { %v1023_v60 = vpop.xlane.xlu0 %1022 }
 0x3eb   :  { %3910 = vrcp.f32 %v1023_v60 }
 0x3ec   :  { %v1025_v59 = vpop.xlane.xlu1 %1024 }
 0x3ed   :  { %3912 = vrcp.f32 %v1025_v59 }
 0x3f1   :  { %v3907_v44 = vpop.eup %3906 }
 0x3f2   :  { %v1027_v57 = vpop.xlane.xlu0 %1026  ;;  %v1098_v56 = vmul.f32 %v3907_v44, %v4753_v36 }
 0x3f3   :  { %v3909_v35 = vpop.eup %3908  ;;  %3914 = vrcp.f32 %v1027_v57 }
 0x3f4   :  { %v1029_v5 = vpop.xlane.xlu1 %1028  ;;  %v1099_v38 = vmul.f32 %v3909_v35, %v4758_v51 }
 0x3f5   :  { %v3911_v6 = vpop.eup %3910  ;;  %3916 = vrcp.f32 %v1029_v5 }
 0x3f6   :  { %v1031_v3 = vpop.xlane.xlu0 %1030  ;;  %v1154_v27 = vpack.c.bf16 %v1099_v38, %v1098_v56  ;;  %v1100_v18 = vmul.f32 %v3911_v6, %v4761_v13 }
 0x3f7   :  { %v3913_v10 = vpop.eup %3912  ;;  %3918 = vrcp.f32 %v1031_v3 }
 0x3f8   :  { %v1101_v11 = vmul.f32 %v3913_v10, %v4764_v19  ;;  %3702 = vmatprep.mubr.bf16.mxu1 %v1154_v27  ;;  %v1033_v21 = vpop.xlane.xlu1 %1032 }
 0x3f9   :  { %3920 = vrcp.f32 %v1033_v21 }
 0x3fa   :  { %v1155_v34 = vpack.c.bf16 %v1101_v11, %v1100_v18 }
 0x3fc   :  { %3703 = vmatmul.mubr.bf16.vlgmr.msra.gmra.mrb[32].mxu1 %v1155_v34 }
 0x3fd   :  { %v3915_v49 = vpop.eup %3914 }
 0x3fe   :  { %v1102_v36 = vmul.f32 %v3915_v49, %v4767_v42 }
 0x3ff   :  { %v3917_v24 = vpop.eup %3916 }
 0x400   :  { %v1103_v51 = vmul.f32 %v3917_v24, %v4770_v30 }
 0x401   :  { %v3919_v43 = vpop.eup %3918 }
 0x402   :  { %v1156_v37 = vpack.c.bf16 %v1103_v51, %v1102_v36  ;;  %v1104_v41 = vmul.f32 %v3919_v43, %v4773_v1 }
 0x403   :  { %v3921_v29 = vpop.eup %3920 }
 0x404   :  { %3706 = vmatprep.mubr.bf16.mxu1 %v1156_v37  ;;  %v1105_v13 = vmul.f32 %v3921_v29, %v4776_v33 }
 0x406   :  { %v1157_v19 = vpack.c.bf16 %v1105_v13, %v1104_v41 }
 0x408   :  { %3707 = vmatmul.mubr.bf16.gmra.mrb[36].mxu1 %v1157_v19 }
 0x44b   :  { %v1035_v4 = vpop.xlane.xlu0 %1034 }
 0x44c   :  { %3922 = vrcp.f32 %v1035_v4 }
 0x44f   :  { %v1039_v50 = vpop.xlane.xlu0 %1038 }
 0x450   :  { %v1037_v28 = vpop.xlane.xlu1 %1036 }
 0x451   :  { %3924 = vrcp.f32 %v1037_v28 }
 0x452   :  { %3926 = vrcp.f32 %v1039_v50 }
 0x454   :  { %v1041_v17 = vpop.xlane.xlu1 %1040 }
 0x455   :  { %3928 = vrcp.f32 %v1041_v17 }
 0x456   :  { %v3923_v42 = vpop.eup %3922 }
 0x457   :  { %v1106_v14 = vmul.f32 %v3923_v42, %v4787_v52 }
 0x45b   :  { %v3925_v30 = vpop.eup %3924  ;;  %v1043_v45 = vpop.xlane.xlu0 %1042 }
 0x45c   :  { %v1107_v26 = vmul.f32 %v3925_v30, %v4793_v53  ;;  %v3927_v1 = vpop.eup %3926  ;;  %3930 = vrcp.f32 %v1043_v45  ;;  %v5913_v30 = vld [vmem:[#allocation19_spill] sm:$0xff] }
 0x45d   :  { %v1108_v44 = vmul.f32 %v3927_v1, %v4791_v46 }
 0x45e   :  { %v1158_v61 = vpack.c.bf16 %v1107_v26, %v1106_v14 }
 0x45f   :  { %v3929_v33 = vpop.eup %3928  ;;  %v1047_v60 = vpop.xlane.xlu0 %1046 }
 0x460   :  { %3710 = vmatprep.mubr.bf16.mxu1 %v1158_v61  ;;  %v1045_v59 = vpop.xlane.xlu1 %1044  ;;  %v1109_v57 = vmul.f32 %v3929_v33, %v4799_v9 }
 0x461   :  { %3932 = vrcp.f32 %v1045_v59  ;;  %v3772_v59 = vld [vmem:[#allocation10 + $0x4] ss:$8 sps:$4 sm:$0xff]  }
 0x462   :  { %v1159_v35 = vpack.c.bf16 %v1109_v57, %v1108_v44  ;;  %3934 = vrcp.f32 %v1047_v60  ;;  %v3770_v60 = vld [vmem:[#allocation10] ss:$8 sps:$4 sm:$0xff]   ;;  %v3775_v44 = vld [vmem:[#allocation10 + $0x14] ss:$8 sps:$4 sm:$0xff]   ;;  %2038 = vmatprep.subr.bf16.mxu0 %v3772_v59  ;;  %v3773_v57 = vld [vmem:[#allocation10 + $0x10] ss:$8 sps:$4 sm:$0xff]  }
 0x463   :  { %2039 = vmatpush1.bf16.msra.mxu0 %v3770_v60  ;;  %v5921_v59 = vld [vmem:[#allocation27_spill] sm:$0xff] }
 0x464   :  { %3711 = vmatmul.mubr.bf16.gmra.mrb[40].mxu1 %v1159_v35  ;;  %v1049_v5 = vpop.xlane.xlu1 %1048  ;;  %2040 = vmatprep.subr.bf16.mxu0 %v3775_v44 }
 0x465   :  { %3936 = vrcp.f32 %v1049_v5 }
 0x466   :  { %v3931_v52 = vpop.eup %3930 }
 0x467   :  { %v1110_v53 = vmul.f32 %v3931_v52, %v4807_v2  ;;  %2041 = vmatpush1.bf16.msra.mxu0 %v3773_v57 }
 0x46b   :  { %v3933_v56 = vpop.eup %3932 }
 0x46c   :  { %v1111_v38 = vmul.f32 %v3933_v56, %v4812_v12  ;;  %v3935_v6 = vpop.eup %3934 }
 0x46d   :  { %v1112_v46 = vmul.f32 %v3935_v6, %v4810_v58 }
 0x46e   :  { %v1160_v3 = vpack.c.bf16 %v1111_v38, %v1110_v53 }
 0x46f   :  { %v3937_v27 = vpop.eup %3936 }
 0x470   :  { %3714 = vmatprep.mubr.bf16.mxu1 %v1160_v3  ;;  %v1113_v9 = vmul.f32 %v3937_v27, %v4816_v20 }
 0x472   :  { %v1161_v10 = vpack.c.bf16 %v1113_v9, %v1112_v46 }
 0x474   :  { %3715 = vmatmul.mubr.bf16.gmra.mrb[44].mxu1 %v1161_v10 }
 0x491   :  { %v3672_v18 = vpop.f32.mrb[64].mxu0 }
 0x492   :  { %v1244_v11 = vpop.f32.mrb[65].mxu0  ;;  %v4852_v12 = vadd.f32 %v3672_v18, %v4409_v31  ;;  %v5916_v18 = vld [vmem:[#allocation22_spill] sm:$0xff] }
 0x493   :  { %v4845_v21 = vadd.f32 %v1244_v11, %v4403_v22  ;;  %v3673_v34 = vpop.f32.mrb[66].mxu0 }
 0x494   :  { %v1247_v49 = vpop.f32.mrb[67].mxu0  ;;  %v4856_v58 = vadd.f32 %v3673_v34, %v4411_v32  ;;  %v5917_v34 = vld [vmem:[#allocation23_spill] sm:$0xff] }
 0x495   :  { %v4848_v2 = vadd.f32 %v1247_v49, %v4405_v23  ;;  %1486 = vadd.xlane.f32.xlu0 %v4845_v21 }
 0x497   :  { %1488 = vadd.xlane.f32.xlu1 %v4848_v2 }
 0x499   :  { %1490 = vadd.xlane.f32.xlu0 %v4852_v12 }
 0x49b   :  { %1492 = vadd.xlane.f32.xlu1 %v4856_v58 }
 0x4a1   :  { %v3676_v22 = vpop.f32.mrb[68].mxu0 }
 0x4a2   :  { %v1260_v20 = vpop.f32.mrb[69].mxu0  ;;  %v4868_v31 = vadd.f32 %v3676_v22, %v4423_v47 }
 0x4a3   :  { %v4861_v24 = vadd.f32 %v1260_v20, %v4416_v39  ;;  %v3677_v23 = vpop.f32.mrb[70].mxu0 }
 0x4a4   :  { %v1263_v36 = vpop.f32.mrb[71].mxu0  ;;  %v4872_v32 = vadd.f32 %v3677_v23, %v4425_v48 }
 0x4a5   :  { %v4864_v51 = vadd.f32 %v1263_v36, %v4418_v40  ;;  %1494 = vadd.xlane.f32.xlu0 %v4861_v24 }
 0x4a7   :  { %1496 = vadd.xlane.f32.xlu1 %v4864_v51 }
 0x4a9   :  { %1498 = vadd.xlane.f32.xlu0 %v4868_v31 }
 0x4ab   :  { %1500 = vadd.xlane.f32.xlu1 %v4872_v32 }
 0x4b2   :  { %v3680_v39 = vpop.f32.mrb[72].mxu0 }
 0x4b3   :  { %v1276_v43 = vpop.f32.mrb[73].mxu0  ;;  %v4884_v47 = vadd.f32 %v3680_v39, %v4437_v62 }
 0x4b4   :  { %v4877_v37 = vadd.f32 %v1276_v43, %v4430_v54  ;;  %v3681_v40 = vpop.f32.mrb[74].mxu0 }
 0x4b5   :  { %v1279_v29 = vpop.f32.mrb[75].mxu0  ;;  %v4888_v48 = vadd.f32 %v3681_v40, %v4439_v63  ;;  %v5919_v40 = vld [vmem:[#allocation25_spill] sm:$0xff] }
 0x4b6   :  { %v4880_v41 = vadd.f32 %v1279_v29, %v4432_v55  ;;  %1502 = vadd.xlane.f32.xlu0 %v4877_v37 }
 0x4b8   :  { %1504 = vadd.xlane.f32.xlu1 %v4880_v41 }
 0x4ba   :  { %1506 = vadd.xlane.f32.xlu0 %v4884_v47  ;;  %v3684_v13 = vpop.f32.mrb[76].mxu0 }
 0x4bb   :  { %v1292_v54 = vpop.f32.mrb[77].mxu0  ;;  %v4900_v62 = vadd.f32 %v3684_v13, %v4451_v15  ;;  %v5914_v15 = vld [vmem:[#allocation20_spill] sm:$0xff] }
 0x4bc   :  { %v4892_v19 = vadd.f32 %v1292_v54, %v4444_v7  ;;  %1508 = vadd.xlane.f32.xlu1 %v4888_v48  ;;  %v3685_v55 = vpop.f32.mrb[78].mxu0 }
 0x4bd   :  { %v1295_v4 = vpop.f32.mrb[79].mxu0  ;;  %v4904_v63 = vadd.f32 %v3685_v55, %v4453_v16  ;;  %v5915_v16 = vld [vmem:[#allocation21_spill] sm:$0xff] }
 0x4be   :  { %v4896_v50 = vadd.f32 %v1295_v4, %v4446_v8  ;;  %1510 = vadd.xlane.f32.xlu0 %v4892_v19 }
 0x4c0   :  { %1512 = vadd.xlane.f32.xlu1 %v4896_v50 }
 0x4c2   :  { %1514 = vadd.xlane.f32.xlu0 %v4900_v62 }
 0x4c4   :  { %1516 = vadd.xlane.f32.xlu1 %v4904_v63 }
 0x4cf   :  { %v3704_v7 = vpop.f32.mrb[32].mxu1 }
 0x4d0   :  { %v1389_v28 = vpop.f32.mrb[33].mxu1  ;;  %v4916_v14 = vadd.f32 %v3704_v7, %v5914_v15 }
 0x4d1   :  { %v4909_v17 = vadd.f32 %v1389_v28, %v4458_v25  ;;  %v3705_v8 = vpop.f32.mrb[34].mxu1 }
 0x4d2   :  { %v1392_v42 = vpop.f32.mrb[35].mxu1  ;;  %v4920_v26 = vadd.f32 %v3705_v8, %v5915_v16 }
 0x4d3   :  { %v4912_v45 = vadd.f32 %v1392_v42, %v5913_v30  ;;  %1518 = vadd.xlane.f32.xlu0 %v4909_v17  ;;  %v3778_v30 = vld [vmem:[#allocation10 + $0x24] ss:$8 sps:$4 sm:$0xff]  }
 0x4d4   :  { %2042 = vmatprep.subr.bf16.mxu0 %v3778_v30 }
 0x4d5   :  { %1520 = vadd.xlane.f32.xlu1 %v4912_v45 }
 0x4d7   :  { %1522 = vadd.xlane.f32.xlu0 %v4916_v14 }
 0x4d9   :  { %1524 = vadd.xlane.f32.xlu1 %v4920_v26 }
 0x4db   :  { %v3708_v25 = vpop.f32.mrb[36].mxu1 }
 0x4dc   :  { %v1405_v1 = vpop.f32.mrb[37].mxu1 }
 0x4dd   :  { %v3709_v61 = vpop.f32.mrb[38].mxu1  ;;  %v4935_v11 = vadd.f32 %v1405_v1, %v5916_v18 }
 0x4de   :  { %v1408_v33 = vpop.f32.mrb[39].mxu1  ;;  %v4956_v29 = vadd.f32 %v3709_v61, %v5919_v40  ;;  %v5920_v61 = vld [vmem:[#allocation26_spill] sm:$0xff] }
 0x4df   :  { %v4941_v49 = vadd.f32 %v1408_v33, %v5917_v34  ;;  %v3785_v34 = vld [vmem:[#allocation10 + $0x50] ss:$8 sps:$4 sm:$0xff]  }
 0x522   :  { %v1487_v35 = vpop.xlane.xlu0 %1486 }
 0x523   :  { %v1550_v5 = vmul.f32 0.0078125, %v1487_v35  ;;  %v3779_v35 = vld [vmem:[#allocation10 + $0x30] ss:$8 sps:$4 sm:$0xff]  }
 0x524   :  { %v1489_v52 = vpop.xlane.xlu1 %1488 }
 0x525   :  { %v1551_v56 = vmul.f32 0.0078125, %v1489_v52  ;;  %v4925_v53 = vsub.f32 %v4845_v21, %v1550_v5 }
 0x526   :  { %v1491_v38 = vpop.xlane.xlu0 %1490 }
 0x527   :  { %v1552_v6 = vmul.f32 0.0078125, %v1491_v38  ;;  %v1614_v3 = vmul.f32 %v4925_v53, %v4925_v53  ;;  %v4930_v27 = vsub.f32 %v4848_v2, %v1551_v56  ;;  %v3782_v56 = vld [vmem:[#allocation10 + $0x40] ss:$8 sps:$4 sm:$0xff]  }
 0x528   :  { %v1493_v46 = vpop.xlane.xlu1 %1492  ;;  %v5922_v38 = vld [vmem:[#allocation28_spill] sm:$0xff] }
 0x529   :  { %v1553_v9 = vmul.f32 0.0078125, %v1493_v46  ;;  %1646 = vadd.xlane.f32.xlu0 %v1614_v3  ;;  %v1615_v10 = vmul.f32 %v4930_v27, %v4930_v27  ;;  %v4938_v21 = vsub.f32 %v4852_v12, %v1552_v6  ;;  %v5918_v12 = vld [vmem:[#allocation24_spill] sm:$0xff]  ;;  %v3787_v46 = vld [vmem:[#allocation10 + $0x54] ss:$8 sps:$4 sm:$0xff]  }
 0x52a   :  { %v4953_v36 = vadd.f32 %v3708_v25, %v5918_v12  ;;  %v3776_v25 = vld [vmem:[#allocation10 + $0x20] ss:$8 sps:$4 sm:$0xff]  }
 0x52b   :  { %1648 = vadd.xlane.f32.xlu1 %v1615_v10  ;;  %v4945_v2 = vsub.f32 %v4856_v58, %v1553_v9  ;;  %v1616_v22 = vmul.f32 %v4938_v21, %v4938_v21  ;;  %2043 = vmatpush1.bf16.msra.mxu0 %v3776_v25  ;;  %v5923_v9 = vld [vmem:[#allocation29_spill] sm:$0xff] }
 0x52d   :  { %1526 = vadd.xlane.f32.xlu0 %v4935_v11  ;;  %v1617_v20 = vmul.f32 %v4945_v2, %v4945_v2 }
 0x52f   :  { %1528 = vadd.xlane.f32.xlu1 %v4941_v49 }
 0x531   :  { %1650 = vadd.xlane.f32.xlu0 %v1616_v22 }
 0x532   :  { %v1495_v23 = vpop.xlane.xlu0 %1494 }
 0x533   :  { %v1554_v39 = vmul.f32 0.0078125, %v1495_v23  ;;  %1652 = vadd.xlane.f32.xlu1 %v1617_v20 }
 0x534   :  { %v1497_v43 = vpop.xlane.xlu1 %1496 }
 0x535   :  { %v1555_v58 = vmul.f32 0.0078125, %v1497_v43  ;;  %1530 = vadd.xlane.f32.xlu0 %v4953_v36  ;;  %v4960_v13 = vsub.f32 %v4861_v24, %v1554_v39 }
 0x536   :  { %v1499_v54 = vpop.xlane.xlu0 %1498 }
 0x537   :  { %v1556_v55 = vmul.f32 0.0078125, %v1499_v54  ;;  %v3712_v4 = vpop.f32.mrb[40].mxu1  ;;  %1532 = vadd.xlane.f32.xlu1 %v4956_v29  ;;  %v1618_v7 = vmul.f32 %v4960_v13, %v4960_v13  ;;  %v4966_v28 = vsub.f32 %v4864_v51, %v1555_v58  ;;  %v3781_v51 = vld [vmem:[#allocation10 + $0x34] ss:$8 sps:$4 sm:$0xff]   ;;  %v3790_v54 = vld [vmem:[#allocation10 + $0x64] ss:$8 sps:$4 sm:$0xff]  }
 0x538   :  { %v1421_v8 = vpop.f32.mrb[41].mxu1  ;;  %v1501_v42 = vpop.xlane.xlu1 %1500  ;;  %2044 = vmatprep.subr.bf16.mxu0 %v3781_v51  ;;  %v4989_v6 = vadd.f32 %v3712_v4, %v5922_v38  ;;  %v5925_v51 = vld [vmem:[#allocation31_spill] sm:$0xff] }
 0x539   :  { %v3713_v15 = vpop.f32.mrb[42].mxu1  ;;  %v1557_v16 = vmul.f32 0.0078125, %v1501_v42  ;;  %1654 = vadd.xlane.f32.xlu0 %v1618_v7  ;;  %v1619_v24 = vmul.f32 %v4966_v28, %v4966_v28  ;;  %v4971_v33 = vadd.f32 %v1421_v8, %v5920_v61  ;;  %v4974_v60 = vsub.f32 %v4868_v31, %v1556_v55  ;;  %2045 = vmatpush1.bf16.msra.mxu0 %v3779_v35  ;;  %v3784_v31 = vld [vmem:[#allocation10 + $0x44] ss:$8 sps:$4 sm:$0xff]  }
 0x53a   :  { %v1424_v1 = vpop.f32.mrb[43].mxu1  ;;  %2046 = vmatprep.subr.bf16.mxu0 %v3784_v31  ;;  %v4992_v10 = vadd.f32 %v3713_v15, %v5923_v9  ;;  %v5924_v15 = vld [vmem:[#allocation30_spill] sm:$0xff] }
 0x53b   :  { %1656 = vadd.xlane.f32.xlu1 %v1619_v24  ;;  %v4977_v44 = vadd.f32 %v1424_v1, %v5921_v59  ;;  %v4981_v57 = vsub.f32 %v4872_v32, %v1557_v16  ;;  %v1620_v5 = vmul.f32 %v4974_v60, %v4974_v60  ;;  %v3793_v24 = vld [vmem:[#allocation10 + $0x74] ss:$8 sps:$4 sm:$0xff]   ;;  %v3791_v1 = vld [vmem:[#allocation10 + $0x70] ss:$8 sps:$4 sm:$0xff]  }
 0x53d   :  { %1534 = vadd.xlane.f32.xlu0 %v4971_v33  ;;  %v1621_v52 = vmul.f32 %v4981_v57, %v4981_v57  ;;  %2047 = vmatpush1.bf16.msra.mxu0 %v3782_v56  ;;  %v5926_v56 = vld [vmem:[#allocation32_spill] sm:$0xff] }
 0x53e   :  { %2048 = vmatprep.subr.bf16.mxu0 %v3787_v46  ;;  %v5927_v46 = vld [vmem:[#allocation33_spill] sm:$0xff] }
 0x53f   :  { %1536 = vadd.xlane.f32.xlu1 %v4977_v44 }
 0x541   :  { %1658 = vadd.xlane.f32.xlu0 %v1620_v5  ;;  %2049 = vmatpush1.bf16.msra.mxu0 %v3785_v34 }
 0x542   :  { %2050 = vmatprep.subr.bf16.mxu0 %v3790_v54 }
 0x543   :  { %v1503_v32 = vpop.xlane.xlu0 %1502  ;;  %1660 = vadd.xlane.f32.xlu1 %v1621_v52 }
 0x544   :  { %v1558_v3 = vmul.f32 0.0078125, %v1503_v32 }
 0x545   :  { %v1505_v18 = vpop.xlane.xlu1 %1504  ;;  %1538 = vadd.xlane.f32.xlu0 %v4989_v6 }
 0x546   :  { %v4996_v22 = vsub.f32 %v4877_v37, %v1558_v3  ;;  %v1559_v20 = vmul.f32 0.0078125, %v1505_v18  ;;  %v3788_v37 = vld [vmem:[#allocation10 + $0x60] ss:$8 sps:$4 sm:$0xff]  }
 0x547   :  { %v1507_v23 = vpop.xlane.xlu0 %1506  ;;  %v3716_v12 = vpop.f32.mrb[44].mxu1  ;;  %1540 = vadd.xlane.f32.xlu1 %v4992_v10  ;;  %2051 = vmatpush1.bf16.msra.mxu0 %v3788_v37 }
 0x548   :  { %v5000_v39 = vsub.f32 %v4880_v41, %v1559_v20  ;;  %v1560_v43 = vmul.f32 0.0078125, %v1507_v23  ;;  %v1437_v40 = vpop.f32.mrb[45].mxu1  ;;  %v1622_v58 = vmul.f32 %v4996_v22, %v4996_v22  ;;  %2052 = vmatprep.subr.bf16.mxu0 %v3793_v24  ;;  %v5025_v38 = vadd.f32 %v3716_v12, %v5926_v56 }
 0x549   :  { %v3717_v55 = vpop.f32.mrb[46].mxu1  ;;  %v1509_v4 = vpop.xlane.xlu1 %1508  ;;  %v5010_v16 = vadd.f32 %v1437_v40, %v5924_v15 }
 0x54a   :  { %v1561_v7 = vmul.f32 0.0078125, %v1509_v4  ;;  %1662 = vadd.xlane.f32.xlu0 %v1622_v58  ;;  %v1440_v8 = vpop.f32.mrb[47].mxu1  ;;  %v1623_v42 = vmul.f32 %v5000_v39, %v5000_v39  ;;  %v5007_v41 = vsub.f32 %v4884_v47, %v1560_v43  ;;  %v5031_v9 = vadd.f32 %v3717_v55, %v5927_v46 }
 0x54b   :  { %v1511_v30 = vpop.xlane.xlu0 %1510  ;;  %v5016_v59 = vadd.f32 %v1440_v8, %v5925_v51  ;;  %2053 = vmatpush1.bf16.msra.mxu0 %v3791_v1 }
 0x54c   :  { %1664 = vadd.xlane.f32.xlu1 %v1623_v42  ;;  %v5013_v61 = vsub.f32 %v4888_v48, %v1561_v7  ;;  %v1562_v35 = vmul.f32 0.0078125, %v1511_v30  ;;  %v1624_v47 = vmul.f32 %v5007_v41, %v5007_v41 }
 0x54d   :  { %v1513_v25 = vpop.xlane.xlu1 %1512 }
 0x54e   :  { %1542 = vadd.xlane.f32.xlu0 %v5010_v16  ;;  %v1563_v31 = vmul.f32 0.0078125, %v1513_v25  ;;  %v1625_v48 = vmul.f32 %v5013_v61, %v5013_v61  ;;  %v5028_v32 = vsub.f32 %v4892_v19, %v1562_v35 }
 0x54f   :  { %v1515_v5 = vpop.xlane.xlu0 %1514 }
 0x550   :  { %1544 = vadd.xlane.f32.xlu1 %v5016_v59  ;;  %v1564_v3 = vmul.f32 0.0078125, %v1515_v5  ;;  %v5034_v18 = vsub.f32 %v4896_v50, %v1563_v31  ;;  %v1626_v19 = vmul.f32 %v5028_v32, %v5028_v32 }
 0x551   :  { %v1517_v52 = vpop.xlane.xlu1 %1516 }
 0x552   :  { %1666 = vadd.xlane.f32.xlu0 %v1624_v47  ;;  %v1565_v34 = vmul.f32 0.0078125, %v1517_v52  ;;  %v5038_v20 = vsub.f32 %v4900_v62, %v1564_v3  ;;  %v1627_v12 = vmul.f32 %v5034_v18, %v5034_v18 }
 0x554   :  { %1668 = vadd.xlane.f32.xlu1 %v1625_v48  ;;  %v5044_v23 = vsub.f32 %v4904_v63, %v1565_v34  ;;  %v1628_v50 = vmul.f32 %v5038_v20, %v5038_v20 }
 0x556   :  { %1546 = vadd.xlane.f32.xlu0 %v5025_v38  ;;  %v1629_v62 = vmul.f32 %v5044_v23, %v5044_v23 }
 0x558   :  { %1548 = vadd.xlane.f32.xlu1 %v5031_v9 }
 0x55a   :  { %1670 = vadd.xlane.f32.xlu0 %v1626_v19 }
 0x55c   :  { %1672 = vadd.xlane.f32.xlu1 %v1627_v12 }
 0x55e   :  { %1674 = vadd.xlane.f32.xlu0 %v1628_v50 }
 0x560   :  { %1676 = vadd.xlane.f32.xlu1 %v1629_v62  ;;  %v1519_v43 = vpop.xlane.xlu0 %1518 }
 0x561   :  { %v1566_v40 = vmul.f32 0.0078125, %v1519_v43 }
 0x562   :  { %v1521_v58 = vpop.xlane.xlu1 %1520 }
 0x563   :  { %v5053_v54 = vsub.f32 %v4909_v17, %v1566_v40  ;;  %v1567_v63 = vmul.f32 0.0078125, %v1521_v58 }
 0x564   :  { %v1523_v55 = vpop.xlane.xlu0 %1522 }
 0x565   :  { %v5056_v4 = vsub.f32 %v4912_v45, %v1567_v63  ;;  %v1568_v37 = vmul.f32 0.0078125, %v1523_v55  ;;  %v1630_v7 = vmul.f32 %v5053_v54, %v5053_v54 }
 0x566   :  { %v1525_v8 = vpop.xlane.xlu1 %1524 }
 0x567   :  { %v5061_v42 = vsub.f32 %v4916_v14, %v1568_v37  ;;  %v1569_v30 = vmul.f32 0.0078125, %v1525_v8  ;;  %1678 = vadd.xlane.f32.xlu0 %v1630_v7  ;;  %v1631_v15 = vmul.f32 %v5056_v4, %v5056_v4 }
 0x569   :  { %v5066_v17 = vsub.f32 %v4920_v26, %v1569_v30  ;;  %1680 = vadd.xlane.f32.xlu1 %v1631_v15  ;;  %v1632_v45 = vmul.f32 %v5061_v42, %v5061_v42 }
 0x56b   :  { %1682 = vadd.xlane.f32.xlu0 %v1632_v45  ;;  %v1633_v24 = vmul.f32 %v5066_v17, %v5066_v17 }
 0x56d   :  { %1684 = vadd.xlane.f32.xlu1 %v1633_v24 }
 0x5b6   :  { %v1647_v25 = vpop.xlane.xlu0 %1646 }
 0x5b7   :  { %v1710_v14 = vmul.f32 0.0078125, %v1647_v25 }
 0x5b8   :  { %v1649_v1 = vpop.xlane.xlu1 %1648 }
 0x5b9   :  { %v1742_v51 = vadd.f32 1e-05, %v1710_v14  ;;  %v1711_v35 = vmul.f32 0.0078125, %v1649_v1 }
 0x5ba   :  { %v1527_v47 = vpop.xlane.xlu0 %1526 }
 0x5bb   :  { %3938 = vrsqrt.f32 %v1742_v51  ;;  %v1743_v5 = vadd.f32 1e-05, %v1711_v35  ;;  %v1570_v31 = vmul.f32 0.0078125, %v1527_v47 }
 0x5bc   :  { %v1529_v26 = vpop.xlane.xlu1 %1528 }
 0x5bd   :  { %3940 = vrsqrt.f32 %v1743_v5  ;;  %v5073_v48 = vsub.f32 %v4935_v11, %v1570_v31  ;;  %v1571_v52 = vmul.f32 0.0078125, %v1529_v26 }
 0x5be   :  { %v1651_v56 = vpop.xlane.xlu0 %1650 }
 0x5bf   :  { %v5076_v3 = vsub.f32 %v4941_v49, %v1571_v52  ;;  %v1712_v46 = vmul.f32 0.0078125, %v1651_v56  ;;  %v1634_v34 = vmul.f32 %v5073_v48, %v5073_v48  ;;  %v5085_v49 = vld [vmem:[%s5875_s9] ss:$0 sm:$0xff] }
 0x5c0   :  { %v1653_v19 = vpop.xlane.xlu1 %1652 }
 0x5c1   :  { %v1744_v12 = vadd.f32 1e-05, %v1712_v46  ;;  %v1713_v50 = vmul.f32 0.0078125, %v1653_v19  ;;  %1686 = vadd.xlane.f32.xlu0 %v1634_v34  ;;  %v1635_v62 = vmul.f32 %v5076_v3, %v5076_v3 }
 0x5c2   :  { %v1531_v43 = vpop.xlane.xlu0 %1530 }
 0x5c3   :  { %3942 = vrsqrt.f32 %v1744_v12  ;;  %v1745_v11 = vadd.f32 1e-05, %v1713_v50  ;;  %v1572_v40 = vmul.f32 0.0078125, %v1531_v43  ;;  %1688 = vadd.xlane.f32.xlu1 %v1635_v62 }
 0x5c4   :  { %v1533_v58 = vpop.xlane.xlu1 %1532 }
 0x5c5   :  { %v3939_v63 = vpop.eup %3938  ;;  %3944 = vrsqrt.f32 %v1745_v11  ;;  %v5088_v55 = vsub.f32 %v4953_v36, %v1572_v40  ;;  %v1573_v37 = vmul.f32 0.0078125, %v1533_v58 }
 0x5c6   :  { %v1806_v7 = vmul.f32 %v3939_v63, %v4925_v53  ;;  %v1655_v8 = vpop.xlane.xlu0 %1654 }
 0x5c7   :  { %v3941_v30 = vpop.eup %3940  ;;  %v5092_v15 = vsub.f32 %v4956_v29, %v1573_v37  ;;  %v1714_v45 = vmul.f32 0.0078125, %v1655_v8  ;;  %v1636_v24 = vmul.f32 %v5088_v55, %v5088_v55  ;;  %v5103_v29 = vld [vmem:[%s5876_s10] ss:$0 sm:$0xff] }
 0x5c8   :  { %v1844_v25 = vmul.f32 %v5085_v49, %v1806_v7  ;;  %v1807_v14 = vmul.f32 %v3941_v30, %v4930_v27  ;;  %v1657_v1 = vpop.xlane.xlu1 %1656 }
 0x5c9   :  { %v1746_v51 = vadd.f32 1e-05, %v1714_v45  ;;  %v1715_v36 = vmul.f32 0.0078125, %v1657_v1  ;;  %1690 = vadd.xlane.f32.xlu0 %v1636_v24  ;;  %v1637_v53 = vmul.f32 %v5092_v15, %v5092_v15 }
 0x5ca   :  { %v1845_v35 = vmul.f32 %v5085_v49, %v1807_v14  ;;  %v1535_v47 = vpop.xlane.xlu0 %1534  ;;  %v5107_v26 = vadd.f32 %v5103_v29, %v1844_v25 }
 0x5cb   :  { %3946 = vrsqrt.f32 %v1746_v51  ;;  %v1747_v5 = vadd.f32 1e-05, %v1715_v36  ;;  %v1574_v31 = vmul.f32 0.0078125, %v1535_v47  ;;  %1692 = vadd.xlane.f32.xlu1 %v1637_v53 }
 0x5cc   :  { %v1537_v27 = vpop.xlane.xlu1 %1536  ;;  %v5110_v52 = vadd.f32 %v5103_v29, %v1845_v35 }
 0x5cd   :  { %v3943_v56 = vpop.eup %3942  ;;  %3948 = vrsqrt.f32 %v1747_v5  ;;  %v5113_v46 = vsub.f32 %v4971_v33, %v1574_v31  ;;  %v1575_v34 = vmul.f32 0.0078125, %v1537_v27 }
 0x5ce   :  { %v1659_v19 = vpop.xlane.xlu0 %1658  ;;  %v1914_v12 = vpack.c.bf16 %v5110_v52, %v5107_v26  ;;  %v1808_v50 = vmul.f32 %v3943_v56, %v4938_v21 }
 0x5cf   :  { %v3945_v62 = vpop.eup %3944  ;;  %v5119_v43 = vsub.f32 %v4977_v44, %v1575_v34  ;;  %v1716_v11 = vmul.f32 0.0078125, %v1659_v19  ;;  %v1638_v40 = vmul.f32 %v5113_v46, %v5113_v46 }
 0x5d0   :  { %2071 = vmatmul.mubr.bf16.vlgmr.msra.gmra.mrb[80].mxu0 %v1914_v12  ;;  %v1661_v58 = vpop.xlane.xlu1 %1660  ;;  %v1809_v33 = vmul.f32 %v3945_v62, %v4945_v2  ;;  %v1846_v63 = vmul.f32 %v5085_v49, %v1808_v50 }
 0x5d1   :  { %v1748_v37 = vadd.f32 1e-05, %v1716_v11  ;;  %v1717_v7 = vmul.f32 0.0078125, %v1661_v58  ;;  %1694 = vadd.xlane.f32.xlu0 %v1638_v40  ;;  %v1639_v21 = vmul.f32 %v5119_v43, %v5119_v43  ;;  %2080 = vmatprep.mubr.bf16.mxu0 %v5912_v0 }
 0x5d2   :  { %v1539_v44 = vpop.xlane.xlu0 %1538  ;;  %v1847_v8 = vmul.f32 %v5085_v49, %v1809_v33  ;;  %v5130_v2 = vadd.f32 %v5103_v29, %v1846_v63 }
 0x5d3   :  { %3950 = vrsqrt.f32 %v1748_v37  ;;  %v1749_v30 = vadd.f32 1e-05, %v1717_v7  ;;  %v1576_v45 = vmul.f32 0.0078125, %v1539_v44  ;;  %1696 = vadd.xlane.f32.xlu1 %v1639_v21 }
 0x5d4   :  { %v1541_v24 = vpop.xlane.xlu1 %1540  ;;  %v5133_v25 = vadd.f32 %v5103_v29, %v1847_v8 }
 0x5d5   :  { %v3947_v14 = vpop.eup %3946  ;;  %3952 = vrsqrt.f32 %v1749_v30  ;;  %v5136_v1 = vsub.f32 %v4989_v6, %v1576_v45  ;;  %v1577_v51 = vmul.f32 0.0078125, %v1541_v24 }
 0x5d6   :  { %v1915_v36 = vpack.c.bf16 %v5133_v25, %v5130_v2  ;;  %v1810_v53 = vmul.f32 %v3947_v14, %v4960_v13 }
 0x5d7   :  { %v3949_v35 = vpop.eup %3948  ;;  %v5142_v47 = vsub.f32 %v4992_v10, %v1577_v51  ;;  %v1663_v5 = vpop.xlane.xlu0 %1662  ;;  %v1640_v31 = vmul.f32 %v5136_v1, %v5136_v1 }
 0x5d8   :  { %v1718_v27 = vmul.f32 0.0078125, %v1663_v5  ;;  %2081 = vmatmul.mubr.bf16.gmra.mrb[84].mxu0 %v1915_v36  ;;  %v1811_v56 = vmul.f32 %v3949_v35, %v4966_v28  ;;  %v1848_v6 = vmul.f32 %v5085_v49, %v1810_v53 }
 0x5d9   :  { %v1665_v34 = vpop.xlane.xlu1 %1664  ;;  %1698 = vadd.xlane.f32.xlu0 %v1640_v31  ;;  %v1641_v19 = vmul.f32 %v5142_v47, %v5142_v47  ;;  %2090 = vmatprep.mubr.bf16.mxu0 %v5912_v0 }
 0x5da   :  { %v1750_v13 = vadd.f32 1e-05, %v1718_v27  ;;  %v1719_v10 = vmul.f32 0.0078125, %v1665_v34  ;;  %v1849_v12 = vmul.f32 %v5085_v49, %v1811_v56  ;;  %v5153_v62 = vadd.f32 %v5103_v29, %v1848_v6 }
 0x5db   :  { %v1543_v50 = vpop.xlane.xlu0 %1542  ;;  %1700 = vadd.xlane.f32.xlu1 %v1641_v19 }
 0x5dc   :  { %3954 = vrsqrt.f32 %v1750_v13  ;;  %v1751_v28 = vadd.f32 1e-05, %v1719_v10  ;;  %v1578_v11 = vmul.f32 0.0078125, %v1543_v50  ;;  %v5156_v40 = vadd.f32 %v5103_v29, %v1849_v12 }
 0x5dd   :  { %v3951_v58 = vpop.eup %3950  ;;  %v1545_v33 = vpop.xlane.xlu1 %1544 }
 0x5de   :  { %3956 = vrsqrt.f32 %v1751_v28  ;;  %v5159_v63 = vsub.f32 %v5010_v16, %v1578_v11  ;;  %v1579_v37 = vmul.f32 0.0078125, %v1545_v33  ;;  %v1916_v7 = vpack.c.bf16 %v5156_v40, %v5153_v62 }
 0x5df   :  { %v3953_v21 = vpop.eup %3952  ;;  %v1667_v44 = vpop.xlane.xlu0 %1666  ;;  %v1812_v8 = vmul.f32 %v3951_v58, %v4974_v60 }
 0x5e0   :  { %v5165_v30 = vsub.f32 %v5016_v59, %v1579_v37  ;;  %v1720_v45 = vmul.f32 0.0078125, %v1667_v44  ;;  %2091 = vmatmul.mubr.bf16.gmra.mrb[88].mxu0 %v1916_v7  ;;  %v1642_v24 = vmul.f32 %v5159_v63, %v5159_v63  ;;  %v1813_v14 = vmul.f32 %v3953_v21, %v4981_v57 }
 0x5e1   :  { %v1669_v16 = vpop.xlane.xlu1 %1668  ;;  %2100 = vmatprep.mubr.bf16.mxu0 %v5912_v0  ;;  %v1850_v51 = vmul.f32 %v5085_v49, %v1812_v8 }
 0x5e2   :  { %v1752_v36 = vadd.f32 1e-05, %v1720_v45  ;;  %v1721_v53 = vmul.f32 0.0078125, %v1669_v16  ;;  %1702 = vadd.xlane.f32.xlu0 %v1642_v24  ;;  %v1643_v60 = vmul.f32 %v5165_v30, %v5165_v30  ;;  %v1851_v59 = vmul.f32 %v5085_v49, %v1813_v14 }
 0x5e3   :  { %v1547_v35 = vpop.xlane.xlu0 %1546  ;;  %v5176_v5 = vadd.f32 %v5103_v29, %v1850_v51 }
 0x5e4   :  { %3958 = vrsqrt.f32 %v1752_v36  ;;  %v1753_v31 = vadd.f32 1e-05, %v1721_v53  ;;  %v1580_v57 = vmul.f32 0.0078125, %v1547_v35  ;;  %1704 = vadd.xlane.f32.xlu1 %v1643_v60  ;;  %v5179_v27 = vadd.f32 %v5103_v29, %v1851_v59 }
 0x5e5   :  { %v1549_v56 = vpop.xlane.xlu1 %1548 }
 0x5e6   :  { %v3955_v6 = vpop.eup %3954  ;;  %3960 = vrsqrt.f32 %v1753_v31  ;;  %v5182_v34 = vsub.f32 %v5025_v38, %v1580_v57  ;;  %v1581_v19 = vmul.f32 0.0078125, %v1549_v56  ;;  %v1917_v13 = vpack.c.bf16 %v5179_v27, %v5176_v5 }
 0x5e7   :  { %v1671_v10 = vpop.xlane.xlu0 %1670  ;;  %v1814_v12 = vmul.f32 %v3955_v6, %v4996_v22 }
 0x5e8   :  { %v3957_v50 = vpop.eup %3956  ;;  %v5188_v28 = vsub.f32 %v5031_v9, %v1581_v19  ;;  %v1722_v11 = vmul.f32 0.0078125, %v1671_v10  ;;  %2101 = vmatmul.mubr.bf16.gmra.mrb[92].mxu0 %v1917_v13  ;;  %v1644_v58 = vmul.f32 %v5182_v34, %v5182_v34 }
 0x5e9   :  { %v1673_v33 = vpop.xlane.xlu1 %1672  ;;  %2110 = vmatprep.mubr.bf16.mxu0 %v5912_v0  ;;  %v1815_v38 = vmul.f32 %v3957_v50, %v5000_v39  ;;  %v1852_v37 = vmul.f32 %v5085_v49, %v1814_v12 }
 0x5ea   :  { %v1754_v7 = vadd.f32 1e-05, %v1722_v11  ;;  %v1723_v21 = vmul.f32 0.0078125, %v1673_v33  ;;  %1706 = vadd.xlane.f32.xlu0 %v1644_v58  ;;  %v1645_v22 = vmul.f32 %v5188_v28, %v5188_v28 }
 0x5eb   :  { %v1675_v9 = vpop.xlane.xlu0 %1674  ;;  %v1853_v44 = vmul.f32 %v5085_v49, %v1815_v38  ;;  %v5199_v14 = vadd.f32 %v5103_v29, %v1852_v37 }
 0x5ec   :  { %3962 = vrsqrt.f32 %v1754_v7  ;;  %v1755_v8 = vadd.f32 1e-05, %v1723_v21  ;;  %v1724_v45 = vmul.f32 0.0078125, %v1675_v9  ;;  %1708 = vadd.xlane.f32.xlu1 %v1645_v22 }
 0x5ed   :  { %v1677_v24 = vpop.xlane.xlu1 %1676  ;;  %v5202_v39 = vadd.f32 %v5103_v29, %v1853_v44 }
 0x5ee   :  { %v3959_v16 = vpop.eup %3958  ;;  %3964 = vrsqrt.f32 %v1755_v8  ;;  %v1756_v51 = vadd.f32 1e-05, %v1724_v45  ;;  %v1725_v36 = vmul.f32 0.0078125, %v1677_v24 }
 0x5ef   :  { %v1918_v53 = vpack.c.bf16 %v5202_v39, %v5199_v14  ;;  %v1816_v60 = vmul.f32 %v3959_v16, %v5007_v41 }
 0x5f0   :  { %v3961_v59 = vpop.eup %3960  ;;  %3966 = vrsqrt.f32 %v1756_v51  ;;  %v1757_v35 = vadd.f32 1e-05, %v1725_v36 }
 0x5f1   :  { %2111 = vmatmul.mubr.bf16.gmra.mrb[96].mxu0 %v1918_v53  ;;  %v1817_v31 = vmul.f32 %v3961_v59, %v5013_v61  ;;  %v1854_v57 = vmul.f32 %v5085_v49, %v1816_v60 }
 0x5f2   :  { %3968 = vrsqrt.f32 %v1757_v35  ;;  %2120 = vmatprep.mubr.bf16.mxu0 %v5912_v0 }
 0x5f3   :  { %v1855_v56 = vmul.f32 %v5085_v49, %v1817_v31  ;;  %v5212_v13 = vadd.f32 %v5103_v29, %v1854_v57 }
 0x5f4   :  { %v1679_v6 = vpop.xlane.xlu0 %1678 }
 0x5f5   :  { %v1726_v19 = vmul.f32 0.0078125, %v1679_v6  ;;  %v5215_v41 = vadd.f32 %v5103_v29, %v1855_v56 }
 0x5f6   :  { %v3963_v10 = vpop.eup %3962  ;;  %v1681_v12 = vpop.xlane.xlu1 %1680 }
 0x5f7   :  { %v1758_v50 = vadd.f32 1e-05, %v1726_v19  ;;  %v1727_v11 = vmul.f32 0.0078125, %v1681_v12  ;;  %v1919_v61 = vpack.c.bf16 %v5215_v41, %v5212_v13  ;;  %v1818_v58 = vmul.f32 %v3963_v10, %v5028_v32 }
 0x5f8   :  { %v3965_v33 = vpop.eup %3964  ;;  %v1683_v38 = vpop.xlane.xlu0 %1682 }
 0x5f9   :  { %3970 = vrsqrt.f32 %v1758_v50  ;;  %v1759_v37 = vadd.f32 1e-05, %v1727_v11  ;;  %v1728_v7 = vmul.f32 0.0078125, %v1683_v38  ;;  %2121 = vmatmul.mubr.bf16.gmra.mrb[100].mxu0 %v1919_v61  ;;  %v1819_v21 = vmul.f32 %v3965_v33, %v5034_v18  ;;  %v3794_v61 = vld [vmem:[#allocation11 + $0x40] sm:$0xff]  }
 0x5fa   :  { %v3967_v22 = vpop.eup %3966  ;;  %v1685_v9 = vpop.xlane.xlu1 %1684  ;;  %2130 = vmatprep.mubr.bf16.mxu0 %v5912_v0  ;;  %v1856_v44 = vmul.f32 %v5085_v49, %v1818_v58  ;;  %3478 = vmatprep.subr.bf16.mxu1 %v3794_v61 }
 0x5fb   :  { %3972 = vrsqrt.f32 %v1759_v37  ;;  %v1729_v8 = vmul.f32 0.0078125, %v1685_v9  ;;  %v1857_v45 = vmul.f32 %v5085_v49, %v1819_v21  ;;  %v1760_v32 = vadd.f32 1e-05, %v1728_v7  ;;  %v3795_v7 = vld [vmem:[#allocation11] sm:$0xff]  }
 0x5fc   :  { %v3969_v24 = vpop.eup %3968  ;;  %v5225_v16 = vadd.f32 %v5103_v29, %v1856_v44  ;;  %v1820_v18 = vmul.f32 %v3967_v22, %v5038_v20  ;;  %v3796_v22 = vld [vmem:[#allocation11 + $0x48] sm:$0xff]   ;;  %3479 = vmatpush3.bf16.msra.mxu1 %v3795_v7  ;;  %v3798_v44 = vld [vmem:[#allocation11 + $0x50] sm:$0xff]  }
 0x5fd   :  { %v1761_v51 = vadd.f32 1e-05, %v1729_v8  ;;  %v5228_v36 = vadd.f32 %v5103_v29, %v1857_v45  ;;  %v1821_v53 = vmul.f32 %v3969_v24, %v5044_v23  ;;  %3480 = vmatprep.subr.bf16.mxu1 %v3796_v22  ;;  %v3799_v8 = vld [vmem:[#allocation11 + $0x10] sm:$0xff]   ;;  %v3800_v24 = vld [vmem:[#allocation11 + $0x58] sm:$0xff]  }
 0x5fe   :  { %v1858_v35 = vmul.f32 %v5085_v49, %v1820_v18  ;;  %v3803_v18 = vld [vmem:[#allocation11 + $0x20] sm:$0xff]  }
 0x5ff   :  { %3974 = vrsqrt.f32 %v1761_v51  ;;  %v1920_v60 = vpack.c.bf16 %v5228_v36, %v5225_v16  ;;  %v1859_v59 = vmul.f32 %v5085_v49, %v1821_v53  ;;  %v3802_v51 = vld [vmem:[#allocation11 + $0x60] sm:$0xff]   ;;  %v3804_v53 = vld [vmem:[#allocation11 + $0x68] sm:$0xff]  }
 0x600   :  { %3976 = vrsqrt.f32 %v1760_v32  ;;  %v5241_v20 = vadd.f32 %v5103_v29, %v1858_v35  ;;  %v3801_v32 = vld [vmem:[#allocation11 + $0x18] sm:$0xff]   ;;  %v3807_v35 = vld [vmem:[#allocation11 + $0x30] sm:$0xff]  }
 0x601   :  { %2131 = vmatmul.mubr.bf16.gmra.mrb[104].mxu0 %v1920_v60  ;;  %v5238_v57 = vadd.f32 %v5103_v29, %v1859_v59  ;;  %v3805_v60 = vld [vmem:[#allocation11 + $0x28] sm:$0xff]   ;;  %v3806_v59 = vld [vmem:[#allocation11 + $0x70] sm:$0xff]  }
 0x602   :  { %2140 = vmatprep.mubr.bf16.mxu0 %v5912_v0 }
 0x603   :  { %v3971_v31 = vpop.eup %3970  ;;  %v1921_v19 = vpack.c.bf16 %v5238_v57, %v5241_v20 }
 0x604   :  { %v1822_v23 = vmul.f32 %v3971_v31, %v5053_v54  ;;  %v3808_v31 = vld [vmem:[#allocation11 + $0x78] sm:$0xff]  }
 0x605   :  { %v3973_v56 = vpop.eup %3972 }
 0x606   :  { %v1823_v6 = vmul.f32 %v3973_v56, %v5056_v4  ;;  %v1860_v50 = vmul.f32 %v5085_v49, %v1822_v23  ;;  %v3809_v56 = vld [vmem:[#allocation11 + $0x38] sm:$0xff]  }
 0x608   :  { %v1861_v10 = vmul.f32 %v5085_v49, %v1823_v6  ;;  %v5255_v4 = vadd.f32 %v5103_v29, %v1860_v50 }
 0x609   :  { %v3975_v12 = vpop.eup %3974  ;;  %2141 = vmatmul.mubr.bf16.gmra.mrb[108].mxu0 %v1921_v19 }
 0x60a   :  { %v3977_v11 = vpop.eup %3976  ;;  %2150 = vmatprep.mubr.bf16.mxu0 %v5912_v0  ;;  %v5251_v58 = vadd.f32 %v5103_v29, %v1861_v10  ;;  %v1825_v54 = vmul.f32 %v3975_v12, %v5066_v17  ;;  %v3797_v17 = vld [vmem:[#allocation11 + $0x8] sm:$0xff]  }
 0x60b   :  { %v1824_v33 = vmul.f32 %v3977_v11, %v5061_v42  ;;  %3481 = vmatpush3.bf16.msra.mxu1 %v3797_v17 }
 0x60c   :  { %v1922_v38 = vpack.c.bf16 %v5251_v58, %v5255_v4  ;;  %v1863_v37 = vmul.f32 %v5085_v49, %v1825_v54  ;;  %3482 = vmatprep.subr.bf16.mxu1 %v3798_v44 }
 0x60d   :  { %v1862_v21 = vmul.f32 %v5085_v49, %v1824_v33 }
 0x60e   :  { %v5264_v9 = vadd.f32 %v5103_v29, %v1863_v37 }
 0x60f   :  { %v5267_v42 = vadd.f32 %v5103_v29, %v1862_v21  ;;  %3483 = vmatpush3.bf16.msra.mxu1 %v3799_v8 }
 0x610   :  { %3484 = vmatprep.subr.bf16.mxu1 %v3800_v24 }
 0x611   :  { %2151 = vmatmul.mubr.bf16.gmra.mrb[112].mxu0 %v1922_v38  ;;  %v1923_v45 = vpack.c.bf16 %v5264_v9, %v5267_v42 }
 0x612   :  { %2160 = vmatprep.mubr.bf16.mxu0 %v5912_v0 }
 0x613   :  { %3485 = vmatpush3.bf16.msra.mxu1 %v3801_v32 }
 0x614   :  { %3486 = vmatprep.subr.bf16.mxu1 %v3802_v51 }
 0x617   :  { %3487 = vmatpush3.bf16.msra.mxu1 %v3803_v18 }
 0x618   :  { %3488 = vmatprep.subr.bf16.mxu1 %v3804_v53 }
 0x619   :  { %2161 = vmatmul.mubr.bf16.gmra.mrb[116].mxu0 %v1923_v45 }
 0x61a   :  { %2170 = vmatprep.mubr.bf16.mxu0 %v5912_v0 }
 0x61b   :  { %3489 = vmatpush3.bf16.msra.mxu1 %v3805_v60 }
 0x61c   :  { %3490 = vmatprep.subr.bf16.mxu1 %v3806_v59 }
 0x61f   :  { %3491 = vmatpush3.bf16.msra.mxu1 %v3807_v35 }
 0x620   :  { %3492 = vmatprep.subr.bf16.mxu1 %v3808_v31 }
 0x623   :  { %3493 = vmatpush3.bf16.msra.mxu1 %v3809_v56 }
 0x64e   :  { %v1687_v23 = vpop.xlane.xlu0 %1686 }
 0x64f   :  { %v1730_v6 = vmul.f32 0.0078125, %v1687_v23 }
 0x650   :  { %v1689_v19 = vpop.xlane.xlu1 %1688 }
 0x651   :  { %v1762_v10 = vadd.f32 1e-05, %v1730_v6  ;;  %v1731_v12 = vmul.f32 0.0078125, %v1689_v19 }
 0x653   :  { %3978 = vrsqrt.f32 %v1762_v10  ;;  %v1763_v50 = vadd.f32 1e-05, %v1731_v12 }
 0x655   :  { %3980 = vrsqrt.f32 %v1763_v50 }
 0x656   :  { %v1691_v11 = vpop.xlane.xlu0 %1690 }
 0x657   :  { %v1732_v61 = vmul.f32 0.0078125, %v1691_v11 }
 0x658   :  { %v1693_v54 = vpop.xlane.xlu1 %1692 }
 0x659   :  { %v1764_v33 = vadd.f32 1e-05, %v1732_v61  ;;  %v1733_v38 = vmul.f32 0.0078125, %v1693_v54 }
 0x65b   :  { %3982 = vrsqrt.f32 %v1764_v33  ;;  %v1765_v37 = vadd.f32 1e-05, %v1733_v38 }
 0x65d   :  { %v3979_v7 = vpop.eup %3978  ;;  %3984 = vrsqrt.f32 %v1765_v37 }
 0x65e   :  { %v1695_v21 = vpop.xlane.xlu0 %1694  ;;  %v1826_v22 = vmul.f32 %v3979_v7, %v5073_v48 }
 0x65f   :  { %v3981_v17 = vpop.eup %3980  ;;  %v1734_v44 = vmul.f32 0.0078125, %v1695_v21 }
 0x660   :  { %v1697_v8 = vpop.xlane.xlu1 %1696  ;;  %v1827_v45 = vmul.f32 %v3981_v17, %v5076_v3  ;;  %v1864_v24 = vmul.f32 %v5085_v49, %v1826_v22 }
 0x661   :  { %v1766_v32 = vadd.f32 1e-05, %v1734_v44  ;;  %v1735_v51 = vmul.f32 0.0078125, %v1697_v8 }
 0x662   :  { %v1865_v18 = vmul.f32 %v5085_v49, %v1827_v45  ;;  %v5277_v60 = vadd.f32 %v5103_v29, %v1864_v24 }
 0x663   :  { %3986 = vrsqrt.f32 %v1766_v32  ;;  %v1767_v53 = vadd.f32 1e-05, %v1735_v51 }
 0x664   :  { %v5280_v59 = vadd.f32 %v5103_v29, %v1865_v18 }
 0x665   :  { %v3983_v48 = vpop.eup %3982  ;;  %3988 = vrsqrt.f32 %v1767_v53 }
 0x666   :  { %v1699_v35 = vpop.xlane.xlu0 %1698  ;;  %v1924_v3 = vpack.c.bf16 %v5280_v59, %v5277_v60  ;;  %v1828_v31 = vmul.f32 %v3983_v48, %v5088_v55 }
 0x667   :  { %v3985_v56 = vpop.eup %3984  ;;  %v1736_v23 = vmul.f32 0.0078125, %v1699_v35 }
 0x668   :  { %2171 = vmatmul.mubr.bf16.gmra.mrb[120].mxu0 %v1924_v3  ;;  %v1701_v6 = vpop.xlane.xlu1 %1700  ;;  %v1829_v19 = vmul.f32 %v3985_v56, %v5092_v15  ;;  %v1866_v10 = vmul.f32 %v5085_v49, %v1828_v31 }
 0x669   :  { %v1768_v12 = vadd.f32 1e-05, %v1736_v23  ;;  %v1737_v50 = vmul.f32 0.0078125, %v1701_v6  ;;  %2180 = vmatprep.mubr.bf16.mxu0 %v5912_v0 }
 0x66a   :  { %v1867_v11 = vmul.f32 %v5085_v49, %v1829_v19  ;;  %v5290_v54 = vadd.f32 %v5103_v29, %v1866_v10 }
 0x66b   :  { %3990 = vrsqrt.f32 %v1768_v12  ;;  %v1769_v61 = vadd.f32 1e-05, %v1737_v50 }
 0x66c   :  { %v5293_v55 = vadd.f32 %v5103_v29, %v1867_v11 }
 0x66d   :  { %v3987_v33 = vpop.eup %3986  ;;  %3992 = vrsqrt.f32 %v1769_v61 }
 0x66e   :  { %v1925_v15 = vpack.c.bf16 %v5293_v55, %v5290_v54  ;;  %v1830_v38 = vmul.f32 %v3987_v33, %v5113_v46 }
 0x66f   :  { %v3989_v37 = vpop.eup %3988  ;;  %v1703_v7 = vpop.xlane.xlu0 %1702 }
 0x670   :  { %v1738_v21 = vmul.f32 0.0078125, %v1703_v7  ;;  %2181 = vmatmul.mubr.bf16.gmra.mrb[124].mxu0 %v1925_v15  ;;  %v1831_v22 = vmul.f32 %v3989_v37, %v5119_v43  ;;  %v1868_v17 = vmul.f32 %v5085_v49, %v1830_v38 }
 0x671   :  { %v1705_v44 = vpop.xlane.xlu1 %1704  ;;  %2190 = vmatprep.mubr.bf16.mxu0 %v5912_v0 }
 0x672   :  { %v1770_v8 = vadd.f32 1e-05, %v1738_v21  ;;  %v1739_v45 = vmul.f32 0.0078125, %v1705_v44  ;;  %v1869_v24 = vmul.f32 %v5085_v49, %v1831_v22  ;;  %v5303_v51 = vadd.f32 %v5103_v29, %v1868_v17 }
 0x674   :  { %3994 = vrsqrt.f32 %v1770_v8  ;;  %v1771_v32 = vadd.f32 1e-05, %v1739_v45  ;;  %v5306_v46 = vadd.f32 %v5103_v29, %v1869_v24 }
 0x675   :  { %v3991_v18 = vpop.eup %3990 }
 0x676   :  { %3996 = vrsqrt.f32 %v1771_v32  ;;  %v1926_v43 = vpack.c.bf16 %v5306_v46, %v5303_v51  ;;  %v1832_v53 = vmul.f32 %v3991_v18, %v5136_v1 }
 0x677   :  { %v3993_v48 = vpop.eup %3992  ;;  %v1707_v35 = vpop.xlane.xlu0 %1706 }
 0x678   :  { %v1740_v3 = vmul.f32 0.0078125, %v1707_v35  ;;  %2191 = vmatmul.mubr.bf16.gmra.mrb[128].mxu0 %v1926_v43  ;;  %v1833_v31 = vmul.f32 %v3993_v48, %v5142_v47  ;;  %v1870_v56 = vmul.f32 %v5085_v49, %v1832_v53 }
 0x679   :  { %v1709_v23 = vpop.xlane.xlu1 %1708  ;;  %2200 = vmatprep.mubr.bf16.mxu0 %v5912_v0 }
 0x67a   :  { %v1772_v6 = vadd.f32 1e-05, %v1740_v3  ;;  %v1741_v19 = vmul.f32 0.0078125, %v1709_v23  ;;  %v1871_v10 = vmul.f32 %v5085_v49, %v1833_v31  ;;  %v5316_v50 = vadd.f32 %v5103_v29, %v1870_v56 }
 0x67c   :  { %3998 = vrsqrt.f32 %v1772_v6  ;;  %v1773_v12 = vadd.f32 1e-05, %v1741_v19  ;;  %v5319_v1 = vadd.f32 %v5103_v29, %v1871_v10 }
 0x67e   :  { %v3995_v11 = vpop.eup %3994  ;;  %4000 = vrsqrt.f32 %v1773_v12  ;;  %v1927_v47 = vpack.c.bf16 %v5319_v1, %v5316_v50 }
 0x67f   :  { %v1834_v61 = vmul.f32 %v3995_v11, %v5159_v63 }
 0x680   :  { %v3997_v33 = vpop.eup %3996  ;;  %2201 = vmatmul.mubr.bf16.gmra.mrb[132].mxu0 %v1927_v47 }
 0x681   :  { %2210 = vmatprep.mubr.bf16.mxu0 %v5912_v0  ;;  %v1835_v15 = vmul.f32 %v3997_v33, %v5165_v30  ;;  %v1872_v38 = vmul.f32 %v5085_v49, %v1834_v61 }
 0x683   :  { %v1873_v37 = vmul.f32 %v5085_v49, %v1835_v15  ;;  %v5329_v7 = vadd.f32 %v5103_v29, %v1872_v38 }
 0x685   :  { %v5332_v21 = vadd.f32 %v5103_v29, %v1873_v37 }
 0x686   :  { %v3999_v22 = vpop.eup %3998 }
 0x687   :  { %v1928_v63 = vpack.c.bf16 %v5332_v21, %v5329_v7  ;;  %v1836_v17 = vmul.f32 %v3999_v22, %v5182_v34  ;;  %v1948_v34 = vlaneseq }
 0x688   :  { %v4001_v44 = vpop.eup %4000 }
 0x689   :  { %2211 = vmatmul.mubr.bf16.gmra.mrb[136].mxu0 %v1928_v63  ;;  %v1837_v30 = vmul.f32 %v4001_v44, %v5188_v28  ;;  %v1874_v8 = vmul.f32 %v5085_v49, %v1836_v17  ;;  %v1949_v43 = vshrl.u32 %v1948_v34, 7  ;;  %v1946_v28 = vld [vmem:[%s5872_s6] sm:$0x3] }
 0x68a   :  { %2220 = vmatprep.mubr.bf16.mxu0 %v5912_v0 }
 0x68b   :  { %v1875_v45 = vmul.f32 %v5085_v49, %v1837_v30  ;;  %v5342_v24 = vadd.f32 %v5103_v29, %v1874_v8  ;;  %v1950_v53 = vsub.s32 0, %v1949_v43  ;;  %v1954_v0 = vsub.s32 1, %v1949_v43 }
 0x68d   :  { %v5345_v32 = vadd.f32 %v5103_v29, %v1875_v45  ;;  %v5352_v48 = vrot.slane %v1946_v28, %v1950_v53  ;;  %v5354_v49 = vrot.slane %v1946_v28, %v1954_v0 }
 0x68f   :  { %v1929_v18 = vpack.c.bf16 %v5345_v32, %v5342_v24 }
 0x691   :  { %2221 = vmatmul.mubr.bf16.gmra.mrb[140].mxu0 %v1929_v18 }
 0x6a3   :  { %v2072_v35 = vpop.f32.mrb[80].mxu0 }
 0x6a4   :  { %v2073_v29 = vadd.f32 %v2072_v35, %v5352_v48  ;;  %v2074_v3 = vpop.f32.mrb[81].mxu0 }
 0x6a5   :  { %v2075_v31 = vadd.f32 %v2074_v3, %v5354_v49  ;;  %v2076_v56 = vpop.f32.mrb[82].mxu0 }
 0x6a6   :  { %v2295_v23 = vmul.f32 0.01, %v2073_v29  ;;  %v2077_v6 = vadd.f32 %v2076_v56, %v5352_v48  ;;  %v2078_v19 = vpop.f32.mrb[83].mxu0  ;;  %vm2231_vm0 = vcmp.gt.f32.partialorder %v2073_v29, 0.0 }
 0x6a7   :  { %v2296_v10 = vmul.f32 0.01, %v2075_v31  ;;  %v2079_v12 = vadd.f32 %v2078_v19, %v5354_v49  ;;  %vm2232_vm1 = vcmp.gt.f32.partialorder %v2075_v31, 0.0 }
 0x6a8   :  { %vm2233_vm2 = vcmp.gt.f32.partialorder %v2077_v6, 0.0  ;;  %v2297_v11 = vmul.f32 0.01, %v2077_v6  ;;  %v2359_v61 = vsel %vm2231_vm0, %v2073_v29, %v2295_v23 }
 0x6a9   :  { %vm2234_vm3 = vcmp.gt.f32.partialorder %v2079_v12, 0.0  ;;  %v2298_v47 = vmul.f32 0.01, %v2079_v12  ;;  %v2360_v37 = vsel %vm2232_vm1, %v2075_v31, %v2296_v10 }
 0x6aa   :  { %v2361_v33 = vsel %vm2233_vm2, %v2077_v6, %v2297_v11 }
 0x6ab   :  { %v2423_v15 = vpack.c.bf16 %v2361_v33, %v2359_v61  ;;  %v2082_v38 = vpop.f32.mrb[84].mxu0  ;;  %v2362_v22 = vsel %vm2234_vm3, %v2079_v12, %v2298_v47 }
 0x6ac   :  { %v2083_v63 = vadd.f32 %v2082_v38, %v5352_v48  ;;  %v2084_v17 = vpop.f32.mrb[85].mxu0  ;;  %v2424_v44 = vpack.c.bf16 %v2362_v22, %v2360_v37 }
 0x6ad   :  { %v2085_v30 = vadd.f32 %v2084_v17, %v5354_v49  ;;  %v2086_v8 = vpop.f32.mrb[86].mxu0 }
 0x6ae   :  { %v2299_v45 = vmul.f32 0.01, %v2083_v63  ;;  %v2087_v18 = vadd.f32 %v2086_v8, %v5352_v48  ;;  %v2088_v34 = vpop.f32.mrb[87].mxu0  ;;  %2622 = vmatprep.mubr.bf16.mxu1 %v2424_v44  ;;  %vm2235_vm4 = vcmp.gt.f32.partialorder %v2083_v63, 0.0 }
 0x6af   :  { %v2300_v43 = vmul.f32 0.01, %v2085_v30  ;;  %v2089_v53 = vadd.f32 %v2088_v34, %v5354_v49  ;;  %2623 = vmatmul.mubr.bf16.vlgmr.msra.gmra.mrb[48].mxu1 %v2423_v15  ;;  %vm2236_vm5 = vcmp.gt.f32.partialorder %v2085_v30, 0.0 }
 0x6b0   :  { %vm2237_vm6 = vcmp.gt.f32.partialorder %v2087_v18, 0.0  ;;  %v2301_v28 = vmul.f32 0.01, %v2087_v18  ;;  %v2363_v35 = vsel %vm2235_vm4, %v2083_v63, %v2299_v45 }
 0x6b1   :  { %vm2238_vm7 = vcmp.gt.f32.partialorder %v2089_v53, 0.0  ;;  %v2302_v0 = vmul.f32 0.01, %v2089_v53  ;;  %v2364_v31 = vsel %vm2236_vm5, %v2085_v30, %v2300_v43 }
 0x6b2   :  { %v2365_v29 = vsel %vm2237_vm6, %v2087_v18, %v2301_v28 }
 0x6b3   :  { %v2092_v3 = vpop.f32.mrb[88].mxu0  ;;  %v2366_v56 = vsel %vm2238_vm7, %v2089_v53, %v2302_v0  ;;  %v2425_v23 = vpack.c.bf16 %v2365_v29, %v2363_v35 }
 0x6b4   :  { %v2093_v6 = vadd.f32 %v2092_v3, %v5352_v48  ;;  %v2094_v19 = vpop.f32.mrb[89].mxu0  ;;  %v2426_v10 = vpack.c.bf16 %v2366_v56, %v2364_v31 }
 0x6b5   :  { %v2095_v12 = vadd.f32 %v2094_v19, %v5354_v49  ;;  %v2096_v11 = vpop.f32.mrb[90].mxu0 }
 0x6b6   :  { %v2303_v47 = vmul.f32 0.01, %v2093_v6  ;;  %v2097_v61 = vadd.f32 %v2096_v11, %v5352_v48  ;;  %v2098_v33 = vpop.f32.mrb[91].mxu0  ;;  %2630 = vmatprep.mubr.bf16.mxu1 %v2426_v10  ;;  %vm2239_vm8 = vcmp.gt.f32.partialorder %v2093_v6, 0.0 }
 0x6b7   :  { %v2304_v15 = vmul.f32 0.01, %v2095_v12  ;;  %v2099_v38 = vadd.f32 %v2098_v33, %v5354_v49  ;;  %2631 = vmatmul.mubr.bf16.gmra.mrb[52].mxu1 %v2425_v23  ;;  %vm2240_vm9 = vcmp.gt.f32.partialorder %v2095_v12, 0.0 }
 0x6b8   :  { %vm2241_vm10 = vcmp.gt.f32.partialorder %v2097_v61, 0.0  ;;  %v2305_v37 = vmul.f32 0.01, %v2097_v61  ;;  %v2367_v63 = vsel %vm2239_vm8, %v2093_v6, %v2303_v47 }
 0x6b9   :  { %vm2242_vm11 = vcmp.gt.f32.partialorder %v2099_v38, 0.0  ;;  %v2306_v22 = vmul.f32 0.01, %v2099_v38  ;;  %v2368_v30 = vsel %vm2240_vm9, %v2095_v12, %v2304_v15 }
 0x6ba   :  { %v2369_v17 = vsel %vm2241_vm10, %v2097_v61, %v2305_v37 }
 0x6bb   :  { %v2102_v44 = vpop.f32.mrb[92].mxu0  ;;  %v2370_v8 = vsel %vm2242_vm11, %v2099_v38, %v2306_v22  ;;  %v2427_v45 = vpack.c.bf16 %v2369_v17, %v2367_v63 }
 0x6bc   :  { %v2103_v18 = vadd.f32 %v2102_v44, %v5352_v48  ;;  %v2104_v34 = vpop.f32.mrb[93].mxu0  ;;  %v2428_v43 = vpack.c.bf16 %v2370_v8, %v2368_v30 }
 0x6bd   :  { %v2105_v53 = vadd.f32 %v2104_v34, %v5354_v49  ;;  %v2106_v28 = vpop.f32.mrb[94].mxu0 }
 0x6be   :  { %v2307_v0 = vmul.f32 0.01, %v2103_v18  ;;  %v2107_v35 = vadd.f32 %v2106_v28, %v5352_v48  ;;  %v2108_v29 = vpop.f32.mrb[95].mxu0  ;;  %2638 = vmatprep.mubr.bf16.mxu1 %v2428_v43  ;;  %vm2243_vm12 = vcmp.gt.f32.partialorder %v2103_v18, 0.0 }
 0x6bf   :  { %v2308_v3 = vmul.f32 0.01, %v2105_v53  ;;  %v2109_v31 = vadd.f32 %v2108_v29, %v5354_v49  ;;  %2639 = vmatmul.mubr.bf16.gmra.mrb[56].mxu1 %v2427_v45  ;;  %vm2244_vm13 = vcmp.gt.f32.partialorder %v2105_v53, 0.0 }
 0x6c0   :  { %vm2245_vm14 = vcmp.gt.f32.partialorder %v2107_v35, 0.0  ;;  %v2309_v56 = vmul.f32 0.01, %v2107_v35  ;;  %v2371_v6 = vsel %vm2243_vm12, %v2103_v18, %v2307_v0 }
 0x6c1   :  { %vm2246_vm15 = vcmp.gt.f32.partialorder %v2109_v31, 0.0  ;;  %v2310_v23 = vmul.f32 0.01, %v2109_v31  ;;  %v2372_v10 = vsel %vm2244_vm13, %v2105_v53, %v2308_v3 }
 0x6c2   :  { %v2373_v19 = vsel %vm2245_vm14, %v2107_v35, %v2309_v56 }
 0x6c3   :  { %v2374_v12 = vsel %vm2246_vm15, %v2109_v31, %v2310_v23  ;;  %v2429_v11 = vpack.c.bf16 %v2373_v19, %v2371_v6 }
 0x6c4   :  { %v2112_v47 = vpop.f32.mrb[96].mxu0  ;;  %v2430_v61 = vpack.c.bf16 %v2374_v12, %v2372_v10 }
 0x6c5   :  { %v2113_v33 = vadd.f32 %v2112_v47, %v5352_v48  ;;  %v2114_v15 = vpop.f32.mrb[97].mxu0 }
 0x6c6   :  { %v2115_v38 = vadd.f32 %v2114_v15, %v5354_v49  ;;  %v2116_v37 = vpop.f32.mrb[98].mxu0  ;;  %2646 = vmatprep.mubr.bf16.mxu1 %v2430_v61 }
 0x6c7   :  { %v2311_v22 = vmul.f32 0.01, %v2113_v33  ;;  %v2117_v63 = vadd.f32 %v2116_v37, %v5352_v48  ;;  %v2118_v17 = vpop.f32.mrb[99].mxu0  ;;  %2647 = vmatmul.mubr.bf16.gmra.mrb[60].mxu1 %v2429_v11  ;;  %vm2247_vm0 = vcmp.gt.f32.partialorder %v2113_v33, 0.0 }
 0x6c8   :  { %v2312_v44 = vmul.f32 0.01, %v2115_v38  ;;  %v2119_v30 = vadd.f32 %v2118_v17, %v5354_v49  ;;  %vm2248_vm1 = vcmp.gt.f32.partialorder %v2115_v38, 0.0 }
 0x6c9   :  { %vm2249_vm2 = vcmp.gt.f32.partialorder %v2117_v63, 0.0  ;;  %v2313_v8 = vmul.f32 0.01, %v2117_v63  ;;  %v2375_v18 = vsel %vm2247_vm0, %v2113_v33, %v2311_v22 }
 0x6ca   :  { %vm2250_vm3 = vcmp.gt.f32.partialorder %v2119_v30, 0.0  ;;  %v2314_v45 = vmul.f32 0.01, %v2119_v30  ;;  %v2376_v53 = vsel %vm2248_vm1, %v2115_v38, %v2312_v44 }
 0x6cb   :  { %v2377_v34 = vsel %vm2249_vm2, %v2117_v63, %v2313_v8 }
 0x6cc   :  { %v2122_v43 = vpop.f32.mrb[100].mxu0  ;;  %v2378_v28 = vsel %vm2250_vm3, %v2119_v30, %v2314_v45  ;;  %v2431_v0 = vpack.c.bf16 %v2377_v34, %v2375_v18 }
 0x6cd   :  { %v2123_v35 = vadd.f32 %v2122_v43, %v5352_v48  ;;  %v2124_v29 = vpop.f32.mrb[101].mxu0  ;;  %v2432_v3 = vpack.c.bf16 %v2378_v28, %v2376_v53 }
 0x6ce   :  { %v2125_v31 = vadd.f32 %v2124_v29, %v5354_v49  ;;  %v2126_v56 = vpop.f32.mrb[102].mxu0 }
 0x6cf   :  { %v2315_v23 = vmul.f32 0.01, %v2123_v35  ;;  %v2127_v6 = vadd.f32 %v2126_v56, %v5352_v48  ;;  %v2128_v19 = vpop.f32.mrb[103].mxu0  ;;  %2654 = vmatprep.mubr.bf16.mxu1 %v2432_v3  ;;  %vm2251_vm4 = vcmp.gt.f32.partialorder %v2123_v35, 0.0 }
 0x6d0   :  { %v2316_v10 = vmul.f32 0.01, %v2125_v31  ;;  %v2129_v12 = vadd.f32 %v2128_v19, %v5354_v49  ;;  %2655 = vmatmul.mubr.bf16.gmra.mrb[64].mxu1 %v2431_v0  ;;  %vm2252_vm5 = vcmp.gt.f32.partialorder %v2125_v31, 0.0 }
 0x6d1   :  { %vm2253_vm6 = vcmp.gt.f32.partialorder %v2127_v6, 0.0  ;;  %v2317_v11 = vmul.f32 0.01, %v2127_v6  ;;  %v2379_v61 = vsel %vm2251_vm4, %v2123_v35, %v2315_v23 }
 0x6d2   :  { %vm2254_vm7 = vcmp.gt.f32.partialorder %v2129_v12, 0.0  ;;  %v2318_v47 = vmul.f32 0.01, %v2129_v12  ;;  %v2380_v38 = vsel %vm2252_vm5, %v2125_v31, %v2316_v10 }
 0x6d3   :  { %v2381_v33 = vsel %vm2253_vm6, %v2127_v6, %v2317_v11 }
 0x6d4   :  { %v2132_v15 = vpop.f32.mrb[104].mxu0  ;;  %v2382_v37 = vsel %vm2254_vm7, %v2129_v12, %v2318_v47  ;;  %v2433_v22 = vpack.c.bf16 %v2381_v33, %v2379_v61 }
 0x6d5   :  { %v2133_v63 = vadd.f32 %v2132_v15, %v5352_v48  ;;  %v2134_v17 = vpop.f32.mrb[105].mxu0  ;;  %v2434_v44 = vpack.c.bf16 %v2382_v37, %v2380_v38 }
 0x6d6   :  { %v2135_v30 = vadd.f32 %v2134_v17, %v5354_v49  ;;  %v2136_v8 = vpop.f32.mrb[106].mxu0 }
 0x6d7   :  { %v2319_v45 = vmul.f32 0.01, %v2133_v63  ;;  %v2137_v18 = vadd.f32 %v2136_v8, %v5352_v48  ;;  %v2138_v34 = vpop.f32.mrb[107].mxu0  ;;  %2662 = vmatprep.mubr.bf16.mxu1 %v2434_v44  ;;  %vm2255_vm8 = vcmp.gt.f32.partialorder %v2133_v63, 0.0 }
 0x6d8   :  { %v2320_v43 = vmul.f32 0.01, %v2135_v30  ;;  %v2139_v53 = vadd.f32 %v2138_v34, %v5354_v49  ;;  %2663 = vmatmul.mubr.bf16.gmra.mrb[68].mxu1 %v2433_v22  ;;  %vm2256_vm9 = vcmp.gt.f32.partialorder %v2135_v30, 0.0 }
 0x6d9   :  { %vm2257_vm10 = vcmp.gt.f32.partialorder %v2137_v18, 0.0  ;;  %v2321_v28 = vmul.f32 0.01, %v2137_v18  ;;  %v2383_v35 = vsel %vm2255_vm8, %v2133_v63, %v2319_v45 }
 0x6da   :  { %vm2258_vm11 = vcmp.gt.f32.partialorder %v2139_v53, 0.0  ;;  %v2322_v0 = vmul.f32 0.01, %v2139_v53  ;;  %v2384_v31 = vsel %vm2256_vm9, %v2135_v30, %v2320_v43 }
 0x6db   :  { %v2385_v29 = vsel %vm2257_vm10, %v2137_v18, %v2321_v28 }
 0x6dc   :  { %v2142_v3 = vpop.f32.mrb[108].mxu0  ;;  %v2386_v56 = vsel %vm2258_vm11, %v2139_v53, %v2322_v0  ;;  %v2435_v23 = vpack.c.bf16 %v2385_v29, %v2383_v35 }
 0x6dd   :  { %v2143_v6 = vadd.f32 %v2142_v3, %v5352_v48  ;;  %v2144_v19 = vpop.f32.mrb[109].mxu0  ;;  %v2436_v10 = vpack.c.bf16 %v2386_v56, %v2384_v31 }
 0x6de   :  { %v2145_v12 = vadd.f32 %v2144_v19, %v5354_v49  ;;  %v2146_v11 = vpop.f32.mrb[110].mxu0 }
 0x6df   :  { %v2323_v47 = vmul.f32 0.01, %v2143_v6  ;;  %v2147_v61 = vadd.f32 %v2146_v11, %v5352_v48  ;;  %v2148_v33 = vpop.f32.mrb[111].mxu0  ;;  %2670 = vmatprep.mubr.bf16.mxu1 %v2436_v10  ;;  %vm2259_vm12 = vcmp.gt.f32.partialorder %v2143_v6, 0.0 }
 0x6e0   :  { %v2324_v15 = vmul.f32 0.01, %v2145_v12  ;;  %v2149_v38 = vadd.f32 %v2148_v33, %v5354_v49  ;;  %2671 = vmatmul.mubr.bf16.gmra.mrb[72].mxu1 %v2435_v23  ;;  %vm2260_vm13 = vcmp.gt.f32.partialorder %v2145_v12, 0.0 }
 0x6e1   :  { %vm2261_vm14 = vcmp.gt.f32.partialorder %v2147_v61, 0.0  ;;  %v2325_v37 = vmul.f32 0.01, %v2147_v61  ;;  %v2387_v63 = vsel %vm2259_vm12, %v2143_v6, %v2323_v47 }
 0x6e2   :  { %vm2262_vm15 = vcmp.gt.f32.partialorder %v2149_v38, 0.0  ;;  %v2326_v22 = vmul.f32 0.01, %v2149_v38  ;;  %v2388_v30 = vsel %vm2260_vm13, %v2145_v12, %v2324_v15 }
 0x6e3   :  { %v2389_v17 = vsel %vm2261_vm14, %v2147_v61, %v2325_v37 }
 0x6e4   :  { %v2152_v44 = vpop.f32.mrb[112].mxu0  ;;  %v2390_v8 = vsel %vm2262_vm15, %v2149_v38, %v2326_v22  ;;  %v2437_v45 = vpack.c.bf16 %v2389_v17, %v2387_v63 }
 0x6e5   :  { %v2153_v18 = vadd.f32 %v2152_v44, %v5352_v48  ;;  %v2154_v34 = vpop.f32.mrb[113].mxu0  ;;  %v2438_v43 = vpack.c.bf16 %v2390_v8, %v2388_v30 }
 0x6e6   :  { %v2155_v53 = vadd.f32 %v2154_v34, %v5354_v49  ;;  %v2156_v28 = vpop.f32.mrb[114].mxu0 }
 0x6e7   :  { %v2327_v0 = vmul.f32 0.01, %v2153_v18  ;;  %v2157_v35 = vadd.f32 %v2156_v28, %v5352_v48  ;;  %v2158_v29 = vpop.f32.mrb[115].mxu0  ;;  %2678 = vmatprep.mubr.bf16.mxu1 %v2438_v43  ;;  %vm2263_vm0 = vcmp.gt.f32.partialorder %v2153_v18, 0.0 }
 0x6e8   :  { %v2328_v3 = vmul.f32 0.01, %v2155_v53  ;;  %v2159_v31 = vadd.f32 %v2158_v29, %v5354_v49  ;;  %2679 = vmatmul.mubr.bf16.gmra.mrb[76].mxu1 %v2437_v45  ;;  %vm2264_vm1 = vcmp.gt.f32.partialorder %v2155_v53, 0.0 }
 0x6e9   :  { %vm2265_vm2 = vcmp.gt.f32.partialorder %v2157_v35, 0.0  ;;  %v2329_v56 = vmul.f32 0.01, %v2157_v35  ;;  %v2391_v6 = vsel %vm2263_vm0, %v2153_v18, %v2327_v0 }
 0x6ea   :  { %vm2266_vm3 = vcmp.gt.f32.partialorder %v2159_v31, 0.0  ;;  %v2330_v23 = vmul.f32 0.01, %v2159_v31  ;;  %v2392_v12 = vsel %vm2264_vm1, %v2155_v53, %v2328_v3 }
 0x6eb   :  { %v2393_v19 = vsel %vm2265_vm2, %v2157_v35, %v2329_v56 }
 0x6ec   :  { %v2162_v10 = vpop.f32.mrb[116].mxu0  ;;  %v2394_v11 = vsel %vm2266_vm3, %v2159_v31, %v2330_v23  ;;  %v2439_v47 = vpack.c.bf16 %v2393_v19, %v2391_v6 }
 0x6ed   :  { %v2163_v61 = vadd.f32 %v2162_v10, %v5352_v48  ;;  %v2164_v33 = vpop.f32.mrb[117].mxu0  ;;  %v2440_v15 = vpack.c.bf16 %v2394_v11, %v2392_v12 }
 0x6ee   :  { %v2165_v38 = vadd.f32 %v2164_v33, %v5354_v49  ;;  %v2166_v37 = vpop.f32.mrb[118].mxu0 }
 0x6ef   :  { %v2331_v22 = vmul.f32 0.01, %v2163_v61  ;;  %v2167_v63 = vadd.f32 %v2166_v37, %v5352_v48  ;;  %v2168_v17 = vpop.f32.mrb[119].mxu0  ;;  %2686 = vmatprep.mubr.bf16.mxu1 %v2440_v15  ;;  %vm2267_vm4 = vcmp.gt.f32.partialorder %v2163_v61, 0.0 }
 0x6f0   :  { %v2332_v44 = vmul.f32 0.01, %v2165_v38  ;;  %v2169_v30 = vadd.f32 %v2168_v17, %v5354_v49  ;;  %2687 = vmatmul.mubr.bf16.gmra.mrb[80].mxu1 %v2439_v47  ;;  %vm2268_vm5 = vcmp.gt.f32.partialorder %v2165_v38, 0.0 }
 0x6f1   :  { %vm2269_vm6 = vcmp.gt.f32.partialorder %v2167_v63, 0.0  ;;  %v2333_v8 = vmul.f32 0.01, %v2167_v63  ;;  %v2395_v18 = vsel %vm2267_vm4, %v2163_v61, %v2331_v22 }
 0x6f2   :  { %vm2270_vm7 = vcmp.gt.f32.partialorder %v2169_v30, 0.0  ;;  %v2334_v45 = vmul.f32 0.01, %v2169_v30  ;;  %v2396_v43 = vsel %vm2268_vm5, %v2165_v38, %v2332_v44 }
 0x6f3   :  { %v2397_v34 = vsel %vm2269_vm6, %v2167_v63, %v2333_v8 }
 0x6f4   :  { %v2398_v53 = vsel %vm2270_vm7, %v2169_v30, %v2334_v45  ;;  %v2441_v28 = vpack.c.bf16 %v2397_v34, %v2395_v18 }
 0x6f5   :  { %v2442_v0 = vpack.c.bf16 %v2398_v53, %v2396_v43 }
 0x6f7   :  { %2694 = vmatprep.mubr.bf16.mxu1 %v2442_v0 }
 0x6f8   :  { %2695 = vmatmul.mubr.bf16.gmra.mrb[84].mxu1 %v2441_v28 }
 0x73b   :  { %v2172_v35 = vpop.f32.mrb[120].mxu0 }
 0x73c   :  { %v2173_v29 = vadd.f32 %v2172_v35, %v5352_v48  ;;  %v2174_v3 = vpop.f32.mrb[121].mxu0 }
 0x73d   :  { %v2175_v31 = vadd.f32 %v2174_v3, %v5354_v49  ;;  %v2176_v56 = vpop.f32.mrb[122].mxu0 }
 0x73e   :  { %v2335_v23 = vmul.f32 0.01, %v2173_v29  ;;  %v2177_v6 = vadd.f32 %v2176_v56, %v5352_v48  ;;  %v2178_v19 = vpop.f32.mrb[123].mxu0  ;;  %vm2271_vm8 = vcmp.gt.f32.partialorder %v2173_v29, 0.0 }
 0x73f   :  { %v2336_v10 = vmul.f32 0.01, %v2175_v31  ;;  %v2179_v12 = vadd.f32 %v2178_v19, %v5354_v49  ;;  %vm2272_vm9 = vcmp.gt.f32.partialorder %v2175_v31, 0.0 }
 0x740   :  { %vm2273_vm10 = vcmp.gt.f32.partialorder %v2177_v6, 0.0  ;;  %v2337_v11 = vmul.f32 0.01, %v2177_v6  ;;  %v2399_v61 = vsel %vm2271_vm8, %v2173_v29, %v2335_v23 }
 0x741   :  { %vm2274_vm11 = vcmp.gt.f32.partialorder %v2179_v12, 0.0  ;;  %v2338_v47 = vmul.f32 0.01, %v2179_v12  ;;  %v2400_v38 = vsel %vm2272_vm9, %v2175_v31, %v2336_v10 }
 0x742   :  { %v2401_v33 = vsel %vm2273_vm10, %v2177_v6, %v2337_v11 }
 0x743   :  { %v2182_v15 = vpop.f32.mrb[124].mxu0  ;;  %v2402_v37 = vsel %vm2274_vm11, %v2179_v12, %v2338_v47  ;;  %v2443_v22 = vpack.c.bf16 %v2401_v33, %v2399_v61 }
 0x744   :  { %v2183_v63 = vadd.f32 %v2182_v15, %v5352_v48  ;;  %v2184_v17 = vpop.f32.mrb[125].mxu0  ;;  %v2444_v44 = vpack.c.bf16 %v2402_v37, %v2400_v38 }
 0x745   :  { %v2185_v30 = vadd.f32 %v2184_v17, %v5354_v49  ;;  %v2186_v8 = vpop.f32.mrb[126].mxu0 }
 0x746   :  { %v2339_v45 = vmul.f32 0.01, %v2183_v63  ;;  %v2187_v18 = vadd.f32 %v2186_v8, %v5352_v48  ;;  %v2188_v34 = vpop.f32.mrb[127].mxu0  ;;  %2702 = vmatprep.mubr.bf16.mxu1 %v2444_v44  ;;  %vm2275_vm12 = vcmp.gt.f32.partialorder %v2183_v63, 0.0 }
 0x747   :  { %v2340_v43 = vmul.f32 0.01, %v2185_v30  ;;  %v2189_v53 = vadd.f32 %v2188_v34, %v5354_v49  ;;  %2703 = vmatmul.mubr.bf16.gmra.mrb[88].mxu1 %v2443_v22  ;;  %vm2276_vm13 = vcmp.gt.f32.partialorder %v2185_v30, 0.0 }
 0x748   :  { %vm2277_vm14 = vcmp.gt.f32.partialorder %v2187_v18, 0.0  ;;  %v2341_v28 = vmul.f32 0.01, %v2187_v18  ;;  %v2403_v35 = vsel %vm2275_vm12, %v2183_v63, %v2339_v45 }
 0x749   :  { %vm2278_vm15 = vcmp.gt.f32.partialorder %v2189_v53, 0.0  ;;  %v2342_v0 = vmul.f32 0.01, %v2189_v53  ;;  %v2404_v31 = vsel %vm2276_vm13, %v2185_v30, %v2340_v43 }
 0x74a   :  { %v2405_v29 = vsel %vm2277_vm14, %v2187_v18, %v2341_v28 }
 0x74b   :  { %v2192_v3 = vpop.f32.mrb[128].mxu0  ;;  %v2406_v56 = vsel %vm2278_vm15, %v2189_v53, %v2342_v0  ;;  %v2445_v23 = vpack.c.bf16 %v2405_v29, %v2403_v35 }
 0x74c   :  { %v2193_v6 = vadd.f32 %v2192_v3, %v5352_v48  ;;  %v2194_v19 = vpop.f32.mrb[129].mxu0  ;;  %v2446_v10 = vpack.c.bf16 %v2406_v56, %v2404_v31 }
 0x74d   :  { %v2195_v12 = vadd.f32 %v2194_v19, %v5354_v49  ;;  %v2196_v11 = vpop.f32.mrb[130].mxu0 }
 0x74e   :  { %v2343_v47 = vmul.f32 0.01, %v2193_v6  ;;  %v2197_v61 = vadd.f32 %v2196_v11, %v5352_v48  ;;  %v2198_v33 = vpop.f32.mrb[131].mxu0  ;;  %2710 = vmatprep.mubr.bf16.mxu1 %v2446_v10  ;;  %vm2279_vm0 = vcmp.gt.f32.partialorder %v2193_v6, 0.0 }
 0x74f   :  { %v2344_v15 = vmul.f32 0.01, %v2195_v12  ;;  %v2199_v38 = vadd.f32 %v2198_v33, %v5354_v49  ;;  %2711 = vmatmul.mubr.bf16.gmra.mrb[92].mxu1 %v2445_v23  ;;  %vm2280_vm1 = vcmp.gt.f32.partialorder %v2195_v12, 0.0 }
 0x750   :  { %vm2281_vm2 = vcmp.gt.f32.partialorder %v2197_v61, 0.0  ;;  %v2345_v37 = vmul.f32 0.01, %v2197_v61  ;;  %v2407_v63 = vsel %vm2279_vm0, %v2193_v6, %v2343_v47 }
 0x751   :  { %vm2282_vm3 = vcmp.gt.f32.partialorder %v2199_v38, 0.0  ;;  %v2346_v22 = vmul.f32 0.01, %v2199_v38  ;;  %v2408_v30 = vsel %vm2280_vm1, %v2195_v12, %v2344_v15 }
 0x752   :  { %v2409_v17 = vsel %vm2281_vm2, %v2197_v61, %v2345_v37 }
 0x753   :  { %v2202_v44 = vpop.f32.mrb[132].mxu0  ;;  %v2410_v8 = vsel %vm2282_vm3, %v2199_v38, %v2346_v22  ;;  %v2447_v45 = vpack.c.bf16 %v2409_v17, %v2407_v63 }
 0x754   :  { %v2203_v18 = vadd.f32 %v2202_v44, %v5352_v48  ;;  %v2204_v34 = vpop.f32.mrb[133].mxu0  ;;  %v2448_v43 = vpack.c.bf16 %v2410_v8, %v2408_v30 }
 0x755   :  { %v2205_v53 = vadd.f32 %v2204_v34, %v5354_v49  ;;  %v2206_v28 = vpop.f32.mrb[134].mxu0 }
 0x756   :  { %v2347_v0 = vmul.f32 0.01, %v2203_v18  ;;  %v2207_v35 = vadd.f32 %v2206_v28, %v5352_v48  ;;  %v2208_v29 = vpop.f32.mrb[135].mxu0  ;;  %2718 = vmatprep.mubr.bf16.mxu1 %v2448_v43  ;;  %vm2283_vm4 = vcmp.gt.f32.partialorder %v2203_v18, 0.0 }
 0x757   :  { %v2348_v3 = vmul.f32 0.01, %v2205_v53  ;;  %v2209_v31 = vadd.f32 %v2208_v29, %v5354_v49  ;;  %2719 = vmatmul.mubr.bf16.gmra.mrb[96].mxu1 %v2447_v45  ;;  %vm2284_vm5 = vcmp.gt.f32.partialorder %v2205_v53, 0.0 }
 0x758   :  { %vm2285_vm6 = vcmp.gt.f32.partialorder %v2207_v35, 0.0  ;;  %v2349_v56 = vmul.f32 0.01, %v2207_v35  ;;  %v2411_v6 = vsel %vm2283_vm4, %v2203_v18, %v2347_v0 }
 0x759   :  { %vm2286_vm7 = vcmp.gt.f32.partialorder %v2209_v31, 0.0  ;;  %v2350_v23 = vmul.f32 0.01, %v2209_v31  ;;  %v2412_v10 = vsel %vm2284_vm5, %v2205_v53, %v2348_v3 }
 0x75a   :  { %v2413_v19 = vsel %vm2285_vm6, %v2207_v35, %v2349_v56 }
 0x75b   :  { %v2414_v12 = vsel %vm2286_vm7, %v2209_v31, %v2350_v23  ;;  %v2449_v11 = vpack.c.bf16 %v2413_v19, %v2411_v6 }
 0x75c   :  { %v2212_v47 = vpop.f32.mrb[136].mxu0  ;;  %v2450_v61 = vpack.c.bf16 %v2414_v12, %v2412_v10 }
 0x75d   :  { %v2213_v33 = vadd.f32 %v2212_v47, %v5352_v48  ;;  %v2214_v15 = vpop.f32.mrb[137].mxu0 }
 0x75e   :  { %v2215_v38 = vadd.f32 %v2214_v15, %v5354_v49  ;;  %v2216_v37 = vpop.f32.mrb[138].mxu0  ;;  %2726 = vmatprep.mubr.bf16.mxu1 %v2450_v61 }
 0x75f   :  { %v2351_v22 = vmul.f32 0.01, %v2213_v33  ;;  %v2217_v63 = vadd.f32 %v2216_v37, %v5352_v48  ;;  %v2218_v17 = vpop.f32.mrb[139].mxu0  ;;  %2727 = vmatmul.mubr.bf16.gmra.mrb[100].mxu1 %v2449_v11  ;;  %vm2287_vm8 = vcmp.gt.f32.partialorder %v2213_v33, 0.0 }
 0x760   :  { %v2352_v44 = vmul.f32 0.01, %v2215_v38  ;;  %v2219_v30 = vadd.f32 %v2218_v17, %v5354_v49  ;;  %vm2288_vm9 = vcmp.gt.f32.partialorder %v2215_v38, 0.0 }
 0x761   :  { %vm2289_vm10 = vcmp.gt.f32.partialorder %v2217_v63, 0.0  ;;  %v2353_v8 = vmul.f32 0.01, %v2217_v63  ;;  %v2415_v18 = vsel %vm2287_vm8, %v2213_v33, %v2351_v22 }
 0x762   :  { %vm2290_vm11 = vcmp.gt.f32.partialorder %v2219_v30, 0.0  ;;  %v2354_v45 = vmul.f32 0.01, %v2219_v30  ;;  %v2416_v53 = vsel %vm2288_vm9, %v2215_v38, %v2352_v44 }
 0x763   :  { %v2417_v34 = vsel %vm2289_vm10, %v2217_v63, %v2353_v8  ;;  %v5423_v63 = vld [vmem:[%s5874_s8] ss:$0 sm:$0xff] }
 0x764   :  { %v2222_v43 = vpop.f32.mrb[140].mxu0  ;;  %v2418_v28 = vsel %vm2290_vm11, %v2219_v30, %v2354_v45  ;;  %v2451_v0 = vpack.c.bf16 %v2417_v34, %v2415_v18 }
 0x765   :  { %v2223_v35 = vadd.f32 %v2222_v43, %v5352_v48  ;;  %v2224_v29 = vpop.f32.mrb[141].mxu0  ;;  %v2452_v3 = vpack.c.bf16 %v2418_v28, %v2416_v53 }
 0x766   :  { %v2225_v31 = vadd.f32 %v2224_v29, %v5354_v49  ;;  %v2226_v56 = vpop.f32.mrb[142].mxu0 }
 0x767   :  { %v2355_v23 = vmul.f32 0.01, %v2223_v35  ;;  %v2227_v6 = vadd.f32 %v2226_v56, %v5352_v48  ;;  %v2228_v19 = vpop.f32.mrb[143].mxu0  ;;  %2734 = vmatprep.mubr.bf16.mxu1 %v2452_v3  ;;  %vm2291_vm12 = vcmp.gt.f32.partialorder %v2223_v35, 0.0 }
 0x768   :  { %v2356_v10 = vmul.f32 0.01, %v2225_v31  ;;  %v2229_v12 = vadd.f32 %v2228_v19, %v5354_v49  ;;  %2735 = vmatmul.mubr.bf16.gmra.mrb[104].mxu1 %v2451_v0  ;;  %vm2292_vm13 = vcmp.gt.f32.partialorder %v2225_v31, 0.0 }
 0x769   :  { %vm2293_vm14 = vcmp.gt.f32.partialorder %v2227_v6, 0.0  ;;  %v2357_v11 = vmul.f32 0.01, %v2227_v6  ;;  %v2419_v61 = vsel %vm2291_vm12, %v2223_v35, %v2355_v23 }
 0x76a   :  { %vm2294_vm15 = vcmp.gt.f32.partialorder %v2229_v12, 0.0  ;;  %v2358_v47 = vmul.f32 0.01, %v2229_v12  ;;  %v2420_v15 = vsel %vm2292_vm13, %v2225_v31, %v2356_v10 }
 0x76b   :  { %v2421_v33 = vsel %vm2293_vm14, %v2227_v6, %v2357_v11 }
 0x76c   :  { %v2422_v38 = vsel %vm2294_vm15, %v2229_v12, %v2358_v47  ;;  %v2453_v37 = vpack.c.bf16 %v2421_v33, %v2419_v61 }
 0x76d   :  { %v2454_v22 = vpack.c.bf16 %v2422_v38, %v2420_v15 }
 0x76f   :  { %2742 = vmatprep.mubr.bf16.mxu1 %v2454_v22 }
 0x770   :  { %2743 = vmatmul.mubr.bf16.gmra.mrb[108].mxu1 %v2453_v37 }
 0x782   :  { %v3494_v48 = vpop.f32.mrb[48].mxu1 }
 0x783   :  { %v3495_v49 = vpop.f32.mrb[49].mxu1 }
 0x784   :  { %v3496_v17 = vadd.f32 %v3495_v49, %v3494_v48  ;;  %v3497_v44 = vpop.f32.mrb[50].mxu1 }
 0x785   :  { %v3498_v30 = vpop.f32.mrb[51].mxu1 }
 0x786   :  { %v2625_v8 = vadd.f32 %v3496_v17, %v5423_v63  ;;  %v3499_v45 = vadd.f32 %v3498_v30, %v3497_v44 }
 0x788   :  { %v2628_v18 = vadd.f32 %v3499_v45, %v5423_v63  ;;  %v5428_v34 = vadd.f32 %v2625_v8, %v5107_v26 }
 0x78a   :  { %2785 = vadd.xlane.f32.xlu0 %v5428_v34  ;;  %v3500_v43 = vpop.f32.mrb[52].mxu1  ;;  %v5432_v53 = vadd.f32 %v2628_v18, %v5110_v52 }
 0x78b   :  { %v3501_v28 = vpop.f32.mrb[53].mxu1 }
 0x78c   :  { %v3502_v0 = vadd.f32 %v3501_v28, %v3500_v43  ;;  %v3503_v35 = vpop.f32.mrb[54].mxu1  ;;  %2787 = vadd.xlane.f32.xlu1 %v5432_v53 }
 0x78d   :  { %v3504_v29 = vpop.f32.mrb[55].mxu1 }
 0x78e   :  { %v2633_v3 = vadd.f32 %v3502_v0, %v5423_v63  ;;  %v3505_v31 = vadd.f32 %v3504_v29, %v3503_v35 }
 0x790   :  { %v2636_v56 = vadd.f32 %v3505_v31, %v5423_v63  ;;  %v5438_v26 = vadd.f32 %v2633_v3, %v5130_v2 }
 0x792   :  { %2789 = vadd.xlane.f32.xlu0 %v5438_v26  ;;  %v3506_v23 = vpop.f32.mrb[56].mxu1  ;;  %v5442_v52 = vadd.f32 %v2636_v56, %v5133_v25 }
 0x793   :  { %v3507_v6 = vpop.f32.mrb[57].mxu1 }
 0x794   :  { %v3508_v19 = vadd.f32 %v3507_v6, %v3506_v23  ;;  %v3509_v10 = vpop.f32.mrb[58].mxu1  ;;  %2791 = vadd.xlane.f32.xlu1 %v5442_v52 }
 0x795   :  { %v3510_v12 = vpop.f32.mrb[59].mxu1 }
 0x796   :  { %v2641_v11 = vadd.f32 %v3508_v19, %v5423_v63  ;;  %v3511_v47 = vadd.f32 %v3510_v12, %v3509_v10 }
 0x798   :  { %v2644_v61 = vadd.f32 %v3511_v47, %v5423_v63  ;;  %v5448_v2 = vadd.f32 %v2641_v11, %v5153_v62 }
 0x79a   :  { %2793 = vadd.xlane.f32.xlu0 %v5448_v2  ;;  %v3512_v33 = vpop.f32.mrb[60].mxu1  ;;  %v5452_v25 = vadd.f32 %v2644_v61, %v5156_v40 }
 0x79b   :  { %v3513_v15 = vpop.f32.mrb[61].mxu1 }
 0x79c   :  { %v3514_v38 = vadd.f32 %v3513_v15, %v3512_v33  ;;  %v3515_v37 = vpop.f32.mrb[62].mxu1  ;;  %2795 = vadd.xlane.f32.xlu1 %v5452_v25 }
 0x79d   :  { %v3516_v22 = vpop.f32.mrb[63].mxu1 }
 0x79e   :  { %v2649_v48 = vadd.f32 %v3514_v38, %v5423_v63  ;;  %v3517_v49 = vadd.f32 %v3516_v22, %v3515_v37 }
 0x7a0   :  { %v2652_v17 = vadd.f32 %v3517_v49, %v5423_v63  ;;  %v5458_v62 = vadd.f32 %v2649_v48, %v5176_v5 }
 0x7a2   :  { %2797 = vadd.xlane.f32.xlu0 %v5458_v62  ;;  %v5462_v44 = vadd.f32 %v2652_v17, %v5179_v27 }
 0x7a3   :  { %v3518_v40 = vpop.f32.mrb[64].mxu1 }
 0x7a4   :  { %v3519_v30 = vpop.f32.mrb[65].mxu1  ;;  %2799 = vadd.xlane.f32.xlu1 %v5462_v44 }
 0x7a5   :  { %v3520_v8 = vadd.f32 %v3519_v30, %v3518_v40  ;;  %v3521_v45 = vpop.f32.mrb[66].mxu1 }
 0x7a6   :  { %v3522_v18 = vpop.f32.mrb[67].mxu1 }
 0x7a7   :  { %v2657_v43 = vadd.f32 %v3520_v8, %v5423_v63  ;;  %v3523_v28 = vadd.f32 %v3522_v18, %v3521_v45 }
 0x7a9   :  { %v2660_v0 = vadd.f32 %v3523_v28, %v5423_v63  ;;  %v5468_v5 = vadd.f32 %v2657_v43, %v5199_v14 }
 0x7ab   :  { %2801 = vadd.xlane.f32.xlu0 %v5468_v5  ;;  %v3524_v35 = vpop.f32.mrb[68].mxu1  ;;  %v5472_v27 = vadd.f32 %v2660_v0, %v5202_v39 }
 0x7ac   :  { %v3525_v29 = vpop.f32.mrb[69].mxu1 }
 0x7ad   :  { %v3526_v3 = vadd.f32 %v3525_v29, %v3524_v35  ;;  %v3527_v31 = vpop.f32.mrb[70].mxu1  ;;  %2803 = vadd.xlane.f32.xlu1 %v5472_v27 }
 0x7ae   :  { %v3528_v56 = vpop.f32.mrb[71].mxu1 }
 0x7af   :  { %v2665_v23 = vadd.f32 %v3526_v3, %v5423_v63  ;;  %v3529_v6 = vadd.f32 %v3528_v56, %v3527_v31 }
 0x7b1   :  { %v2668_v19 = vadd.f32 %v3529_v6, %v5423_v63  ;;  %v5478_v14 = vadd.f32 %v2665_v23, %v5212_v13 }
 0x7b3   :  { %2805 = vadd.xlane.f32.xlu0 %v5478_v14  ;;  %v3530_v10 = vpop.f32.mrb[72].mxu1  ;;  %v5482_v39 = vadd.f32 %v2668_v19, %v5215_v41 }
 0x7b4   :  { %v3531_v12 = vpop.f32.mrb[73].mxu1 }
 0x7b5   :  { %v3532_v11 = vadd.f32 %v3531_v12, %v3530_v10  ;;  %2807 = vadd.xlane.f32.xlu1 %v5482_v39  ;;  %v3533_v47 = vpop.f32.mrb[74].mxu1 }
 0x7b6   :  { %v3534_v61 = vpop.f32.mrb[75].mxu1 }
 0x7b7   :  { %v2673_v33 = vadd.f32 %v3532_v11, %v5423_v63  ;;  %v3535_v15 = vadd.f32 %v3534_v61, %v3533_v47 }
 0x7b9   :  { %v2676_v38 = vadd.f32 %v3535_v15, %v5423_v63  ;;  %v5488_v13 = vadd.f32 %v2673_v33, %v5225_v16 }
 0x7bb   :  { %2809 = vadd.xlane.f32.xlu0 %v5488_v13  ;;  %v3536_v37 = vpop.f32.mrb[76].mxu1  ;;  %v5492_v41 = vadd.f32 %v2676_v38, %v5228_v36 }
 0x7bc   :  { %v3537_v22 = vpop.f32.mrb[77].mxu1 }
 0x7bd   :  { %v3538_v48 = vadd.f32 %v3537_v22, %v3536_v37  ;;  %2811 = vadd.xlane.f32.xlu1 %v5492_v41  ;;  %v3539_v49 = vpop.f32.mrb[78].mxu1 }
 0x7be   :  { %v3540_v17 = vpop.f32.mrb[79].mxu1 }
 0x7bf   :  { %v2681_v40 = vadd.f32 %v3538_v48, %v5423_v63  ;;  %v3541_v30 = vadd.f32 %v3540_v17, %v3539_v49 }
 0x7c1   :  { %v2684_v8 = vadd.f32 %v3541_v30, %v5423_v63  ;;  %v5498_v16 = vadd.f32 %v2681_v40, %v5241_v20 }
 0x7c3   :  { %2813 = vadd.xlane.f32.xlu0 %v5498_v16  ;;  %v3542_v45 = vpop.f32.mrb[80].mxu1  ;;  %v5502_v36 = vadd.f32 %v2684_v8, %v5238_v57 }
 0x7c4   :  { %v3543_v18 = vpop.f32.mrb[81].mxu1 }
 0x7c5   :  { %v3544_v43 = vadd.f32 %v3543_v18, %v3542_v45  ;;  %2815 = vadd.xlane.f32.xlu1 %v5502_v36  ;;  %v3545_v28 = vpop.f32.mrb[82].mxu1 }
 0x7c6   :  { %v3546_v0 = vpop.f32.mrb[83].mxu1 }
 0x7c7   :  { %v2689_v35 = vadd.f32 %v3544_v43, %v5423_v63  ;;  %v3547_v29 = vadd.f32 %v3546_v0, %v3545_v28 }
 0x7c9   :  { %v2692_v3 = vadd.f32 %v3547_v29, %v5423_v63  ;;  %v5508_v20 = vadd.f32 %v2689_v35, %v5255_v4 }
 0x7cb   :  { %2817 = vadd.xlane.f32.xlu0 %v5508_v20  ;;  %v3548_v31 = vpop.f32.mrb[84].mxu1  ;;  %v5512_v57 = vadd.f32 %v2692_v3, %v5251_v58 }
 0x7cc   :  { %v3549_v56 = vpop.f32.mrb[85].mxu1 }
 0x7cd   :  { %v3550_v23 = vadd.f32 %v3549_v56, %v3548_v31  ;;  %2819 = vadd.xlane.f32.xlu1 %v5512_v57  ;;  %v3551_v6 = vpop.f32.mrb[86].mxu1 }
 0x7ce   :  { %v3552_v19 = vpop.f32.mrb[87].mxu1 }
 0x7cf   :  { %v2697_v10 = vadd.f32 %v3550_v23, %v5423_v63  ;;  %v3553_v12 = vadd.f32 %v3552_v19, %v3551_v6 }
 0x7d1   :  { %v2700_v11 = vadd.f32 %v3553_v12, %v5423_v63  ;;  %v5518_v4 = vadd.f32 %v2697_v10, %v5267_v42 }
 0x7d3   :  { %2821 = vadd.xlane.f32.xlu0 %v5518_v4  ;;  %v5522_v47 = vadd.f32 %v2700_v11, %v5264_v9 }
 0x7d5   :  { %2823 = vadd.xlane.f32.xlu1 %v5522_v47 }
 0x81a   :  { %v3554_v58 = vpop.f32.mrb[88].mxu1 }
 0x81b   :  { %v3555_v61 = vpop.f32.mrb[89].mxu1 }
 0x81c   :  { %v3556_v33 = vadd.f32 %v3555_v61, %v3554_v58  ;;  %v3557_v15 = vpop.f32.mrb[90].mxu1 }
 0x81d   :  { %v3558_v38 = vpop.f32.mrb[91].mxu1 }
 0x81e   :  { %v2705_v37 = vadd.f32 %v3556_v33, %v5423_v63  ;;  %v3559_v22 = vadd.f32 %v3558_v38, %v3557_v15 }
 0x820   :  { %v2708_v48 = vadd.f32 %v3559_v22, %v5423_v63  ;;  %v5528_v42 = vadd.f32 %v2705_v37, %v5277_v60 }
 0x822   :  { %2825 = vadd.xlane.f32.xlu0 %v5528_v42  ;;  %v3560_v49 = vpop.f32.mrb[92].mxu1  ;;  %v5532_v9 = vadd.f32 %v2708_v48, %v5280_v59 }
 0x823   :  { %v3561_v17 = vpop.f32.mrb[93].mxu1 }
 0x824   :  { %v3562_v40 = vadd.f32 %v3561_v17, %v3560_v49  ;;  %2827 = vadd.xlane.f32.xlu1 %v5532_v9  ;;  %v3563_v30 = vpop.f32.mrb[94].mxu1 }
 0x825   :  { %v3564_v8 = vpop.f32.mrb[95].mxu1 }
 0x826   :  { %v2713_v45 = vadd.f32 %v3562_v40, %v5423_v63  ;;  %v3565_v18 = vadd.f32 %v3564_v8, %v3563_v30  ;;  %v2786_v30 = vpop.xlane.xlu0 %2785 }
 0x828   :  { %v2716_v43 = vadd.f32 %v3565_v18, %v5423_v63  ;;  %v5538_v60 = vadd.f32 %v2713_v45, %v5290_v54  ;;  %v2788_v45 = vpop.xlane.xlu1 %2787 }
 0x82a   :  { %2829 = vadd.xlane.f32.xlu0 %v5538_v60  ;;  %v3566_v28 = vpop.f32.mrb[96].mxu1  ;;  %v5542_v59 = vadd.f32 %v2716_v43, %v5293_v55  ;;  %v2849_v43 = vmul.f32 0.0078125, %v2786_v30 }
 0x82b   :  { %v3567_v0 = vpop.f32.mrb[97].mxu1 }
 0x82c   :  { %v3568_v35 = vadd.f32 %v3567_v0, %v3566_v28  ;;  %2831 = vadd.xlane.f32.xlu1 %v5542_v59  ;;  %v3569_v29 = vpop.f32.mrb[98].mxu1 }
 0x82d   :  { %v3570_v3 = vpop.f32.mrb[99].mxu1 }
 0x82e   :  { %v2721_v31 = vadd.f32 %v3568_v35, %v5423_v63  ;;  %v3571_v56 = vadd.f32 %v3570_v3, %v3569_v29  ;;  %v2790_v35 = vpop.xlane.xlu0 %2789  ;;  %v2850_v3 = vmul.f32 0.0078125, %v2788_v45 }
 0x830   :  { %v2724_v23 = vadd.f32 %v3571_v56, %v5423_v63  ;;  %v5548_v54 = vadd.f32 %v2721_v31, %v5303_v51  ;;  %v2792_v56 = vpop.xlane.xlu1 %2791 }
 0x832   :  { %2833 = vadd.xlane.f32.xlu0 %v5548_v54  ;;  %v3572_v6 = vpop.f32.mrb[100].mxu1  ;;  %v5552_v55 = vadd.f32 %v2724_v23, %v5306_v46  ;;  %v5577_v23 = vsub.f32 %v5428_v34, %v2849_v43 }
 0x833   :  { %v3573_v19 = vpop.f32.mrb[101].mxu1 }
 0x834   :  { %v3574_v10 = vadd.f32 %v3573_v19, %v3572_v6  ;;  %2835 = vadd.xlane.f32.xlu1 %v5552_v55  ;;  %v3575_v12 = vpop.f32.mrb[102].mxu1  ;;  %v2851_v6 = vmul.f32 0.0078125, %v2790_v35 }
 0x835   :  { %v3576_v11 = vpop.f32.mrb[103].mxu1 }
 0x836   :  { %v2729_v58 = vadd.f32 %v3574_v10, %v5423_v63  ;;  %v3577_v61 = vadd.f32 %v3576_v11, %v3575_v12  ;;  %v2794_v10 = vpop.xlane.xlu0 %2793  ;;  %v5584_v12 = vsub.f32 %v5432_v53, %v2850_v3  ;;  %v2852_v11 = vmul.f32 0.0078125, %v2792_v56 }
 0x837   :  { %v5591_v34 = vsub.f32 %v5438_v26, %v2851_v6 }
 0x838   :  { %v2732_v33 = vadd.f32 %v3577_v61, %v5423_v63  ;;  %v5558_v51 = vadd.f32 %v2729_v58, %v5316_v50  ;;  %v2796_v61 = vpop.xlane.xlu1 %2795  ;;  %v5597_v53 = vsub.f32 %v5442_v52, %v2852_v11 }
 0x83a   :  { %2837 = vadd.xlane.f32.xlu0 %v5558_v51  ;;  %v5562_v15 = vadd.f32 %v2732_v33, %v5319_v1  ;;  %v2853_v33 = vmul.f32 0.0078125, %v2794_v10 }
 0x83b   :  { %v3578_v46 = vpop.f32.mrb[104].mxu1 }
 0x83c   :  { %v3579_v38 = vpop.f32.mrb[105].mxu1  ;;  %2839 = vadd.xlane.f32.xlu1 %v5562_v15 }
 0x83d   :  { %v3580_v37 = vadd.f32 %v3579_v38, %v3578_v46  ;;  %v3581_v22 = vpop.f32.mrb[106].mxu1  ;;  %v2854_v46 = vmul.f32 0.0078125, %v2796_v61  ;;  %v2800_v38 = vpop.xlane.xlu1 %2799 }
 0x83e   :  { %v3582_v48 = vpop.f32.mrb[107].mxu1  ;;  %v2856_v52 = vmul.f32 0.0078125, %v2800_v38 }
 0x83f   :  { %v2737_v49 = vadd.f32 %v3580_v37, %v5423_v63  ;;  %v3583_v17 = vadd.f32 %v3582_v48, %v3581_v22  ;;  %v5602_v37 = vsub.f32 %v5448_v2, %v2853_v33  ;;  %v2915_v22 = vmul.f32 %v5591_v34, %v5591_v34 }
 0x841   :  { %v2740_v40 = vadd.f32 %v3583_v17, %v5423_v63  ;;  %v5568_v50 = vadd.f32 %v2737_v49, %v5329_v7  ;;  %v5607_v49 = vsub.f32 %v5452_v25, %v2854_v46  ;;  %v2916_v17 = vmul.f32 %v5597_v53, %v5597_v53 }
 0x843   :  { %2841 = vadd.xlane.f32.xlu0 %v5568_v50  ;;  %v3584_v1 = vpop.f32.mrb[108].mxu1  ;;  %v5572_v8 = vadd.f32 %v2740_v40, %v5332_v21  ;;  %v2804_v40 = vpop.xlane.xlu1 %2803  ;;  %v2918_v43 = vmul.f32 %v5607_v49, %v5607_v49 }
 0x844   :  { %v3585_v18 = vpop.f32.mrb[109].mxu1  ;;  %v2858_v25 = vmul.f32 0.0078125, %v2804_v40 }
 0x845   :  { %v3586_v28 = vadd.f32 %v3585_v18, %v3584_v1  ;;  %2843 = vadd.xlane.f32.xlu1 %v5572_v8  ;;  %v3587_v0 = vpop.f32.mrb[110].mxu1  ;;  %v2917_v1 = vmul.f32 %v5602_v37, %v5602_v37  ;;  %v5617_v18 = vsub.f32 %v5462_v44, %v2856_v52 }
 0x846   :  { %v3588_v29 = vpop.f32.mrb[111].mxu1  ;;  %v5627_v3 = vsub.f32 %v5472_v27, %v2858_v25 }
 0x847   :  { %v2745_v7 = vadd.f32 %v3586_v28, %v5423_v63  ;;  %v3589_v31 = vadd.f32 %v3588_v29, %v3587_v0  ;;  %v2808_v28 = vpop.xlane.xlu1 %2807 }
 0x848   :  { %v2860_v44 = vmul.f32 0.0078125, %v2808_v28  ;;  %v2922_v11 = vmul.f32 %v5627_v3, %v5627_v3 }
 0x849   :  { %v2748_v21 = vadd.f32 %v3589_v31, %v5423_v63  ;;  %v5581_v19 = vadd.f32 %v2745_v7, %v5342_v24  ;;  %v2913_v24 = vmul.f32 %v5577_v23, %v5577_v23  ;;  %v2798_v63 = vpop.xlane.xlu0 %2797  ;;  %v2920_v7 = vmul.f32 %v5617_v18, %v5617_v18 }
 0x84a   :  { %v2855_v26 = vmul.f32 0.0078125, %v2798_v63  ;;  %v5637_v10 = vsub.f32 %v5482_v39, %v2860_v44 }
 0x84b   :  { %2845 = vadd.xlane.f32.xlu0 %v5581_v19  ;;  %v5588_v58 = vadd.f32 %v2748_v21, %v5345_v32  ;;  %v2914_v32 = vmul.f32 %v5584_v12, %v5584_v12  ;;  %v2812_v31 = vpop.xlane.xlu1 %2811 }
 0x84c   :  { %v5612_v30 = vsub.f32 %v5458_v62, %v2855_v26  ;;  %v2862_v27 = vmul.f32 0.0078125, %v2812_v31 }
 0x84d   :  { %2847 = vadd.xlane.f32.xlu1 %v5588_v58  ;;  %v2802_v48 = vpop.xlane.xlu0 %2801 }
 0x84e   :  { %v2857_v2 = vmul.f32 0.0078125, %v2802_v48  ;;  %v2919_v35 = vmul.f32 %v5612_v30, %v5612_v30  ;;  %v5647_v46 = vsub.f32 %v5492_v41, %v2862_v27 }
 0x84f   :  { %2945 = vadd.xlane.f32.xlu0 %v2913_v24 }
 0x850   :  { %v5622_v0 = vsub.f32 %v5468_v5, %v2857_v2 }
 0x851   :  { %2947 = vadd.xlane.f32.xlu1 %v2914_v32  ;;  %v2806_v45 = vpop.xlane.xlu0 %2805  ;;  %v2924_v32 = vmul.f32 %v5637_v10, %v5637_v10 }
 0x852   :  { %v2859_v62 = vmul.f32 0.0078125, %v2806_v45  ;;  %v2921_v6 = vmul.f32 %v5622_v0, %v5622_v0  ;;  %v2816_v61 = vpop.xlane.xlu1 %2815 }
 0x853   :  { %2949 = vadd.xlane.f32.xlu0 %v2915_v22  ;;  %v2864_v39 = vmul.f32 0.0078125, %v2816_v61 }
 0x854   :  { %v5632_v56 = vsub.f32 %v5478_v14, %v2859_v62 }
 0x855   :  { %2951 = vadd.xlane.f32.xlu1 %v2916_v17  ;;  %v2810_v29 = vpop.xlane.xlu0 %2809  ;;  %v5657_v52 = vsub.f32 %v5502_v36, %v2864_v39  ;;  %v2926_v17 = vmul.f32 %v5647_v46, %v5647_v46 }
 0x856   :  { %v2861_v5 = vmul.f32 0.0078125, %v2810_v29  ;;  %v2923_v24 = vmul.f32 %v5632_v56, %v5632_v56 }
 0x857   :  { %2953 = vadd.xlane.f32.xlu0 %v2917_v1  ;;  %v2928_v36 = vmul.f32 %v5657_v52, %v5657_v52 }
 0x858   :  { %v5642_v33 = vsub.f32 %v5488_v13, %v2861_v5 }
 0x859   :  { %2955 = vadd.xlane.f32.xlu1 %v2918_v43  ;;  %v2814_v21 = vpop.xlane.xlu0 %2813 }
 0x85a   :  { %v2863_v14 = vmul.f32 0.0078125, %v2814_v21  ;;  %v2820_v38 = vpop.xlane.xlu1 %2819  ;;  %v2925_v22 = vmul.f32 %v5642_v33, %v5642_v33 }
 0x85b   :  { %2957 = vadd.xlane.f32.xlu0 %v2919_v35  ;;  %v2866_v41 = vmul.f32 0.0078125, %v2820_v38 }
 0x85c   :  { %v5652_v26 = vsub.f32 %v5498_v16, %v2863_v14 }
 0x85d   :  { %2959 = vadd.xlane.f32.xlu1 %v2920_v7  ;;  %v2818_v63 = vpop.xlane.xlu0 %2817  ;;  %v5667_v45 = vsub.f32 %v5512_v57, %v2866_v41 }
 0x85e   :  { %v2865_v13 = vmul.f32 0.0078125, %v2818_v63  ;;  %v2927_v1 = vmul.f32 %v5652_v26, %v5652_v26 }
 0x85f   :  { %2961 = vadd.xlane.f32.xlu0 %v2921_v6  ;;  %v2930_v57 = vmul.f32 %v5667_v45, %v5667_v45 }
 0x860   :  { %v5662_v2 = vsub.f32 %v5508_v20, %v2865_v13 }
 0x861   :  { %2963 = vadd.xlane.f32.xlu1 %v2922_v11  ;;  %v2822_v48 = vpop.xlane.xlu0 %2821 }
 0x862   :  { %v2824_v40 = vpop.xlane.xlu1 %2823  ;;  %v2867_v16 = vmul.f32 0.0078125, %v2822_v48  ;;  %v2929_v20 = vmul.f32 %v5662_v2, %v5662_v2 }
 0x863   :  { %2965 = vadd.xlane.f32.xlu0 %v2923_v24  ;;  %v2868_v25 = vmul.f32 0.0078125, %v2824_v40 }
 0x864   :  { %v5672_v43 = vsub.f32 %v5518_v4, %v2867_v16 }
 0x865   :  { %2967 = vadd.xlane.f32.xlu1 %v2924_v32  ;;  %v5677_v28 = vsub.f32 %v5522_v47, %v2868_v25 }
 0x866   :  { %v2931_v62 = vmul.f32 %v5672_v43, %v5672_v43 }
 0x867   :  { %2969 = vadd.xlane.f32.xlu0 %v2925_v22  ;;  %v2932_v4 = vmul.f32 %v5677_v28, %v5677_v28 }
 0x869   :  { %2971 = vadd.xlane.f32.xlu1 %v2926_v17 }
 0x86b   :  { %2973 = vadd.xlane.f32.xlu0 %v2927_v1 }
 0x86d   :  { %2975 = vadd.xlane.f32.xlu1 %v2928_v36 }
 0x86f   :  { %2977 = vadd.xlane.f32.xlu0 %v2929_v20 }
 0x871   :  { %2979 = vadd.xlane.f32.xlu1 %v2930_v57 }
 0x873   :  { %2981 = vadd.xlane.f32.xlu0 %v2931_v62 }
 0x875   :  { %2983 = vadd.xlane.f32.xlu1 %v2932_v4 }
 0x8af   :  { %v2826_v35 = vpop.xlane.xlu0 %2825 }
 0x8b0   :  { %v2869_v29 = vmul.f32 0.0078125, %v2826_v35 }
 0x8b1   :  { %v2828_v44 = vpop.xlane.xlu1 %2827 }
 0x8b2   :  { %v5686_v7 = vsub.f32 %v5528_v42, %v2869_v29  ;;  %v2870_v47 = vmul.f32 0.0078125, %v2828_v44 }
 0x8b4   :  { %v5689_v31 = vsub.f32 %v5532_v9, %v2870_v47  ;;  %v2933_v5 = vmul.f32 %v5686_v7, %v5686_v7 }
 0x8b6   :  { %2985 = vadd.xlane.f32.xlu0 %v2933_v5  ;;  %v2934_v6 = vmul.f32 %v5689_v31, %v5689_v31 }
 0x8b7   :  { %v2830_v21 = vpop.xlane.xlu0 %2829 }
 0x8b8   :  { %v2871_v27 = vmul.f32 0.0078125, %v2830_v21  ;;  %2987 = vadd.xlane.f32.xlu1 %v2934_v6 }
 0x8b9   :  { %v2832_v11 = vpop.xlane.xlu1 %2831 }
 0x8ba   :  { %v5696_v61 = vsub.f32 %v5538_v60, %v2871_v27  ;;  %v2872_v42 = vmul.f32 0.0078125, %v2832_v11 }
 0x8bc   :  { %v5699_v14 = vsub.f32 %v5542_v59, %v2872_v42  ;;  %v2935_v9 = vmul.f32 %v5696_v61, %v5696_v61 }
 0x8be   :  { %2989 = vadd.xlane.f32.xlu0 %v2935_v9  ;;  %v2936_v24 = vmul.f32 %v5699_v14, %v5699_v14 }
 0x8bf   :  { %v2834_v63 = vpop.xlane.xlu0 %2833 }
 0x8c0   :  { %v2873_v39 = vmul.f32 0.0078125, %v2834_v63  ;;  %2991 = vadd.xlane.f32.xlu1 %v2936_v24 }
 0x8c1   :  { %v2836_v32 = vpop.xlane.xlu1 %2835 }
 0x8c2   :  { %v5706_v38 = vsub.f32 %v5548_v54, %v2873_v39  ;;  %v2874_v60 = vmul.f32 0.0078125, %v2836_v32 }
 0x8c4   :  { %v5709_v13 = vsub.f32 %v5552_v55, %v2874_v60  ;;  %v2937_v59 = vmul.f32 %v5706_v38, %v5706_v38 }
 0x8c6   :  { %2993 = vadd.xlane.f32.xlu0 %v2937_v59  ;;  %v2938_v22 = vmul.f32 %v5709_v13, %v5709_v13 }
 0x8c7   :  { %v2838_v48 = vpop.xlane.xlu0 %2837 }
 0x8c8   :  { %v2875_v41 = vmul.f32 0.0078125, %v2838_v48  ;;  %2995 = vadd.xlane.f32.xlu1 %v2938_v22 }
 0x8c9   :  { %v2840_v17 = vpop.xlane.xlu1 %2839 }
 0x8ca   :  { %v5716_v40 = vsub.f32 %v5558_v51, %v2875_v41  ;;  %v2876_v54 = vmul.f32 0.0078125, %v2840_v17 }
 0x8cc   :  { %v5719_v16 = vsub.f32 %v5562_v15, %v2876_v54  ;;  %v2939_v55 = vmul.f32 %v5716_v40, %v5716_v40 }
 0x8ce   :  { %2997 = vadd.xlane.f32.xlu0 %v2939_v55  ;;  %v2940_v1 = vmul.f32 %v5719_v16, %v5719_v16 }
 0x8d0   :  { %v2842_v25 = vpop.xlane.xlu0 %2841  ;;  %2999 = vadd.xlane.f32.xlu1 %v2940_v1 }
 0x8d1   :  { %v2877_v36 = vmul.f32 0.0078125, %v2842_v25 }
 0x8d2   :  { %v2844_v20 = vpop.xlane.xlu1 %2843 }
 0x8d3   :  { %v5726_v57 = vsub.f32 %v5568_v50, %v2877_v36  ;;  %v2878_v51 = vmul.f32 0.0078125, %v2844_v20  ;;  %v5748_v20 = vld [vmem:[%s5877_s11] ss:$0 sm:$0xff]  ;;  %s4241_s11 = smov [#allocation13]  }
 0x8d5   :  { %v5729_v62 = vsub.f32 %v5572_v8, %v2878_v51  ;;  %v2941_v15 = vmul.f32 %v5726_v57, %v5726_v57 }
 0x8d7   :  { %3001 = vadd.xlane.f32.xlu0 %v2941_v15  ;;  %v2942_v4 = vmul.f32 %v5729_v62, %v5729_v62 }
 0x8d8   :  { %v2846_v35 = vpop.xlane.xlu0 %2845 }
 0x8d9   :  { %v2879_v29 = vmul.f32 0.0078125, %v2846_v35  ;;  %3003 = vadd.xlane.f32.xlu1 %v2942_v4 }
 0x8da   :  { %v2848_v44 = vpop.xlane.xlu1 %2847 }
 0x8db   :  { %v5736_v47 = vsub.f32 %v5581_v19, %v2879_v29  ;;  %v2880_v50 = vmul.f32 0.0078125, %v2848_v44  ;;  %v5754_v44 = vld [vmem:[%s5878_s12] ss:$0 sm:$0xff]  ;;  %s3250_s12 = sshll.u32 %s4241_s11, 4  ;;  %s3251_s12 = int_to_ptr.vmem [resolvable:$true] %s3250_s12 }
 0x8dc   :  { %v2946_v5 = vpop.xlane.xlu0 %2945  ;;  %s4198_s29 = scalar_lea.vmem %s3251_s12, 4096  ;;  %p4203_p7 = scmp.lt.s32.totalorder %s3251_s12, %s3251_s12 }
 0x8dd   :  { %v5739_v6 = vsub.f32 %v5588_v58, %v2880_v50  ;;  %v3009_v8 = vmul.f32 0.0078125, %v2946_v5  ;;  %v2943_v21 = vmul.f32 %v5736_v47, %v5736_v47  ;;  %p4199_p6 = scmp.ne.s32.totalorder %s3251_s12, %s4198_s29  ;;  %p4204_p8 = scmp.lt.s32.totalorder %s4198_s29, %s4198_s29 }
 0x8de   :  { %v2948_v27 = vpop.xlane.xlu1 %2947 }
 0x8df   :  { %v3041_v11 = vadd.f32 1e-05, %v3009_v8  ;;  %v3010_v42 = vmul.f32 0.0078125, %v2948_v27  ;;  %3005 = vadd.xlane.f32.xlu0 %v2943_v21  ;;  %v2944_v9 = vmul.f32 %v5739_v6, %v5739_v6  ;;  %p4205_p9 = por %p4204_p8, %p4203_p7 }
 0x8e0   :  { %v2950_v24 = vpop.xlane.xlu0 %2949 }
 0x8e1   :  { %4002 = vrsqrt.f32 %v3041_v11  ;;  %v3042_v19 = vadd.f32 1e-05, %v3010_v42  ;;  %v3011_v63 = vmul.f32 0.0078125, %v2950_v24  ;;  %3007 = vadd.xlane.f32.xlu1 %v2944_v9  ;;  %p4206_p10 = pnand %p4205_p9, %p4199_p6 }
 0x8e2   :  { %v2952_v39 = vpop.xlane.xlu1 %2951 }
 0x8e3   :  { %4004 = vrsqrt.f32 %v3042_v19  ;;  %v3043_v58 = vadd.f32 1e-05, %v3011_v63  ;;  %v3012_v32 = vmul.f32 0.0078125, %v2952_v39 }
 0x8e4   :  { %v2954_v60 = vpop.xlane.xlu0 %2953 }
 0x8e5   :  { %4006 = vrsqrt.f32 %v3043_v58  ;;  %v3044_v59 = vadd.f32 1e-05, %v3012_v32  ;;  %v3013_v22 = vmul.f32 0.0078125, %v2954_v60 }
 0x8e6   :  { %v2956_v48 = vpop.xlane.xlu1 %2955 }
 0x8e7   :  { %4008 = vrsqrt.f32 %v3044_v59  ;;  %v3045_v41 = vadd.f32 1e-05, %v3013_v22  ;;  %v3014_v17 = vmul.f32 0.0078125, %v2956_v48 }
 0x8e8   :  { %v2958_v54 = vpop.xlane.xlu0 %2957 }
 0x8e9   :  { %4010 = vrsqrt.f32 %v3045_v41  ;;  %v3046_v55 = vadd.f32 1e-05, %v3014_v17  ;;  %v3015_v1 = vmul.f32 0.0078125, %v2958_v54 }
 0x8ea   :  { %v2960_v25 = vpop.xlane.xlu1 %2959 }
 0x8eb   :  { %v4003_v36 = vpop.eup %4002  ;;  %4012 = vrsqrt.f32 %v3046_v55  ;;  %v3047_v51 = vadd.f32 1e-05, %v3015_v1  ;;  %v3016_v15 = vmul.f32 0.0078125, %v2960_v25 }
 0x8ec   :  { %v3105_v4 = vmul.f32 %v4003_v36, %v5577_v23  ;;  %v2962_v35 = vpop.xlane.xlu0 %2961 }
 0x8ed   :  { %v4005_v29 = vpop.eup %4004  ;;  %4014 = vrsqrt.f32 %v3047_v51  ;;  %v3048_v50 = vadd.f32 1e-05, %v3016_v15  ;;  %v3017_v5 = vmul.f32 0.0078125, %v2962_v35 }
 0x8ee   :  { %v3143_v8 = vmul.f32 %v5748_v20, %v3105_v4  ;;  %v3106_v21 = vmul.f32 %v4005_v29, %v5584_v12  ;;  %v2964_v27 = vpop.xlane.xlu1 %2963 }
 0x8ef   :  { %v4007_v11 = vpop.eup %4006  ;;  %4016 = vrsqrt.f32 %v3048_v50  ;;  %v3049_v42 = vadd.f32 1e-05, %v3017_v5  ;;  %v3018_v9 = vmul.f32 0.0078125, %v2964_v27 }
 0x8f0   :  { %v3181_v23 = vadd.f32 %v5754_v44, %v3143_v8  ;;  %v3144_v24 = vmul.f32 %v5748_v20, %v3106_v21  ;;  %v3107_v19 = vmul.f32 %v4007_v11, %v5591_v34  ;;  %v2966_v63 = vpop.xlane.xlu0 %2965 }
 0x8f1   :  { %v4009_v39 = vpop.eup %4008  ;;  %4018 = vrsqrt.f32 %v3049_v42  ;;  %v3050_v58 = vadd.f32 1e-05, %v3018_v9  ;;  %v3019_v32 = vmul.f32 0.0078125, %v2966_v63 }
 0x8f2   :  { %3213 = vst [vmem:[#allocation13] sm:$0xff] %v3181_v23  ;;  %v3182_v60 = vadd.f32 %v5754_v44, %v3144_v24  ;;  %v3145_v12 = vmul.f32 %v5748_v20, %v3107_v19  ;;  %v3108_v59 = vmul.f32 %v4009_v39, %v5597_v53  ;;  %v2968_v22 = vpop.xlane.xlu1 %2967 }
 0x8f3   :  { %v4011_v48 = vpop.eup %4010  ;;  %4020 = vrsqrt.f32 %v3050_v58  ;;  %v3051_v41 = vadd.f32 1e-05, %v3019_v32  ;;  %v3020_v17 = vmul.f32 0.0078125, %v2968_v22 }
 0x8f4   :  { %3214 = vst [vmem:[#allocation13 + $0x8] sm:$0xff] %v3182_v60  ;;  %v3183_v34 = vadd.f32 %v5754_v44, %v3145_v12  ;;  %v3146_v54 = vmul.f32 %v5748_v20, %v3108_v59  ;;  %v3109_v55 = vmul.f32 %v4011_v48, %v5602_v37  ;;  %v2970_v1 = vpop.xlane.xlu0 %2969 }
 0x8f5   :  { %v4013_v25 = vpop.eup %4012  ;;  %4022 = vrsqrt.f32 %v3051_v41  ;;  %v3052_v36 = vadd.f32 1e-05, %v3020_v17  ;;  %v3021_v51 = vmul.f32 0.0078125, %v2970_v1 }
 0x8f6   :  { %3215 = vst [vmem:[#allocation13 + $0x10] sm:$0xff] %v3183_v34  ;;  %v3184_v53 = vadd.f32 %v5754_v44, %v3146_v54  ;;  %v3147_v15 = vmul.f32 %v5748_v20, %v3109_v55  ;;  %v3110_v4 = vmul.f32 %v4013_v25, %v5607_v49  ;;  %v2972_v35 = vpop.xlane.xlu1 %2971 }
 0x8f7   :  { %v4015_v29 = vpop.eup %4014  ;;  %4024 = vrsqrt.f32 %v3052_v36  ;;  %v3053_v50 = vadd.f32 1e-05, %v3021_v51  ;;  %v3022_v5 = vmul.f32 0.0078125, %v2972_v35 }
 0x8f8   :  { %3216 = vst [vmem:[#allocation13 + $0x18] sm:$0xff] %v3184_v53  ;;  %v3185_v37 = vadd.f32 %v5754_v44, %v3147_v15  ;;  %v3148_v8 = vmul.f32 %v5748_v20, %v3110_v4  ;;  %v3111_v21 = vmul.f32 %v4015_v29, %v5612_v30  ;;  %v2974_v27 = vpop.xlane.xlu0 %2973 }
 0x8f9   :  { %v4017_v11 = vpop.eup %4016  ;;  %4026 = vrsqrt.f32 %v3053_v50  ;;  %v3054_v42 = vadd.f32 1e-05, %v3022_v5  ;;  %v3023_v9 = vmul.f32 0.0078125, %v2974_v27 }
 0x8fa   :  { %3217 = vst [vmem:[#allocation13 + $0x20] sm:$0xff] %v3185_v37  ;;  %v3186_v49 = vadd.f32 %v5754_v44, %v3148_v8  ;;  %v3149_v23 = vmul.f32 %v5748_v20, %v3111_v21  ;;  %v3112_v24 = vmul.f32 %v4017_v11, %v5617_v18  ;;  %v2976_v19 = vpop.xlane.xlu1 %2975 }
 0x8fb   :  { %v4019_v63 = vpop.eup %4018  ;;  %4028 = vrsqrt.f32 %v3054_v42  ;;  %v3055_v39 = vadd.f32 1e-05, %v3023_v9  ;;  %v3024_v58 = vmul.f32 0.0078125, %v2976_v19 }
 0x8fc   :  { %3218 = vst [vmem:[#allocation13 + $0x28] sm:$0xff] %v3186_v49  ;;  %v3187_v30 = vadd.f32 %v5754_v44, %v3149_v23  ;;  %v3150_v32 = vmul.f32 %v5748_v20, %v3112_v24  ;;  %v3113_v60 = vmul.f32 %v4019_v63, %v5622_v0  ;;  %v2978_v12 = vpop.xlane.xlu0 %2977 }
 0x8fd   :  { %v4021_v59 = vpop.eup %4020  ;;  %4030 = vrsqrt.f32 %v3055_v39  ;;  %v3056_v22 = vadd.f32 1e-05, %v3024_v58  ;;  %v3025_v48 = vmul.f32 0.0078125, %v2978_v12 }
 0x8fe   :  { %3219 = vst [vmem:[#allocation13 + $0x30] sm:$0xff] %v3187_v30  ;;  %v3188_v18 = vadd.f32 %v5754_v44, %v3150_v32  ;;  %v3151_v41 = vmul.f32 %v5748_v20, %v3113_v60  ;;  %v3114_v17 = vmul.f32 %v4021_v59, %v5627_v3  ;;  %v2980_v34 = vpop.xlane.xlu1 %2979 }
 0x8ff   :  { %v4023_v54 = vpop.eup %4022  ;;  %4032 = vrsqrt.f32 %v3056_v22  ;;  %v3057_v55 = vadd.f32 1e-05, %v3025_v48  ;;  %v3026_v1 = vmul.f32 0.0078125, %v2980_v34 }
 0x900   :  { %3220 = vst [vmem:[#allocation13 + $0x38] sm:$0xff] %v3188_v18  ;;  %v3189_v0 = vadd.f32 %v5754_v44, %v3151_v41  ;;  %v3152_v25 = vmul.f32 %v5748_v20, %v3114_v17  ;;  %v3115_v36 = vmul.f32 %v4023_v54, %v5632_v56  ;;  %v2982_v51 = vpop.xlane.xlu0 %2981 }
 0x901   :  { %v4025_v53 = vpop.eup %4024  ;;  %4034 = vrsqrt.f32 %v3057_v55  ;;  %v3058_v15 = vadd.f32 1e-05, %v3026_v1  ;;  %v3027_v4 = vmul.f32 0.0078125, %v2982_v51 }
 0x902   :  { %3221 = vst [vmem:[#allocation13 + $0x40] sm:$0xff] %v3189_v0  ;;  %v3190_v3 = vadd.f32 %v5754_v44, %v3152_v25  ;;  %v3153_v35 = vmul.f32 %v5748_v20, %v3115_v36  ;;  %v3116_v29 = vmul.f32 %v4025_v53, %v5637_v10  ;;  %v2984_v50 = vpop.xlane.xlu1 %2983 }
 0x903   :  { %v4027_v5 = vpop.eup %4026  ;;  %4036 = vrsqrt.f32 %v3058_v15  ;;  %v3059_v37 = vadd.f32 1e-05, %v3027_v4  ;;  %v3028_v8 = vmul.f32 0.0078125, %v2984_v50 }
 0x904   :  { %3222 = vst [vmem:[#allocation13 + $0x48] sm:$0xff] %v3190_v3  ;;  %v3191_v56 = vadd.f32 %v5754_v44, %v3153_v35  ;;  %v3154_v21 = vmul.f32 %v5748_v20, %v3116_v29  ;;  %v3117_v27 = vmul.f32 %v4027_v5, %v5642_v33 }
 0x905   :  { %v4029_v11 = vpop.eup %4028  ;;  %4038 = vrsqrt.f32 %v3059_v37  ;;  %v3060_v42 = vadd.f32 1e-05, %v3028_v8 }
 0x906   :  { %3223 = vst [vmem:[#allocation13 + $0x50] sm:$0xff] %v3191_v56  ;;  %v3192_v9 = vadd.f32 %v5754_v44, %v3154_v21  ;;  %v3155_v10 = vmul.f32 %v5748_v20, %v3117_v27  ;;  %v3118_v49 = vmul.f32 %v4029_v11, %v5647_v46 }
 0x907   :  { %v4031_v23 = vpop.eup %4030  ;;  %4040 = vrsqrt.f32 %v3060_v42 }
 0x908   :  { %3224 = vst [vmem:[#allocation13 + $0x58] sm:$0xff] %v3192_v9  ;;  %v3193_v24 = vadd.f32 %v5754_v44, %v3155_v10  ;;  %v3156_v19 = vmul.f32 %v5748_v20, %v3118_v49  ;;  %v3119_v63 = vmul.f32 %v4031_v23, %v5652_v26 }
 0x909   :  { %v4033_v33 = vpop.eup %4032 }
 0x90a   :  { %3225 = vst [vmem:[#allocation13 + $0x60] sm:$0xff] %v3193_v24  ;;  %v3194_v39 = vadd.f32 %v5754_v44, %v3156_v19  ;;  %v3157_v58 = vmul.f32 %v5748_v20, %v3119_v63  ;;  %v3120_v30 = vmul.f32 %v4033_v33, %v5657_v52 }
 0x90b   :  { %v4035_v32 = vpop.eup %4034 }
 0x90c   :  { %3226 = vst [vmem:[#allocation13 + $0x68] sm:$0xff] %v3194_v39  ;;  %v3195_v46 = vadd.f32 %v5754_v44, %v3157_v58  ;;  %v3158_v60 = vmul.f32 %v5748_v20, %v3120_v30  ;;  %v3121_v12 = vmul.f32 %v4035_v32, %v5662_v2 }
 0x90d   :  { %v4037_v59 = vpop.eup %4036 }
 0x90e   :  { %3227 = vst [vmem:[#allocation13 + $0x70] sm:$0xff] %v3195_v46  ;;  %v3196_v26 = vadd.f32 %v5754_v44, %v3158_v60  ;;  %v3159_v22 = vmul.f32 %v5748_v20, %v3121_v12  ;;  %v3122_v48 = vmul.f32 %v4037_v59, %v5667_v45 }
 0x90f   :  { %v4039_v18 = vpop.eup %4038 }
 0x910   :  { %3228 = vst [vmem:[#allocation13 + $0x78] sm:$0xff] %v3196_v26  ;;  %v3197_v52 = vadd.f32 %v5754_v44, %v3159_v22  ;;  %v3160_v41 = vmul.f32 %v5748_v20, %v3122_v48  ;;  %v3123_v17 = vmul.f32 %v4039_v18, %v5672_v43 }
 0x911   :  { %v4041_v34 = vpop.eup %4040 }
 0x912   :  { %3229 = vst [vmem:[#allocation13 + $0x80] sm:$0xff] %v3197_v52  ;;  %v3198_v2 = vadd.f32 %v5754_v44, %v3160_v41  ;;  %v3161_v54 = vmul.f32 %v5748_v20, %v3123_v17  ;;  %v3124_v55 = vmul.f32 %v4041_v34, %v5677_v28 }
 0x914   :  { %3230 = vst [vmem:[#allocation13 + $0x88] sm:$0xff] %v3198_v2  ;;  %v3199_v1 = vadd.f32 %v5754_v44, %v3161_v54  ;;  %v3162_v45 = vmul.f32 %v5748_v20, %v3124_v55 }
 0x916   :  { %3231 = vst [vmem:[#allocation13 + $0x90] sm:$0xff] %v3199_v1  ;;  %v3200_v0 = vadd.f32 %v5754_v44, %v3162_v45 }
 0x918   :  { %3232 = vst [vmem:[#allocation13 + $0x98] sm:$0xff] %v3200_v0 }
 0x943   :  { %v2986_v25 = vpop.xlane.xlu0 %2985 }
 0x944   :  { %v3029_v36 = vmul.f32 0.0078125, %v2986_v25 }
 0x945   :  { %v2988_v43 = vpop.xlane.xlu1 %2987 }
 0x946   :  { %v3061_v51 = vadd.f32 1e-05, %v3029_v36  ;;  %v3030_v53 = vmul.f32 0.0078125, %v2988_v43 }
 0x948   :  { %4042 = vrsqrt.f32 %v3061_v51  ;;  %v3062_v15 = vadd.f32 1e-05, %v3030_v53 }
 0x94a   :  { %4044 = vrsqrt.f32 %v3062_v15 }
 0x94b   :  { %v2990_v4 = vpop.xlane.xlu0 %2989 }
 0x94c   :  { %v3031_v3 = vmul.f32 0.0078125, %v2990_v4 }
 0x94d   :  { %v2992_v28 = vpop.xlane.xlu1 %2991 }
 0x94e   :  { %v3063_v35 = vadd.f32 1e-05, %v3031_v3  ;;  %v3032_v29 = vmul.f32 0.0078125, %v2992_v28 }
 0x950   :  { %4046 = vrsqrt.f32 %v3063_v35  ;;  %v3064_v50 = vadd.f32 1e-05, %v3032_v29 }
 0x952   :  { %v4043_v5 = vpop.eup %4042  ;;  %4048 = vrsqrt.f32 %v3064_v50 }
 0x953   :  { %v3125_v37 = vmul.f32 %v4043_v5, %v5686_v7  ;;  %v2994_v8 = vpop.xlane.xlu0 %2993 }
 0x954   :  { %v4045_v56 = vpop.eup %4044  ;;  %v3033_v21 = vmul.f32 0.0078125, %v2994_v8 }
 0x955   :  { %v3163_v27 = vmul.f32 %v5748_v20, %v3125_v37  ;;  %v3126_v11 = vmul.f32 %v4045_v56, %v5689_v31  ;;  %v2996_v42 = vpop.xlane.xlu1 %2995 }
 0x956   :  { %v3065_v9 = vadd.f32 1e-05, %v3033_v21  ;;  %v3034_v10 = vmul.f32 0.0078125, %v2996_v42 }
 0x957   :  { %v3201_v49 = vadd.f32 %v5754_v44, %v3163_v27  ;;  %v3164_v23 = vmul.f32 %v5748_v20, %v3126_v11 }
 0x958   :  { %4050 = vrsqrt.f32 %v3065_v9  ;;  %v3066_v24 = vadd.f32 1e-05, %v3034_v10 }
 0x959   :  { %3233 = vst [vmem:[#allocation13 + $0xa0] sm:$0xff] %v3201_v49  ;;  %v3202_v19 = vadd.f32 %v5754_v44, %v3164_v23 }
 0x95a   :  { %v4047_v7 = vpop.eup %4046  ;;  %4052 = vrsqrt.f32 %v3066_v24 }
 0x95b   :  { %3234 = vst [vmem:[#allocation13 + $0xa8] sm:$0xff] %v3202_v19  ;;  %v3127_v63 = vmul.f32 %v4047_v7, %v5696_v61  ;;  %v2998_v33 = vpop.xlane.xlu0 %2997 }
 0x95c   :  { %v4049_v39 = vpop.eup %4048  ;;  %v3035_v31 = vmul.f32 0.0078125, %v2998_v33 }
 0x95d   :  { %v3165_v58 = vmul.f32 %v5748_v20, %v3127_v63  ;;  %v3128_v30 = vmul.f32 %v4049_v39, %v5699_v14  ;;  %v3000_v32 = vpop.xlane.xlu1 %2999 }
 0x95e   :  { %v3067_v46 = vadd.f32 1e-05, %v3035_v31  ;;  %v3036_v60 = vmul.f32 0.0078125, %v3000_v32 }
 0x95f   :  { %v3203_v12 = vadd.f32 %v5754_v44, %v3165_v58  ;;  %v3166_v59 = vmul.f32 %v5748_v20, %v3128_v30 }
 0x960   :  { %4054 = vrsqrt.f32 %v3067_v46  ;;  %v3068_v26 = vadd.f32 1e-05, %v3036_v60 }
 0x961   :  { %3235 = vst [vmem:[#allocation13 + $0xb0] sm:$0xff] %v3203_v12  ;;  %v3204_v22 = vadd.f32 %v5754_v44, %v3166_v59 }
 0x962   :  { %v4051_v61 = vpop.eup %4050  ;;  %4056 = vrsqrt.f32 %v3068_v26 }
 0x963   :  { %3236 = vst [vmem:[#allocation13 + $0xb8] sm:$0xff] %v3204_v22  ;;  %v3129_v48 = vmul.f32 %v4051_v61, %v5706_v38 }
 0x964   :  { %v4053_v18 = vpop.eup %4052  ;;  %v3002_v52 = vpop.xlane.xlu0 %3001 }
 0x965   :  { %v3167_v14 = vmul.f32 %v5748_v20, %v3129_v48  ;;  %v3130_v41 = vmul.f32 %v4053_v18, %v5709_v13  ;;  %v3037_v17 = vmul.f32 0.0078125, %v3002_v52 }
 0x966   :  { %v3004_v34 = vpop.xlane.xlu1 %3003 }
 0x967   :  { %v3205_v2 = vadd.f32 %v5754_v44, %v3167_v14  ;;  %v3168_v54 = vmul.f32 %v5748_v20, %v3130_v41  ;;  %v3069_v55 = vadd.f32 1e-05, %v3037_v17  ;;  %v3038_v1 = vmul.f32 0.0078125, %v3004_v34 }
 0x969   :  { %3237 = vst [vmem:[#allocation13 + $0xc0] sm:$0xff] %v3205_v2  ;;  %v3206_v45 = vadd.f32 %v5754_v44, %v3168_v54  ;;  %4058 = vrsqrt.f32 %v3069_v55  ;;  %v3070_v0 = vadd.f32 1e-05, %v3038_v1 }
 0x96a   :  { %v4055_v38 = vpop.eup %4054 }
 0x96b   :  { %3238 = vst [vmem:[#allocation13 + $0xc8] sm:$0xff] %v3206_v45  ;;  %v3131_v25 = vmul.f32 %v4055_v38, %v5716_v40  ;;  %4060 = vrsqrt.f32 %v3070_v0 }
 0x96c   :  { %v4057_v36 = vpop.eup %4056  ;;  %v3006_v13 = vpop.xlane.xlu0 %3005 }
 0x96d   :  { %v3169_v43 = vmul.f32 %v5748_v20, %v3131_v25  ;;  %v3132_v51 = vmul.f32 %v4057_v36, %v5719_v16  ;;  %v3039_v53 = vmul.f32 0.0078125, %v3006_v13 }
 0x96e   :  { %v3008_v15 = vpop.xlane.xlu1 %3007 }
 0x96f   :  { %v3207_v4 = vadd.f32 %v5754_v44, %v3169_v43  ;;  %v3170_v3 = vmul.f32 %v5748_v20, %v3132_v51  ;;  %v3071_v28 = vadd.f32 1e-05, %v3039_v53  ;;  %v3040_v35 = vmul.f32 0.0078125, %v3008_v15 }
 0x971   :  { %3239 = vst [vmem:[#allocation13 + $0xd0] sm:$0xff] %v3207_v4  ;;  %v3208_v29 = vadd.f32 %v5754_v44, %v3170_v3  ;;  %4062 = vrsqrt.f32 %v3071_v28  ;;  %v3072_v40 = vadd.f32 1e-05, %v3040_v35 }
 0x973   :  { %v4059_v50 = vpop.eup %4058  ;;  %3240 = vst [vmem:[#allocation13 + $0xd8] sm:$0xff] %v3208_v29  ;;  %4064 = vrsqrt.f32 %v3072_v40 }
 0x974   :  { %v3133_v5 = vmul.f32 %v4059_v50, %v5726_v57 }
 0x975   :  { %v4061_v37 = vpop.eup %4060 }
 0x976   :  { %v3171_v16 = vmul.f32 %v5748_v20, %v3133_v5  ;;  %v3134_v8 = vmul.f32 %v4061_v37, %v5729_v62 }
 0x978   :  { %v3209_v56 = vadd.f32 %v5754_v44, %v3171_v16  ;;  %v3172_v21 = vmul.f32 %v5748_v20, %v3134_v8 }
 0x97a   :  { %3241 = vst [vmem:[#allocation13 + $0xe0] sm:$0xff] %v3209_v56  ;;  %v3210_v27 = vadd.f32 %v5754_v44, %v3172_v21 }
 0x97b   :  { %v4063_v11 = vpop.eup %4062 }
 0x97c   :  { %3242 = vst [vmem:[#allocation13 + $0xe8] sm:$0xff] %v3210_v27  ;;  %v3135_v42 = vmul.f32 %v4063_v11, %v5736_v47 }
 0x97d   :  { %v4065_v9 = vpop.eup %4064 }
 0x97e   :  { %v3173_v10 = vmul.f32 %v5748_v20, %v3135_v42  ;;  %v3136_v57 = vmul.f32 %v4065_v9, %v5739_v6 }
 0x980   :  { %v3211_v62 = vadd.f32 %v5754_v44, %v3173_v10  ;;  %v3174_v49 = vmul.f32 %v5748_v20, %v3136_v57 }
 0x982   :  { %3243 = vst [vmem:[#allocation13 + $0xf0] sm:$0xff] %v3211_v62  ;;  %v3212_v23 = vadd.f32 %v5754_v44, %v3174_v49 }
 0x984   :  { %3244 = vst [vmem:[#allocation13 + $0xf8] sm:$0xff] %v3212_v23 }
 0x985   :  { %4209 = shalt.err (!%p4206_p10)
}
 0x986   :  { %s4210_s0 = scalar_lea.hbm %s5879_s13, 4096 }
 0x987   :  { %p4211_p11 = scmp.ne.s32.totalorder %s5879_s13, %s4210_s0  ;;  %p4214_p12 = scmp.lt.u32.totalorder %s4210_s0, %s5879_s13 }
 0x989   :  { %p4216_p13 = pnand %p4214_p12, %p4211_p11 }
 0x98b   :  { %4219 = shalt.err (!%p4216_p13)
}
 0x98c   :  { %3256 = dma.vmem_to_hbm [thread:$0]  %s3251_s12, 4096, %s5879_s13, [#allocation4], %s4235_s26, %s4235_s26, %s4236_s17  }
 0x98d   :  { %4228 = dma.done.wait [#allocation4], 4096  }
 0x98e   :  { %4229 = vsyncadd [#allocation4], 4294963200 }
 0x98f   :  { %3260 = vsyncpa [#allocation3], 1 }
 0x990   :  { %3261 = vsyncpa [#allocation6], 1 }
 0x991   :  { %3262 = vsyncpa [#allocation9], 1 }
 0x992   :  { %3263 = vsyncpa [#allocation12], 1 }
 0x993   :  { %3264 = vsyncpa [#allocation4], 1 }

// kernel: tpu_custom_call.1
= control target key start
LH: loop header
LB: loop body
LE: loop exit
PB: predicated region body
PF: predicated region fallthrough
CT: control target
= control target key end

     0   :  { %18 = vsyncpa [#allocation3], 0  ;;  %s5866_s0 = inlined_call_operand.hbm [shape: f32[2,128,128], index: 0, kind: input, shape index: {}]   ;;  %s5867_s1 = inlined_call_operand.hbm [shape: bf16[2,128,128], index: 1, kind: input, shape index: {}]   ;;  %s5868_s2 = inlined_call_operand.hbm [shape: bf16[2,128,128], index: 2, kind: input, shape index: {}]   ;;  %s5869_s3 = inlined_call_operand.hbm [shape: bf16[128,256], index: 3, kind: input, shape index: {}]   ;;  %s5870_s4 = inlined_call_operand.vmem [shape: f32[1,128], index: 4, kind: input, shape index: {}]   ;;  %s5871_s5 = inlined_call_operand.hbm [shape: bf16[128,256], index: 5, kind: input, shape index: {}]   ;;  %s5872_s6 = inlined_call_operand.vmem [shape: f32[1,256], index: 6, kind: input, shape index: {}]   ;;  %s5873_s7 = inlined_call_operand.hbm [shape: bf16[256,128], index: 7, kind: input, shape index: {}]   ;;  %s5874_s8 = inlined_call_operand.vmem [shape: f32[1,128], index: 8, kind: input, shape index: {}]   ;;  %s5875_s9 = inlined_call_operand.vmem [shape: f32[1,128], index: 9, kind: input, shape index: {}]   ;;  %s5876_s10 = inlined_call_operand.vmem [shape: f32[1,128], index: 10, kind: input, shape index: {}]   ;;  %s5877_s11 = inlined_call_operand.vmem [shape: f32[1,128], index: 11, kind: input, shape index: {}]   ;;  %s5878_s12 = inlined_call_operand.vmem [shape: f32[1,128], index: 12, kind: input, shape index: {}]   ;;  %s5879_s13 = inlined_call_operand.hbm [shape: f32[2,128,128], index: 13, kind: output, shape index: {}]  }
   0x1   :  { %19 = vsyncpa [#allocation6], 0 }
   0x2   :  { %20 = vsyncpa [#allocation9], 0 }
   0x3   :  { %21 = vsyncpa [#allocation12], 0 }
   0x4   :  { %22 = vsyncpa [#allocation4], 0  ;;  %s4230_s25 = smov [#allocation5]   ;;  %s4066_s29 = scalar_lea.hbm %s5867_s1, 2048 }
   0x5   :  { %s40_s26 = sshll.u32 %s4230_s25, 4  ;;  %p4067_p0 = scmp.ne.s32.totalorder %s5867_s1, %s4066_s29  ;;  %s41_s26 = int_to_ptr.vmem [resolvable:$true] %s40_s26 }
   0x6   :  { %p4070_p1 = scmp.lt.u32.totalorder %s4066_s29, %s5867_s1 }
   0x8   :  { %p4072_p2 = pnand %p4070_p1, %p4067_p0 }
   0xa   :  { %4075 = shalt.err (!%p4072_p2)
}
   0xb   :  { %s4076_s17 = scalar_lea.vmem %s41_s26, 2048  ;;  %p4081_p4 = scmp.lt.s32.totalorder %s41_s26, %s41_s26 }
   0xc   :  { %p4077_p3 = scmp.ne.s32.totalorder %s41_s26, %s4076_s17  ;;  %p4082_p5 = scmp.lt.s32.totalorder %s4076_s17, %s4076_s17 }
   0xe   :  { %p4083_p6 = por %p4082_p5, %p4081_p4 }
  0x10   :  { %p4084_p7 = pnand %p4083_p6, %p4077_p3 }
  0x12   :  { %4087 = shalt.err (!%p4084_p7)
}
  0x13   :  { %s4231_s18 = smov 64   ;;  %s4232_s19 = smov 4  }
  0x14   :  { %46 = dma.hbm_to_vmem [thread:$0]  %s5867_s1, 2048, %s41_s26, [#allocation6], %s4231_s18, %s4231_s18, %s4232_s19  }
  0x15   :  { %s4233_s22 = smov [#allocation8]   ;;  %s4234_s24 = smov [#allocation2]  }
  0x16   :  { %s64_s23 = sshll.u32 %s4233_s22, 4  ;;  %s28_s25 = sshll.u32 %s4234_s24, 4  ;;  %s65_s23 = int_to_ptr.vmem [resolvable:$true] %s64_s23  ;;  %s29_s25 = int_to_ptr.vmem [resolvable:$true] %s28_s25 }
  0x17   :  { %s4088_s29 = scalar_lea.hbm %s5869_s3, 2048 }
  0x18   :  { %p4089_p8 = scmp.ne.s32.totalorder %s5869_s3, %s4088_s29  ;;  %p4092_p9 = scmp.lt.u32.totalorder %s4088_s29, %s5869_s3 }
  0x1a   :  { %p4094_p10 = pnand %p4092_p9, %p4089_p8 }
  0x1c   :  { %4097 = shalt.err (!%p4094_p10)
}
  0x1d   :  { %s4098_s1 = scalar_lea.vmem %s65_s23, 2048  ;;  %p4103_p12 = scmp.lt.s32.totalorder %s65_s23, %s65_s23 }
  0x1e   :  { %p4099_p11 = scmp.ne.s32.totalorder %s65_s23, %s4098_s1  ;;  %p4104_p13 = scmp.lt.s32.totalorder %s4098_s1, %s4098_s1 }
  0x20   :  { %p4105_p0 = por %p4104_p13, %p4103_p12 }
  0x22   :  { %p4106_p1 = pnand %p4105_p0, %p4099_p11 }
  0x24   :  { %4109 = shalt.err (!%p4106_p1)
}
  0x25   :  { %s4235_s26 = smov 128   ;;  %s4236_s17 = smov 8  }
  0x26   :  { %70 = dma.hbm_to_vmem [thread:$0]  %s5869_s3, 2048, %s65_s23, [#allocation9], %s4235_s26, %s4235_s26, %s4236_s17  }
  0x27   :  { %s4110_s27 = scalar_lea.hbm %s5866_s0, 4096 }
  0x28   :  { %p4111_p2 = scmp.ne.s32.totalorder %s5866_s0, %s4110_s27  ;;  %p4114_p3 = scmp.lt.u32.totalorder %s4110_s27, %s5866_s0 }
  0x2a   :  { %p4116_p4 = pnand %p4114_p3, %p4111_p2 }
  0x2c   :  { %4119 = shalt.err (!%p4116_p4)
}
  0x2d   :  { %s4120_s15 = scalar_lea.vmem %s29_s25, 4096  ;;  %p4125_p6 = scmp.lt.s32.totalorder %s29_s25, %s29_s25 }
  0x2e   :  { %p4121_p5 = scmp.ne.s32.totalorder %s29_s25, %s4120_s15  ;;  %p4126_p7 = scmp.lt.s32.totalorder %s4120_s15, %s4120_s15 }
  0x30   :  { %p4127_p8 = por %p4126_p7, %p4125_p6 }
  0x32   :  { %p4128_p9 = pnand %p4127_p8, %p4121_p5 }
  0x34   :  { %4131 = shalt.err (!%p4128_p9)
}
  0x35   :  { %34 = dma.hbm_to_vmem [thread:$0]  %s5866_s0, 4096, %s29_s25, [#allocation3], %s4235_s26, %s4235_s26, %s4236_s17  }
  0x36   :  { %s4237_s16 = smov [#allocation7]   ;;  %s4238_s20 = smov [#allocation10]  }
  0x37   :  { %s52_s1 = sshll.u32 %s4237_s16, 4  ;;  %s78_s21 = sshll.u32 %s4238_s20, 4  ;;  %s53_s1 = int_to_ptr.vmem [resolvable:$true] %s52_s1  ;;  %s79_s21 = int_to_ptr.vmem [resolvable:$true] %s78_s21 }
  0x38   :  { %s4132_s27 = scalar_lea.hbm %s5868_s2, 2048 }
  0x39   :  { %p4133_p10 = scmp.ne.s32.totalorder %s5868_s2, %s4132_s27  ;;  %p4136_p11 = scmp.lt.u32.totalorder %s4132_s27, %s5868_s2 }
  0x3b   :  { %p4138_p12 = pnand %p4136_p11, %p4133_p10 }
  0x3d   :  { %4141 = shalt.err (!%p4138_p12)
}
  0x3e   :  { %s4142_s0 = scalar_lea.vmem %s53_s1, 2048  ;;  %p4147_p0 = scmp.lt.s32.totalorder %s53_s1, %s53_s1 }
  0x3f   :  { %p4143_p13 = scmp.ne.s32.totalorder %s53_s1, %s4142_s0  ;;  %p4148_p1 = scmp.lt.s32.totalorder %s4142_s0, %s4142_s0 }
  0x41   :  { %p4149_p2 = por %p4148_p1, %p4147_p0 }
  0x43   :  { %p4150_p3 = pnand %p4149_p2, %p4143_p13 }
  0x45   :  { %4153 = shalt.err (!%p4150_p3)
}
  0x46   :  { %58 = dma.hbm_to_vmem [thread:$0]  %s5868_s2, 2048, %s53_s1, [#allocation6], %s4231_s18, %s4231_s18, %s4232_s19  }
  0x47   :  { %s4154_s16 = scalar_lea.hbm %s5871_s5, 2048 }
  0x48   :  { %p4155_p4 = scmp.ne.s32.totalorder %s5871_s5, %s4154_s16  ;;  %p4158_p5 = scmp.lt.u32.totalorder %s4154_s16, %s5871_s5 }
  0x4a   :  { %p4160_p6 = pnand %p4158_p5, %p4155_p4 }
  0x4c   :  { %4163 = shalt.err (!%p4160_p6)
}
  0x4d   :  { %s4164_s28 = scalar_lea.vmem %s79_s21, 2048  ;;  %p4169_p8 = scmp.lt.s32.totalorder %s79_s21, %s79_s21 }
  0x4e   :  { %p4165_p7 = scmp.ne.s32.totalorder %s79_s21, %s4164_s28  ;;  %p4170_p9 = scmp.lt.s32.totalorder %s4164_s28, %s4164_s28 }
  0x50   :  { %p4171_p10 = por %p4170_p9, %p4169_p8 }
  0x52   :  { %p4172_p11 = pnand %p4171_p10, %p4165_p7 }
  0x54   :  { %4175 = shalt.err (!%p4172_p11)
}
  0x55   :  { %84 = dma.hbm_to_vmem [thread:$0]  %s5871_s5, 2048, %s79_s21, [#allocation9], %s4235_s26, %s4235_s26, %s4236_s17  }
  0x56   :  { %s4239_s29 = smov [#allocation11]   ;;  %s4176_s25 = scalar_lea.hbm %s5873_s7, 2048 }
  0x57   :  { %s92_s30 = sshll.u32 %s4239_s29, 4  ;;  %p4177_p12 = scmp.ne.s32.totalorder %s5873_s7, %s4176_s25  ;;  %s93_s30 = int_to_ptr.vmem [resolvable:$true] %s92_s30 }
  0x58   :  { %p4180_p13 = scmp.lt.u32.totalorder %s4176_s25, %s5873_s7 }
  0x5a   :  { %p4182_p0 = pnand %p4180_p13, %p4177_p12 }
  0x5c   :  { %4185 = shalt.err (!%p4182_p0)
}
  0x5d   :  { %s4186_s20 = scalar_lea.vmem %s93_s30, 2048  ;;  %p4191_p2 = scmp.lt.s32.totalorder %s93_s30, %s93_s30 }
  0x5e   :  { %p4187_p1 = scmp.ne.s32.totalorder %s93_s30, %s4186_s20  ;;  %p4192_p3 = scmp.lt.s32.totalorder %s4186_s20, %s4186_s20 }
  0x60   :  { %p4193_p4 = por %p4192_p3, %p4191_p2 }
  0x62   :  { %p4194_p5 = pnand %p4193_p4, %p4187_p1 }
  0x64   :  { %4197 = shalt.err (!%p4194_p5)
}
  0x65   :  { %98 = dma.hbm_to_vmem [thread:$0]  %s5873_s7, 2048, %s93_s30, [#allocation12], %s4231_s18, %s4231_s18, %s4232_s19  }
  0x66   :  { %4220 = dma.done.wait [#allocation3], 4096  }
  0x67   :  { %4221 = vsyncadd [#allocation3], 4294963200 }
  0x68   :  { %4222 = dma.done.wait [#allocation6], 4096  }
  0x69   :  { %4223 = vsyncadd [#allocation6], 4294963200 }
  0x6a   :  { %4224 = dma.done.wait [#allocation9], 4096  }
  0x6b   :  { %4225 = vsyncadd [#allocation9], 4294963200 }
  0x6c   :  { %4226 = dma.done.wait [#allocation12], 2048  }
  0x6d   :  { %4227 = vsyncadd [#allocation12], 4294965248  ;;  %v5880_v0 = vmov 0   ;;  %v3730_v1 = vld [vmem:[#allocation8 + $0x4] ss:$8 sps:$4 sm:$0xff]   ;;  %v130_v25 = vld [vmem:[#allocation2 + $0x10] sm:$0xff] }
  0x6e   :  { %400 = vmatprep.mubr.bf16.mxu0 %v5880_v0  ;;  %v3732_v2 = vld [vmem:[#allocation8] ss:$8 sps:$4 sm:$0xff]   ;;  %368 = vmatprep.subr.bf16.mxu0 %v3730_v1  ;;  %v3733_v3 = vld [vmem:[#allocation8 + $0x14] ss:$8 sps:$4 sm:$0xff]   ;;  %v3735_v4 = vld [vmem:[#allocation8 + $0x10] ss:$8 sps:$4 sm:$0xff]  }
  0x6f   :  { %369 = vmatpush1.bf16.msra.mxu0 %v3732_v2  ;;  %v3736_v5 = vld [vmem:[#allocation8 + $0x24] ss:$8 sps:$4 sm:$0xff]   ;;  %v3738_v6 = vld [vmem:[#allocation8 + $0x20] ss:$8 sps:$4 sm:$0xff]   ;;  %v3739_v7 = vld [vmem:[#allocation8 + $0x34] ss:$8 sps:$4 sm:$0xff]  }
  0x70   :  { %370 = vmatprep.subr.bf16.mxu0 %v3733_v3  ;;  %v3741_v8 = vld [vmem:[#allocation8 + $0x30] ss:$8 sps:$4 sm:$0xff]   ;;  %v3742_v9 = vld [vmem:[#allocation8 + $0x44] ss:$8 sps:$4 sm:$0xff]   ;;  %v3744_v10 = vld [vmem:[#allocation8 + $0x40] ss:$8 sps:$4 sm:$0xff]  }
  0x71   :  { %v3745_v11 = vld [vmem:[#allocation8 + $0x54] ss:$8 sps:$4 sm:$0xff]   ;;  %v3747_v12 = vld [vmem:[#allocation8 + $0x50] ss:$8 sps:$4 sm:$0xff]   ;;  %v3336_v13 = vld [vmem:[#allocation5] sm:$0xff]  }
  0x72   :  { %v3748_v14 = vld [vmem:[#allocation8 + $0x64] ss:$8 sps:$4 sm:$0xff]   ;;  %v3337_v15 = vunpack.c.l.bf16 %v3336_v13  ;;  %v3338_v16 = vunpack.c.h.bf16 %v3336_v13  ;;  %v3750_v17 = vld [vmem:[#allocation8 + $0x60] ss:$8 sps:$4 sm:$0xff]   ;;  %v3751_v20 = vld [vmem:[#allocation8 + $0x74] ss:$8 sps:$4 sm:$0xff]  }
  0x73   :  { %371 = vmatpush1.bf16.msra.mxu0 %v3735_v4  ;;  %v128_v18 = vld [vmem:[#allocation2] sm:$0xff]  ;;  %v129_v19 = vld [vmem:[#allocation2 + $0x8] sm:$0xff]  ;;  %v3753_v21 = vld [vmem:[#allocation8 + $0x70] ss:$8 sps:$4 sm:$0xff]  }
  0x74   :  { %372 = vmatprep.subr.bf16.mxu0 %v3736_v5  ;;  %v4403_v22 = vadd.f32 %v3337_v15, %v128_v18  ;;  %v4405_v23 = vadd.f32 %v3338_v16, %v129_v19  ;;  %v3399_v24 = vld [vmem:[#allocation5 + $0x8] sm:$0xff]   ;;  %v131_v26 = vld [vmem:[#allocation2 + $0x18] sm:$0xff]  ;;  %v3400_v30 = vld [vmem:[#allocation5 + $0x10] sm:$0xff]  }
  0x75   :  { %v3341_v28 = vunpack.c.l.bf16 %v3399_v24  ;;  %v3342_v29 = vunpack.c.h.bf16 %v3399_v24  ;;  %v132_v33 = vld [vmem:[#allocation2 + $0x20] sm:$0xff]  ;;  %v133_v34 = vld [vmem:[#allocation2 + $0x28] sm:$0xff]  ;;  %v3345_v36 = vunpack.c.l.bf16 %v3400_v30  ;;  %v3346_v37 = vunpack.c.h.bf16 %v3400_v30  ;;  %v3401_v38 = vld [vmem:[#allocation5 + $0x18] sm:$0xff]  }
  0x76   :  { %v256_v27 = vpack.c.bf16 %v4405_v23, %v4403_v22  ;;  %v134_v41 = vld [vmem:[#allocation2 + $0x30] sm:$0xff]  ;;  %v135_v42 = vld [vmem:[#allocation2 + $0x38] sm:$0xff]  ;;  %v3349_v44 = vunpack.c.l.bf16 %v3401_v38  ;;  %v3350_v45 = vunpack.c.h.bf16 %v3401_v38  ;;  %v3402_v46 = vld [vmem:[#allocation5 + $0x20] sm:$0xff]  }
  0x77   :  { %373 = vmatpush1.bf16.msra.mxu0 %v3738_v6  ;;  %v4409_v31 = vadd.f32 %v3341_v28, %v130_v25  ;;  %v4411_v32 = vadd.f32 %v3342_v29, %v131_v26  ;;  %v4416_v39 = vadd.f32 %v3345_v36, %v132_v33  ;;  %v4418_v40 = vadd.f32 %v3346_v37, %v133_v34  ;;  %v136_v52 = vld [vmem:[#allocation2 + $0x40] sm:$0xff]  ;;  %v137_v53 = vld [vmem:[#allocation2 + $0x48] sm:$0xff]  ;;  %v138_v60 = vld [vmem:[#allocation2 + $0x50] sm:$0xff] }
  0x78   :  { %374 = vmatprep.subr.bf16.mxu0 %v3739_v7  ;;  %v4423_v47 = vadd.f32 %v3349_v44, %v134_v41  ;;  %v4425_v48 = vadd.f32 %v3350_v45, %v135_v42  ;;  %v3353_v50 = vunpack.c.l.bf16 %v3402_v46  ;;  %v3354_v51 = vunpack.c.h.bf16 %v3402_v46  ;;  %v3403_v56 = vld [vmem:[#allocation5 + $0x28] sm:$0xff]   ;;  %v139_v61 = vld [vmem:[#allocation2 + $0x58] sm:$0xff]  ;;  %v3404_v1 = vld [vmem:[#allocation5 + $0x30] sm:$0xff]  }
  0x79   :  { %v257_v35 = vpack.c.bf16 %v4411_v32, %v4409_v31  ;;  %v258_v43 = vpack.c.bf16 %v4418_v40, %v4416_v39  ;;  %v3357_v58 = vunpack.c.l.bf16 %v3403_v56  ;;  %v3358_v59 = vunpack.c.h.bf16 %v3403_v56  ;;  %v140_v5 = vld [vmem:[#allocation2 + $0x60] sm:$0xff]  ;;  %v141_v6 = vld [vmem:[#allocation2 + $0x68] sm:$0xff]  ;;  %v142_v13 = vld [vmem:[#allocation2 + $0x70] sm:$0xff] }
  0x7a   :  { %v259_v49 = vpack.c.bf16 %v4425_v48, %v4423_v47  ;;  %v4430_v54 = vadd.f32 %v3353_v50, %v136_v52  ;;  %v4432_v55 = vadd.f32 %v3354_v51, %v137_v53  ;;  %v3361_v3 = vunpack.c.l.bf16 %v3404_v1  ;;  %v145_v24 = vld [vmem:[#allocation2 + $0x88] sm:$0xff]  ;;  %v146_v33 = vld [vmem:[#allocation2 + $0x90] sm:$0xff]  ;;  %v147_v34 = vld [vmem:[#allocation2 + $0x98] sm:$0xff] }
  0x7b   :  { %375 = vmatpush1.bf16.msra.mxu0 %v3741_v8  ;;  %v4437_v62 = vadd.f32 %v3357_v58, %v138_v60  ;;  %v4439_v63 = vadd.f32 %v3358_v59, %v139_v61  ;;  %v3362_v4 = vunpack.c.h.bf16 %v3404_v1  ;;  %v3408_v37 = vld [vmem:[#allocation5 + $0x50] sm:$0xff]   ;;  %v149_v44 = vld [vmem:[#allocation2 + $0xa8] sm:$0xff]  ;;  %v151_v56 = vld [vmem:[#allocation2 + $0xb8] sm:$0xff] }
  0x7c   :  { %376 = vmatprep.subr.bf16.mxu0 %v3742_v9  ;;  %v260_v57 = vpack.c.bf16 %v4432_v55, %v4430_v54  ;;  %v4444_v7 = vadd.f32 %v3361_v3, %v140_v5  ;;  %v3405_v9 = vld [vmem:[#allocation5 + $0x38] sm:$0xff]   ;;  %v3377_v41 = vunpack.c.l.bf16 %v3408_v37  ;;  %v3378_v42 = vunpack.c.h.bf16 %v3408_v37  ;;  %v150_v53 = vld [vmem:[#allocation2 + $0xb0] sm:$0xff]  ;;  %v3410_v59 = vld [vmem:[#allocation5 + $0x60] sm:$0xff]  }
  0x7d   :  { %v261_v2 = vpack.c.bf16 %v4439_v63, %v4437_v62  ;;  %v4446_v8 = vadd.f32 %v3362_v4, %v141_v6  ;;  %v3385_v61 = vunpack.c.l.bf16 %v3410_v59  ;;  %v3386_v1 = vunpack.c.h.bf16 %v3410_v59  ;;  %v153_v3 = vld [vmem:[#allocation2 + $0xc8] sm:$0xff] }
  0x7e   :  { %v4474_v46 = vadd.f32 %v3378_v42, %v149_v44  ;;  %v3411_v6 = vld [vmem:[#allocation5 + $0x68] sm:$0xff]  }
  0x7f   :  { %377 = vmatpush1.bf16.msra.mxu0 %v3744_v10  ;;  %v262_v10 = vpack.c.bf16 %v4446_v8, %v4444_v7  ;;  %v4488_v5 = vadd.f32 %v3386_v1, %v153_v3 }
  0x80   :  { %378 = vmatprep.subr.bf16.mxu0 %v3745_v11  ;;  %v3365_v11 = vunpack.c.l.bf16 %v3405_v9  ;;  %5901 = vst [vmem:[#allocation23_spill] sm:$0xff] %v4474_v46 }
  0x81   :  { %5905 = vst [vmem:[#allocation27_spill] sm:$0xff] %v4488_v5 }
  0x82   :  { %v4451_v15 = vadd.f32 %v3365_v11, %v142_v13  ;;  %v3390_v11 = vunpack.c.h.bf16 %v3411_v6  ;;  %v155_v13 = vld [vmem:[#allocation2 + $0xd8] sm:$0xff] }
  0x83   :  { %379 = vmatpush1.bf16.msra.mxu0 %v3747_v12  ;;  %v3366_v12 = vunpack.c.h.bf16 %v3405_v9 }
  0x84   :  { %380 = vmatprep.subr.bf16.mxu0 %v3748_v14  ;;  %v143_v14 = vld [vmem:[#allocation2 + $0x78] sm:$0xff] }
  0x85   :  { %v4453_v16 = vadd.f32 %v3366_v12, %v143_v14  ;;  %v154_v12 = vld [vmem:[#allocation2 + $0xd0] sm:$0xff] }
  0x87   :  { %381 = vmatpush1.bf16.msra.mxu0 %v3750_v17  ;;  %v3406_v17 = vld [vmem:[#allocation5 + $0x40] sm:$0xff]   ;;  %v263_v18 = vpack.c.bf16 %v4453_v16, %v4451_v15 }
  0x88   :  { %382 = vmatprep.subr.bf16.mxu0 %v3751_v20  ;;  %v3369_v19 = vunpack.c.l.bf16 %v3406_v17  ;;  %v3370_v20 = vunpack.c.h.bf16 %v3406_v17  ;;  %v4495_v17 = vadd.f32 %v3390_v11, %v155_v13 }
  0x8a   :  { %v4460_v26 = vadd.f32 %v3370_v20, %v145_v24  ;;  %5907 = vst [vmem:[#allocation29_spill] sm:$0xff] %v4495_v17  ;;  %v156_v24 = vld [vmem:[#allocation2 + $0xe0] sm:$0xff] }
  0x8b   :  { %383 = vmatpush1.bf16.msra.mxu0 %v3753_v21  ;;  %v144_v21 = vld [vmem:[#allocation2 + $0x80] sm:$0xff] }
  0x8c   :  { %v4458_v25 = vadd.f32 %v3369_v19, %v144_v21  ;;  %5897 = vst [vmem:[#allocation19_spill] sm:$0xff] %v4460_v26 }
  0x8e   :  { %401 = vmatmul.mubr.bf16.vlgmr.msra.gmra.mrb[0].mxu0 %v256_v27  ;;  %v3407_v27 = vld [vmem:[#allocation5 + $0x48] sm:$0xff]   ;;  %v264_v28 = vpack.c.bf16 %v4460_v26, %v4458_v25 }
  0x8f   :  { %410 = vmatprep.mubr.bf16.mxu0 %v5880_v0  ;;  %v3373_v29 = vunpack.c.l.bf16 %v3407_v27  ;;  %v3374_v30 = vunpack.c.h.bf16 %v3407_v27  ;;  %v157_v27 = vld [vmem:[#allocation2 + $0xe8] sm:$0xff] }
  0x91   :  { %v4467_v36 = vadd.f32 %v3374_v30, %v147_v34  ;;  %v3413_v30 = vld [vmem:[#allocation5 + $0x78] sm:$0xff]  }
  0x92   :  { %v3397_v34 = vunpack.c.l.bf16 %v3413_v30  ;;  %v3398_v37 = vunpack.c.h.bf16 %v3413_v30 }
  0x93   :  { %5899 = vst [vmem:[#allocation21_spill] sm:$0xff] %v4467_v36 }
  0x96   :  { %411 = vmatmul.mubr.bf16.gmra.mrb[4].mxu0 %v257_v35  ;;  %v4465_v35 = vadd.f32 %v3373_v29, %v146_v33 }
  0x97   :  { %420 = vmatprep.mubr.bf16.mxu0 %v5880_v0 }
  0x98   :  { %5898 = vst [vmem:[#allocation20_spill] sm:$0xff] %v4465_v35  ;;  %v265_v38 = vpack.c.bf16 %v4467_v36, %v4465_v35 }
  0x9e   :  { %421 = vmatmul.mubr.bf16.gmra.mrb[8].mxu0 %v258_v43  ;;  %v148_v43 = vld [vmem:[#allocation2 + $0xa0] sm:$0xff] }
  0x9f   :  { %430 = vmatprep.mubr.bf16.mxu0 %v5880_v0  ;;  %v4472_v45 = vadd.f32 %v3377_v41, %v148_v43  ;;  %v159_v41 = vld [vmem:[#allocation2 + $0xf8] sm:$0xff] }
  0xa0   :  { %v4509_v43 = vadd.f32 %v3398_v37, %v159_v41 }
  0xa1   :  { %5900 = vst [vmem:[#allocation22_spill] sm:$0xff] %v4472_v45  ;;  %v266_v50 = vpack.c.bf16 %v4474_v46, %v4472_v45 }
  0xa2   :  { %5911 = vst [vmem:[#allocation33_spill] sm:$0xff] %v4509_v43 }
  0xa6   :  { %431 = vmatmul.mubr.bf16.gmra.mrb[12].mxu0 %v259_v49  ;;  %v3409_v49 = vld [vmem:[#allocation5 + $0x58] sm:$0xff]  }
  0xa7   :  { %440 = vmatprep.mubr.bf16.mxu0 %v5880_v0  ;;  %v3381_v51 = vunpack.c.l.bf16 %v3409_v49  ;;  %v3382_v52 = vunpack.c.h.bf16 %v3409_v49 }
  0xa9   :  { %v4481_v58 = vadd.f32 %v3382_v52, %v151_v56 }
  0xab   :  { %5903 = vst [vmem:[#allocation25_spill] sm:$0xff] %v4481_v58 }
  0xae   :  { %441 = vmatmul.mubr.bf16.gmra.mrb[16].mxu0 %v260_v57  ;;  %v4479_v57 = vadd.f32 %v3381_v51, %v150_v53 }
  0xaf   :  { %450 = vmatprep.mubr.bf16.mxu0 %v5880_v0 }
  0xb0   :  { %5902 = vst [vmem:[#allocation24_spill] sm:$0xff] %v4479_v57  ;;  %v267_v60 = vpack.c.bf16 %v4481_v58, %v4479_v57 }
  0xb6   :  { %451 = vmatmul.mubr.bf16.gmra.mrb[20].mxu0 %v261_v2  ;;  %v152_v2 = vld [vmem:[#allocation2 + $0xc0] sm:$0xff] }
  0xb7   :  { %460 = vmatprep.mubr.bf16.mxu0 %v5880_v0  ;;  %v4486_v4 = vadd.f32 %v3385_v61, %v152_v2 }
  0xb9   :  { %5904 = vst [vmem:[#allocation26_spill] sm:$0xff] %v4486_v4  ;;  %v268_v9 = vpack.c.bf16 %v4488_v5, %v4486_v4 }
  0xbe   :  { %461 = vmatmul.mubr.bf16.gmra.mrb[24].mxu0 %v262_v10  ;;  %v3389_v10 = vunpack.c.l.bf16 %v3411_v6 }
  0xbf   :  { %470 = vmatprep.mubr.bf16.mxu0 %v5880_v0 }
  0xc0   :  { %v4493_v14 = vadd.f32 %v3389_v10, %v154_v12 }
  0xc2   :  { %5906 = vst [vmem:[#allocation28_spill] sm:$0xff] %v4493_v14  ;;  %v269_v19 = vpack.c.bf16 %v4495_v17, %v4493_v14  ;;  %v3759_v17 = vld [vmem:[#allocation7 + $0x28] sm:$0xff]   ;;  %v3760_v14 = vld [vmem:[#allocation7 + $0x30] sm:$0xff]  }
  0xc6   :  { %471 = vmatmul.mubr.bf16.gmra.mrb[28].mxu0 %v263_v18  ;;  %v3412_v18 = vld [vmem:[#allocation5 + $0x70] sm:$0xff]  }
  0xc7   :  { %480 = vmatprep.mubr.bf16.mxu0 %v5880_v0  ;;  %v3393_v20 = vunpack.c.l.bf16 %v3412_v18  ;;  %v3394_v21 = vunpack.c.h.bf16 %v3412_v18 }
  0xc9   :  { %v4502_v29 = vadd.f32 %v3394_v21, %v157_v27 }
  0xcb   :  { %5909 = vst [vmem:[#allocation31_spill] sm:$0xff] %v4502_v29 }
  0xce   :  { %481 = vmatmul.mubr.bf16.gmra.mrb[32].mxu0 %v264_v28  ;;  %v4500_v28 = vadd.f32 %v3393_v20, %v156_v24 }
  0xcf   :  { %490 = vmatprep.mubr.bf16.mxu0 %v5880_v0 }
  0xd0   :  { %5908 = vst [vmem:[#allocation30_spill] sm:$0xff] %v4500_v28  ;;  %v270_v33 = vpack.c.bf16 %v4502_v29, %v4500_v28  ;;  %v3757_v29 = vld [vmem:[#allocation7 + $0x18] sm:$0xff]   ;;  %v3758_v28 = vld [vmem:[#allocation7 + $0x20] sm:$0xff]  }
  0xd6   :  { %491 = vmatmul.mubr.bf16.gmra.mrb[36].mxu0 %v265_v38  ;;  %v158_v38 = vld [vmem:[#allocation2 + $0xf0] sm:$0xff] }
  0xd7   :  { %500 = vmatprep.mubr.bf16.mxu0 %v5880_v0  ;;  %v4507_v42 = vadd.f32 %v3397_v34, %v158_v38 }
  0xd9   :  { %5910 = vst [vmem:[#allocation32_spill] sm:$0xff] %v4507_v42  ;;  %v271_v44 = vpack.c.bf16 %v4509_v43, %v4507_v42  ;;  %v3756_v42 = vld [vmem:[#allocation7 + $0x10] sm:$0xff]  }
  0xde   :  { %501 = vmatmul.mubr.bf16.gmra.mrb[40].mxu0 %v266_v50  ;;  %v4517_v50 = vld [vmem:[%s5870_s4] ss:$0 sm:$0xff] }
  0xdf   :  { %510 = vmatprep.mubr.bf16.mxu0 %v5880_v0 }
  0xe6   :  { %511 = vmatmul.mubr.bf16.gmra.mrb[44].mxu0 %v267_v60 }
  0xe7   :  { %520 = vmatprep.mubr.bf16.mxu0 %v5880_v0 }
  0xee   :  { %521 = vmatmul.mubr.bf16.gmra.mrb[48].mxu0 %v268_v9 }
  0xef   :  { %530 = vmatprep.mubr.bf16.mxu0 %v5880_v0 }
  0xf6   :  { %531 = vmatmul.mubr.bf16.gmra.mrb[52].mxu0 %v269_v19 }
  0xf7   :  { %540 = vmatprep.mubr.bf16.mxu0 %v5880_v0 }
  0xfe   :  { %541 = vmatmul.mubr.bf16.gmra.mrb[56].mxu0 %v270_v33 }
  0xff   :  { %550 = vmatprep.mubr.bf16.mxu0 %v5880_v0 }
 0x106   :  { %551 = vmatmul.mubr.bf16.gmra.mrb[60].mxu0 %v271_v44 }
 0x161   :  { %v402_v49 = vpop.f32.mrb[0].mxu0 }
 0x162   :  { %v404_v51 = vpop.f32.mrb[1].mxu0  ;;  %v568_v53 = vadd.f32 %v4517_v50, %v402_v49 }
 0x163   :  { %v406_v52 = vpop.f32.mrb[2].mxu0 }
 0x164   :  { %v569_v56 = vadd.f32 %v4517_v50, %v406_v52  ;;  %v408_v59 = vpop.f32.mrb[3].mxu0 }
 0x165   :  { %v616_v60 = vpack.c.bf16 %v408_v59, %v404_v51 }
 0x166   :  { %v600_v61 = vpack.c.bf16 %v569_v56, %v568_v53 }
 0x167   :  { %3590 = vmatprep.subr.bf16.mxu1 %v616_v60 }
 0x168   :  { %3591 = vmatpush3.bf16.xpose.msra.mxu1 %v616_v60  ;;  %3606 = vmatprep.mubr.bf16.mxu1 %v600_v61 }
 0x169   :  { %v412_v1 = vpop.f32.mrb[4].mxu0 }
 0x16a   :  { %v414_v2 = vpop.f32.mrb[5].mxu0  ;;  %v4522_v6 = vadd.f32 %v4517_v50, %v412_v1 }
 0x16b   :  { %v416_v3 = vpop.f32.mrb[6].mxu0 }
 0x16c   :  { %v4525_v9 = vadd.f32 %v4517_v50, %v416_v3  ;;  %v418_v10 = vpop.f32.mrb[7].mxu0 }
 0x16d   :  { %v617_v11 = vpack.c.bf16 %v418_v10, %v414_v2 }
 0x16e   :  { %v601_v12 = vpack.c.bf16 %v4525_v9, %v4522_v6 }
 0x16f   :  { %3592 = vmatprep.subr.bf16.mxu1 %v617_v11 }
 0x170   :  { %3593 = vmatpush3.bf16.xpose.msra.mxu1 %v617_v11 }
 0x171   :  { %v422_v13 = vpop.f32.mrb[8].mxu0 }
 0x172   :  { %v424_v18 = vpop.f32.mrb[9].mxu0  ;;  %v4530_v20 = vadd.f32 %v4517_v50, %v422_v13 }
 0x173   :  { %v426_v19 = vpop.f32.mrb[10].mxu0 }
 0x174   :  { %v4533_v21 = vadd.f32 %v4517_v50, %v426_v19  ;;  %v428_v24 = vpop.f32.mrb[11].mxu0 }
 0x175   :  { %v618_v27 = vpack.c.bf16 %v428_v24, %v424_v18 }
 0x176   :  { %v602_v30 = vpack.c.bf16 %v4533_v21, %v4530_v20 }
 0x177   :  { %3594 = vmatprep.subr.bf16.mxu1 %v618_v27 }
 0x178   :  { %3595 = vmatpush3.bf16.xpose.msra.mxu1 %v618_v27 }
 0x179   :  { %v432_v33 = vpop.f32.mrb[12].mxu0 }
 0x17a   :  { %v434_v34 = vpop.f32.mrb[13].mxu0  ;;  %v4538_v38 = vadd.f32 %v4517_v50, %v432_v33 }
 0x17b   :  { %v436_v37 = vpop.f32.mrb[14].mxu0 }
 0x17c   :  { %v4541_v41 = vadd.f32 %v4517_v50, %v436_v37  ;;  %v438_v44 = vpop.f32.mrb[15].mxu0 }
 0x17d   :  { %v619_v49 = vpack.c.bf16 %v438_v44, %v434_v34 }
 0x17e   :  { %v603_v51 = vpack.c.bf16 %v4541_v41, %v4538_v38 }
 0x17f   :  { %3596 = vmatprep.subr.bf16.mxu1 %v619_v49 }
 0x180   :  { %3597 = vmatpush3.bf16.xpose.msra.mxu1 %v619_v49 }
 0x181   :  { %v442_v52 = vpop.f32.mrb[16].mxu0 }
 0x182   :  { %v444_v53 = vpop.f32.mrb[17].mxu0  ;;  %v576_v59 = vadd.f32 %v4517_v50, %v442_v52 }
 0x183   :  { %v446_v56 = vpop.f32.mrb[18].mxu0 }
 0x184   :  { %v577_v60 = vadd.f32 %v4517_v50, %v446_v56  ;;  %v448_v61 = vpop.f32.mrb[19].mxu0 }
 0x185   :  { %v620_v1 = vpack.c.bf16 %v448_v61, %v444_v53 }
 0x186   :  { %v604_v2 = vpack.c.bf16 %v577_v60, %v576_v59 }
 0x187   :  { %3598 = vmatprep.subr.bf16.mxu1 %v620_v1 }
 0x188   :  { %3599 = vmatpush3.bf16.xpose.msra.mxu1 %v620_v1 }
 0x189   :  { %v452_v3 = vpop.f32.mrb[20].mxu0 }
 0x18a   :  { %v454_v10 = vpop.f32.mrb[21].mxu0  ;;  %v578_v13 = vadd.f32 %v4517_v50, %v452_v3 }
 0x18b   :  { %v456_v11 = vpop.f32.mrb[22].mxu0 }
 0x18c   :  { %v579_v18 = vadd.f32 %v4517_v50, %v456_v11  ;;  %v458_v19 = vpop.f32.mrb[23].mxu0 }
 0x18d   :  { %v621_v20 = vpack.c.bf16 %v458_v19, %v454_v10 }
 0x18e   :  { %v605_v21 = vpack.c.bf16 %v579_v18, %v578_v13 }
 0x18f   :  { %3600 = vmatprep.subr.bf16.mxu1 %v621_v20 }
 0x190   :  { %3601 = vmatpush3.bf16.xpose.msra.mxu1 %v621_v20 }
 0x191   :  { %v462_v24 = vpop.f32.mrb[24].mxu0 }
 0x192   :  { %v464_v27 = vpop.f32.mrb[25].mxu0  ;;  %v580_v34 = vadd.f32 %v4517_v50, %v462_v24 }
 0x193   :  { %v466_v33 = vpop.f32.mrb[26].mxu0 }
 0x194   :  { %v581_v37 = vadd.f32 %v4517_v50, %v466_v33  ;;  %v468_v44 = vpop.f32.mrb[27].mxu0 }
 0x195   :  { %v622_v49 = vpack.c.bf16 %v468_v44, %v464_v27 }
 0x196   :  { %v606_v52 = vpack.c.bf16 %v581_v37, %v580_v34 }
 0x197   :  { %3602 = vmatprep.subr.bf16.mxu1 %v622_v49 }
 0x198   :  { %3603 = vmatpush3.bf16.xpose.msra.mxu1 %v622_v49 }
 0x199   :  { %v472_v53 = vpop.f32.mrb[28].mxu0 }
 0x19a   :  { %v474_v56 = vpop.f32.mrb[29].mxu0  ;;  %v582_v60 = vadd.f32 %v4517_v50, %v472_v53 }
 0x19b   :  { %v476_v59 = vpop.f32.mrb[30].mxu0 }
 0x19c   :  { %v583_v61 = vadd.f32 %v4517_v50, %v476_v59  ;;  %v478_v1 = vpop.f32.mrb[31].mxu0 }
 0x19d   :  { %v623_v3 = vpack.c.bf16 %v478_v1, %v474_v56 }
 0x19e   :  { %v607_v10 = vpack.c.bf16 %v583_v61, %v582_v60 }
 0x19f   :  { %3604 = vmatprep.subr.bf16.mxu1 %v623_v3 }
 0x1a0   :  { %3605 = vmatpush3.bf16.xpose.msra.mxu1 %v623_v3 }
 0x1a1   :  { %v482_v11 = vpop.f32.mrb[32].mxu0 }
 0x1a2   :  { %v584_v13 = vadd.f32 %v4517_v50, %v482_v11  ;;  %v484_v18 = vpop.f32.mrb[33].mxu0 }
 0x1a3   :  { %v486_v19 = vpop.f32.mrb[34].mxu0 }
 0x1a4   :  { %v585_v20 = vadd.f32 %v4517_v50, %v486_v19  ;;  %v488_v24 = vpop.f32.mrb[35].mxu0 }
 0x1a5   :  { %v624_v27 = vpack.c.bf16 %v488_v24, %v484_v18 }
 0x1a6   :  { %v608_v33 = vpack.c.bf16 %v585_v20, %v584_v13 }
 0x1a7   :  { %3607 = vmatmul.mubr.bf16.vlgmr.msra.gmra.mrb[0].mxu1 %v601_v12  ;;  %3622 = vmatprep.subr.bf16.mxu1 %v624_v27 }
 0x1a8   :  { %3610 = vmatprep.mubr.bf16.mxu1 %v602_v30  ;;  %3623 = vmatpush3.bf16.xpose.msra.mxu1 %v624_v27 }
 0x1a9   :  { %v492_v34 = vpop.f32.mrb[36].mxu0 }
 0x1aa   :  { %v4559_v37 = vadd.f32 %v4517_v50, %v492_v34  ;;  %v494_v44 = vpop.f32.mrb[37].mxu0 }
 0x1ab   :  { %v496_v49 = vpop.f32.mrb[38].mxu0 }
 0x1ac   :  { %v4562_v53 = vadd.f32 %v4517_v50, %v496_v49  ;;  %v498_v56 = vpop.f32.mrb[39].mxu0 }
 0x1ad   :  { %v625_v59 = vpack.c.bf16 %v498_v56, %v494_v44 }
 0x1ae   :  { %v609_v60 = vpack.c.bf16 %v4562_v53, %v4559_v37 }
 0x1af   :  { %3611 = vmatmul.mubr.bf16.gmra.mrb[4].mxu1 %v603_v51  ;;  %3624 = vmatprep.subr.bf16.mxu1 %v625_v59 }
 0x1b0   :  { %3614 = vmatprep.mubr.bf16.mxu1 %v604_v2  ;;  %3625 = vmatpush3.bf16.xpose.msra.mxu1 %v625_v59 }
 0x1b1   :  { %v502_v6 = vpop.f32.mrb[40].mxu0 }
 0x1b2   :  { %v4570_v9 = vadd.f32 %v4517_v50, %v502_v6  ;;  %v504_v12 = vpop.f32.mrb[41].mxu0 }
 0x1b3   :  { %v506_v30 = vpop.f32.mrb[42].mxu0 }
 0x1b4   :  { %v589_v61 = vadd.f32 %v4517_v50, %v506_v30  ;;  %v508_v1 = vpop.f32.mrb[43].mxu0 }
 0x1b5   :  { %v626_v3 = vpack.c.bf16 %v508_v1, %v504_v12 }
 0x1b6   :  { %v610_v11 = vpack.c.bf16 %v589_v61, %v4570_v9 }
 0x1b7   :  { %3615 = vmatmul.mubr.bf16.gmra.mrb[8].mxu1 %v605_v21  ;;  %3626 = vmatprep.subr.bf16.mxu1 %v626_v3 }
 0x1b8   :  { %3618 = vmatprep.mubr.bf16.mxu1 %v606_v52  ;;  %3627 = vmatpush3.bf16.xpose.msra.mxu1 %v626_v3 }
 0x1b9   :  { %v512_v38 = vpop.f32.mrb[44].mxu0 }
 0x1ba   :  { %v590_v41 = vadd.f32 %v4517_v50, %v512_v38  ;;  %v514_v51 = vpop.f32.mrb[45].mxu0 }
 0x1bb   :  { %v516_v2 = vpop.f32.mrb[46].mxu0 }
 0x1bc   :  { %v591_v13 = vadd.f32 %v4517_v50, %v516_v2  ;;  %v518_v18 = vpop.f32.mrb[47].mxu0 }
 0x1bd   :  { %v627_v19 = vpack.c.bf16 %v518_v18, %v514_v51 }
 0x1be   :  { %v611_v20 = vpack.c.bf16 %v591_v13, %v590_v41 }
 0x1bf   :  { %3619 = vmatmul.mubr.bf16.gmra.mrb[12].mxu1 %v607_v10  ;;  %3628 = vmatprep.subr.bf16.mxu1 %v627_v19 }
 0x1c0   :  { %3629 = vmatpush3.bf16.xpose.msra.mxu1 %v627_v19  ;;  %3638 = vmatprep.mubr.bf16.mxu1 %v608_v33 }
 0x1c1   :  { %v522_v24 = vpop.f32.mrb[48].mxu0 }
 0x1c2   :  { %v592_v21 = vadd.f32 %v4517_v50, %v522_v24  ;;  %v524_v27 = vpop.f32.mrb[49].mxu0 }
 0x1c3   :  { %v526_v52 = vpop.f32.mrb[50].mxu0 }
 0x1c4   :  { %v593_v34 = vadd.f32 %v4517_v50, %v526_v52  ;;  %v528_v44 = vpop.f32.mrb[51].mxu0 }
 0x1c5   :  { %v628_v49 = vpack.c.bf16 %v528_v44, %v524_v27 }
 0x1c6   :  { %v612_v56 = vpack.c.bf16 %v593_v34, %v592_v21 }
 0x1c7   :  { %3630 = vmatprep.subr.bf16.mxu1 %v628_v49 }
 0x1c8   :  { %3631 = vmatpush3.bf16.xpose.msra.mxu1 %v628_v49 }
 0x1c9   :  { %v532_v59 = vpop.f32.mrb[52].mxu0 }
 0x1ca   :  { %v594_v6 = vadd.f32 %v4517_v50, %v532_v59  ;;  %v534_v9 = vpop.f32.mrb[53].mxu0 }
 0x1cb   :  { %v536_v10 = vpop.f32.mrb[54].mxu0 }
 0x1cc   :  { %v595_v12 = vadd.f32 %v4517_v50, %v536_v10  ;;  %v538_v33 = vpop.f32.mrb[55].mxu0 }
 0x1cd   :  { %v629_v30 = vpack.c.bf16 %v538_v33, %v534_v9 }
 0x1ce   :  { %v613_v61 = vpack.c.bf16 %v595_v12, %v594_v6 }
 0x1cf   :  { %3632 = vmatprep.subr.bf16.mxu1 %v629_v30 }
 0x1d0   :  { %3633 = vmatpush3.bf16.xpose.msra.mxu1 %v629_v30 }
 0x1d1   :  { %v542_v1 = vpop.f32.mrb[56].mxu0 }
 0x1d2   :  { %v596_v3 = vadd.f32 %v4517_v50, %v542_v1  ;;  %v544_v38 = vpop.f32.mrb[57].mxu0 }
 0x1d3   :  { %v546_v41 = vpop.f32.mrb[58].mxu0 }
 0x1d4   :  { %v597_v51 = vadd.f32 %v4517_v50, %v546_v41  ;;  %v548_v2 = vpop.f32.mrb[59].mxu0 }
 0x1d5   :  { %v630_v13 = vpack.c.bf16 %v548_v2, %v544_v38 }
 0x1d6   :  { %v614_v18 = vpack.c.bf16 %v597_v51, %v596_v3  ;;  %v3754_v3 = vld [vmem:[#allocation7] sm:$0xff]  }
 0x1d7   :  { %3634 = vmatprep.subr.bf16.mxu1 %v630_v13  ;;  %3654 = vmatprep.subr.bf16.mxu0 %v3754_v3 }
 0x1d8   :  { %3635 = vmatpush3.bf16.xpose.msra.mxu1 %v630_v13  ;;  %3655 = vmatpush3.bf16.msra.mxu0 %v3754_v3 }
 0x1d9   :  { %v552_v19 = vpop.f32.mrb[60].mxu0 }
 0x1da   :  { %v598_v24 = vadd.f32 %v4517_v50, %v552_v19  ;;  %v554_v21 = vpop.f32.mrb[61].mxu0 }
 0x1db   :  { %v556_v27 = vpop.f32.mrb[62].mxu0 }
 0x1dc   :  { %v599_v52 = vadd.f32 %v4517_v50, %v556_v27  ;;  %v558_v34 = vpop.f32.mrb[63].mxu0 }
 0x1dd   :  { %v631_v44 = vpack.c.bf16 %v558_v34, %v554_v21 }
 0x1de   :  { %v615_v49 = vpack.c.bf16 %v599_v52, %v598_v24 }
 0x1df   :  { %3636 = vmatprep.subr.bf16.mxu1 %v631_v44 }
 0x1e0   :  { %3637 = vmatpush3.bf16.xpose.msra.mxu1 %v631_v44  ;;  %v3755_v44 = vld [vmem:[#allocation7 + $0x8] sm:$0xff]  }
 0x1e1   :  { %3656 = vmatprep.subr.bf16.mxu0 %v3755_v44 }
 0x1e2   :  { %3657 = vmatpush3.bf16.msra.mxu0 %v3755_v44 }
 0x1e3   :  { %3658 = vmatprep.subr.bf16.mxu0 %v3756_v42 }
 0x1e6   :  { %3659 = vmatpush3.bf16.msra.mxu0 %v3756_v42 }
 0x1e7   :  { %3639 = vmatmul.mubr.bf16.vlgmr.msra.gmra.mrb[16].mxu1 %v609_v60  ;;  %3660 = vmatprep.subr.bf16.mxu0 %v3757_v29 }
 0x1e8   :  { %3642 = vmatprep.mubr.bf16.mxu1 %v610_v11 }
 0x1ea   :  { %3661 = vmatpush3.bf16.msra.mxu0 %v3757_v29 }
 0x1eb   :  { %3662 = vmatprep.subr.bf16.mxu0 %v3758_v28 }
 0x1ee   :  { %3663 = vmatpush3.bf16.msra.mxu0 %v3758_v28 }
 0x1ef   :  { %3643 = vmatmul.mubr.bf16.gmra.mrb[20].mxu1 %v611_v20  ;;  %3664 = vmatprep.subr.bf16.mxu0 %v3759_v17 }
 0x1f0   :  { %3646 = vmatprep.mubr.bf16.mxu1 %v612_v56 }
 0x1f2   :  { %3665 = vmatpush3.bf16.msra.mxu0 %v3759_v17 }
 0x1f3   :  { %3666 = vmatprep.subr.bf16.mxu0 %v3760_v14 }
 0x1f6   :  { %3667 = vmatpush3.bf16.msra.mxu0 %v3760_v14 }
 0x1f7   :  { %3647 = vmatmul.mubr.bf16.gmra.mrb[24].mxu1 %v613_v61 }
 0x1f8   :  { %3650 = vmatprep.mubr.bf16.mxu1 %v614_v18 }
 0x1ff   :  { %3651 = vmatmul.mubr.bf16.gmra.mrb[28].mxu1 %v615_v49 }
 0x27a   :  { %v4587_v59 = vpop.f32.mrb[0].mxu1 }
 0x27b   :  { %830 = vmax.xlane.f32.xlu1 %v4587_v59  ;;  %v4590_v50 = vpop.f32.mrb[1].mxu1 }
 0x27c   :  { %826 = vmax.xlane.f32.xlu0 %v4590_v50  ;;  %v4593_v6 = vpop.f32.mrb[2].mxu1 }
 0x27d   :  { %v4595_v9 = vpop.f32.mrb[3].mxu1 }
 0x27f   :  { %832 = vmax.xlane.f32.xlu1 %v4593_v6 }
 0x280   :  { %828 = vmax.xlane.f32.xlu0 %v4595_v9 }
 0x282   :  { %v4599_v37 = vpop.f32.mrb[4].mxu1 }
 0x283   :  { %v4601_v53 = vpop.f32.mrb[5].mxu1 }
 0x284   :  { %834 = vmax.xlane.f32.xlu0 %v4601_v53  ;;  %v4604_v60 = vpop.f32.mrb[6].mxu1 }
 0x285   :  { %v4606_v11 = vpop.f32.mrb[7].mxu1 }
 0x286   :  { %836 = vmax.xlane.f32.xlu1 %v4606_v11 }
 0x288   :  { %838 = vmax.xlane.f32.xlu0 %v4599_v37 }
 0x28a   :  { %840 = vmax.xlane.f32.xlu1 %v4604_v60  ;;  %v4611_v20 = vpop.f32.mrb[8].mxu1 }
 0x28b   :  { %v4613_v56 = vpop.f32.mrb[9].mxu1 }
 0x28c   :  { %842 = vmax.xlane.f32.xlu0 %v4613_v56  ;;  %v4616_v10 = vpop.f32.mrb[10].mxu1 }
 0x28d   :  { %v4618_v12 = vpop.f32.mrb[11].mxu1 }
 0x28e   :  { %844 = vmax.xlane.f32.xlu1 %v4618_v12 }
 0x290   :  { %846 = vmax.xlane.f32.xlu0 %v4611_v20 }
 0x292   :  { %848 = vmax.xlane.f32.xlu1 %v4616_v10  ;;  %v4623_v33 = vpop.f32.mrb[12].mxu1 }
 0x293   :  { %v4625_v30 = vpop.f32.mrb[13].mxu1 }
 0x294   :  { %850 = vmax.xlane.f32.xlu0 %v4625_v30  ;;  %v4628_v61 = vpop.f32.mrb[14].mxu1 }
 0x295   :  { %v4630_v1 = vpop.f32.mrb[15].mxu1 }
 0x296   :  { %852 = vmax.xlane.f32.xlu1 %v4630_v1 }
 0x298   :  { %854 = vmax.xlane.f32.xlu0 %v4623_v33 }
 0x29a   :  { %856 = vmax.xlane.f32.xlu1 %v4628_v61 }
 0x2ba   :  { %v4635_v38 = vpop.f32.mrb[16].mxu1 }
 0x2bb   :  { %v4637_v41 = vpop.f32.mrb[17].mxu1 }
 0x2bc   :  { %858 = vmax.xlane.f32.xlu0 %v4637_v41  ;;  %v4640_v51 = vpop.f32.mrb[18].mxu1 }
 0x2bd   :  { %v4642_v2 = vpop.f32.mrb[19].mxu1 }
 0x2be   :  { %860 = vmax.xlane.f32.xlu1 %v4642_v2 }
 0x2c0   :  { %862 = vmax.xlane.f32.xlu0 %v4635_v38 }
 0x2c2   :  { %864 = vmax.xlane.f32.xlu1 %v4640_v51  ;;  %v4647_v13 = vpop.f32.mrb[20].mxu1 }
 0x2c3   :  { %v4649_v18 = vpop.f32.mrb[21].mxu1 }
 0x2c4   :  { %870 = vmax.xlane.f32.xlu0 %v4647_v13  ;;  %v4652_v19 = vpop.f32.mrb[22].mxu1 }
 0x2c5   :  { %v4654_v24 = vpop.f32.mrb[23].mxu1 }
 0x2c6   :  { %872 = vmax.xlane.f32.xlu1 %v4652_v19 }
 0x2c8   :  { %866 = vmax.xlane.f32.xlu0 %v4649_v18 }
 0x2ca   :  { %868 = vmax.xlane.f32.xlu1 %v4654_v24  ;;  %v4659_v21 = vpop.f32.mrb[24].mxu1 }
 0x2cb   :  { %v4661_v27 = vpop.f32.mrb[25].mxu1 }
 0x2cc   :  { %v4663_v52 = vpop.f32.mrb[26].mxu1 }
 0x2cd   :  { %v4665_v34 = vpop.f32.mrb[27].mxu1 }
 0x2d2   :  { %v4667_v49 = vpop.f32.mrb[28].mxu1 }
 0x2d3   :  { %v4669_v3 = vpop.f32.mrb[29].mxu1 }
 0x2d4   :  { %v4671_v0 = vpop.f32.mrb[30].mxu1 }
 0x2d5   :  { %v4673_v43 = vpop.f32.mrb[31].mxu1 }
 0x308   :  { %v831_v44 = vpop.xlane.xlu1 %830 }
 0x309   :  { %v892_v5 = vsub.f32 %v4587_v59, %v831_v44  ;;  %v827_v4 = vpop.xlane.xlu0 %826 }
 0x30a   :  { %v890_v58 = vsub.f32 %v4590_v50, %v827_v4 }
 0x30b   :  { %v926_v46 = vmul.f32 1.442695, %v892_v5 }
 0x30c   :  { %v922_v57 = vmul.f32 1.442695, %v890_v58  ;;  %v833_v42 = vpop.xlane.xlu1 %832 }
 0x30d   :  { %v829_v45 = vpop.xlane.xlu0 %828  ;;  %v893_v29 = vsub.f32 %v4593_v6, %v833_v42 }
 0x30e   :  { %3810 = vpow2.f32 %v922_v57  ;;  %v891_v28 = vsub.f32 %v4595_v9, %v829_v45 }
 0x30f   :  { %3812 = vpow2.f32 %v926_v46  ;;  %v928_v35 = vmul.f32 1.442695, %v893_v29 }
 0x310   :  { %v924_v36 = vmul.f32 1.442695, %v891_v28 }
 0x311   :  { %v835_v17 = vpop.xlane.xlu0 %834 }
 0x312   :  { %3814 = vpow2.f32 %v924_v36  ;;  %v894_v59 = vsub.f32 %v4601_v53, %v835_v17 }
 0x313   :  { %v837_v14 = vpop.xlane.xlu1 %836  ;;  %3816 = vpow2.f32 %v928_v35 }
 0x314   :  { %v895_v58 = vsub.f32 %v4606_v11, %v837_v14  ;;  %v930_v57 = vmul.f32 1.442695, %v894_v59 }
 0x315   :  { %v839_v44 = vpop.xlane.xlu0 %838 }
 0x316   :  { %v896_v5 = vsub.f32 %v4599_v37, %v839_v44  ;;  %v932_v36 = vmul.f32 1.442695, %v895_v58  ;;  %3818 = vpow2.f32 %v930_v57 }
 0x317   :  { %v841_v46 = vpop.xlane.xlu1 %840 }
 0x318   :  { %v4680_v4 = vpop.eup %3810  ;;  %v934_v35 = vmul.f32 1.442695, %v896_v5  ;;  %v897_v9 = vsub.f32 %v4604_v60, %v841_v46  ;;  %3820 = vpow2.f32 %v932_v36 }
 0x319   :  { %986 = vadd.xlane.f32.xlu0 %v4680_v4  ;;  %v4685_v45 = vpop.eup %3812  ;;  %v843_v6 = vpop.xlane.xlu0 %842 }
 0x31a   :  { %3822 = vpow2.f32 %v934_v35  ;;  %v936_v37 = vmul.f32 1.442695, %v897_v9  ;;  %v898_v29 = vsub.f32 %v4613_v56, %v843_v6 }
 0x31b   :  { %v845_v11 = vpop.xlane.xlu1 %844 }
 0x31c   :  { %v4687_v50 = vpop.eup %3814  ;;  %3824 = vpow2.f32 %v936_v37  ;;  %v899_v17 = vsub.f32 %v4618_v12, %v845_v11  ;;  %v938_v59 = vmul.f32 1.442695, %v898_v29 }
 0x31d   :  { %990 = vadd.xlane.f32.xlu0 %v4685_v45  ;;  %988 = vadd.xlane.f32.xlu1 %v4687_v50  ;;  %v4692_v53 = vpop.eup %3816  ;;  %v847_v42 = vpop.xlane.xlu0 %846 }
 0x31e   :  { %v900_v44 = vsub.f32 %v4611_v20, %v847_v42  ;;  %v940_v5 = vmul.f32 1.442695, %v899_v17  ;;  %3826 = vpow2.f32 %v938_v59 }
 0x31f   :  { %v849_v28 = vpop.xlane.xlu1 %848 }
 0x320   :  { %v4699_v60 = vpop.eup %3818  ;;  %v901_v56 = vsub.f32 %v4616_v10, %v849_v28  ;;  %v942_v12 = vmul.f32 1.442695, %v900_v44  ;;  %3828 = vpow2.f32 %v940_v5 }
 0x321   :  { %992 = vadd.xlane.f32.xlu1 %v4692_v53  ;;  %874 = vmax.xlane.f32.xlu0 %v4661_v27  ;;  %v851_v14 = vpop.xlane.xlu0 %850 }
 0x322   :  { %v4705_v58 = vpop.eup %3820  ;;  %v902_v36 = vsub.f32 %v4625_v30, %v851_v14  ;;  %v944_v20 = vmul.f32 1.442695, %v901_v56  ;;  %3830 = vpow2.f32 %v942_v12 }
 0x323   :  { %v853_v46 = vpop.xlane.xlu1 %852 }
 0x324   :  { %v4707_v57 = vpop.eup %3822  ;;  %v903_v9 = vsub.f32 %v4630_v1, %v853_v46  ;;  %v946_v10 = vmul.f32 1.442695, %v902_v36  ;;  %3832 = vpow2.f32 %v944_v20  ;;  %v3761_v1 = vld [vmem:[#allocation7 + $0x38] sm:$0xff]  }
 0x325   :  { %878 = vmax.xlane.f32.xlu0 %v4659_v21  ;;  %876 = vmax.xlane.f32.xlu1 %v4665_v34  ;;  %v855_v6 = vpop.xlane.xlu0 %854 }
 0x326   :  { %v4713_v35 = vpop.eup %3824  ;;  %v904_v11 = vsub.f32 %v4623_v33, %v855_v6  ;;  %v948_v42 = vmul.f32 1.442695, %v903_v9  ;;  %3834 = vpow2.f32 %v946_v10  ;;  %3668 = vmatprep.subr.bf16.mxu0 %v3761_v1 }
 0x327   :  { %v857_v37 = vpop.xlane.xlu1 %856  ;;  %3669 = vmatpush3.bf16.msra.mxu0 %v3761_v1 }
 0x328   :  { %v950_v30 = vmul.f32 1.442695, %v904_v11  ;;  %v905_v29 = vsub.f32 %v4628_v61, %v857_v37  ;;  %v4722_v28 = vpop.eup %3826  ;;  %3836 = vpow2.f32 %v948_v42 }
 0x329   :  { %994 = vadd.xlane.f32.xlu0 %v4699_v60  ;;  %880 = vmax.xlane.f32.xlu1 %v4663_v52 }
 0x32a   :  { %3838 = vpow2.f32 %v950_v30  ;;  %v952_v33 = vmul.f32 1.442695, %v905_v29  ;;  %v4726_v17 = vpop.eup %3828 }
 0x32c   :  { %v4728_v14 = vpop.eup %3830  ;;  %3840 = vpow2.f32 %v952_v33 }
 0x32d   :  { %998 = vadd.xlane.f32.xlu0 %v4707_v57  ;;  %996 = vadd.xlane.f32.xlu1 %v4705_v58 }
 0x32e   :  { %v4732_v61 = vpop.eup %3832 }
 0x330   :  { %v4734_v59 = vpop.eup %3834 }
 0x331   :  { %1000 = vadd.xlane.f32.xlu1 %v4713_v35  ;;  %882 = vmax.xlane.f32.xlu0 %v4669_v3 }
 0x332   :  { %v4738_v44 = vpop.eup %3836 }
 0x334   :  { %v4740_v5 = vpop.eup %3838 }
 0x335   :  { %886 = vmax.xlane.f32.xlu0 %v4667_v49  ;;  %884 = vmax.xlane.f32.xlu1 %v4673_v43 }
 0x336   :  { %v4744_v56 = vpop.eup %3840 }
 0x339   :  { %1002 = vadd.xlane.f32.xlu0 %v4722_v28  ;;  %888 = vmax.xlane.f32.xlu1 %v4671_v0 }
 0x33d   :  { %1006 = vadd.xlane.f32.xlu0 %v4728_v14  ;;  %1004 = vadd.xlane.f32.xlu1 %v4726_v17 }
 0x341   :  { %1010 = vadd.xlane.f32.xlu0 %v4734_v59  ;;  %1008 = vadd.xlane.f32.xlu1 %v4732_v61 }
 0x345   :  { %1014 = vadd.xlane.f32.xlu0 %v4740_v5  ;;  %1012 = vadd.xlane.f32.xlu1 %v4738_v44 }
 0x349   :  { %v859_v46 = vpop.xlane.xlu0 %858  ;;  %1016 = vadd.xlane.f32.xlu1 %v4744_v56 }
 0x34a   :  { %v906_v12 = vsub.f32 %v4637_v41, %v859_v46 }
 0x34b   :  { %v861_v36 = vpop.xlane.xlu1 %860 }
 0x34c   :  { %v954_v6 = vmul.f32 1.442695, %v906_v12  ;;  %v907_v20 = vsub.f32 %v4642_v2, %v861_v36 }
 0x34d   :  { %v863_v9 = vpop.xlane.xlu0 %862 }
 0x34e   :  { %3842 = vpow2.f32 %v954_v6  ;;  %v956_v10 = vmul.f32 1.442695, %v907_v20  ;;  %v908_v11 = vsub.f32 %v4635_v38, %v863_v9 }
 0x34f   :  { %v865_v37 = vpop.xlane.xlu1 %864 }
 0x350   :  { %3844 = vpow2.f32 %v956_v10  ;;  %v958_v42 = vmul.f32 1.442695, %v908_v11  ;;  %v909_v30 = vsub.f32 %v4640_v51, %v865_v37  ;;  %v3762_v11 = vld [vmem:[#allocation7 + $0x40] sm:$0xff]   ;;  %v3764_v37 = vld [vmem:[#allocation7 + $0x50] sm:$0xff]  }
 0x351   :  { %v871_v29 = vpop.xlane.xlu0 %870  ;;  %3686 = vmatprep.subr.bf16.mxu1 %v3762_v11 }
 0x352   :  { %3846 = vpow2.f32 %v958_v42  ;;  %v960_v1 = vmul.f32 1.442695, %v909_v30  ;;  %v912_v46 = vsub.f32 %v4647_v13, %v871_v29  ;;  %3687 = vmatpush3.bf16.msra.mxu1 %v3762_v11  ;;  %v3765_v29 = vld [vmem:[#allocation7 + $0x58] sm:$0xff]  }
 0x353   :  { %v873_v33 = vpop.xlane.xlu1 %872 }
 0x354   :  { %3848 = vpow2.f32 %v960_v1  ;;  %v913_v38 = vsub.f32 %v4652_v19, %v873_v33  ;;  %v966_v9 = vmul.f32 1.442695, %v912_v46  ;;  %v3767_v46 = vld [vmem:[#allocation7 + $0x68] sm:$0xff]  }
 0x355   :  { %v867_v41 = vpop.xlane.xlu0 %866 }
 0x356   :  { %v910_v2 = vsub.f32 %v4649_v18, %v867_v41  ;;  %v968_v18 = vmul.f32 1.442695, %v913_v38  ;;  %v3766_v41 = vld [vmem:[#allocation7 + $0x60] sm:$0xff]  }
 0x357   :  { %v869_v12 = vpop.xlane.xlu1 %868 }
 0x358   :  { %v4753_v36 = vpop.eup %3842  ;;  %v962_v6 = vmul.f32 1.442695, %v910_v2  ;;  %v911_v20 = vsub.f32 %v4654_v24, %v869_v12  ;;  %v3763_v24 = vld [vmem:[#allocation7 + $0x48] sm:$0xff]   ;;  %v3768_v2 = vld [vmem:[#allocation7 + $0x70] sm:$0xff]   ;;  %v3769_v12 = vld [vmem:[#allocation7 + $0x78] sm:$0xff]  }
 0x359   :  { %1018 = vadd.xlane.f32.xlu0 %v4753_v36  ;;  %3688 = vmatprep.subr.bf16.mxu1 %v3763_v24 }
 0x35a   :  { %v4758_v51 = vpop.eup %3844  ;;  %3850 = vpow2.f32 %v962_v6  ;;  %v964_v10 = vmul.f32 1.442695, %v911_v20  ;;  %3689 = vmatpush3.bf16.msra.mxu1 %v3763_v24 }
 0x35b   :  { %1020 = vadd.xlane.f32.xlu1 %v4758_v51  ;;  %3690 = vmatprep.subr.bf16.mxu1 %v3764_v37 }
 0x35c   :  { %v4761_v13 = vpop.eup %3846  ;;  %3852 = vpow2.f32 %v964_v10 }
 0x35d   :  { %1022 = vadd.xlane.f32.xlu0 %v4761_v13  ;;  %3854 = vpow2.f32 %v966_v9 }
 0x35e   :  { %v4764_v19 = vpop.eup %3848  ;;  %3856 = vpow2.f32 %v968_v18  ;;  %3691 = vmatpush3.bf16.msra.mxu1 %v3764_v37 }
 0x35f   :  { %1024 = vadd.xlane.f32.xlu1 %v4764_v19  ;;  %3692 = vmatprep.subr.bf16.mxu1 %v3765_v29 }
 0x362   :  { %3693 = vmatpush3.bf16.msra.mxu1 %v3765_v29 }
 0x363   :  { %3694 = vmatprep.subr.bf16.mxu1 %v3766_v41 }
 0x364   :  { %v4767_v42 = vpop.eup %3850 }
 0x365   :  { %1026 = vadd.xlane.f32.xlu0 %v4767_v42 }
 0x366   :  { %v4770_v30 = vpop.eup %3852  ;;  %3695 = vmatpush3.bf16.msra.mxu1 %v3766_v41 }
 0x367   :  { %1028 = vadd.xlane.f32.xlu1 %v4770_v30  ;;  %v4773_v1 = vpop.eup %3854  ;;  %3696 = vmatprep.subr.bf16.mxu1 %v3767_v46 }
 0x368   :  { %v4776_v33 = vpop.eup %3856 }
 0x369   :  { %1030 = vadd.xlane.f32.xlu0 %v4773_v1 }
 0x36a   :  { %3697 = vmatpush3.bf16.msra.mxu1 %v3767_v46 }
 0x36b   :  { %1032 = vadd.xlane.f32.xlu1 %v4776_v33  ;;  %3698 = vmatprep.subr.bf16.mxu1 %v3768_v2 }
 0x36e   :  { %3699 = vmatpush3.bf16.msra.mxu1 %v3768_v2 }
 0x36f   :  { %3700 = vmatprep.subr.bf16.mxu1 %v3769_v12 }
 0x372   :  { %3701 = vmatpush3.bf16.msra.mxu1 %v3769_v12 }
 0x3a6   :  { %v987_v38 = vpop.xlane.xlu0 %986 }
 0x3a7   :  { %3858 = vrcp.f32 %v987_v38 }
 0x3aa   :  { %v991_v6 = vpop.xlane.xlu0 %990  ;;  %v989_v20 = vpop.xlane.xlu1 %988 }
 0x3ab   :  { %3860 = vrcp.f32 %v989_v20 }
 0x3ac   :  { %3862 = vrcp.f32 %v991_v6 }
 0x3ae   :  { %v993_v9 = vpop.xlane.xlu1 %992  ;;  %v875_v10 = vpop.xlane.xlu0 %874 }
 0x3af   :  { %3864 = vrcp.f32 %v993_v9  ;;  %v914_v18 = vsub.f32 %v4661_v27, %v875_v10 }
 0x3b1   :  { %v970_v11 = vmul.f32 1.442695, %v914_v18  ;;  %v3859_v46 = vpop.eup %3858 }
 0x3b2   :  { %v879_v24 = vpop.xlane.xlu0 %878  ;;  %v877_v37 = vpop.xlane.xlu1 %876  ;;  %v1082_v27 = vmul.f32 %v3859_v46, %v4680_v4 }
 0x3b3   :  { %3866 = vpow2.f32 %v970_v11  ;;  %v916_v29 = vsub.f32 %v4659_v21, %v879_v24  ;;  %v915_v41 = vsub.f32 %v4665_v34, %v877_v37 }
 0x3b5   :  { %v974_v2 = vmul.f32 1.442695, %v916_v29  ;;  %v972_v12 = vmul.f32 1.442695, %v915_v41  ;;  %v3861_v38 = vpop.eup %3860 }
 0x3b6   :  { %v995_v26 = vpop.xlane.xlu0 %994  ;;  %v881_v20 = vpop.xlane.xlu1 %880  ;;  %v1083_v10 = vmul.f32 %v3861_v38, %v4687_v50 }
 0x3b7   :  { %v3863_v6 = vpop.eup %3862  ;;  %3868 = vpow2.f32 %v974_v2  ;;  %v917_v9 = vsub.f32 %v4663_v52, %v881_v20 }
 0x3b8   :  { %3870 = vpow2.f32 %v972_v12  ;;  %v1146_v21 = vpack.c.bf16 %v1083_v10, %v1082_v27  ;;  %v1084_v34 = vmul.f32 %v3863_v6, %v4685_v45 }
 0x3b9   :  { %v3865_v18 = vpop.eup %3864  ;;  %v976_v11 = vmul.f32 1.442695, %v917_v9  ;;  %3872 = vrcp.f32 %v995_v26 }
 0x3ba   :  { %v1085_v24 = vmul.f32 %v3865_v18, %v4692_v53  ;;  %v999_v37 = vpop.xlane.xlu0 %998  ;;  %v997_v29 = vpop.xlane.xlu1 %996  ;;  %3670 = vmatprep.mubr.bf16.mxu0 %v1146_v21 }
 0x3bb   :  { %3874 = vpow2.f32 %v976_v11 }
 0x3bc   :  { %3876 = vrcp.f32 %v999_v37  ;;  %v1147_v41 = vpack.c.bf16 %v1085_v24, %v1084_v34 }
 0x3bd   :  { %v4787_v52 = vpop.eup %3866  ;;  %3878 = vrcp.f32 %v997_v29 }
 0x3be   :  { %3671 = vmatmul.mubr.bf16.vlgmr.msra.gmra.mrb[64].mxu0 %v1147_v41  ;;  %v1001_v4 = vpop.xlane.xlu1 %1000  ;;  %1034 = vadd.xlane.f32.xlu0 %v4787_v52  ;;  %v883_v50 = vpop.xlane.xlu0 %882 }
 0x3bf   :  { %3880 = vrcp.f32 %v1001_v4  ;;  %v918_v45 = vsub.f32 %v4669_v3, %v883_v50 }
 0x3c1   :  { %v4791_v46 = vpop.eup %3868  ;;  %v978_v26 = vmul.f32 1.442695, %v918_v45 }
 0x3c2   :  { %v4793_v53 = vpop.eup %3870  ;;  %1038 = vadd.xlane.f32.xlu0 %v4791_v46  ;;  %v887_v2 = vpop.xlane.xlu0 %886 }
 0x3c3   :  { %v885_v12 = vpop.xlane.xlu1 %884  ;;  %3882 = vpow2.f32 %v978_v26  ;;  %v920_v38 = vsub.f32 %v4667_v49, %v887_v2  ;;  %1036 = vadd.xlane.f32.xlu1 %v4793_v53  ;;  %v3873_v6 = vpop.eup %3872 }
 0x3c4   :  { %v919_v20 = vsub.f32 %v4673_v43, %v885_v12  ;;  %v1086_v49 = vmul.f32 %v3873_v6, %v4699_v60 }
 0x3c5   :  { %v4799_v9 = vpop.eup %3874  ;;  %v982_v3 = vmul.f32 1.442695, %v920_v38 }
 0x3c6   :  { %v980_v27 = vmul.f32 1.442695, %v919_v20  ;;  %v3877_v10 = vpop.eup %3876  ;;  %v1003_v18 = vpop.xlane.xlu0 %1002 }
 0x3c7   :  { %v889_v11 = vpop.xlane.xlu1 %888  ;;  %v3879_v21 = vpop.eup %3878  ;;  %3884 = vpow2.f32 %v982_v3  ;;  %1040 = vadd.xlane.f32.xlu1 %v4799_v9  ;;  %v1088_v50 = vmul.f32 %v3877_v10, %v4707_v57 }
 0x3c8   :  { %v921_v34 = vsub.f32 %v4671_v0, %v889_v11  ;;  %3886 = vpow2.f32 %v980_v27  ;;  %v1087_v24 = vmul.f32 %v3879_v21, %v4705_v58 }
 0x3c9   :  { %v3881_v43 = vpop.eup %3880  ;;  %3888 = vrcp.f32 %v1003_v18 }
 0x3ca   :  { %v984_v37 = vmul.f32 1.442695, %v921_v34  ;;  %v1148_v29 = vpack.c.bf16 %v1087_v24, %v1086_v49  ;;  %v1007_v41 = vpop.xlane.xlu0 %1006  ;;  %v1089_v45 = vmul.f32 %v3881_v43, %v4713_v35 }
 0x3cb   :  { %v1005_v4 = vpop.xlane.xlu1 %1004 }
 0x3cc   :  { %3890 = vpow2.f32 %v984_v37  ;;  %3674 = vmatprep.mubr.bf16.mxu0 %v1148_v29  ;;  %v1149_v26 = vpack.c.bf16 %v1089_v45, %v1088_v50 }
 0x3cd   :  { %v4807_v2 = vpop.eup %3882  ;;  %3892 = vrcp.f32 %v1005_v4 }
 0x3ce   :  { %3894 = vrcp.f32 %v1007_v41  ;;  %3675 = vmatmul.mubr.bf16.gmra.mrb[68].mxu0 %v1149_v26  ;;  %1042 = vadd.xlane.f32.xlu0 %v4807_v2  ;;  %v1011_v0 = vpop.xlane.xlu0 %1010 }
 0x3cf   :  { %v1009_v60 = vpop.xlane.xlu1 %1008 }
 0x3d0   :  { %3896 = vrcp.f32 %v1009_v60 }
 0x3d1   :  { %v4810_v58 = vpop.eup %3884  ;;  %3898 = vrcp.f32 %v1011_v0  ;;  %v5912_v0 = vmov 0  }
 0x3d2   :  { %v4812_v12 = vpop.eup %3886  ;;  %1046 = vadd.xlane.f32.xlu0 %v4810_v58  ;;  %v1015_v57 = vpop.xlane.xlu0 %1014 }
 0x3d3   :  { %v1013_v35 = vpop.xlane.xlu1 %1012  ;;  %1044 = vadd.xlane.f32.xlu1 %v4812_v12  ;;  %v3889_v38 = vpop.eup %3888 }
 0x3d4   :  { %3900 = vrcp.f32 %v1013_v35  ;;  %v1090_v10 = vmul.f32 %v3889_v38, %v4722_v28 }
 0x3d5   :  { %3902 = vrcp.f32 %v1015_v57 }
 0x3d6   :  { %v4816_v20 = vpop.eup %3890 }
 0x3d7   :  { %v1017_v6 = vpop.xlane.xlu1 %1016  ;;  %v3893_v3 = vpop.eup %3892  ;;  %1048 = vadd.xlane.f32.xlu1 %v4816_v20 }
 0x3d8   :  { %3904 = vrcp.f32 %v1017_v6  ;;  %v3895_v27 = vpop.eup %3894  ;;  %v1091_v18 = vmul.f32 %v3893_v3, %v4726_v17 }
 0x3d9   :  { %v1092_v34 = vmul.f32 %v3895_v27, %v4728_v14 }
 0x3da   :  { %v3897_v11 = vpop.eup %3896  ;;  %v1150_v21 = vpack.c.bf16 %v1091_v18, %v1090_v10 }
 0x3db   :  { %v1093_v49 = vmul.f32 %v3897_v11, %v4732_v61  ;;  %v3899_v24 = vpop.eup %3898 }
 0x3dc   :  { %3678 = vmatprep.mubr.bf16.mxu0 %v1150_v21  ;;  %v1094_v41 = vmul.f32 %v3899_v24, %v4734_v59 }
 0x3dd   :  { %v1151_v43 = vpack.c.bf16 %v1093_v49, %v1092_v34 }
 0x3de   :  { %v3901_v37 = vpop.eup %3900 }
 0x3df   :  { %v3903_v29 = vpop.eup %3902  ;;  %3679 = vmatmul.mubr.bf16.gmra.mrb[72].mxu0 %v1151_v43  ;;  %v1095_v4 = vmul.f32 %v3901_v37, %v4738_v44 }
 0x3e0   :  { %v1096_v17 = vmul.f32 %v3903_v29, %v4740_v5 }
 0x3e1   :  { %v1152_v28 = vpack.c.bf16 %v1095_v4, %v1094_v41 }
 0x3e2   :  { %v3905_v50 = vpop.eup %3904 }
 0x3e3   :  { %v1097_v45 = vmul.f32 %v3905_v50, %v4744_v56  ;;  %3682 = vmatprep.mubr.bf16.mxu0 %v1152_v28 }
 0x3e5   :  { %v1153_v14 = vpack.c.bf16 %v1097_v45, %v1096_v17 }
 0x3e6   :  { %v1019_v26 = vpop.xlane.xlu0 %1018 }
 0x3e7   :  { %3906 = vrcp.f32 %v1019_v26  ;;  %3683 = vmatmul.mubr.bf16.gmra.mrb[76].mxu0 %v1153_v14 }
 0x3e8   :  { %v1021_v61 = vpop.xlane.xlu1 %1020  ;;  %2070 = vmatprep.mubr.bf16.mxu0 %v5912_v0 }
 0x3e9   :  { %3908 = vrcp.f32 %v1021_v61 }
 0x3ea   :  { %v1023_v60 = vpop.xlane.xlu0 %1022 }
 0x3eb   :  { %3910 = vrcp.f32 %v1023_v60 }
 0x3ec   :  { %v1025_v59 = vpop.xlane.xlu1 %1024 }
 0x3ed   :  { %3912 = vrcp.f32 %v1025_v59 }
 0x3f1   :  { %v3907_v44 = vpop.eup %3906 }
 0x3f2   :  { %v1027_v57 = vpop.xlane.xlu0 %1026  ;;  %v1098_v56 = vmul.f32 %v3907_v44, %v4753_v36 }
 0x3f3   :  { %v3909_v35 = vpop.eup %3908  ;;  %3914 = vrcp.f32 %v1027_v57 }
 0x3f4   :  { %v1029_v5 = vpop.xlane.xlu1 %1028  ;;  %v1099_v38 = vmul.f32 %v3909_v35, %v4758_v51 }
 0x3f5   :  { %v3911_v6 = vpop.eup %3910  ;;  %3916 = vrcp.f32 %v1029_v5 }
 0x3f6   :  { %v1031_v3 = vpop.xlane.xlu0 %1030  ;;  %v1154_v27 = vpack.c.bf16 %v1099_v38, %v1098_v56  ;;  %v1100_v18 = vmul.f32 %v3911_v6, %v4761_v13 }
 0x3f7   :  { %v3913_v10 = vpop.eup %3912  ;;  %3918 = vrcp.f32 %v1031_v3 }
 0x3f8   :  { %v1101_v11 = vmul.f32 %v3913_v10, %v4764_v19  ;;  %3702 = vmatprep.mubr.bf16.mxu1 %v1154_v27  ;;  %v1033_v21 = vpop.xlane.xlu1 %1032 }
 0x3f9   :  { %3920 = vrcp.f32 %v1033_v21 }
 0x3fa   :  { %v1155_v34 = vpack.c.bf16 %v1101_v11, %v1100_v18 }
 0x3fc   :  { %3703 = vmatmul.mubr.bf16.vlgmr.msra.gmra.mrb[32].mxu1 %v1155_v34 }
 0x3fd   :  { %v3915_v49 = vpop.eup %3914 }
 0x3fe   :  { %v1102_v36 = vmul.f32 %v3915_v49, %v4767_v42 }
 0x3ff   :  { %v3917_v24 = vpop.eup %3916 }
 0x400   :  { %v1103_v51 = vmul.f32 %v3917_v24, %v4770_v30 }
 0x401   :  { %v3919_v43 = vpop.eup %3918 }
 0x402   :  { %v1156_v37 = vpack.c.bf16 %v1103_v51, %v1102_v36  ;;  %v1104_v41 = vmul.f32 %v3919_v43, %v4773_v1 }
 0x403   :  { %v3921_v29 = vpop.eup %3920 }
 0x404   :  { %3706 = vmatprep.mubr.bf16.mxu1 %v1156_v37  ;;  %v1105_v13 = vmul.f32 %v3921_v29, %v4776_v33 }
 0x406   :  { %v1157_v19 = vpack.c.bf16 %v1105_v13, %v1104_v41 }
 0x408   :  { %3707 = vmatmul.mubr.bf16.gmra.mrb[36].mxu1 %v1157_v19 }
 0x44b   :  { %v1035_v4 = vpop.xlane.xlu0 %1034 }
 0x44c   :  { %3922 = vrcp.f32 %v1035_v4 }
 0x44f   :  { %v1039_v50 = vpop.xlane.xlu0 %1038 }
 0x450   :  { %v1037_v28 = vpop.xlane.xlu1 %1036 }
 0x451   :  { %3924 = vrcp.f32 %v1037_v28 }
 0x452   :  { %3926 = vrcp.f32 %v1039_v50 }
 0x454   :  { %v1041_v17 = vpop.xlane.xlu1 %1040 }
 0x455   :  { %3928 = vrcp.f32 %v1041_v17 }
 0x456   :  { %v3923_v42 = vpop.eup %3922 }
 0x457   :  { %v1106_v14 = vmul.f32 %v3923_v42, %v4787_v52 }
 0x45b   :  { %v3925_v30 = vpop.eup %3924  ;;  %v1043_v45 = vpop.xlane.xlu0 %1042 }
 0x45c   :  { %v1107_v26 = vmul.f32 %v3925_v30, %v4793_v53  ;;  %v3927_v1 = vpop.eup %3926  ;;  %3930 = vrcp.f32 %v1043_v45  ;;  %v5913_v30 = vld [vmem:[#allocation19_spill] sm:$0xff] }
 0x45d   :  { %v1108_v44 = vmul.f32 %v3927_v1, %v4791_v46 }
 0x45e   :  { %v1158_v61 = vpack.c.bf16 %v1107_v26, %v1106_v14 }
 0x45f   :  { %v3929_v33 = vpop.eup %3928  ;;  %v1047_v60 = vpop.xlane.xlu0 %1046 }
 0x460   :  { %3710 = vmatprep.mubr.bf16.mxu1 %v1158_v61  ;;  %v1045_v59 = vpop.xlane.xlu1 %1044  ;;  %v1109_v57 = vmul.f32 %v3929_v33, %v4799_v9 }
 0x461   :  { %3932 = vrcp.f32 %v1045_v59  ;;  %v3772_v59 = vld [vmem:[#allocation10 + $0x4] ss:$8 sps:$4 sm:$0xff]  }
 0x462   :  { %v1159_v35 = vpack.c.bf16 %v1109_v57, %v1108_v44  ;;  %3934 = vrcp.f32 %v1047_v60  ;;  %v3770_v60 = vld [vmem:[#allocation10] ss:$8 sps:$4 sm:$0xff]   ;;  %v3775_v44 = vld [vmem:[#allocation10 + $0x14] ss:$8 sps:$4 sm:$0xff]   ;;  %2038 = vmatprep.subr.bf16.mxu0 %v3772_v59  ;;  %v3773_v57 = vld [vmem:[#allocation10 + $0x10] ss:$8 sps:$4 sm:$0xff]  }
 0x463   :  { %2039 = vmatpush1.bf16.msra.mxu0 %v3770_v60  ;;  %v5921_v59 = vld [vmem:[#allocation27_spill] sm:$0xff] }
 0x464   :  { %3711 = vmatmul.mubr.bf16.gmra.mrb[40].mxu1 %v1159_v35  ;;  %v1049_v5 = vpop.xlane.xlu1 %1048  ;;  %2040 = vmatprep.subr.bf16.mxu0 %v3775_v44 }
 0x465   :  { %3936 = vrcp.f32 %v1049_v5 }
 0x466   :  { %v3931_v52 = vpop.eup %3930 }
 0x467   :  { %v1110_v53 = vmul.f32 %v3931_v52, %v4807_v2  ;;  %2041 = vmatpush1.bf16.msra.mxu0 %v3773_v57 }
 0x46b   :  { %v3933_v56 = vpop.eup %3932 }
 0x46c   :  { %v1111_v38 = vmul.f32 %v3933_v56, %v4812_v12  ;;  %v3935_v6 = vpop.eup %3934 }
 0x46d   :  { %v1112_v46 = vmul.f32 %v3935_v6, %v4810_v58 }
 0x46e   :  { %v1160_v3 = vpack.c.bf16 %v1111_v38, %v1110_v53 }
 0x46f   :  { %v3937_v27 = vpop.eup %3936 }
 0x470   :  { %3714 = vmatprep.mubr.bf16.mxu1 %v1160_v3  ;;  %v1113_v9 = vmul.f32 %v3937_v27, %v4816_v20 }
 0x472   :  { %v1161_v10 = vpack.c.bf16 %v1113_v9, %v1112_v46 }
 0x474   :  { %3715 = vmatmul.mubr.bf16.gmra.mrb[44].mxu1 %v1161_v10 }
 0x491   :  { %v3672_v18 = vpop.f32.mrb[64].mxu0 }
 0x492   :  { %v1244_v11 = vpop.f32.mrb[65].mxu0  ;;  %v4852_v12 = vadd.f32 %v3672_v18, %v4409_v31  ;;  %v5916_v18 = vld [vmem:[#allocation22_spill] sm:$0xff] }
 0x493   :  { %v4845_v21 = vadd.f32 %v1244_v11, %v4403_v22  ;;  %v3673_v34 = vpop.f32.mrb[66].mxu0 }
 0x494   :  { %v1247_v49 = vpop.f32.mrb[67].mxu0  ;;  %v4856_v58 = vadd.f32 %v3673_v34, %v4411_v32  ;;  %v5917_v34 = vld [vmem:[#allocation23_spill] sm:$0xff] }
 0x495   :  { %v4848_v2 = vadd.f32 %v1247_v49, %v4405_v23  ;;  %1486 = vadd.xlane.f32.xlu0 %v4845_v21 }
 0x497   :  { %1488 = vadd.xlane.f32.xlu1 %v4848_v2 }
 0x499   :  { %1490 = vadd.xlane.f32.xlu0 %v4852_v12 }
 0x49b   :  { %1492 = vadd.xlane.f32.xlu1 %v4856_v58 }
 0x4a1   :  { %v3676_v22 = vpop.f32.mrb[68].mxu0 }
 0x4a2   :  { %v1260_v20 = vpop.f32.mrb[69].mxu0  ;;  %v4868_v31 = vadd.f32 %v3676_v22, %v4423_v47 }
 0x4a3   :  { %v4861_v24 = vadd.f32 %v1260_v20, %v4416_v39  ;;  %v3677_v23 = vpop.f32.mrb[70].mxu0 }
 0x4a4   :  { %v1263_v36 = vpop.f32.mrb[71].mxu0  ;;  %v4872_v32 = vadd.f32 %v3677_v23, %v4425_v48 }
 0x4a5   :  { %v4864_v51 = vadd.f32 %v1263_v36, %v4418_v40  ;;  %1494 = vadd.xlane.f32.xlu0 %v4861_v24 }
 0x4a7   :  { %1496 = vadd.xlane.f32.xlu1 %v4864_v51 }
 0x4a9   :  { %1498 = vadd.xlane.f32.xlu0 %v4868_v31 }
 0x4ab   :  { %1500 = vadd.xlane.f32.xlu1 %v4872_v32 }
 0x4b2   :  { %v3680_v39 = vpop.f32.mrb[72].mxu0 }
 0x4b3   :  { %v1276_v43 = vpop.f32.mrb[73].mxu0  ;;  %v4884_v47 = vadd.f32 %v3680_v39, %v4437_v62 }
 0x4b4   :  { %v4877_v37 = vadd.f32 %v1276_v43, %v4430_v54  ;;  %v3681_v40 = vpop.f32.mrb[74].mxu0 }
 0x4b5   :  { %v1279_v29 = vpop.f32.mrb[75].mxu0  ;;  %v4888_v48 = vadd.f32 %v3681_v40, %v4439_v63  ;;  %v5919_v40 = vld [vmem:[#allocation25_spill] sm:$0xff] }
 0x4b6   :  { %v4880_v41 = vadd.f32 %v1279_v29, %v4432_v55  ;;  %1502 = vadd.xlane.f32.xlu0 %v4877_v37 }
 0x4b8   :  { %1504 = vadd.xlane.f32.xlu1 %v4880_v41 }
 0x4ba   :  { %1506 = vadd.xlane.f32.xlu0 %v4884_v47  ;;  %v3684_v13 = vpop.f32.mrb[76].mxu0 }
 0x4bb   :  { %v1292_v54 = vpop.f32.mrb[77].mxu0  ;;  %v4900_v62 = vadd.f32 %v3684_v13, %v4451_v15  ;;  %v5914_v15 = vld [vmem:[#allocation20_spill] sm:$0xff] }
 0x4bc   :  { %v4892_v19 = vadd.f32 %v1292_v54, %v4444_v7  ;;  %1508 = vadd.xlane.f32.xlu1 %v4888_v48  ;;  %v3685_v55 = vpop.f32.mrb[78].mxu0 }
 0x4bd   :  { %v1295_v4 = vpop.f32.mrb[79].mxu0  ;;  %v4904_v63 = vadd.f32 %v3685_v55, %v4453_v16  ;;  %v5915_v16 = vld [vmem:[#allocation21_spill] sm:$0xff] }
 0x4be   :  { %v4896_v50 = vadd.f32 %v1295_v4, %v4446_v8  ;;  %1510 = vadd.xlane.f32.xlu0 %v4892_v19 }
 0x4c0   :  { %1512 = vadd.xlane.f32.xlu1 %v4896_v50 }
 0x4c2   :  { %1514 = vadd.xlane.f32.xlu0 %v4900_v62 }
 0x4c4   :  { %1516 = vadd.xlane.f32.xlu1 %v4904_v63 }
 0x4cf   :  { %v3704_v7 = vpop.f32.mrb[32].mxu1 }
 0x4d0   :  { %v1389_v28 = vpop.f32.mrb[33].mxu1  ;;  %v4916_v14 = vadd.f32 %v3704_v7, %v5914_v15 }
 0x4d1   :  { %v4909_v17 = vadd.f32 %v1389_v28, %v4458_v25  ;;  %v3705_v8 = vpop.f32.mrb[34].mxu1 }
 0x4d2   :  { %v1392_v42 = vpop.f32.mrb[35].mxu1  ;;  %v4920_v26 = vadd.f32 %v3705_v8, %v5915_v16 }
 0x4d3   :  { %v4912_v45 = vadd.f32 %v1392_v42, %v5913_v30  ;;  %1518 = vadd.xlane.f32.xlu0 %v4909_v17  ;;  %v3778_v30 = vld [vmem:[#allocation10 + $0x24] ss:$8 sps:$4 sm:$0xff]  }
 0x4d4   :  { %2042 = vmatprep.subr.bf16.mxu0 %v3778_v30 }
 0x4d5   :  { %1520 = vadd.xlane.f32.xlu1 %v4912_v45 }
 0x4d7   :  { %1522 = vadd.xlane.f32.xlu0 %v4916_v14 }
 0x4d9   :  { %1524 = vadd.xlane.f32.xlu1 %v4920_v26 }
 0x4db   :  { %v3708_v25 = vpop.f32.mrb[36].mxu1 }
 0x4dc   :  { %v1405_v1 = vpop.f32.mrb[37].mxu1 }
 0x4dd   :  { %v3709_v61 = vpop.f32.mrb[38].mxu1  ;;  %v4935_v11 = vadd.f32 %v1405_v1, %v5916_v18 }
 0x4de   :  { %v1408_v33 = vpop.f32.mrb[39].mxu1  ;;  %v4956_v29 = vadd.f32 %v3709_v61, %v5919_v40  ;;  %v5920_v61 = vld [vmem:[#allocation26_spill] sm:$0xff] }
 0x4df   :  { %v4941_v49 = vadd.f32 %v1408_v33, %v5917_v34  ;;  %v3785_v34 = vld [vmem:[#allocation10 + $0x50] ss:$8 sps:$4 sm:$0xff]  }
 0x522   :  { %v1487_v35 = vpop.xlane.xlu0 %1486 }
 0x523   :  { %v1550_v5 = vmul.f32 0.0078125, %v1487_v35  ;;  %v3779_v35 = vld [vmem:[#allocation10 + $0x30] ss:$8 sps:$4 sm:$0xff]  }
 0x524   :  { %v1489_v52 = vpop.xlane.xlu1 %1488 }
 0x525   :  { %v1551_v56 = vmul.f32 0.0078125, %v1489_v52  ;;  %v4925_v53 = vsub.f32 %v4845_v21, %v1550_v5 }
 0x526   :  { %v1491_v38 = vpop.xlane.xlu0 %1490 }
 0x527   :  { %v1552_v6 = vmul.f32 0.0078125, %v1491_v38  ;;  %v1614_v3 = vmul.f32 %v4925_v53, %v4925_v53  ;;  %v4930_v27 = vsub.f32 %v4848_v2, %v1551_v56  ;;  %v3782_v56 = vld [vmem:[#allocation10 + $0x40] ss:$8 sps:$4 sm:$0xff]  }
 0x528   :  { %v1493_v46 = vpop.xlane.xlu1 %1492  ;;  %v5922_v38 = vld [vmem:[#allocation28_spill] sm:$0xff] }
 0x529   :  { %v1553_v9 = vmul.f32 0.0078125, %v1493_v46  ;;  %1646 = vadd.xlane.f32.xlu0 %v1614_v3  ;;  %v1615_v10 = vmul.f32 %v4930_v27, %v4930_v27  ;;  %v4938_v21 = vsub.f32 %v4852_v12, %v1552_v6  ;;  %v5918_v12 = vld [vmem:[#allocation24_spill] sm:$0xff]  ;;  %v3787_v46 = vld [vmem:[#allocation10 + $0x54] ss:$8 sps:$4 sm:$0xff]  }
 0x52a   :  { %v4953_v36 = vadd.f32 %v3708_v25, %v5918_v12  ;;  %v3776_v25 = vld [vmem:[#allocation10 + $0x20] ss:$8 sps:$4 sm:$0xff]  }
 0x52b   :  { %1648 = vadd.xlane.f32.xlu1 %v1615_v10  ;;  %v4945_v2 = vsub.f32 %v4856_v58, %v1553_v9  ;;  %v1616_v22 = vmul.f32 %v4938_v21, %v4938_v21  ;;  %2043 = vmatpush1.bf16.msra.mxu0 %v3776_v25  ;;  %v5923_v9 = vld [vmem:[#allocation29_spill] sm:$0xff] }
 0x52d   :  { %1526 = vadd.xlane.f32.xlu0 %v4935_v11  ;;  %v1617_v20 = vmul.f32 %v4945_v2, %v4945_v2 }
 0x52f   :  { %1528 = vadd.xlane.f32.xlu1 %v4941_v49 }
 0x531   :  { %1650 = vadd.xlane.f32.xlu0 %v1616_v22 }
 0x532   :  { %v1495_v23 = vpop.xlane.xlu0 %1494 }
 0x533   :  { %v1554_v39 = vmul.f32 0.0078125, %v1495_v23  ;;  %1652 = vadd.xlane.f32.xlu1 %v1617_v20 }
 0x534   :  { %v1497_v43 = vpop.xlane.xlu1 %1496 }
 0x535   :  { %v1555_v58 = vmul.f32 0.0078125, %v1497_v43  ;;  %1530 = vadd.xlane.f32.xlu0 %v4953_v36  ;;  %v4960_v13 = vsub.f32 %v4861_v24, %v1554_v39 }
 0x536   :  { %v1499_v54 = vpop.xlane.xlu0 %1498 }
 0x537   :  { %v1556_v55 = vmul.f32 0.0078125, %v1499_v54  ;;  %v3712_v4 = vpop.f32.mrb[40].mxu1  ;;  %1532 = vadd.xlane.f32.xlu1 %v4956_v29  ;;  %v1618_v7 = vmul.f32 %v4960_v13, %v4960_v13  ;;  %v4966_v28 = vsub.f32 %v4864_v51, %v1555_v58  ;;  %v3781_v51 = vld [vmem:[#allocation10 + $0x34] ss:$8 sps:$4 sm:$0xff]   ;;  %v3790_v54 = vld [vmem:[#allocation10 + $0x64] ss:$8 sps:$4 sm:$0xff]  }
 0x538   :  { %v1421_v8 = vpop.f32.mrb[41].mxu1  ;;  %v1501_v42 = vpop.xlane.xlu1 %1500  ;;  %2044 = vmatprep.subr.bf16.mxu0 %v3781_v51  ;;  %v4989_v6 = vadd.f32 %v3712_v4, %v5922_v38  ;;  %v5925_v51 = vld [vmem:[#allocation31_spill] sm:$0xff] }
 0x539   :  { %v3713_v15 = vpop.f32.mrb[42].mxu1  ;;  %v1557_v16 = vmul.f32 0.0078125, %v1501_v42  ;;  %1654 = vadd.xlane.f32.xlu0 %v1618_v7  ;;  %v1619_v24 = vmul.f32 %v4966_v28, %v4966_v28  ;;  %v4971_v33 = vadd.f32 %v1421_v8, %v5920_v61  ;;  %v4974_v60 = vsub.f32 %v4868_v31, %v1556_v55  ;;  %2045 = vmatpush1.bf16.msra.mxu0 %v3779_v35  ;;  %v3784_v31 = vld [vmem:[#allocation10 + $0x44] ss:$8 sps:$4 sm:$0xff]  }
 0x53a   :  { %v1424_v1 = vpop.f32.mrb[43].mxu1  ;;  %2046 = vmatprep.subr.bf16.mxu0 %v3784_v31  ;;  %v4992_v10 = vadd.f32 %v3713_v15, %v5923_v9  ;;  %v5924_v15 = vld [vmem:[#allocation30_spill] sm:$0xff] }
 0x53b   :  { %1656 = vadd.xlane.f32.xlu1 %v1619_v24  ;;  %v4977_v44 = vadd.f32 %v1424_v1, %v5921_v59  ;;  %v4981_v57 = vsub.f32 %v4872_v32, %v1557_v16  ;;  %v1620_v5 = vmul.f32 %v4974_v60, %v4974_v60  ;;  %v3793_v24 = vld [vmem:[#allocation10 + $0x74] ss:$8 sps:$4 sm:$0xff]   ;;  %v3791_v1 = vld [vmem:[#allocation10 + $0x70] ss:$8 sps:$4 sm:$0xff]  }
 0x53d   :  { %1534 = vadd.xlane.f32.xlu0 %v4971_v33  ;;  %v1621_v52 = vmul.f32 %v4981_v57, %v4981_v57  ;;  %2047 = vmatpush1.bf16.msra.mxu0 %v3782_v56  ;;  %v5926_v56 = vld [vmem:[#allocation32_spill] sm:$0xff] }
 0x53e   :  { %2048 = vmatprep.subr.bf16.mxu0 %v3787_v46  ;;  %v5927_v46 = vld [vmem:[#allocation33_spill] sm:$0xff] }
 0x53f   :  { %1536 = vadd.xlane.f32.xlu1 %v4977_v44 }
 0x541   :  { %1658 = vadd.xlane.f32.xlu0 %v1620_v5  ;;  %2049 = vmatpush1.bf16.msra.mxu0 %v3785_v34 }
 0x542   :  { %2050 = vmatprep.subr.bf16.mxu0 %v3790_v54 }
 0x543   :  { %v1503_v32 = vpop.xlane.xlu0 %1502  ;;  %1660 = vadd.xlane.f32.xlu1 %v1621_v52 }
 0x544   :  { %v1558_v3 = vmul.f32 0.0078125, %v1503_v32 }
 0x545   :  { %v1505_v18 = vpop.xlane.xlu1 %1504  ;;  %1538 = vadd.xlane.f32.xlu0 %v4989_v6 }
 0x546   :  { %v4996_v22 = vsub.f32 %v4877_v37, %v1558_v3  ;;  %v1559_v20 = vmul.f32 0.0078125, %v1505_v18  ;;  %v3788_v37 = vld [vmem:[#allocation10 + $0x60] ss:$8 sps:$4 sm:$0xff]  }
 0x547   :  { %v1507_v23 = vpop.xlane.xlu0 %1506  ;;  %v3716_v12 = vpop.f32.mrb[44].mxu1  ;;  %1540 = vadd.xlane.f32.xlu1 %v4992_v10  ;;  %2051 = vmatpush1.bf16.msra.mxu0 %v3788_v37 }
 0x548   :  { %v5000_v39 = vsub.f32 %v4880_v41, %v1559_v20  ;;  %v1560_v43 = vmul.f32 0.0078125, %v1507_v23  ;;  %v1437_v40 = vpop.f32.mrb[45].mxu1  ;;  %v1622_v58 = vmul.f32 %v4996_v22, %v4996_v22  ;;  %2052 = vmatprep.subr.bf16.mxu0 %v3793_v24  ;;  %v5025_v38 = vadd.f32 %v3716_v12, %v5926_v56 }
 0x549   :  { %v3717_v55 = vpop.f32.mrb[46].mxu1  ;;  %v1509_v4 = vpop.xlane.xlu1 %1508  ;;  %v5010_v16 = vadd.f32 %v1437_v40, %v5924_v15 }
 0x54a   :  { %v1561_v7 = vmul.f32 0.0078125, %v1509_v4  ;;  %1662 = vadd.xlane.f32.xlu0 %v1622_v58  ;;  %v1440_v8 = vpop.f32.mrb[47].mxu1  ;;  %v1623_v42 = vmul.f32 %v5000_v39, %v5000_v39  ;;  %v5007_v41 = vsub.f32 %v4884_v47, %v1560_v43  ;;  %v5031_v9 = vadd.f32 %v3717_v55, %v5927_v46 }
 0x54b   :  { %v1511_v30 = vpop.xlane.xlu0 %1510  ;;  %v5016_v59 = vadd.f32 %v1440_v8, %v5925_v51  ;;  %2053 = vmatpush1.bf16.msra.mxu0 %v3791_v1 }
 0x54c   :  { %1664 = vadd.xlane.f32.xlu1 %v1623_v42  ;;  %v5013_v61 = vsub.f32 %v4888_v48, %v1561_v7  ;;  %v1562_v35 = vmul.f32 0.0078125, %v1511_v30  ;;  %v1624_v47 = vmul.f32 %v5007_v41, %v5007_v41 }
 0x54d   :  { %v1513_v25 = vpop.xlane.xlu1 %1512 }
 0x54e   :  { %1542 = vadd.xlane.f32.xlu0 %v5010_v16  ;;  %v1563_v31 = vmul.f32 0.0078125, %v1513_v25  ;;  %v1625_v48 = vmul.f32 %v5013_v61, %v5013_v61  ;;  %v5028_v32 = vsub.f32 %v4892_v19, %v1562_v35 }
 0x54f   :  { %v1515_v5 = vpop.xlane.xlu0 %1514 }
 0x550   :  { %1544 = vadd.xlane.f32.xlu1 %v5016_v59  ;;  %v1564_v3 = vmul.f32 0.0078125, %v1515_v5  ;;  %v5034_v18 = vsub.f32 %v4896_v50, %v1563_v31  ;;  %v1626_v19 = vmul.f32 %v5028_v32, %v5028_v32 }
 0x551   :  { %v1517_v52 = vpop.xlane.xlu1 %1516 }
 0x552   :  { %1666 = vadd.xlane.f32.xlu0 %v1624_v47  ;;  %v1565_v34 = vmul.f32 0.0078125, %v1517_v52  ;;  %v5038_v20 = vsub.f32 %v4900_v62, %v1564_v3  ;;  %v1627_v12 = vmul.f32 %v5034_v18, %v5034_v18 }
 0x554   :  { %1668 = vadd.xlane.f32.xlu1 %v1625_v48  ;;  %v5044_v23 = vsub.f32 %v4904_v63, %v1565_v34  ;;  %v1628_v50 = vmul.f32 %v5038_v20, %v5038_v20 }
 0x556   :  { %1546 = vadd.xlane.f32.xlu0 %v5025_v38  ;;  %v1629_v62 = vmul.f32 %v5044_v23, %v5044_v23 }
 0x558   :  { %1548 = vadd.xlane.f32.xlu1 %v5031_v9 }
 0x55a   :  { %1670 = vadd.xlane.f32.xlu0 %v1626_v19 }
 0x55c   :  { %1672 = vadd.xlane.f32.xlu1 %v1627_v12 }
 0x55e   :  { %1674 = vadd.xlane.f32.xlu0 %v1628_v50 }
 0x560   :  { %1676 = vadd.xlane.f32.xlu1 %v1629_v62  ;;  %v1519_v43 = vpop.xlane.xlu0 %1518 }
 0x561   :  { %v1566_v40 = vmul.f32 0.0078125, %v1519_v43 }
 0x562   :  { %v1521_v58 = vpop.xlane.xlu1 %1520 }
 0x563   :  { %v5053_v54 = vsub.f32 %v4909_v17, %v1566_v40  ;;  %v1567_v63 = vmul.f32 0.0078125, %v1521_v58 }
 0x564   :  { %v1523_v55 = vpop.xlane.xlu0 %1522 }
 0x565   :  { %v5056_v4 = vsub.f32 %v4912_v45, %v1567_v63  ;;  %v1568_v37 = vmul.f32 0.0078125, %v1523_v55  ;;  %v1630_v7 = vmul.f32 %v5053_v54, %v5053_v54 }
 0x566   :  { %v1525_v8 = vpop.xlane.xlu1 %1524 }
 0x567   :  { %v5061_v42 = vsub.f32 %v4916_v14, %v1568_v37  ;;  %v1569_v30 = vmul.f32 0.0078125, %v1525_v8  ;;  %1678 = vadd.xlane.f32.xlu0 %v1630_v7  ;;  %v1631_v15 = vmul.f32 %v5056_v4, %v5056_v4 }
 0x569   :  { %v5066_v17 = vsub.f32 %v4920_v26, %v1569_v30  ;;  %1680 = vadd.xlane.f32.xlu1 %v1631_v15  ;;  %v1632_v45 = vmul.f32 %v5061_v42, %v5061_v42 }
 0x56b   :  { %1682 = vadd.xlane.f32.xlu0 %v1632_v45  ;;  %v1633_v24 = vmul.f32 %v5066_v17, %v5066_v17 }
 0x56d   :  { %1684 = vadd.xlane.f32.xlu1 %v1633_v24 }
 0x5b6   :  { %v1647_v25 = vpop.xlane.xlu0 %1646 }
 0x5b7   :  { %v1710_v14 = vmul.f32 0.0078125, %v1647_v25 }
 0x5b8   :  { %v1649_v1 = vpop.xlane.xlu1 %1648 }
 0x5b9   :  { %v1742_v51 = vadd.f32 1e-05, %v1710_v14  ;;  %v1711_v35 = vmul.f32 0.0078125, %v1649_v1 }
 0x5ba   :  { %v1527_v47 = vpop.xlane.xlu0 %1526 }
 0x5bb   :  { %3938 = vrsqrt.f32 %v1742_v51  ;;  %v1743_v5 = vadd.f32 1e-05, %v1711_v35  ;;  %v1570_v31 = vmul.f32 0.0078125, %v1527_v47 }
 0x5bc   :  { %v1529_v26 = vpop.xlane.xlu1 %1528 }
 0x5bd   :  { %3940 = vrsqrt.f32 %v1743_v5  ;;  %v5073_v48 = vsub.f32 %v4935_v11, %v1570_v31  ;;  %v1571_v52 = vmul.f32 0.0078125, %v1529_v26 }
 0x5be   :  { %v1651_v56 = vpop.xlane.xlu0 %1650 }
 0x5bf   :  { %v5076_v3 = vsub.f32 %v4941_v49, %v1571_v52  ;;  %v1712_v46 = vmul.f32 0.0078125, %v1651_v56  ;;  %v1634_v34 = vmul.f32 %v5073_v48, %v5073_v48  ;;  %v5085_v49 = vld [vmem:[%s5875_s9] ss:$0 sm:$0xff] }
 0x5c0   :  { %v1653_v19 = vpop.xlane.xlu1 %1652 }
 0x5c1   :  { %v1744_v12 = vadd.f32 1e-05, %v1712_v46  ;;  %v1713_v50 = vmul.f32 0.0078125, %v1653_v19  ;;  %1686 = vadd.xlane.f32.xlu0 %v1634_v34  ;;  %v1635_v62 = vmul.f32 %v5076_v3, %v5076_v3 }
 0x5c2   :  { %v1531_v43 = vpop.xlane.xlu0 %1530 }
 0x5c3   :  { %3942 = vrsqrt.f32 %v1744_v12  ;;  %v1745_v11 = vadd.f32 1e-05, %v1713_v50  ;;  %v1572_v40 = vmul.f32 0.0078125, %v1531_v43  ;;  %1688 = vadd.xlane.f32.xlu1 %v1635_v62 }
 0x5c4   :  { %v1533_v58 = vpop.xlane.xlu1 %1532 }
 0x5c5   :  { %v3939_v63 = vpop.eup %3938  ;;  %3944 = vrsqrt.f32 %v1745_v11  ;;  %v5088_v55 = vsub.f32 %v4953_v36, %v1572_v40  ;;  %v1573_v37 = vmul.f32 0.0078125, %v1533_v58 }
 0x5c6   :  { %v1806_v7 = vmul.f32 %v3939_v63, %v4925_v53  ;;  %v1655_v8 = vpop.xlane.xlu0 %1654 }
 0x5c7   :  { %v3941_v30 = vpop.eup %3940  ;;  %v5092_v15 = vsub.f32 %v4956_v29, %v1573_v37  ;;  %v1714_v45 = vmul.f32 0.0078125, %v1655_v8  ;;  %v1636_v24 = vmul.f32 %v5088_v55, %v5088_v55  ;;  %v5103_v29 = vld [vmem:[%s5876_s10] ss:$0 sm:$0xff] }
 0x5c8   :  { %v1844_v25 = vmul.f32 %v5085_v49, %v1806_v7  ;;  %v1807_v14 = vmul.f32 %v3941_v30, %v4930_v27  ;;  %v1657_v1 = vpop.xlane.xlu1 %1656 }
 0x5c9   :  { %v1746_v51 = vadd.f32 1e-05, %v1714_v45  ;;  %v1715_v36 = vmul.f32 0.0078125, %v1657_v1  ;;  %1690 = vadd.xlane.f32.xlu0 %v1636_v24  ;;  %v1637_v53 = vmul.f32 %v5092_v15, %v5092_v15 }
 0x5ca   :  { %v1845_v35 = vmul.f32 %v5085_v49, %v1807_v14  ;;  %v1535_v47 = vpop.xlane.xlu0 %1534  ;;  %v5107_v26 = vadd.f32 %v5103_v29, %v1844_v25 }
 0x5cb   :  { %3946 = vrsqrt.f32 %v1746_v51  ;;  %v1747_v5 = vadd.f32 1e-05, %v1715_v36  ;;  %v1574_v31 = vmul.f32 0.0078125, %v1535_v47  ;;  %1692 = vadd.xlane.f32.xlu1 %v1637_v53 }
 0x5cc   :  { %v1537_v27 = vpop.xlane.xlu1 %1536  ;;  %v5110_v52 = vadd.f32 %v5103_v29, %v1845_v35 }
 0x5cd   :  { %v3943_v56 = vpop.eup %3942  ;;  %3948 = vrsqrt.f32 %v1747_v5  ;;  %v5113_v46 = vsub.f32 %v4971_v33, %v1574_v31  ;;  %v1575_v34 = vmul.f32 0.0078125, %v1537_v27 }
 0x5ce   :  { %v1659_v19 = vpop.xlane.xlu0 %1658  ;;  %v1914_v12 = vpack.c.bf16 %v5110_v52, %v5107_v26  ;;  %v1808_v50 = vmul.f32 %v3943_v56, %v4938_v21 }
 0x5cf   :  { %v3945_v62 = vpop.eup %3944  ;;  %v5119_v43 = vsub.f32 %v4977_v44, %v1575_v34  ;;  %v1716_v11 = vmul.f32 0.0078125, %v1659_v19  ;;  %v1638_v40 = vmul.f32 %v5113_v46, %v5113_v46 }
 0x5d0   :  { %2071 = vmatmul.mubr.bf16.vlgmr.msra.gmra.mrb[80].mxu0 %v1914_v12  ;;  %v1661_v58 = vpop.xlane.xlu1 %1660  ;;  %v1809_v33 = vmul.f32 %v3945_v62, %v4945_v2  ;;  %v1846_v63 = vmul.f32 %v5085_v49, %v1808_v50 }
 0x5d1   :  { %v1748_v37 = vadd.f32 1e-05, %v1716_v11  ;;  %v1717_v7 = vmul.f32 0.0078125, %v1661_v58  ;;  %1694 = vadd.xlane.f32.xlu0 %v1638_v40  ;;  %v1639_v21 = vmul.f32 %v5119_v43, %v5119_v43  ;;  %2080 = vmatprep.mubr.bf16.mxu0 %v5912_v0 }
 0x5d2   :  { %v1539_v44 = vpop.xlane.xlu0 %1538  ;;  %v1847_v8 = vmul.f32 %v5085_v49, %v1809_v33  ;;  %v5130_v2 = vadd.f32 %v5103_v29, %v1846_v63 }
 0x5d3   :  { %3950 = vrsqrt.f32 %v1748_v37  ;;  %v1749_v30 = vadd.f32 1e-05, %v1717_v7  ;;  %v1576_v45 = vmul.f32 0.0078125, %v1539_v44  ;;  %1696 = vadd.xlane.f32.xlu1 %v1639_v21 }
 0x5d4   :  { %v1541_v24 = vpop.xlane.xlu1 %1540  ;;  %v5133_v25 = vadd.f32 %v5103_v29, %v1847_v8 }
 0x5d5   :  { %v3947_v14 = vpop.eup %3946  ;;  %3952 = vrsqrt.f32 %v1749_v30  ;;  %v5136_v1 = vsub.f32 %v4989_v6, %v1576_v45  ;;  %v1577_v51 = vmul.f32 0.0078125, %v1541_v24 }
 0x5d6   :  { %v1915_v36 = vpack.c.bf16 %v5133_v25, %v5130_v2  ;;  %v1810_v53 = vmul.f32 %v3947_v14, %v4960_v13 }
 0x5d7   :  { %v3949_v35 = vpop.eup %3948  ;;  %v5142_v47 = vsub.f32 %v4992_v10, %v1577_v51  ;;  %v1663_v5 = vpop.xlane.xlu0 %1662  ;;  %v1640_v31 = vmul.f32 %v5136_v1, %v5136_v1 }
 0x5d8   :  { %v1718_v27 = vmul.f32 0.0078125, %v1663_v5  ;;  %2081 = vmatmul.mubr.bf16.gmra.mrb[84].mxu0 %v1915_v36  ;;  %v1811_v56 = vmul.f32 %v3949_v35, %v4966_v28  ;;  %v1848_v6 = vmul.f32 %v5085_v49, %v1810_v53 }
 0x5d9   :  { %v1665_v34 = vpop.xlane.xlu1 %1664  ;;  %1698 = vadd.xlane.f32.xlu0 %v1640_v31  ;;  %v1641_v19 = vmul.f32 %v5142_v47, %v5142_v47  ;;  %2090 = vmatprep.mubr.bf16.mxu0 %v5912_v0 }
 0x5da   :  { %v1750_v13 = vadd.f32 1e-05, %v1718_v27  ;;  %v1719_v10 = vmul.f32 0.0078125, %v1665_v34  ;;  %v1849_v12 = vmul.f32 %v5085_v49, %v1811_v56  ;;  %v5153_v62 = vadd.f32 %v5103_v29, %v1848_v6 }
 0x5db   :  { %v1543_v50 = vpop.xlane.xlu0 %1542  ;;  %1700 = vadd.xlane.f32.xlu1 %v1641_v19 }
 0x5dc   :  { %3954 = vrsqrt.f32 %v1750_v13  ;;  %v1751_v28 = vadd.f32 1e-05, %v1719_v10  ;;  %v1578_v11 = vmul.f32 0.0078125, %v1543_v50  ;;  %v5156_v40 = vadd.f32 %v5103_v29, %v1849_v12 }
 0x5dd   :  { %v3951_v58 = vpop.eup %3950  ;;  %v1545_v33 = vpop.xlane.xlu1 %1544 }
 0x5de   :  { %3956 = vrsqrt.f32 %v1751_v28  ;;  %v5159_v63 = vsub.f32 %v5010_v16, %v1578_v11  ;;  %v1579_v37 = vmul.f32 0.0078125, %v1545_v33  ;;  %v1916_v7 = vpack.c.bf16 %v5156_v40, %v5153_v62 }
 0x5df   :  { %v3953_v21 = vpop.eup %3952  ;;  %v1667_v44 = vpop.xlane.xlu0 %1666  ;;  %v1812_v8 = vmul.f32 %v3951_v58, %v4974_v60 }
 0x5e0   :  { %v5165_v30 = vsub.f32 %v5016_v59, %v1579_v37  ;;  %v1720_v45 = vmul.f32 0.0078125, %v1667_v44  ;;  %2091 = vmatmul.mubr.bf16.gmra.mrb[88].mxu0 %v1916_v7  ;;  %v1642_v24 = vmul.f32 %v5159_v63, %v5159_v63  ;;  %v1813_v14 = vmul.f32 %v3953_v21, %v4981_v57 }
 0x5e1   :  { %v1669_v16 = vpop.xlane.xlu1 %1668  ;;  %2100 = vmatprep.mubr.bf16.mxu0 %v5912_v0  ;;  %v1850_v51 = vmul.f32 %v5085_v49, %v1812_v8 }
 0x5e2   :  { %v1752_v36 = vadd.f32 1e-05, %v1720_v45  ;;  %v1721_v53 = vmul.f32 0.0078125, %v1669_v16  ;;  %1702 = vadd.xlane.f32.xlu0 %v1642_v24  ;;  %v1643_v60 = vmul.f32 %v5165_v30, %v5165_v30  ;;  %v1851_v59 = vmul.f32 %v5085_v49, %v1813_v14 }
 0x5e3   :  { %v1547_v35 = vpop.xlane.xlu0 %1546  ;;  %v5176_v5 = vadd.f32 %v5103_v29, %v1850_v51 }
 0x5e4   :  { %3958 = vrsqrt.f32 %v1752_v36  ;;  %v1753_v31 = vadd.f32 1e-05, %v1721_v53  ;;  %v1580_v57 = vmul.f32 0.0078125, %v1547_v35  ;;  %1704 = vadd.xlane.f32.xlu1 %v1643_v60  ;;  %v5179_v27 = vadd.f32 %v5103_v29, %v1851_v59 }
 0x5e5   :  { %v1549_v56 = vpop.xlane.xlu1 %1548 }
 0x5e6   :  { %v3955_v6 = vpop.eup %3954  ;;  %3960 = vrsqrt.f32 %v1753_v31  ;;  %v5182_v34 = vsub.f32 %v5025_v38, %v1580_v57  ;;  %v1581_v19 = vmul.f32 0.0078125, %v1549_v56  ;;  %v1917_v13 = vpack.c.bf16 %v5179_v27, %v5176_v5 }
 0x5e7   :  { %v1671_v10 = vpop.xlane.xlu0 %1670  ;;  %v1814_v12 = vmul.f32 %v3955_v6, %v4996_v22 }
 0x5e8   :  { %v3957_v50 = vpop.eup %3956  ;;  %v5188_v28 = vsub.f32 %v5031_v9, %v1581_v19  ;;  %v1722_v11 = vmul.f32 0.0078125, %v1671_v10  ;;  %2101 = vmatmul.mubr.bf16.gmra.mrb[92].mxu0 %v1917_v13  ;;  %v1644_v58 = vmul.f32 %v5182_v34, %v5182_v34 }
 0x5e9   :  { %v1673_v33 = vpop.xlane.xlu1 %1672  ;;  %2110 = vmatprep.mubr.bf16.mxu0 %v5912_v0  ;;  %v1815_v38 = vmul.f32 %v3957_v50, %v5000_v39  ;;  %v1852_v37 = vmul.f32 %v5085_v49, %v1814_v12 }
 0x5ea   :  { %v1754_v7 = vadd.f32 1e-05, %v1722_v11  ;;  %v1723_v21 = vmul.f32 0.0078125, %v1673_v33  ;;  %1706 = vadd.xlane.f32.xlu0 %v1644_v58  ;;  %v1645_v22 = vmul.f32 %v5188_v28, %v5188_v28 }
 0x5eb   :  { %v1675_v9 = vpop.xlane.xlu0 %1674  ;;  %v1853_v44 = vmul.f32 %v5085_v49, %v1815_v38  ;;  %v5199_v14 = vadd.f32 %v5103_v29, %v1852_v37 }
 0x5ec   :  { %3962 = vrsqrt.f32 %v1754_v7  ;;  %v1755_v8 = vadd.f32 1e-05, %v1723_v21  ;;  %v1724_v45 = vmul.f32 0.0078125, %v1675_v9  ;;  %1708 = vadd.xlane.f32.xlu1 %v1645_v22 }
 0x5ed   :  { %v1677_v24 = vpop.xlane.xlu1 %1676  ;;  %v5202_v39 = vadd.f32 %v5103_v29, %v1853_v44 }
 0x5ee   :  { %v3959_v16 = vpop.eup %3958  ;;  %3964 = vrsqrt.f32 %v1755_v8  ;;  %v1756_v51 = vadd.f32 1e-05, %v1724_v45  ;;  %v1725_v36 = vmul.f32 0.0078125, %v1677_v24 }
 0x5ef   :  { %v1918_v53 = vpack.c.bf16 %v5202_v39, %v5199_v14  ;;  %v1816_v60 = vmul.f32 %v3959_v16, %v5007_v41 }
 0x5f0   :  { %v3961_v59 = vpop.eup %3960  ;;  %3966 = vrsqrt.f32 %v1756_v51  ;;  %v1757_v35 = vadd.f32 1e-05, %v1725_v36 }
 0x5f1   :  { %2111 = vmatmul.mubr.bf16.gmra.mrb[96].mxu0 %v1918_v53  ;;  %v1817_v31 = vmul.f32 %v3961_v59, %v5013_v61  ;;  %v1854_v57 = vmul.f32 %v5085_v49, %v1816_v60 }
 0x5f2   :  { %3968 = vrsqrt.f32 %v1757_v35  ;;  %2120 = vmatprep.mubr.bf16.mxu0 %v5912_v0 }
 0x5f3   :  { %v1855_v56 = vmul.f32 %v5085_v49, %v1817_v31  ;;  %v5212_v13 = vadd.f32 %v5103_v29, %v1854_v57 }
 0x5f4   :  { %v1679_v6 = vpop.xlane.xlu0 %1678 }
 0x5f5   :  { %v1726_v19 = vmul.f32 0.0078125, %v1679_v6  ;;  %v5215_v41 = vadd.f32 %v5103_v29, %v1855_v56 }
 0x5f6   :  { %v3963_v10 = vpop.eup %3962  ;;  %v1681_v12 = vpop.xlane.xlu1 %1680 }
 0x5f7   :  { %v1758_v50 = vadd.f32 1e-05, %v1726_v19  ;;  %v1727_v11 = vmul.f32 0.0078125, %v1681_v12  ;;  %v1919_v61 = vpack.c.bf16 %v5215_v41, %v5212_v13  ;;  %v1818_v58 = vmul.f32 %v3963_v10, %v5028_v32 }
 0x5f8   :  { %v3965_v33 = vpop.eup %3964  ;;  %v1683_v38 = vpop.xlane.xlu0 %1682 }
 0x5f9   :  { %3970 = vrsqrt.f32 %v1758_v50  ;;  %v1759_v37 = vadd.f32 1e-05, %v1727_v11  ;;  %v1728_v7 = vmul.f32 0.0078125, %v1683_v38  ;;  %2121 = vmatmul.mubr.bf16.gmra.mrb[100].mxu0 %v1919_v61  ;;  %v1819_v21 = vmul.f32 %v3965_v33, %v5034_v18  ;;  %v3794_v61 = vld [vmem:[#allocation11 + $0x40] sm:$0xff]  }
 0x5fa   :  { %v3967_v22 = vpop.eup %3966  ;;  %v1685_v9 = vpop.xlane.xlu1 %1684  ;;  %2130 = vmatprep.mubr.bf16.mxu0 %v5912_v0  ;;  %v1856_v44 = vmul.f32 %v5085_v49, %v1818_v58  ;;  %3478 = vmatprep.subr.bf16.mxu1 %v3794_v61 }
 0x5fb   :  { %3972 = vrsqrt.f32 %v1759_v37  ;;  %v1729_v8 = vmul.f32 0.0078125, %v1685_v9  ;;  %v1857_v45 = vmul.f32 %v5085_v49, %v1819_v21  ;;  %v1760_v32 = vadd.f32 1e-05, %v1728_v7  ;;  %v3795_v7 = vld [vmem:[#allocation11] sm:$0xff]  }
 0x5fc   :  { %v3969_v24 = vpop.eup %3968  ;;  %v5225_v16 = vadd.f32 %v5103_v29, %v1856_v44  ;;  %v1820_v18 = vmul.f32 %v3967_v22, %v5038_v20  ;;  %v3796_v22 = vld [vmem:[#allocation11 + $0x48] sm:$0xff]   ;;  %3479 = vmatpush3.bf16.msra.mxu1 %v3795_v7  ;;  %v3798_v44 = vld [vmem:[#allocation11 + $0x50] sm:$0xff]  }
 0x5fd   :  { %v1761_v51 = vadd.f32 1e-05, %v1729_v8  ;;  %v5228_v36 = vadd.f32 %v5103_v29, %v1857_v45  ;;  %v1821_v53 = vmul.f32 %v3969_v24, %v5044_v23  ;;  %3480 = vmatprep.subr.bf16.mxu1 %v3796_v22  ;;  %v3799_v8 = vld [vmem:[#allocation11 + $0x10] sm:$0xff]   ;;  %v3800_v24 = vld [vmem:[#allocation11 + $0x58] sm:$0xff]  }
 0x5fe   :  { %v1858_v35 = vmul.f32 %v5085_v49, %v1820_v18  ;;  %v3803_v18 = vld [vmem:[#allocation11 + $0x20] sm:$0xff]  }
 0x5ff   :  { %3974 = vrsqrt.f32 %v1761_v51  ;;  %v1920_v60 = vpack.c.bf16 %v5228_v36, %v5225_v16  ;;  %v1859_v59 = vmul.f32 %v5085_v49, %v1821_v53  ;;  %v3802_v51 = vld [vmem:[#allocation11 + $0x60] sm:$0xff]   ;;  %v3804_v53 = vld [vmem:[#allocation11 + $0x68] sm:$0xff]  }
 0x600   :  { %3976 = vrsqrt.f32 %v1760_v32  ;;  %v5241_v20 = vadd.f32 %v5103_v29, %v1858_v35  ;;  %v3801_v32 = vld [vmem:[#allocation11 + $0x18] sm:$0xff]   ;;  %v3807_v35 = vld [vmem:[#allocation11 + $0x30] sm:$0xff]  }
 0x601   :  { %2131 = vmatmul.mubr.bf16.gmra.mrb[104].mxu0 %v1920_v60  ;;  %v5238_v57 = vadd.f32 %v5103_v29, %v1859_v59  ;;  %v3805_v60 = vld [vmem:[#allocation11 + $0x28] sm:$0xff]   ;;  %v3806_v59 = vld [vmem:[#allocation11 + $0x70] sm:$0xff]  }
 0x602   :  { %2140 = vmatprep.mubr.bf16.mxu0 %v5912_v0 }
 0x603   :  { %v3971_v31 = vpop.eup %3970  ;;  %v1921_v19 = vpack.c.bf16 %v5238_v57, %v5241_v20 }
 0x604   :  { %v1822_v23 = vmul.f32 %v3971_v31, %v5053_v54  ;;  %v3808_v31 = vld [vmem:[#allocation11 + $0x78] sm:$0xff]  }
 0x605   :  { %v3973_v56 = vpop.eup %3972 }
 0x606   :  { %v1823_v6 = vmul.f32 %v3973_v56, %v5056_v4  ;;  %v1860_v50 = vmul.f32 %v5085_v49, %v1822_v23  ;;  %v3809_v56 = vld [vmem:[#allocation11 + $0x38] sm:$0xff]  }
 0x608   :  { %v1861_v10 = vmul.f32 %v5085_v49, %v1823_v6  ;;  %v5255_v4 = vadd.f32 %v5103_v29, %v1860_v50 }
 0x609   :  { %v3975_v12 = vpop.eup %3974  ;;  %2141 = vmatmul.mubr.bf16.gmra.mrb[108].mxu0 %v1921_v19 }
 0x60a   :  { %v3977_v11 = vpop.eup %3976  ;;  %2150 = vmatprep.mubr.bf16.mxu0 %v5912_v0  ;;  %v5251_v58 = vadd.f32 %v5103_v29, %v1861_v10  ;;  %v1825_v54 = vmul.f32 %v3975_v12, %v5066_v17  ;;  %v3797_v17 = vld [vmem:[#allocation11 + $0x8] sm:$0xff]  }
 0x60b   :  { %v1824_v33 = vmul.f32 %v3977_v11, %v5061_v42  ;;  %3481 = vmatpush3.bf16.msra.mxu1 %v3797_v17 }
 0x60c   :  { %v1922_v38 = vpack.c.bf16 %v5251_v58, %v5255_v4  ;;  %v1863_v37 = vmul.f32 %v5085_v49, %v1825_v54  ;;  %3482 = vmatprep.subr.bf16.mxu1 %v3798_v44 }
 0x60d   :  { %v1862_v21 = vmul.f32 %v5085_v49, %v1824_v33 }
 0x60e   :  { %v5264_v9 = vadd.f32 %v5103_v29, %v1863_v37 }
 0x60f   :  { %v5267_v42 = vadd.f32 %v5103_v29, %v1862_v21  ;;  %3483 = vmatpush3.bf16.msra.mxu1 %v3799_v8 }
 0x610   :  { %3484 = vmatprep.subr.bf16.mxu1 %v3800_v24 }
 0x611   :  { %2151 = vmatmul.mubr.bf16.gmra.mrb[112].mxu0 %v1922_v38  ;;  %v1923_v45 = vpack.c.bf16 %v5264_v9, %v5267_v42 }
 0x612   :  { %2160 = vmatprep.mubr.bf16.mxu0 %v5912_v0 }
 0x613   :  { %3485 = vmatpush3.bf16.msra.mxu1 %v3801_v32 }
 0x614   :  { %3486 = vmatprep.subr.bf16.mxu1 %v3802_v51 }
 0x617   :  { %3487 = vmatpush3.bf16.msra.mxu1 %v3803_v18 }
 0x618   :  { %3488 = vmatprep.subr.bf16.mxu1 %v3804_v53 }
 0x619   :  { %2161 = vmatmul.mubr.bf16.gmra.mrb[116].mxu0 %v1923_v45 }
 0x61a   :  { %2170 = vmatprep.mubr.bf16.mxu0 %v5912_v0 }
 0x61b   :  { %3489 = vmatpush3.bf16.msra.mxu1 %v3805_v60 }
 0x61c   :  { %3490 = vmatprep.subr.bf16.mxu1 %v3806_v59 }
 0x61f   :  { %3491 = vmatpush3.bf16.msra.mxu1 %v3807_v35 }
 0x620   :  { %3492 = vmatprep.subr.bf16.mxu1 %v3808_v31 }
 0x623   :  { %3493 = vmatpush3.bf16.msra.mxu1 %v3809_v56 }
 0x64e   :  { %v1687_v23 = vpop.xlane.xlu0 %1686 }
 0x64f   :  { %v1730_v6 = vmul.f32 0.0078125, %v1687_v23 }
 0x650   :  { %v1689_v19 = vpop.xlane.xlu1 %1688 }
 0x651   :  { %v1762_v10 = vadd.f32 1e-05, %v1730_v6  ;;  %v1731_v12 = vmul.f32 0.0078125, %v1689_v19 }
 0x653   :  { %3978 = vrsqrt.f32 %v1762_v10  ;;  %v1763_v50 = vadd.f32 1e-05, %v1731_v12 }
 0x655   :  { %3980 = vrsqrt.f32 %v1763_v50 }
 0x656   :  { %v1691_v11 = vpop.xlane.xlu0 %1690 }
 0x657   :  { %v1732_v61 = vmul.f32 0.0078125, %v1691_v11 }
 0x658   :  { %v1693_v54 = vpop.xlane.xlu1 %1692 }
 0x659   :  { %v1764_v33 = vadd.f32 1e-05, %v1732_v61  ;;  %v1733_v38 = vmul.f32 0.0078125, %v1693_v54 }
 0x65b   :  { %3982 = vrsqrt.f32 %v1764_v33  ;;  %v1765_v37 = vadd.f32 1e-05, %v1733_v38 }
 0x65d   :  { %v3979_v7 = vpop.eup %3978  ;;  %3984 = vrsqrt.f32 %v1765_v37 }
 0x65e   :  { %v1695_v21 = vpop.xlane.xlu0 %1694  ;;  %v1826_v22 = vmul.f32 %v3979_v7, %v5073_v48 }
 0x65f   :  { %v3981_v17 = vpop.eup %3980  ;;  %v1734_v44 = vmul.f32 0.0078125, %v1695_v21 }
 0x660   :  { %v1697_v8 = vpop.xlane.xlu1 %1696  ;;  %v1827_v45 = vmul.f32 %v3981_v17, %v5076_v3  ;;  %v1864_v24 = vmul.f32 %v5085_v49, %v1826_v22 }
 0x661   :  { %v1766_v32 = vadd.f32 1e-05, %v1734_v44  ;;  %v1735_v51 = vmul.f32 0.0078125, %v1697_v8 }
 0x662   :  { %v1865_v18 = vmul.f32 %v5085_v49, %v1827_v45  ;;  %v5277_v60 = vadd.f32 %v5103_v29, %v1864_v24 }
 0x663   :  { %3986 = vrsqrt.f32 %v1766_v32  ;;  %v1767_v53 = vadd.f32 1e-05, %v1735_v51 }
 0x664   :  { %v5280_v59 = vadd.f32 %v5103_v29, %v1865_v18 }
 0x665   :  { %v3983_v48 = vpop.eup %3982  ;;  %3988 = vrsqrt.f32 %v1767_v53 }
 0x666   :  { %v1699_v35 = vpop.xlane.xlu0 %1698  ;;  %v1924_v3 = vpack.c.bf16 %v5280_v59, %v5277_v60  ;;  %v1828_v31 = vmul.f32 %v3983_v48, %v5088_v55 }
 0x667   :  { %v3985_v56 = vpop.eup %3984  ;;  %v1736_v23 = vmul.f32 0.0078125, %v1699_v35 }
 0x668   :  { %2171 = vmatmul.mubr.bf16.gmra.mrb[120].mxu0 %v1924_v3  ;;  %v1701_v6 = vpop.xlane.xlu1 %1700  ;;  %v1829_v19 = vmul.f32 %v3985_v56, %v5092_v15  ;;  %v1866_v10 = vmul.f32 %v5085_v49, %v1828_v31 }
 0x669   :  { %v1768_v12 = vadd.f32 1e-05, %v1736_v23  ;;  %v1737_v50 = vmul.f32 0.0078125, %v1701_v6  ;;  %2180 = vmatprep.mubr.bf16.mxu0 %v5912_v0 }
 0x66a   :  { %v1867_v11 = vmul.f32 %v5085_v49, %v1829_v19  ;;  %v5290_v54 = vadd.f32 %v5103_v29, %v1866_v10 }
 0x66b   :  { %3990 = vrsqrt.f32 %v1768_v12  ;;  %v1769_v61 = vadd.f32 1e-05, %v1737_v50 }
 0x66c   :  { %v5293_v55 = vadd.f32 %v5103_v29, %v1867_v11 }
 0x66d   :  { %v3987_v33 = vpop.eup %3986  ;;  %3992 = vrsqrt.f32 %v1769_v61 }
 0x66e   :  { %v1925_v15 = vpack.c.bf16 %v5293_v55, %v5290_v54  ;;  %v1830_v38 = vmul.f32 %v3987_v33, %v5113_v46 }
 0x66f   :  { %v3989_v37 = vpop.eup %3988  ;;  %v1703_v7 = vpop.xlane.xlu0 %1702 }
 0x670   :  { %v1738_v21 = vmul.f32 0.0078125, %v1703_v7  ;;  %2181 = vmatmul.mubr.bf16.gmra.mrb[124].mxu0 %v1925_v15  ;;  %v1831_v22 = vmul.f32 %v3989_v37, %v5119_v43  ;;  %v1868_v17 = vmul.f32 %v5085_v49, %v1830_v38 }
 0x671   :  { %v1705_v44 = vpop.xlane.xlu1 %1704  ;;  %2190 = vmatprep.mubr.bf16.mxu0 %v5912_v0 }
 0x672   :  { %v1770_v8 = vadd.f32 1e-05, %v1738_v21  ;;  %v1739_v45 = vmul.f32 0.0078125, %v1705_v44  ;;  %v1869_v24 = vmul.f32 %v5085_v49, %v1831_v22  ;;  %v5303_v51 = vadd.f32 %v5103_v29, %v1868_v17 }
 0x674   :  { %3994 = vrsqrt.f32 %v1770_v8  ;;  %v1771_v32 = vadd.f32 1e-05, %v1739_v45  ;;  %v5306_v46 = vadd.f32 %v5103_v29, %v1869_v24 }
 0x675   :  { %v3991_v18 = vpop.eup %3990 }
 0x676   :  { %3996 = vrsqrt.f32 %v1771_v32  ;;  %v1926_v43 = vpack.c.bf16 %v5306_v46, %v5303_v51  ;;  %v1832_v53 = vmul.f32 %v3991_v18, %v5136_v1 }
 0x677   :  { %v3993_v48 = vpop.eup %3992  ;;  %v1707_v35 = vpop.xlane.xlu0 %1706 }
 0x678   :  { %v1740_v3 = vmul.f32 0.0078125, %v1707_v35  ;;  %2191 = vmatmul.mubr.bf16.gmra.mrb[128].mxu0 %v1926_v43  ;;  %v1833_v31 = vmul.f32 %v3993_v48, %v5142_v47  ;;  %v1870_v56 = vmul.f32 %v5085_v49, %v1832_v53 }
 0x679   :  { %v1709_v23 = vpop.xlane.xlu1 %1708  ;;  %2200 = vmatprep.mubr.bf16.mxu0 %v5912_v0 }
 0x67a   :  { %v1772_v6 = vadd.f32 1e-05, %v1740_v3  ;;  %v1741_v19 = vmul.f32 0.0078125, %v1709_v23  ;;  %v1871_v10 = vmul.f32 %v5085_v49, %v1833_v31  ;;  %v5316_v50 = vadd.f32 %v5103_v29, %v1870_v56 }
 0x67c   :  { %3998 = vrsqrt.f32 %v1772_v6  ;;  %v1773_v12 = vadd.f32 1e-05, %v1741_v19  ;;  %v5319_v1 = vadd.f32 %v5103_v29, %v1871_v10 }
 0x67e   :  { %v3995_v11 = vpop.eup %3994  ;;  %4000 = vrsqrt.f32 %v1773_v12  ;;  %v1927_v47 = vpack.c.bf16 %v5319_v1, %v5316_v50 }
 0x67f   :  { %v1834_v61 = vmul.f32 %v3995_v11, %v5159_v63 }
 0x680   :  { %v3997_v33 = vpop.eup %3996  ;;  %2201 = vmatmul.mubr.bf16.gmra.mrb[132].mxu0 %v1927_v47 }
 0x681   :  { %2210 = vmatprep.mubr.bf16.mxu0 %v5912_v0  ;;  %v1835_v15 = vmul.f32 %v3997_v33, %v5165_v30  ;;  %v1872_v38 = vmul.f32 %v5085_v49, %v1834_v61 }
 0x683   :  { %v1873_v37 = vmul.f32 %v5085_v49, %v1835_v15  ;;  %v5329_v7 = vadd.f32 %v5103_v29, %v1872_v38 }
 0x685   :  { %v5332_v21 = vadd.f32 %v5103_v29, %v1873_v37 }
 0x686   :  { %v3999_v22 = vpop.eup %3998 }
 0x687   :  { %v1928_v63 = vpack.c.bf16 %v5332_v21, %v5329_v7  ;;  %v1836_v17 = vmul.f32 %v3999_v22, %v5182_v34  ;;  %v1948_v34 = vlaneseq }
 0x688   :  { %v4001_v44 = vpop.eup %4000 }
 0x689   :  { %2211 = vmatmul.mubr.bf16.gmra.mrb[136].mxu0 %v1928_v63  ;;  %v1837_v30 = vmul.f32 %v4001_v44, %v5188_v28  ;;  %v1874_v8 = vmul.f32 %v5085_v49, %v1836_v17  ;;  %v1949_v43 = vshrl.u32 %v1948_v34, 7  ;;  %v1946_v28 = vld [vmem:[%s5872_s6] sm:$0x3] }
 0x68a   :  { %2220 = vmatprep.mubr.bf16.mxu0 %v5912_v0 }
 0x68b   :  { %v1875_v45 = vmul.f32 %v5085_v49, %v1837_v30  ;;  %v5342_v24 = vadd.f32 %v5103_v29, %v1874_v8  ;;  %v1950_v53 = vsub.s32 0, %v1949_v43  ;;  %v1954_v0 = vsub.s32 1, %v1949_v43 }
 0x68d   :  { %v5345_v32 = vadd.f32 %v5103_v29, %v1875_v45  ;;  %v5352_v48 = vrot.slane %v1946_v28, %v1950_v53  ;;  %v5354_v49 = vrot.slane %v1946_v28, %v1954_v0 }
 0x68f   :  { %v1929_v18 = vpack.c.bf16 %v5345_v32, %v5342_v24 }
 0x691   :  { %2221 = vmatmul.mubr.bf16.gmra.mrb[140].mxu0 %v1929_v18 }
 0x6a3   :  { %v2072_v35 = vpop.f32.mrb[80].mxu0 }
 0x6a4   :  { %v2073_v29 = vadd.f32 %v2072_v35, %v5352_v48  ;;  %v2074_v3 = vpop.f32.mrb[81].mxu0 }
 0x6a5   :  { %v2075_v31 = vadd.f32 %v2074_v3, %v5354_v49  ;;  %v2076_v56 = vpop.f32.mrb[82].mxu0 }
 0x6a6   :  { %v2295_v23 = vmul.f32 0.01, %v2073_v29  ;;  %v2077_v6 = vadd.f32 %v2076_v56, %v5352_v48  ;;  %v2078_v19 = vpop.f32.mrb[83].mxu0  ;;  %vm2231_vm0 = vcmp.gt.f32.partialorder %v2073_v29, 0.0 }
 0x6a7   :  { %v2296_v10 = vmul.f32 0.01, %v2075_v31  ;;  %v2079_v12 = vadd.f32 %v2078_v19, %v5354_v49  ;;  %vm2232_vm1 = vcmp.gt.f32.partialorder %v2075_v31, 0.0 }
 0x6a8   :  { %vm2233_vm2 = vcmp.gt.f32.partialorder %v2077_v6, 0.0  ;;  %v2297_v11 = vmul.f32 0.01, %v2077_v6  ;;  %v2359_v61 = vsel %vm2231_vm0, %v2073_v29, %v2295_v23 }
 0x6a9   :  { %vm2234_vm3 = vcmp.gt.f32.partialorder %v2079_v12, 0.0  ;;  %v2298_v47 = vmul.f32 0.01, %v2079_v12  ;;  %v2360_v37 = vsel %vm2232_vm1, %v2075_v31, %v2296_v10 }
 0x6aa   :  { %v2361_v33 = vsel %vm2233_vm2, %v2077_v6, %v2297_v11 }
 0x6ab   :  { %v2423_v15 = vpack.c.bf16 %v2361_v33, %v2359_v61  ;;  %v2082_v38 = vpop.f32.mrb[84].mxu0  ;;  %v2362_v22 = vsel %vm2234_vm3, %v2079_v12, %v2298_v47 }
 0x6ac   :  { %v2083_v63 = vadd.f32 %v2082_v38, %v5352_v48  ;;  %v2084_v17 = vpop.f32.mrb[85].mxu0  ;;  %v2424_v44 = vpack.c.bf16 %v2362_v22, %v2360_v37 }
 0x6ad   :  { %v2085_v30 = vadd.f32 %v2084_v17, %v5354_v49  ;;  %v2086_v8 = vpop.f32.mrb[86].mxu0 }
 0x6ae   :  { %v2299_v45 = vmul.f32 0.01, %v2083_v63  ;;  %v2087_v18 = vadd.f32 %v2086_v8, %v5352_v48  ;;  %v2088_v34 = vpop.f32.mrb[87].mxu0  ;;  %2622 = vmatprep.mubr.bf16.mxu1 %v2424_v44  ;;  %vm2235_vm4 = vcmp.gt.f32.partialorder %v2083_v63, 0.0 }
 0x6af   :  { %v2300_v43 = vmul.f32 0.01, %v2085_v30  ;;  %v2089_v53 = vadd.f32 %v2088_v34, %v5354_v49  ;;  %2623 = vmatmul.mubr.bf16.vlgmr.msra.gmra.mrb[48].mxu1 %v2423_v15  ;;  %vm2236_vm5 = vcmp.gt.f32.partialorder %v2085_v30, 0.0 }
 0x6b0   :  { %vm2237_vm6 = vcmp.gt.f32.partialorder %v2087_v18, 0.0  ;;  %v2301_v28 = vmul.f32 0.01, %v2087_v18  ;;  %v2363_v35 = vsel %vm2235_vm4, %v2083_v63, %v2299_v45 }
 0x6b1   :  { %vm2238_vm7 = vcmp.gt.f32.partialorder %v2089_v53, 0.0  ;;  %v2302_v0 = vmul.f32 0.01, %v2089_v53  ;;  %v2364_v31 = vsel %vm2236_vm5, %v2085_v30, %v2300_v43 }
 0x6b2   :  { %v2365_v29 = vsel %vm2237_vm6, %v2087_v18, %v2301_v28 }
 0x6b3   :  { %v2092_v3 = vpop.f32.mrb[88].mxu0  ;;  %v2366_v56 = vsel %vm2238_vm7, %v2089_v53, %v2302_v0  ;;  %v2425_v23 = vpack.c.bf16 %v2365_v29, %v2363_v35 }
 0x6b4   :  { %v2093_v6 = vadd.f32 %v2092_v3, %v5352_v48  ;;  %v2094_v19 = vpop.f32.mrb[89].mxu0  ;;  %v2426_v10 = vpack.c.bf16 %v2366_v56, %v2364_v31 }
 0x6b5   :  { %v2095_v12 = vadd.f32 %v2094_v19, %v5354_v49  ;;  %v2096_v11 = vpop.f32.mrb[90].mxu0 }
 0x6b6   :  { %v2303_v47 = vmul.f32 0.01, %v2093_v6  ;;  %v2097_v61 = vadd.f32 %v2096_v11, %v5352_v48  ;;  %v2098_v33 = vpop.f32.mrb[91].mxu0  ;;  %2630 = vmatprep.mubr.bf16.mxu1 %v2426_v10  ;;  %vm2239_vm8 = vcmp.gt.f32.partialorder %v2093_v6, 0.0 }
 0x6b7   :  { %v2304_v15 = vmul.f32 0.01, %v2095_v12  ;;  %v2099_v38 = vadd.f32 %v2098_v33, %v5354_v49  ;;  %2631 = vmatmul.mubr.bf16.gmra.mrb[52].mxu1 %v2425_v23  ;;  %vm2240_vm9 = vcmp.gt.f32.partialorder %v2095_v12, 0.0 }
 0x6b8   :  { %vm2241_vm10 = vcmp.gt.f32.partialorder %v2097_v61, 0.0  ;;  %v2305_v37 = vmul.f32 0.01, %v2097_v61  ;;  %v2367_v63 = vsel %vm2239_vm8, %v2093_v6, %v2303_v47 }
 0x6b9   :  { %vm2242_vm11 = vcmp.gt.f32.partialorder %v2099_v38, 0.0  ;;  %v2306_v22 = vmul.f32 0.01, %v2099_v38  ;;  %v2368_v30 = vsel %vm2240_vm9, %v2095_v12, %v2304_v15 }
 0x6ba   :  { %v2369_v17 = vsel %vm2241_vm10, %v2097_v61, %v2305_v37 }
 0x6bb   :  { %v2102_v44 = vpop.f32.mrb[92].mxu0  ;;  %v2370_v8 = vsel %vm2242_vm11, %v2099_v38, %v2306_v22  ;;  %v2427_v45 = vpack.c.bf16 %v2369_v17, %v2367_v63 }
 0x6bc   :  { %v2103_v18 = vadd.f32 %v2102_v44, %v5352_v48  ;;  %v2104_v34 = vpop.f32.mrb[93].mxu0  ;;  %v2428_v43 = vpack.c.bf16 %v2370_v8, %v2368_v30 }
 0x6bd   :  { %v2105_v53 = vadd.f32 %v2104_v34, %v5354_v49  ;;  %v2106_v28 = vpop.f32.mrb[94].mxu0 }
 0x6be   :  { %v2307_v0 = vmul.f32 0.01, %v2103_v18  ;;  %v2107_v35 = vadd.f32 %v2106_v28, %v5352_v48  ;;  %v2108_v29 = vpop.f32.mrb[95].mxu0  ;;  %2638 = vmatprep.mubr.bf16.mxu1 %v2428_v43  ;;  %vm2243_vm12 = vcmp.gt.f32.partialorder %v2103_v18, 0.0 }
 0x6bf   :  { %v2308_v3 = vmul.f32 0.01, %v2105_v53  ;;  %v2109_v31 = vadd.f32 %v2108_v29, %v5354_v49  ;;  %2639 = vmatmul.mubr.bf16.gmra.mrb[56].mxu1 %v2427_v45  ;;  %vm2244_vm13 = vcmp.gt.f32.partialorder %v2105_v53, 0.0 }
 0x6c0   :  { %vm2245_vm14 = vcmp.gt.f32.partialorder %v2107_v35, 0.0  ;;  %v2309_v56 = vmul.f32 0.01, %v2107_v35  ;;  %v2371_v6 = vsel %vm2243_vm12, %v2103_v18, %v2307_v0 }
 0x6c1   :  { %vm2246_vm15 = vcmp.gt.f32.partialorder %v2109_v31, 0.0  ;;  %v2310_v23 = vmul.f32 0.01, %v2109_v31  ;;  %v2372_v10 = vsel %vm2244_vm13, %v2105_v53, %v2308_v3 }
 0x6c2   :  { %v2373_v19 = vsel %vm2245_vm14, %v2107_v35, %v2309_v56 }
 0x6c3   :  { %v2374_v12 = vsel %vm2246_vm15, %v2109_v31, %v2310_v23  ;;  %v2429_v11 = vpack.c.bf16 %v2373_v19, %v2371_v6 }
 0x6c4   :  { %v2112_v47 = vpop.f32.mrb[96].mxu0  ;;  %v2430_v61 = vpack.c.bf16 %v2374_v12, %v2372_v10 }
 0x6c5   :  { %v2113_v33 = vadd.f32 %v2112_v47, %v5352_v48  ;;  %v2114_v15 = vpop.f32.mrb[97].mxu0 }
 0x6c6   :  { %v2115_v38 = vadd.f32 %v2114_v15, %v5354_v49  ;;  %v2116_v37 = vpop.f32.mrb[98].mxu0  ;;  %2646 = vmatprep.mubr.bf16.mxu1 %v2430_v61 }
 0x6c7   :  { %v2311_v22 = vmul.f32 0.01, %v2113_v33  ;;  %v2117_v63 = vadd.f32 %v2116_v37, %v5352_v48  ;;  %v2118_v17 = vpop.f32.mrb[99].mxu0  ;;  %2647 = vmatmul.mubr.bf16.gmra.mrb[60].mxu1 %v2429_v11  ;;  %vm2247_vm0 = vcmp.gt.f32.partialorder %v2113_v33, 0.0 }
 0x6c8   :  { %v2312_v44 = vmul.f32 0.01, %v2115_v38  ;;  %v2119_v30 = vadd.f32 %v2118_v17, %v5354_v49  ;;  %vm2248_vm1 = vcmp.gt.f32.partialorder %v2115_v38, 0.0 }
 0x6c9   :  { %vm2249_vm2 = vcmp.gt.f32.partialorder %v2117_v63, 0.0  ;;  %v2313_v8 = vmul.f32 0.01, %v2117_v63  ;;  %v2375_v18 = vsel %vm2247_vm0, %v2113_v33, %v2311_v22 }
 0x6ca   :  { %vm2250_vm3 = vcmp.gt.f32.partialorder %v2119_v30, 0.0  ;;  %v2314_v45 = vmul.f32 0.01, %v2119_v30  ;;  %v2376_v53 = vsel %vm2248_vm1, %v2115_v38, %v2312_v44 }
 0x6cb   :  { %v2377_v34 = vsel %vm2249_vm2, %v2117_v63, %v2313_v8 }
 0x6cc   :  { %v2122_v43 = vpop.f32.mrb[100].mxu0  ;;  %v2378_v28 = vsel %vm2250_vm3, %v2119_v30, %v2314_v45  ;;  %v2431_v0 = vpack.c.bf16 %v2377_v34, %v2375_v18 }
 0x6cd   :  { %v2123_v35 = vadd.f32 %v2122_v43, %v5352_v48  ;;  %v2124_v29 = vpop.f32.mrb[101].mxu0  ;;  %v2432_v3 = vpack.c.bf16 %v2378_v28, %v2376_v53 }
 0x6ce   :  { %v2125_v31 = vadd.f32 %v2124_v29, %v5354_v49  ;;  %v2126_v56 = vpop.f32.mrb[102].mxu0 }
 0x6cf   :  { %v2315_v23 = vmul.f32 0.01, %v2123_v35  ;;  %v2127_v6 = vadd.f32 %v2126_v56, %v5352_v48  ;;  %v2128_v19 = vpop.f32.mrb[103].mxu0  ;;  %2654 = vmatprep.mubr.bf16.mxu1 %v2432_v3  ;;  %vm2251_vm4 = vcmp.gt.f32.partialorder %v2123_v35, 0.0 }
 0x6d0   :  { %v2316_v10 = vmul.f32 0.01, %v2125_v31  ;;  %v2129_v12 = vadd.f32 %v2128_v19, %v5354_v49  ;;  %2655 = vmatmul.mubr.bf16.gmra.mrb[64].mxu1 %v2431_v0  ;;  %vm2252_vm5 = vcmp.gt.f32.partialorder %v2125_v31, 0.0 }
 0x6d1   :  { %vm2253_vm6 = vcmp.gt.f32.partialorder %v2127_v6, 0.0  ;;  %v2317_v11 = vmul.f32 0.01, %v2127_v6  ;;  %v2379_v61 = vsel %vm2251_vm4, %v2123_v35, %v2315_v23 }
 0x6d2   :  { %vm2254_vm7 = vcmp.gt.f32.partialorder %v2129_v12, 0.0  ;;  %v2318_v47 = vmul.f32 0.01, %v2129_v12  ;;  %v2380_v38 = vsel %vm2252_vm5, %v2125_v31, %v2316_v10 }
 0x6d3   :  { %v2381_v33 = vsel %vm2253_vm6, %v2127_v6, %v2317_v11 }
 0x6d4   :  { %v2132_v15 = vpop.f32.mrb[104].mxu0  ;;  %v2382_v37 = vsel %vm2254_vm7, %v2129_v12, %v2318_v47  ;;  %v2433_v22 = vpack.c.bf16 %v2381_v33, %v2379_v61 }
 0x6d5   :  { %v2133_v63 = vadd.f32 %v2132_v15, %v5352_v48  ;;  %v2134_v17 = vpop.f32.mrb[105].mxu0  ;;  %v2434_v44 = vpack.c.bf16 %v2382_v37, %v2380_v38 }
 0x6d6   :  { %v2135_v30 = vadd.f32 %v2134_v17, %v5354_v49  ;;  %v2136_v8 = vpop.f32.mrb[106].mxu0 }
 0x6d7   :  { %v2319_v45 = vmul.f32 0.01, %v2133_v63  ;;  %v2137_v18 = vadd.f32 %v2136_v8, %v5352_v48  ;;  %v2138_v34 = vpop.f32.mrb[107].mxu0  ;;  %2662 = vmatprep.mubr.bf16.mxu1 %v2434_v44  ;;  %vm2255_vm8 = vcmp.gt.f32.partialorder %v2133_v63, 0.0 }
 0x6d8   :  { %v2320_v43 = vmul.f32 0.01, %v2135_v30  ;;  %v2139_v53 = vadd.f32 %v2138_v34, %v5354_v49  ;;  %2663 = vmatmul.mubr.bf16.gmra.mrb[68].mxu1 %v2433_v22  ;;  %vm2256_vm9 = vcmp.gt.f32.partialorder %v2135_v30, 0.0 }
 0x6d9   :  { %vm2257_vm10 = vcmp.gt.f32.partialorder %v2137_v18, 0.0  ;;  %v2321_v28 = vmul.f32 0.01, %v2137_v18  ;;  %v2383_v35 = vsel %vm2255_vm8, %v2133_v63, %v2319_v45 }
 0x6da   :  { %vm2258_vm11 = vcmp.gt.f32.partialorder %v2139_v53, 0.0  ;;  %v2322_v0 = vmul.f32 0.01, %v2139_v53  ;;  %v2384_v31 = vsel %vm2256_vm9, %v2135_v30, %v2320_v43 }
 0x6db   :  { %v2385_v29 = vsel %vm2257_vm10, %v2137_v18, %v2321_v28 }
 0x6dc   :  { %v2142_v3 = vpop.f32.mrb[108].mxu0  ;;  %v2386_v56 = vsel %vm2258_vm11, %v2139_v53, %v2322_v0  ;;  %v2435_v23 = vpack.c.bf16 %v2385_v29, %v2383_v35 }
 0x6dd   :  { %v2143_v6 = vadd.f32 %v2142_v3, %v5352_v48  ;;  %v2144_v19 = vpop.f32.mrb[109].mxu0  ;;  %v2436_v10 = vpack.c.bf16 %v2386_v56, %v2384_v31 }
 0x6de   :  { %v2145_v12 = vadd.f32 %v2144_v19, %v5354_v49  ;;  %v2146_v11 = vpop.f32.mrb[110].mxu0 }
 0x6df   :  { %v2323_v47 = vmul.f32 0.01, %v2143_v6  ;;  %v2147_v61 = vadd.f32 %v2146_v11, %v5352_v48  ;;  %v2148_v33 = vpop.f32.mrb[111].mxu0  ;;  %2670 = vmatprep.mubr.bf16.mxu1 %v2436_v10  ;;  %vm2259_vm12 = vcmp.gt.f32.partialorder %v2143_v6, 0.0 }
 0x6e0   :  { %v2324_v15 = vmul.f32 0.01, %v2145_v12  ;;  %v2149_v38 = vadd.f32 %v2148_v33, %v5354_v49  ;;  %2671 = vmatmul.mubr.bf16.gmra.mrb[72].mxu1 %v2435_v23  ;;  %vm2260_vm13 = vcmp.gt.f32.partialorder %v2145_v12, 0.0 }
 0x6e1   :  { %vm2261_vm14 = vcmp.gt.f32.partialorder %v2147_v61, 0.0  ;;  %v2325_v37 = vmul.f32 0.01, %v2147_v61  ;;  %v2387_v63 = vsel %vm2259_vm12, %v2143_v6, %v2323_v47 }
 0x6e2   :  { %vm2262_vm15 = vcmp.gt.f32.partialorder %v2149_v38, 0.0  ;;  %v2326_v22 = vmul.f32 0.01, %v2149_v38  ;;  %v2388_v30 = vsel %vm2260_vm13, %v2145_v12, %v2324_v15 }
 0x6e3   :  { %v2389_v17 = vsel %vm2261_vm14, %v2147_v61, %v2325_v37 }
 0x6e4   :  { %v2152_v44 = vpop.f32.mrb[112].mxu0  ;;  %v2390_v8 = vsel %vm2262_vm15, %v2149_v38, %v2326_v22  ;;  %v2437_v45 = vpack.c.bf16 %v2389_v17, %v2387_v63 }
 0x6e5   :  { %v2153_v18 = vadd.f32 %v2152_v44, %v5352_v48  ;;  %v2154_v34 = vpop.f32.mrb[113].mxu0  ;;  %v2438_v43 = vpack.c.bf16 %v2390_v8, %v2388_v30 }
 0x6e6   :  { %v2155_v53 = vadd.f32 %v2154_v34, %v5354_v49  ;;  %v2156_v28 = vpop.f32.mrb[114].mxu0 }
 0x6e7   :  { %v2327_v0 = vmul.f32 0.01, %v2153_v18  ;;  %v2157_v35 = vadd.f32 %v2156_v28, %v5352_v48  ;;  %v2158_v29 = vpop.f32.mrb[115].mxu0  ;;  %2678 = vmatprep.mubr.bf16.mxu1 %v2438_v43  ;;  %vm2263_vm0 = vcmp.gt.f32.partialorder %v2153_v18, 0.0 }
 0x6e8   :  { %v2328_v3 = vmul.f32 0.01, %v2155_v53  ;;  %v2159_v31 = vadd.f32 %v2158_v29, %v5354_v49  ;;  %2679 = vmatmul.mubr.bf16.gmra.mrb[76].mxu1 %v2437_v45  ;;  %vm2264_vm1 = vcmp.gt.f32.partialorder %v2155_v53, 0.0 }
 0x6e9   :  { %vm2265_vm2 = vcmp.gt.f32.partialorder %v2157_v35, 0.0  ;;  %v2329_v56 = vmul.f32 0.01, %v2157_v35  ;;  %v2391_v6 = vsel %vm2263_vm0, %v2153_v18, %v2327_v0 }
 0x6ea   :  { %vm2266_vm3 = vcmp.gt.f32.partialorder %v2159_v31, 0.0  ;;  %v2330_v23 = vmul.f32 0.01, %v2159_v31  ;;  %v2392_v12 = vsel %vm2264_vm1, %v2155_v53, %v2328_v3 }
 0x6eb   :  { %v2393_v19 = vsel %vm2265_vm2, %v2157_v35, %v2329_v56 }
 0x6ec   :  { %v2162_v10 = vpop.f32.mrb[116].mxu0  ;;  %v2394_v11 = vsel %vm2266_vm3, %v2159_v31, %v2330_v23  ;;  %v2439_v47 = vpack.c.bf16 %v2393_v19, %v2391_v6 }
 0x6ed   :  { %v2163_v61 = vadd.f32 %v2162_v10, %v5352_v48  ;;  %v2164_v33 = vpop.f32.mrb[117].mxu0  ;;  %v2440_v15 = vpack.c.bf16 %v2394_v11, %v2392_v12 }
 0x6ee   :  { %v2165_v38 = vadd.f32 %v2164_v33, %v5354_v49  ;;  %v2166_v37 = vpop.f32.mrb[118].mxu0 }
 0x6ef   :  { %v2331_v22 = vmul.f32 0.01, %v2163_v61  ;;  %v2167_v63 = vadd.f32 %v2166_v37, %v5352_v48  ;;  %v2168_v17 = vpop.f32.mrb[119].mxu0  ;;  %2686 = vmatprep.mubr.bf16.mxu1 %v2440_v15  ;;  %vm2267_vm4 = vcmp.gt.f32.partialorder %v2163_v61, 0.0 }
 0x6f0   :  { %v2332_v44 = vmul.f32 0.01, %v2165_v38  ;;  %v2169_v30 = vadd.f32 %v2168_v17, %v5354_v49  ;;  %2687 = vmatmul.mubr.bf16.gmra.mrb[80].mxu1 %v2439_v47  ;;  %vm2268_vm5 = vcmp.gt.f32.partialorder %v2165_v38, 0.0 }
 0x6f1   :  { %vm2269_vm6 = vcmp.gt.f32.partialorder %v2167_v63, 0.0  ;;  %v2333_v8 = vmul.f32 0.01, %v2167_v63  ;;  %v2395_v18 = vsel %vm2267_vm4, %v2163_v61, %v2331_v22 }
 0x6f2   :  { %vm2270_vm7 = vcmp.gt.f32.partialorder %v2169_v30, 0.0  ;;  %v2334_v45 = vmul.f32 0.01, %v2169_v30  ;;  %v2396_v43 = vsel %vm2268_vm5, %v2165_v38, %v2332_v44 }
 0x6f3   :  { %v2397_v34 = vsel %vm2269_vm6, %v2167_v63, %v2333_v8 }
 0x6f4   :  { %v2398_v53 = vsel %vm2270_vm7, %v2169_v30, %v2334_v45  ;;  %v2441_v28 = vpack.c.bf16 %v2397_v34, %v2395_v18 }
 0x6f5   :  { %v2442_v0 = vpack.c.bf16 %v2398_v53, %v2396_v43 }
 0x6f7   :  { %2694 = vmatprep.mubr.bf16.mxu1 %v2442_v0 }
 0x6f8   :  { %2695 = vmatmul.mubr.bf16.gmra.mrb[84].mxu1 %v2441_v28 }
 0x73b   :  { %v2172_v35 = vpop.f32.mrb[120].mxu0 }
 0x73c   :  { %v2173_v29 = vadd.f32 %v2172_v35, %v5352_v48  ;;  %v2174_v3 = vpop.f32.mrb[121].mxu0 }
 0x73d   :  { %v2175_v31 = vadd.f32 %v2174_v3, %v5354_v49  ;;  %v2176_v56 = vpop.f32.mrb[122].mxu0 }
 0x73e   :  { %v2335_v23 = vmul.f32 0.01, %v2173_v29  ;;  %v2177_v6 = vadd.f32 %v2176_v56, %v5352_v48  ;;  %v2178_v19 = vpop.f32.mrb[123].mxu0  ;;  %vm2271_vm8 = vcmp.gt.f32.partialorder %v2173_v29, 0.0 }
 0x73f   :  { %v2336_v10 = vmul.f32 0.01, %v2175_v31  ;;  %v2179_v12 = vadd.f32 %v2178_v19, %v5354_v49  ;;  %vm2272_vm9 = vcmp.gt.f32.partialorder %v2175_v31, 0.0 }
 0x740   :  { %vm2273_vm10 = vcmp.gt.f32.partialorder %v2177_v6, 0.0  ;;  %v2337_v11 = vmul.f32 0.01, %v2177_v6  ;;  %v2399_v61 = vsel %vm2271_vm8, %v2173_v29, %v2335_v23 }
 0x741   :  { %vm2274_vm11 = vcmp.gt.f32.partialorder %v2179_v12, 0.0  ;;  %v2338_v47 = vmul.f32 0.01, %v2179_v12  ;;  %v2400_v38 = vsel %vm2272_vm9, %v2175_v31, %v2336_v10 }
 0x742   :  { %v2401_v33 = vsel %vm2273_vm10, %v2177_v6, %v2337_v11 }
 0x743   :  { %v2182_v15 = vpop.f32.mrb[124].mxu0  ;;  %v2402_v37 = vsel %vm2274_vm11, %v2179_v12, %v2338_v47  ;;  %v2443_v22 = vpack.c.bf16 %v2401_v33, %v2399_v61 }
 0x744   :  { %v2183_v63 = vadd.f32 %v2182_v15, %v5352_v48  ;;  %v2184_v17 = vpop.f32.mrb[125].mxu0  ;;  %v2444_v44 = vpack.c.bf16 %v2402_v37, %v2400_v38 }
 0x745   :  { %v2185_v30 = vadd.f32 %v2184_v17, %v5354_v49  ;;  %v2186_v8 = vpop.f32.mrb[126].mxu0 }
 0x746   :  { %v2339_v45 = vmul.f32 0.01, %v2183_v63  ;;  %v2187_v18 = vadd.f32 %v2186_v8, %v5352_v48  ;;  %v2188_v34 = vpop.f32.mrb[127].mxu0  ;;  %2702 = vmatprep.mubr.bf16.mxu1 %v2444_v44  ;;  %vm2275_vm12 = vcmp.gt.f32.partialorder %v2183_v63, 0.0 }
 0x747   :  { %v2340_v43 = vmul.f32 0.01, %v2185_v30  ;;  %v2189_v53 = vadd.f32 %v2188_v34, %v5354_v49  ;;  %2703 = vmatmul.mubr.bf16.gmra.mrb[88].mxu1 %v2443_v22  ;;  %vm2276_vm13 = vcmp.gt.f32.partialorder %v2185_v30, 0.0 }
 0x748   :  { %vm2277_vm14 = vcmp.gt.f32.partialorder %v2187_v18, 0.0  ;;  %v2341_v28 = vmul.f32 0.01, %v2187_v18  ;;  %v2403_v35 = vsel %vm2275_vm12, %v2183_v63, %v2339_v45 }
 0x749   :  { %vm2278_vm15 = vcmp.gt.f32.partialorder %v2189_v53, 0.0  ;;  %v2342_v0 = vmul.f32 0.01, %v2189_v53  ;;  %v2404_v31 = vsel %vm2276_vm13, %v2185_v30, %v2340_v43 }
 0x74a   :  { %v2405_v29 = vsel %vm2277_vm14, %v2187_v18, %v2341_v28 }
 0x74b   :  { %v2192_v3 = vpop.f32.mrb[128].mxu0  ;;  %v2406_v56 = vsel %vm2278_vm15, %v2189_v53, %v2342_v0  ;;  %v2445_v23 = vpack.c.bf16 %v2405_v29, %v2403_v35 }
 0x74c   :  { %v2193_v6 = vadd.f32 %v2192_v3, %v5352_v48  ;;  %v2194_v19 = vpop.f32.mrb[129].mxu0  ;;  %v2446_v10 = vpack.c.bf16 %v2406_v56, %v2404_v31 }
 0x74d   :  { %v2195_v12 = vadd.f32 %v2194_v19, %v5354_v49  ;;  %v2196_v11 = vpop.f32.mrb[130].mxu0 }
 0x74e   :  { %v2343_v47 = vmul.f32 0.01, %v2193_v6  ;;  %v2197_v61 = vadd.f32 %v2196_v11, %v5352_v48  ;;  %v2198_v33 = vpop.f32.mrb[131].mxu0  ;;  %2710 = vmatprep.mubr.bf16.mxu1 %v2446_v10  ;;  %vm2279_vm0 = vcmp.gt.f32.partialorder %v2193_v6, 0.0 }
 0x74f   :  { %v2344_v15 = vmul.f32 0.01, %v2195_v12  ;;  %v2199_v38 = vadd.f32 %v2198_v33, %v5354_v49  ;;  %2711 = vmatmul.mubr.bf16.gmra.mrb[92].mxu1 %v2445_v23  ;;  %vm2280_vm1 = vcmp.gt.f32.partialorder %v2195_v12, 0.0 }
 0x750   :  { %vm2281_vm2 = vcmp.gt.f32.partialorder %v2197_v61, 0.0  ;;  %v2345_v37 = vmul.f32 0.01, %v2197_v61  ;;  %v2407_v63 = vsel %vm2279_vm0, %v2193_v6, %v2343_v47 }
 0x751   :  { %vm2282_vm3 = vcmp.gt.f32.partialorder %v2199_v38, 0.0  ;;  %v2346_v22 = vmul.f32 0.01, %v2199_v38  ;;  %v2408_v30 = vsel %vm2280_vm1, %v2195_v12, %v2344_v15 }
 0x752   :  { %v2409_v17 = vsel %vm2281_vm2, %v2197_v61, %v2345_v37 }
 0x753   :  { %v2202_v44 = vpop.f32.mrb[132].mxu0  ;;  %v2410_v8 = vsel %vm2282_vm3, %v2199_v38, %v2346_v22  ;;  %v2447_v45 = vpack.c.bf16 %v2409_v17, %v2407_v63 }
 0x754   :  { %v2203_v18 = vadd.f32 %v2202_v44, %v5352_v48  ;;  %v2204_v34 = vpop.f32.mrb[133].mxu0  ;;  %v2448_v43 = vpack.c.bf16 %v2410_v8, %v2408_v30 }
 0x755   :  { %v2205_v53 = vadd.f32 %v2204_v34, %v5354_v49  ;;  %v2206_v28 = vpop.f32.mrb[134].mxu0 }
 0x756   :  { %v2347_v0 = vmul.f32 0.01, %v2203_v18  ;;  %v2207_v35 = vadd.f32 %v2206_v28, %v5352_v48  ;;  %v2208_v29 = vpop.f32.mrb[135].mxu0  ;;  %2718 = vmatprep.mubr.bf16.mxu1 %v2448_v43  ;;  %vm2283_vm4 = vcmp.gt.f32.partialorder %v2203_v18, 0.0 }
 0x757   :  { %v2348_v3 = vmul.f32 0.01, %v2205_v53  ;;  %v2209_v31 = vadd.f32 %v2208_v29, %v5354_v49  ;;  %2719 = vmatmul.mubr.bf16.gmra.mrb[96].mxu1 %v2447_v45  ;;  %vm2284_vm5 = vcmp.gt.f32.partialorder %v2205_v53, 0.0 }
 0x758   :  { %vm2285_vm6 = vcmp.gt.f32.partialorder %v2207_v35, 0.0  ;;  %v2349_v56 = vmul.f32 0.01, %v2207_v35  ;;  %v2411_v6 = vsel %vm2283_vm4, %v2203_v18, %v2347_v0 }
 0x759   :  { %vm2286_vm7 = vcmp.gt.f32.partialorder %v2209_v31, 0.0  ;;  %v2350_v23 = vmul.f32 0.01, %v2209_v31  ;;  %v2412_v10 = vsel %vm2284_vm5, %v2205_v53, %v2348_v3 }
 0x75a   :  { %v2413_v19 = vsel %vm2285_vm6, %v2207_v35, %v2349_v56 }
 0x75b   :  { %v2414_v12 = vsel %vm2286_vm7, %v2209_v31, %v2350_v23  ;;  %v2449_v11 = vpack.c.bf16 %v2413_v19, %v2411_v6 }
 0x75c   :  { %v2212_v47 = vpop.f32.mrb[136].mxu0  ;;  %v2450_v61 = vpack.c.bf16 %v2414_v12, %v2412_v10 }
 0x75d   :  { %v2213_v33 = vadd.f32 %v2212_v47, %v5352_v48  ;;  %v2214_v15 = vpop.f32.mrb[137].mxu0 }
 0x75e   :  { %v2215_v38 = vadd.f32 %v2214_v15, %v5354_v49  ;;  %v2216_v37 = vpop.f32.mrb[138].mxu0  ;;  %2726 = vmatprep.mubr.bf16.mxu1 %v2450_v61 }
 0x75f   :  { %v2351_v22 = vmul.f32 0.01, %v2213_v33  ;;  %v2217_v63 = vadd.f32 %v2216_v37, %v5352_v48  ;;  %v2218_v17 = vpop.f32.mrb[139].mxu0  ;;  %2727 = vmatmul.mubr.bf16.gmra.mrb[100].mxu1 %v2449_v11  ;;  %vm2287_vm8 = vcmp.gt.f32.partialorder %v2213_v33, 0.0 }
 0x760   :  { %v2352_v44 = vmul.f32 0.01, %v2215_v38  ;;  %v2219_v30 = vadd.f32 %v2218_v17, %v5354_v49  ;;  %vm2288_vm9 = vcmp.gt.f32.partialorder %v2215_v38, 0.0 }
 0x761   :  { %vm2289_vm10 = vcmp.gt.f32.partialorder %v2217_v63, 0.0  ;;  %v2353_v8 = vmul.f32 0.01, %v2217_v63  ;;  %v2415_v18 = vsel %vm2287_vm8, %v2213_v33, %v2351_v22 }
 0x762   :  { %vm2290_vm11 = vcmp.gt.f32.partialorder %v2219_v30, 0.0  ;;  %v2354_v45 = vmul.f32 0.01, %v2219_v30  ;;  %v2416_v53 = vsel %vm2288_vm9, %v2215_v38, %v2352_v44 }
 0x763   :  { %v2417_v34 = vsel %vm2289_vm10, %v2217_v63, %v2353_v8  ;;  %v5423_v63 = vld [vmem:[%s5874_s8] ss:$0 sm:$0xff] }
 0x764   :  { %v2222_v43 = vpop.f32.mrb[140].mxu0  ;;  %v2418_v28 = vsel %vm2290_vm11, %v2219_v30, %v2354_v45  ;;  %v2451_v0 = vpack.c.bf16 %v2417_v34, %v2415_v18 }
 0x765   :  { %v2223_v35 = vadd.f32 %v2222_v43, %v5352_v48  ;;  %v2224_v29 = vpop.f32.mrb[141].mxu0  ;;  %v2452_v3 = vpack.c.bf16 %v2418_v28, %v2416_v53 }
 0x766   :  { %v2225_v31 = vadd.f32 %v2224_v29, %v5354_v49  ;;  %v2226_v56 = vpop.f32.mrb[142].mxu0 }
 0x767   :  { %v2355_v23 = vmul.f32 0.01, %v2223_v35  ;;  %v2227_v6 = vadd.f32 %v2226_v56, %v5352_v48  ;;  %v2228_v19 = vpop.f32.mrb[143].mxu0  ;;  %2734 = vmatprep.mubr.bf16.mxu1 %v2452_v3  ;;  %vm2291_vm12 = vcmp.gt.f32.partialorder %v2223_v35, 0.0 }
 0x768   :  { %v2356_v10 = vmul.f32 0.01, %v2225_v31  ;;  %v2229_v12 = vadd.f32 %v2228_v19, %v5354_v49  ;;  %2735 = vmatmul.mubr.bf16.gmra.mrb[104].mxu1 %v2451_v0  ;;  %vm2292_vm13 = vcmp.gt.f32.partialorder %v2225_v31, 0.0 }
 0x769   :  { %vm2293_vm14 = vcmp.gt.f32.partialorder %v2227_v6, 0.0  ;;  %v2357_v11 = vmul.f32 0.01, %v2227_v6  ;;  %v2419_v61 = vsel %vm2291_vm12, %v2223_v35, %v2355_v23 }
 0x76a   :  { %vm2294_vm15 = vcmp.gt.f32.partialorder %v2229_v12, 0.0  ;;  %v2358_v47 = vmul.f32 0.01, %v2229_v12  ;;  %v2420_v15 = vsel %vm2292_vm13, %v2225_v31, %v2356_v10 }
 0x76b   :  { %v2421_v33 = vsel %vm2293_vm14, %v2227_v6, %v2357_v11 }
 0x76c   :  { %v2422_v38 = vsel %vm2294_vm15, %v2229_v12, %v2358_v47  ;;  %v2453_v37 = vpack.c.bf16 %v2421_v33, %v2419_v61 }
 0x76d   :  { %v2454_v22 = vpack.c.bf16 %v2422_v38, %v2420_v15 }
 0x76f   :  { %2742 = vmatprep.mubr.bf16.mxu1 %v2454_v22 }
 0x770   :  { %2743 = vmatmul.mubr.bf16.gmra.mrb[108].mxu1 %v2453_v37 }
 0x782   :  { %v3494_v48 = vpop.f32.mrb[48].mxu1 }
 0x783   :  { %v3495_v49 = vpop.f32.mrb[49].mxu1 }
 0x784   :  { %v3496_v17 = vadd.f32 %v3495_v49, %v3494_v48  ;;  %v3497_v44 = vpop.f32.mrb[50].mxu1 }
 0x785   :  { %v3498_v30 = vpop.f32.mrb[51].mxu1 }
 0x786   :  { %v2625_v8 = vadd.f32 %v3496_v17, %v5423_v63  ;;  %v3499_v45 = vadd.f32 %v3498_v30, %v3497_v44 }
 0x788   :  { %v2628_v18 = vadd.f32 %v3499_v45, %v5423_v63  ;;  %v5428_v34 = vadd.f32 %v2625_v8, %v5107_v26 }
 0x78a   :  { %2785 = vadd.xlane.f32.xlu0 %v5428_v34  ;;  %v3500_v43 = vpop.f32.mrb[52].mxu1  ;;  %v5432_v53 = vadd.f32 %v2628_v18, %v5110_v52 }
 0x78b   :  { %v3501_v28 = vpop.f32.mrb[53].mxu1 }
 0x78c   :  { %v3502_v0 = vadd.f32 %v3501_v28, %v3500_v43  ;;  %v3503_v35 = vpop.f32.mrb[54].mxu1  ;;  %2787 = vadd.xlane.f32.xlu1 %v5432_v53 }
 0x78d   :  { %v3504_v29 = vpop.f32.mrb[55].mxu1 }
 0x78e   :  { %v2633_v3 = vadd.f32 %v3502_v0, %v5423_v63  ;;  %v3505_v31 = vadd.f32 %v3504_v29, %v3503_v35 }
 0x790   :  { %v2636_v56 = vadd.f32 %v3505_v31, %v5423_v63  ;;  %v5438_v26 = vadd.f32 %v2633_v3, %v5130_v2 }
 0x792   :  { %2789 = vadd.xlane.f32.xlu0 %v5438_v26  ;;  %v3506_v23 = vpop.f32.mrb[56].mxu1  ;;  %v5442_v52 = vadd.f32 %v2636_v56, %v5133_v25 }
 0x793   :  { %v3507_v6 = vpop.f32.mrb[57].mxu1 }
 0x794   :  { %v3508_v19 = vadd.f32 %v3507_v6, %v3506_v23  ;;  %v3509_v10 = vpop.f32.mrb[58].mxu1  ;;  %2791 = vadd.xlane.f32.xlu1 %v5442_v52 }
 0x795   :  { %v3510_v12 = vpop.f32.mrb[59].mxu1 }
 0x796   :  { %v2641_v11 = vadd.f32 %v3508_v19, %v5423_v63  ;;  %v3511_v47 = vadd.f32 %v3510_v12, %v3509_v10 }
 0x798   :  { %v2644_v61 = vadd.f32 %v3511_v47, %v5423_v63  ;;  %v5448_v2 = vadd.f32 %v2641_v11, %v5153_v62 }
 0x79a   :  { %2793 = vadd.xlane.f32.xlu0 %v5448_v2  ;;  %v3512_v33 = vpop.f32.mrb[60].mxu1  ;;  %v5452_v25 = vadd.f32 %v2644_v61, %v5156_v40 }
 0x79b   :  { %v3513_v15 = vpop.f32.mrb[61].mxu1 }
 0x79c   :  { %v3514_v38 = vadd.f32 %v3513_v15, %v3512_v33  ;;  %v3515_v37 = vpop.f32.mrb[62].mxu1  ;;  %2795 = vadd.xlane.f32.xlu1 %v5452_v25 }
 0x79d   :  { %v3516_v22 = vpop.f32.mrb[63].mxu1 }
 0x79e   :  { %v2649_v48 = vadd.f32 %v3514_v38, %v5423_v63  ;;  %v3517_v49 = vadd.f32 %v3516_v22, %v3515_v37 }
 0x7a0   :  { %v2652_v17 = vadd.f32 %v3517_v49, %v5423_v63  ;;  %v5458_v62 = vadd.f32 %v2649_v48, %v5176_v5 }
 0x7a2   :  { %2797 = vadd.xlane.f32.xlu0 %v5458_v62  ;;  %v5462_v44 = vadd.f32 %v2652_v17, %v5179_v27 }
 0x7a3   :  { %v3518_v40 = vpop.f32.mrb[64].mxu1 }
 0x7a4   :  { %v3519_v30 = vpop.f32.mrb[65].mxu1  ;;  %2799 = vadd.xlane.f32.xlu1 %v5462_v44 }
 0x7a5   :  { %v3520_v8 = vadd.f32 %v3519_v30, %v3518_v40  ;;  %v3521_v45 = vpop.f32.mrb[66].mxu1 }
 0x7a6   :  { %v3522_v18 = vpop.f32.mrb[67].mxu1 }
 0x7a7   :  { %v2657_v43 = vadd.f32 %v3520_v8, %v5423_v63  ;;  %v3523_v28 = vadd.f32 %v3522_v18, %v3521_v45 }
 0x7a9   :  { %v2660_v0 = vadd.f32 %v3523_v28, %v5423_v63  ;;  %v5468_v5 = vadd.f32 %v2657_v43, %v5199_v14 }
 0x7ab   :  { %2801 = vadd.xlane.f32.xlu0 %v5468_v5  ;;  %v3524_v35 = vpop.f32.mrb[68].mxu1  ;;  %v5472_v27 = vadd.f32 %v2660_v0, %v5202_v39 }
 0x7ac   :  { %v3525_v29 = vpop.f32.mrb[69].mxu1 }
 0x7ad   :  { %v3526_v3 = vadd.f32 %v3525_v29, %v3524_v35  ;;  %v3527_v31 = vpop.f32.mrb[70].mxu1  ;;  %2803 = vadd.xlane.f32.xlu1 %v5472_v27 }
 0x7ae   :  { %v3528_v56 = vpop.f32.mrb[71].mxu1 }
 0x7af   :  { %v2665_v23 = vadd.f32 %v3526_v3, %v5423_v63  ;;  %v3529_v6 = vadd.f32 %v3528_v56, %v3527_v31 }
 0x7b1   :  { %v2668_v19 = vadd.f32 %v3529_v6, %v5423_v63  ;;  %v5478_v14 = vadd.f32 %v2665_v23, %v5212_v13 }
 0x7b3   :  { %2805 = vadd.xlane.f32.xlu0 %v5478_v14  ;;  %v3530_v10 = vpop.f32.mrb[72].mxu1  ;;  %v5482_v39 = vadd.f32 %v2668_v19, %v5215_v41 }
 0x7b4   :  { %v3531_v12 = vpop.f32.mrb[73].mxu1 }
 0x7b5   :  { %v3532_v11 = vadd.f32 %v3531_v12, %v3530_v10  ;;  %2807 = vadd.xlane.f32.xlu1 %v5482_v39  ;;  %v3533_v47 = vpop.f32.mrb[74].mxu1 }
 0x7b6   :  { %v3534_v61 = vpop.f32.mrb[75].mxu1 }
 0x7b7   :  { %v2673_v33 = vadd.f32 %v3532_v11, %v5423_v63  ;;  %v3535_v15 = vadd.f32 %v3534_v61, %v3533_v47 }
 0x7b9   :  { %v2676_v38 = vadd.f32 %v3535_v15, %v5423_v63  ;;  %v5488_v13 = vadd.f32 %v2673_v33, %v5225_v16 }
 0x7bb   :  { %2809 = vadd.xlane.f32.xlu0 %v5488_v13  ;;  %v3536_v37 = vpop.f32.mrb[76].mxu1  ;;  %v5492_v41 = vadd.f32 %v2676_v38, %v5228_v36 }
 0x7bc   :  { %v3537_v22 = vpop.f32.mrb[77].mxu1 }
 0x7bd   :  { %v3538_v48 = vadd.f32 %v3537_v22, %v3536_v37  ;;  %2811 = vadd.xlane.f32.xlu1 %v5492_v41  ;;  %v3539_v49 = vpop.f32.mrb[78].mxu1 }
 0x7be   :  { %v3540_v17 = vpop.f32.mrb[79].mxu1 }
 0x7bf   :  { %v2681_v40 = vadd.f32 %v3538_v48, %v5423_v63  ;;  %v3541_v30 = vadd.f32 %v3540_v17, %v3539_v49 }
 0x7c1   :  { %v2684_v8 = vadd.f32 %v3541_v30, %v5423_v63  ;;  %v5498_v16 = vadd.f32 %v2681_v40, %v5241_v20 }
 0x7c3   :  { %2813 = vadd.xlane.f32.xlu0 %v5498_v16  ;;  %v3542_v45 = vpop.f32.mrb[80].mxu1  ;;  %v5502_v36 = vadd.f32 %v2684_v8, %v5238_v57 }
 0x7c4   :  { %v3543_v18 = vpop.f32.mrb[81].mxu1 }
 0x7c5   :  { %v3544_v43 = vadd.f32 %v3543_v18, %v3542_v45  ;;  %2815 = vadd.xlane.f32.xlu1 %v5502_v36  ;;  %v3545_v28 = vpop.f32.mrb[82].mxu1 }
 0x7c6   :  { %v3546_v0 = vpop.f32.mrb[83].mxu1 }
 0x7c7   :  { %v2689_v35 = vadd.f32 %v3544_v43, %v5423_v63  ;;  %v3547_v29 = vadd.f32 %v3546_v0, %v3545_v28 }
 0x7c9   :  { %v2692_v3 = vadd.f32 %v3547_v29, %v5423_v63  ;;  %v5508_v20 = vadd.f32 %v2689_v35, %v5255_v4 }
 0x7cb   :  { %2817 = vadd.xlane.f32.xlu0 %v5508_v20  ;;  %v3548_v31 = vpop.f32.mrb[84].mxu1  ;;  %v5512_v57 = vadd.f32 %v2692_v3, %v5251_v58 }
 0x7cc   :  { %v3549_v56 = vpop.f32.mrb[85].mxu1 }
 0x7cd   :  { %v3550_v23 = vadd.f32 %v3549_v56, %v3548_v31  ;;  %2819 = vadd.xlane.f32.xlu1 %v5512_v57  ;;  %v3551_v6 = vpop.f32.mrb[86].mxu1 }
 0x7ce   :  { %v3552_v19 = vpop.f32.mrb[87].mxu1 }
 0x7cf   :  { %v2697_v10 = vadd.f32 %v3550_v23, %v5423_v63  ;;  %v3553_v12 = vadd.f32 %v3552_v19, %v3551_v6 }
 0x7d1   :  { %v2700_v11 = vadd.f32 %v3553_v12, %v5423_v63  ;;  %v5518_v4 = vadd.f32 %v2697_v10, %v5267_v42 }
 0x7d3   :  { %2821 = vadd.xlane.f32.xlu0 %v5518_v4  ;;  %v5522_v47 = vadd.f32 %v2700_v11, %v5264_v9 }
 0x7d5   :  { %2823 = vadd.xlane.f32.xlu1 %v5522_v47 }
 0x81a   :  { %v3554_v58 = vpop.f32.mrb[88].mxu1 }
 0x81b   :  { %v3555_v61 = vpop.f32.mrb[89].mxu1 }
 0x81c   :  { %v3556_v33 = vadd.f32 %v3555_v61, %v3554_v58  ;;  %v3557_v15 = vpop.f32.mrb[90].mxu1 }
 0x81d   :  { %v3558_v38 = vpop.f32.mrb[91].mxu1 }
 0x81e   :  { %v2705_v37 = vadd.f32 %v3556_v33, %v5423_v63  ;;  %v3559_v22 = vadd.f32 %v3558_v38, %v3557_v15 }
 0x820   :  { %v2708_v48 = vadd.f32 %v3559_v22, %v5423_v63  ;;  %v5528_v42 = vadd.f32 %v2705_v37, %v5277_v60 }
 0x822   :  { %2825 = vadd.xlane.f32.xlu0 %v5528_v42  ;;  %v3560_v49 = vpop.f32.mrb[92].mxu1  ;;  %v5532_v9 = vadd.f32 %v2708_v48, %v5280_v59 }
 0x823   :  { %v3561_v17 = vpop.f32.mrb[93].mxu1 }
 0x824   :  { %v3562_v40 = vadd.f32 %v3561_v17, %v3560_v49  ;;  %2827 = vadd.xlane.f32.xlu1 %v5532_v9  ;;  %v3563_v30 = vpop.f32.mrb[94].mxu1 }
 0x825   :  { %v3564_v8 = vpop.f32.mrb[95].mxu1 }
 0x826   :  { %v2713_v45 = vadd.f32 %v3562_v40, %v5423_v63  ;;  %v3565_v18 = vadd.f32 %v3564_v8, %v3563_v30  ;;  %v2786_v30 = vpop.xlane.xlu0 %2785 }
 0x828   :  { %v2716_v43 = vadd.f32 %v3565_v18, %v5423_v63  ;;  %v5538_v60 = vadd.f32 %v2713_v45, %v5290_v54  ;;  %v2788_v45 = vpop.xlane.xlu1 %2787 }
 0x82a   :  { %2829 = vadd.xlane.f32.xlu0 %v5538_v60  ;;  %v3566_v28 = vpop.f32.mrb[96].mxu1  ;;  %v5542_v59 = vadd.f32 %v2716_v43, %v5293_v55  ;;  %v2849_v43 = vmul.f32 0.0078125, %v2786_v30 }
 0x82b   :  { %v3567_v0 = vpop.f32.mrb[97].mxu1 }
 0x82c   :  { %v3568_v35 = vadd.f32 %v3567_v0, %v3566_v28  ;;  %2831 = vadd.xlane.f32.xlu1 %v5542_v59  ;;  %v3569_v29 = vpop.f32.mrb[98].mxu1 }
 0x82d   :  { %v3570_v3 = vpop.f32.mrb[99].mxu1 }
 0x82e   :  { %v2721_v31 = vadd.f32 %v3568_v35, %v5423_v63  ;;  %v3571_v56 = vadd.f32 %v3570_v3, %v3569_v29  ;;  %v2790_v35 = vpop.xlane.xlu0 %2789  ;;  %v2850_v3 = vmul.f32 0.0078125, %v2788_v45 }
 0x830   :  { %v2724_v23 = vadd.f32 %v3571_v56, %v5423_v63  ;;  %v5548_v54 = vadd.f32 %v2721_v31, %v5303_v51  ;;  %v2792_v56 = vpop.xlane.xlu1 %2791 }
 0x832   :  { %2833 = vadd.xlane.f32.xlu0 %v5548_v54  ;;  %v3572_v6 = vpop.f32.mrb[100].mxu1  ;;  %v5552_v55 = vadd.f32 %v2724_v23, %v5306_v46  ;;  %v5577_v23 = vsub.f32 %v5428_v34, %v2849_v43 }
 0x833   :  { %v3573_v19 = vpop.f32.mrb[101].mxu1 }
 0x834   :  { %v3574_v10 = vadd.f32 %v3573_v19, %v3572_v6  ;;  %2835 = vadd.xlane.f32.xlu1 %v5552_v55  ;;  %v3575_v12 = vpop.f32.mrb[102].mxu1  ;;  %v2851_v6 = vmul.f32 0.0078125, %v2790_v35 }
 0x835   :  { %v3576_v11 = vpop.f32.mrb[103].mxu1 }
 0x836   :  { %v2729_v58 = vadd.f32 %v3574_v10, %v5423_v63  ;;  %v3577_v61 = vadd.f32 %v3576_v11, %v3575_v12  ;;  %v2794_v10 = vpop.xlane.xlu0 %2793  ;;  %v5584_v12 = vsub.f32 %v5432_v53, %v2850_v3  ;;  %v2852_v11 = vmul.f32 0.0078125, %v2792_v56 }
 0x837   :  { %v5591_v34 = vsub.f32 %v5438_v26, %v2851_v6 }
 0x838   :  { %v2732_v33 = vadd.f32 %v3577_v61, %v5423_v63  ;;  %v5558_v51 = vadd.f32 %v2729_v58, %v5316_v50  ;;  %v2796_v61 = vpop.xlane.xlu1 %2795  ;;  %v5597_v53 = vsub.f32 %v5442_v52, %v2852_v11 }
 0x83a   :  { %2837 = vadd.xlane.f32.xlu0 %v5558_v51  ;;  %v5562_v15 = vadd.f32 %v2732_v33, %v5319_v1  ;;  %v2853_v33 = vmul.f32 0.0078125, %v2794_v10 }
 0x83b   :  { %v3578_v46 = vpop.f32.mrb[104].mxu1 }
 0x83c   :  { %v3579_v38 = vpop.f32.mrb[105].mxu1  ;;  %2839 = vadd.xlane.f32.xlu1 %v5562_v15 }
 0x83d   :  { %v3580_v37 = vadd.f32 %v3579_v38, %v3578_v46  ;;  %v3581_v22 = vpop.f32.mrb[106].mxu1  ;;  %v2854_v46 = vmul.f32 0.0078125, %v2796_v61  ;;  %v2800_v38 = vpop.xlane.xlu1 %2799 }
 0x83e   :  { %v3582_v48 = vpop.f32.mrb[107].mxu1  ;;  %v2856_v52 = vmul.f32 0.0078125, %v2800_v38 }
 0x83f   :  { %v2737_v49 = vadd.f32 %v3580_v37, %v5423_v63  ;;  %v3583_v17 = vadd.f32 %v3582_v48, %v3581_v22  ;;  %v5602_v37 = vsub.f32 %v5448_v2, %v2853_v33  ;;  %v2915_v22 = vmul.f32 %v5591_v34, %v5591_v34 }
 0x841   :  { %v2740_v40 = vadd.f32 %v3583_v17, %v5423_v63  ;;  %v5568_v50 = vadd.f32 %v2737_v49, %v5329_v7  ;;  %v5607_v49 = vsub.f32 %v5452_v25, %v2854_v46  ;;  %v2916_v17 = vmul.f32 %v5597_v53, %v5597_v53 }
 0x843   :  { %2841 = vadd.xlane.f32.xlu0 %v5568_v50  ;;  %v3584_v1 = vpop.f32.mrb[108].mxu1  ;;  %v5572_v8 = vadd.f32 %v2740_v40, %v5332_v21  ;;  %v2804_v40 = vpop.xlane.xlu1 %2803  ;;  %v2918_v43 = vmul.f32 %v5607_v49, %v5607_v49 }
 0x844   :  { %v3585_v18 = vpop.f32.mrb[109].mxu1  ;;  %v2858_v25 = vmul.f32 0.0078125, %v2804_v40 }
 0x845   :  { %v3586_v28 = vadd.f32 %v3585_v18, %v3584_v1  ;;  %2843 = vadd.xlane.f32.xlu1 %v5572_v8  ;;  %v3587_v0 = vpop.f32.mrb[110].mxu1  ;;  %v2917_v1 = vmul.f32 %v5602_v37, %v5602_v37  ;;  %v5617_v18 = vsub.f32 %v5462_v44, %v2856_v52 }
 0x846   :  { %v3588_v29 = vpop.f32.mrb[111].mxu1  ;;  %v5627_v3 = vsub.f32 %v5472_v27, %v2858_v25 }
 0x847   :  { %v2745_v7 = vadd.f32 %v3586_v28, %v5423_v63  ;;  %v3589_v31 = vadd.f32 %v3588_v29, %v3587_v0  ;;  %v2808_v28 = vpop.xlane.xlu1 %2807 }
 0x848   :  { %v2860_v44 = vmul.f32 0.0078125, %v2808_v28  ;;  %v2922_v11 = vmul.f32 %v5627_v3, %v5627_v3 }
 0x849   :  { %v2748_v21 = vadd.f32 %v3589_v31, %v5423_v63  ;;  %v5581_v19 = vadd.f32 %v2745_v7, %v5342_v24  ;;  %v2913_v24 = vmul.f32 %v5577_v23, %v5577_v23  ;;  %v2798_v63 = vpop.xlane.xlu0 %2797  ;;  %v2920_v7 = vmul.f32 %v5617_v18, %v5617_v18 }
 0x84a   :  { %v2855_v26 = vmul.f32 0.0078125, %v2798_v63  ;;  %v5637_v10 = vsub.f32 %v5482_v39, %v2860_v44 }
 0x84b   :  { %2845 = vadd.xlane.f32.xlu0 %v5581_v19  ;;  %v5588_v58 = vadd.f32 %v2748_v21, %v5345_v32  ;;  %v2914_v32 = vmul.f32 %v5584_v12, %v5584_v12  ;;  %v2812_v31 = vpop.xlane.xlu1 %2811 }
 0x84c   :  { %v5612_v30 = vsub.f32 %v5458_v62, %v2855_v26  ;;  %v2862_v27 = vmul.f32 0.0078125, %v2812_v31 }
 0x84d   :  { %2847 = vadd.xlane.f32.xlu1 %v5588_v58  ;;  %v2802_v48 = vpop.xlane.xlu0 %2801 }
 0x84e   :  { %v2857_v2 = vmul.f32 0.0078125, %v2802_v48  ;;  %v2919_v35 = vmul.f32 %v5612_v30, %v5612_v30  ;;  %v5647_v46 = vsub.f32 %v5492_v41, %v2862_v27 }
 0x84f   :  { %2945 = vadd.xlane.f32.xlu0 %v2913_v24 }
 0x850   :  { %v5622_v0 = vsub.f32 %v5468_v5, %v2857_v2 }
 0x851   :  { %2947 = vadd.xlane.f32.xlu1 %v2914_v32  ;;  %v2806_v45 = vpop.xlane.xlu0 %2805  ;;  %v2924_v32 = vmul.f32 %v5637_v10, %v5637_v10 }
 0x852   :  { %v2859_v62 = vmul.f32 0.0078125, %v2806_v45  ;;  %v2921_v6 = vmul.f32 %v5622_v0, %v5622_v0  ;;  %v2816_v61 = vpop.xlane.xlu1 %2815 }
 0x853   :  { %2949 = vadd.xlane.f32.xlu0 %v2915_v22  ;;  %v2864_v39 = vmul.f32 0.0078125, %v2816_v61 }
 0x854   :  { %v5632_v56 = vsub.f32 %v5478_v14, %v2859_v62 }
 0x855   :  { %2951 = vadd.xlane.f32.xlu1 %v2916_v17  ;;  %v2810_v29 = vpop.xlane.xlu0 %2809  ;;  %v5657_v52 = vsub.f32 %v5502_v36, %v2864_v39  ;;  %v2926_v17 = vmul.f32 %v5647_v46, %v5647_v46 }
 0x856   :  { %v2861_v5 = vmul.f32 0.0078125, %v2810_v29  ;;  %v2923_v24 = vmul.f32 %v5632_v56, %v5632_v56 }
 0x857   :  { %2953 = vadd.xlane.f32.xlu0 %v2917_v1  ;;  %v2928_v36 = vmul.f32 %v5657_v52, %v5657_v52 }
 0x858   :  { %v5642_v33 = vsub.f32 %v5488_v13, %v2861_v5 }
 0x859   :  { %2955 = vadd.xlane.f32.xlu1 %v2918_v43  ;;  %v2814_v21 = vpop.xlane.xlu0 %2813 }
 0x85a   :  { %v2863_v14 = vmul.f32 0.0078125, %v2814_v21  ;;  %v2820_v38 = vpop.xlane.xlu1 %2819  ;;  %v2925_v22 = vmul.f32 %v5642_v33, %v5642_v33 }
 0x85b   :  { %2957 = vadd.xlane.f32.xlu0 %v2919_v35  ;;  %v2866_v41 = vmul.f32 0.0078125, %v2820_v38 }
 0x85c   :  { %v5652_v26 = vsub.f32 %v5498_v16, %v2863_v14 }
 0x85d   :  { %2959 = vadd.xlane.f32.xlu1 %v2920_v7  ;;  %v2818_v63 = vpop.xlane.xlu0 %2817  ;;  %v5667_v45 = vsub.f32 %v5512_v57, %v2866_v41 }
 0x85e   :  { %v2865_v13 = vmul.f32 0.0078125, %v2818_v63  ;;  %v2927_v1 = vmul.f32 %v5652_v26, %v5652_v26 }
 0x85f   :  { %2961 = vadd.xlane.f32.xlu0 %v2921_v6  ;;  %v2930_v57 = vmul.f32 %v5667_v45, %v5667_v45 }
 0x860   :  { %v5662_v2 = vsub.f32 %v5508_v20, %v2865_v13 }
 0x861   :  { %2963 = vadd.xlane.f32.xlu1 %v2922_v11  ;;  %v2822_v48 = vpop.xlane.xlu0 %2821 }
 0x862   :  { %v2824_v40 = vpop.xlane.xlu1 %2823  ;;  %v2867_v16 = vmul.f32 0.0078125, %v2822_v48  ;;  %v2929_v20 = vmul.f32 %v5662_v2, %v5662_v2 }
 0x863   :  { %2965 = vadd.xlane.f32.xlu0 %v2923_v24  ;;  %v2868_v25 = vmul.f32 0.0078125, %v2824_v40 }
 0x864   :  { %v5672_v43 = vsub.f32 %v5518_v4, %v2867_v16 }
 0x865   :  { %2967 = vadd.xlane.f32.xlu1 %v2924_v32  ;;  %v5677_v28 = vsub.f32 %v5522_v47, %v2868_v25 }
 0x866   :  { %v2931_v62 = vmul.f32 %v5672_v43, %v5672_v43 }
 0x867   :  { %2969 = vadd.xlane.f32.xlu0 %v2925_v22  ;;  %v2932_v4 = vmul.f32 %v5677_v28, %v5677_v28 }
 0x869   :  { %2971 = vadd.xlane.f32.xlu1 %v2926_v17 }
 0x86b   :  { %2973 = vadd.xlane.f32.xlu0 %v2927_v1 }
 0x86d   :  { %2975 = vadd.xlane.f32.xlu1 %v2928_v36 }
 0x86f   :  { %2977 = vadd.xlane.f32.xlu0 %v2929_v20 }
 0x871   :  { %2979 = vadd.xlane.f32.xlu1 %v2930_v57 }
 0x873   :  { %2981 = vadd.xlane.f32.xlu0 %v2931_v62 }
 0x875   :  { %2983 = vadd.xlane.f32.xlu1 %v2932_v4 }
 0x8af   :  { %v2826_v35 = vpop.xlane.xlu0 %2825 }
 0x8b0   :  { %v2869_v29 = vmul.f32 0.0078125, %v2826_v35 }
 0x8b1   :  { %v2828_v44 = vpop.xlane.xlu1 %2827 }
 0x8b2   :  { %v5686_v7 = vsub.f32 %v5528_v42, %v2869_v29  ;;  %v2870_v47 = vmul.f32 0.0078125, %v2828_v44 }
 0x8b4   :  { %v5689_v31 = vsub.f32 %v5532_v9, %v2870_v47  ;;  %v2933_v5 = vmul.f32 %v5686_v7, %v5686_v7 }
 0x8b6   :  { %2985 = vadd.xlane.f32.xlu0 %v2933_v5  ;;  %v2934_v6 = vmul.f32 %v5689_v31, %v5689_v31 }
 0x8b7   :  { %v2830_v21 = vpop.xlane.xlu0 %2829 }
 0x8b8   :  { %v2871_v27 = vmul.f32 0.0078125, %v2830_v21  ;;  %2987 = vadd.xlane.f32.xlu1 %v2934_v6 }
 0x8b9   :  { %v2832_v11 = vpop.xlane.xlu1 %2831 }
 0x8ba   :  { %v5696_v61 = vsub.f32 %v5538_v60, %v2871_v27  ;;  %v2872_v42 = vmul.f32 0.0078125, %v2832_v11 }
 0x8bc   :  { %v5699_v14 = vsub.f32 %v5542_v59, %v2872_v42  ;;  %v2935_v9 = vmul.f32 %v5696_v61, %v5696_v61 }
 0x8be   :  { %2989 = vadd.xlane.f32.xlu0 %v2935_v9  ;;  %v2936_v24 = vmul.f32 %v5699_v14, %v5699_v14 }
 0x8bf   :  { %v2834_v63 = vpop.xlane.xlu0 %2833 }
 0x8c0   :  { %v2873_v39 = vmul.f32 0.0078125, %v2834_v63  ;;  %2991 = vadd.xlane.f32.xlu1 %v2936_v24 }
 0x8c1   :  { %v2836_v32 = vpop.xlane.xlu1 %2835 }
 0x8c2   :  { %v5706_v38 = vsub.f32 %v5548_v54, %v2873_v39  ;;  %v2874_v60 = vmul.f32 0.0078125, %v2836_v32 }
 0x8c4   :  { %v5709_v13 = vsub.f32 %v5552_v55, %v2874_v60  ;;  %v2937_v59 = vmul.f32 %v5706_v38, %v5706_v38 }
 0x8c6   :  { %2993 = vadd.xlane.f32.xlu0 %v2937_v59  ;;  %v2938_v22 = vmul.f32 %v5709_v13, %v5709_v13 }
 0x8c7   :  { %v2838_v48 = vpop.xlane.xlu0 %2837 }
 0x8c8   :  { %v2875_v41 = vmul.f32 0.0078125, %v2838_v48  ;;  %2995 = vadd.xlane.f32.xlu1 %v2938_v22 }
 0x8c9   :  { %v2840_v17 = vpop.xlane.xlu1 %2839 }
 0x8ca   :  { %v5716_v40 = vsub.f32 %v5558_v51, %v2875_v41  ;;  %v2876_v54 = vmul.f32 0.0078125, %v2840_v17 }
 0x8cc   :  { %v5719_v16 = vsub.f32 %v5562_v15, %v2876_v54  ;;  %v2939_v55 = vmul.f32 %v5716_v40, %v5716_v40 }
 0x8ce   :  { %2997 = vadd.xlane.f32.xlu0 %v2939_v55  ;;  %v2940_v1 = vmul.f32 %v5719_v16, %v5719_v16 }
 0x8d0   :  { %v2842_v25 = vpop.xlane.xlu0 %2841  ;;  %2999 = vadd.xlane.f32.xlu1 %v2940_v1 }
 0x8d1   :  { %v2877_v36 = vmul.f32 0.0078125, %v2842_v25 }
 0x8d2   :  { %v2844_v20 = vpop.xlane.xlu1 %2843 }
 0x8d3   :  { %v5726_v57 = vsub.f32 %v5568_v50, %v2877_v36  ;;  %v2878_v51 = vmul.f32 0.0078125, %v2844_v20  ;;  %v5748_v20 = vld [vmem:[%s5877_s11] ss:$0 sm:$0xff]  ;;  %s4241_s11 = smov [#allocation13]  }
 0x8d5   :  { %v5729_v62 = vsub.f32 %v5572_v8, %v2878_v51  ;;  %v2941_v15 = vmul.f32 %v5726_v57, %v5726_v57 }
 0x8d7   :  { %3001 = vadd.xlane.f32.xlu0 %v2941_v15  ;;  %v2942_v4 = vmul.f32 %v5729_v62, %v5729_v62 }
 0x8d8   :  { %v2846_v35 = vpop.xlane.xlu0 %2845 }
 0x8d9   :  { %v2879_v29 = vmul.f32 0.0078125, %v2846_v35  ;;  %3003 = vadd.xlane.f32.xlu1 %v2942_v4 }
 0x8da   :  { %v2848_v44 = vpop.xlane.xlu1 %2847 }
 0x8db   :  { %v5736_v47 = vsub.f32 %v5581_v19, %v2879_v29  ;;  %v2880_v50 = vmul.f32 0.0078125, %v2848_v44  ;;  %v5754_v44 = vld [vmem:[%s5878_s12] ss:$0 sm:$0xff]  ;;  %s3250_s12 = sshll.u32 %s4241_s11, 4  ;;  %s3251_s12 = int_to_ptr.vmem [resolvable:$true] %s3250_s12 }
 0x8dc   :  { %v2946_v5 = vpop.xlane.xlu0 %2945  ;;  %s4198_s29 = scalar_lea.vmem %s3251_s12, 4096  ;;  %p4203_p7 = scmp.lt.s32.totalorder %s3251_s12, %s3251_s12 }
 0x8dd   :  { %v5739_v6 = vsub.f32 %v5588_v58, %v2880_v50  ;;  %v3009_v8 = vmul.f32 0.0078125, %v2946_v5  ;;  %v2943_v21 = vmul.f32 %v5736_v47, %v5736_v47  ;;  %p4199_p6 = scmp.ne.s32.totalorder %s3251_s12, %s4198_s29  ;;  %p4204_p8 = scmp.lt.s32.totalorder %s4198_s29, %s4198_s29 }
 0x8de   :  { %v2948_v27 = vpop.xlane.xlu1 %2947 }
 0x8df   :  { %v3041_v11 = vadd.f32 1e-05, %v3009_v8  ;;  %v3010_v42 = vmul.f32 0.0078125, %v2948_v27  ;;  %3005 = vadd.xlane.f32.xlu0 %v2943_v21  ;;  %v2944_v9 = vmul.f32 %v5739_v6, %v5739_v6  ;;  %p4205_p9 = por %p4204_p8, %p4203_p7 }
 0x8e0   :  { %v2950_v24 = vpop.xlane.xlu0 %2949 }
 0x8e1   :  { %4002 = vrsqrt.f32 %v3041_v11  ;;  %v3042_v19 = vadd.f32 1e-05, %v3010_v42  ;;  %v3011_v63 = vmul.f32 0.0078125, %v2950_v24  ;;  %3007 = vadd.xlane.f32.xlu1 %v2944_v9  ;;  %p4206_p10 = pnand %p4205_p9, %p4199_p6 }
 0x8e2   :  { %v2952_v39 = vpop.xlane.xlu1 %2951 }
 0x8e3   :  { %4004 = vrsqrt.f32 %v3042_v19  ;;  %v3043_v58 = vadd.f32 1e-05, %v3011_v63  ;;  %v3012_v32 = vmul.f32 0.0078125, %v2952_v39 }
 0x8e4   :  { %v2954_v60 = vpop.xlane.xlu0 %2953 }
 0x8e5   :  { %4006 = vrsqrt.f32 %v3043_v58  ;;  %v3044_v59 = vadd.f32 1e-05, %v3012_v32  ;;  %v3013_v22 = vmul.f32 0.0078125, %v2954_v60 }
 0x8e6   :  { %v2956_v48 = vpop.xlane.xlu1 %2955 }
 0x8e7   :  { %4008 = vrsqrt.f32 %v3044_v59  ;;  %v3045_v41 = vadd.f32 1e-05, %v3013_v22  ;;  %v3014_v17 = vmul.f32 0.0078125, %v2956_v48 }
 0x8e8   :  { %v2958_v54 = vpop.xlane.xlu0 %2957 }
 0x8e9   :  { %4010 = vrsqrt.f32 %v3045_v41  ;;  %v3046_v55 = vadd.f32 1e-05, %v3014_v17  ;;  %v3015_v1 = vmul.f32 0.0078125, %v2958_v54 }
 0x8ea   :  { %v2960_v25 = vpop.xlane.xlu1 %2959 }
 0x8eb   :  { %v4003_v36 = vpop.eup %4002  ;;  %4012 = vrsqrt.f32 %v3046_v55  ;;  %v3047_v51 = vadd.f32 1e-05, %v3015_v1  ;;  %v3016_v15 = vmul.f32 0.0078125, %v2960_v25 }
 0x8ec   :  { %v3105_v4 = vmul.f32 %v4003_v36, %v5577_v23  ;;  %v2962_v35 = vpop.xlane.xlu0 %2961 }
 0x8ed   :  { %v4005_v29 = vpop.eup %4004  ;;  %4014 = vrsqrt.f32 %v3047_v51  ;;  %v3048_v50 = vadd.f32 1e-05, %v3016_v15  ;;  %v3017_v5 = vmul.f32 0.0078125, %v2962_v35 }
 0x8ee   :  { %v3143_v8 = vmul.f32 %v5748_v20, %v3105_v4  ;;  %v3106_v21 = vmul.f32 %v4005_v29, %v5584_v12  ;;  %v2964_v27 = vpop.xlane.xlu1 %2963 }
 0x8ef   :  { %v4007_v11 = vpop.eup %4006  ;;  %4016 = vrsqrt.f32 %v3048_v50  ;;  %v3049_v42 = vadd.f32 1e-05, %v3017_v5  ;;  %v3018_v9 = vmul.f32 0.0078125, %v2964_v27 }
 0x8f0   :  { %v3181_v23 = vadd.f32 %v5754_v44, %v3143_v8  ;;  %v3144_v24 = vmul.f32 %v5748_v20, %v3106_v21  ;;  %v3107_v19 = vmul.f32 %v4007_v11, %v5591_v34  ;;  %v2966_v63 = vpop.xlane.xlu0 %2965 }
 0x8f1   :  { %v4009_v39 = vpop.eup %4008  ;;  %4018 = vrsqrt.f32 %v3049_v42  ;;  %v3050_v58 = vadd.f32 1e-05, %v3018_v9  ;;  %v3019_v32 = vmul.f32 0.0078125, %v2966_v63 }
 0x8f2   :  { %3213 = vst [vmem:[#allocation13] sm:$0xff] %v3181_v23  ;;  %v3182_v60 = vadd.f32 %v5754_v44, %v3144_v24  ;;  %v3145_v12 = vmul.f32 %v5748_v20, %v3107_v19  ;;  %v3108_v59 = vmul.f32 %v4009_v39, %v5597_v53  ;;  %v2968_v22 = vpop.xlane.xlu1 %2967 }
 0x8f3   :  { %v4011_v48 = vpop.eup %4010  ;;  %4020 = vrsqrt.f32 %v3050_v58  ;;  %v3051_v41 = vadd.f32 1e-05, %v3019_v32  ;;  %v3020_v17 = vmul.f32 0.0078125, %v2968_v22 }
 0x8f4   :  { %3214 = vst [vmem:[#allocation13 + $0x8] sm:$0xff] %v3182_v60  ;;  %v3183_v34 = vadd.f32 %v5754_v44, %v3145_v12  ;;  %v3146_v54 = vmul.f32 %v5748_v20, %v3108_v59  ;;  %v3109_v55 = vmul.f32 %v4011_v48, %v5602_v37  ;;  %v2970_v1 = vpop.xlane.xlu0 %2969 }
 0x8f5   :  { %v4013_v25 = vpop.eup %4012  ;;  %4022 = vrsqrt.f32 %v3051_v41  ;;  %v3052_v36 = vadd.f32 1e-05, %v3020_v17  ;;  %v3021_v51 = vmul.f32 0.0078125, %v2970_v1 }
 0x8f6   :  { %3215 = vst [vmem:[#allocation13 + $0x10] sm:$0xff] %v3183_v34  ;;  %v3184_v53 = vadd.f32 %v5754_v44, %v3146_v54  ;;  %v3147_v15 = vmul.f32 %v5748_v20, %v3109_v55  ;;  %v3110_v4 = vmul.f32 %v4013_v25, %v5607_v49  ;;  %v2972_v35 = vpop.xlane.xlu1 %2971 }
 0x8f7   :  { %v4015_v29 = vpop.eup %4014  ;;  %4024 = vrsqrt.f32 %v3052_v36  ;;  %v3053_v50 = vadd.f32 1e-05, %v3021_v51  ;;  %v3022_v5 = vmul.f32 0.0078125, %v2972_v35 }
 0x8f8   :  { %3216 = vst [vmem:[#allocation13 + $0x18] sm:$0xff] %v3184_v53  ;;  %v3185_v37 = vadd.f32 %v5754_v44, %v3147_v15  ;;  %v3148_v8 = vmul.f32 %v5748_v20, %v3110_v4  ;;  %v3111_v21 = vmul.f32 %v4015_v29, %v5612_v30  ;;  %v2974_v27 = vpop.xlane.xlu0 %2973 }
 0x8f9   :  { %v4017_v11 = vpop.eup %4016  ;;  %4026 = vrsqrt.f32 %v3053_v50  ;;  %v3054_v42 = vadd.f32 1e-05, %v3022_v5  ;;  %v3023_v9 = vmul.f32 0.0078125, %v2974_v27 }
 0x8fa   :  { %3217 = vst [vmem:[#allocation13 + $0x20] sm:$0xff] %v3185_v37  ;;  %v3186_v49 = vadd.f32 %v5754_v44, %v3148_v8  ;;  %v3149_v23 = vmul.f32 %v5748_v20, %v3111_v21  ;;  %v3112_v24 = vmul.f32 %v4017_v11, %v5617_v18  ;;  %v2976_v19 = vpop.xlane.xlu1 %2975 }
 0x8fb   :  { %v4019_v63 = vpop.eup %4018  ;;  %4028 = vrsqrt.f32 %v3054_v42  ;;  %v3055_v39 = vadd.f32 1e-05, %v3023_v9  ;;  %v3024_v58 = vmul.f32 0.0078125, %v2976_v19 }
 0x8fc   :  { %3218 = vst [vmem:[#allocation13 + $0x28] sm:$0xff] %v3186_v49  ;;  %v3187_v30 = vadd.f32 %v5754_v44, %v3149_v23  ;;  %v3150_v32 = vmul.f32 %v5748_v20, %v3112_v24  ;;  %v3113_v60 = vmul.f32 %v4019_v63, %v5622_v0  ;;  %v2978_v12 = vpop.xlane.xlu0 %2977 }
 0x8fd   :  { %v4021_v59 = vpop.eup %4020  ;;  %4030 = vrsqrt.f32 %v3055_v39  ;;  %v3056_v22 = vadd.f32 1e-05, %v3024_v58  ;;  %v3025_v48 = vmul.f32 0.0078125, %v2978_v12 }
 0x8fe   :  { %3219 = vst [vmem:[#allocation13 + $0x30] sm:$0xff] %v3187_v30  ;;  %v3188_v18 = vadd.f32 %v5754_v44, %v3150_v32  ;;  %v3151_v41 = vmul.f32 %v5748_v20, %v3113_v60  ;;  %v3114_v17 = vmul.f32 %v4021_v59, %v5627_v3  ;;  %v2980_v34 = vpop.xlane.xlu1 %2979 }
 0x8ff   :  { %v4023_v54 = vpop.eup %4022  ;;  %4032 = vrsqrt.f32 %v3056_v22  ;;  %v3057_v55 = vadd.f32 1e-05, %v3025_v48  ;;  %v3026_v1 = vmul.f32 0.0078125, %v2980_v34 }
 0x900   :  { %3220 = vst [vmem:[#allocation13 + $0x38] sm:$0xff] %v3188_v18  ;;  %v3189_v0 = vadd.f32 %v5754_v44, %v3151_v41  ;;  %v3152_v25 = vmul.f32 %v5748_v20, %v3114_v17  ;;  %v3115_v36 = vmul.f32 %v4023_v54, %v5632_v56  ;;  %v2982_v51 = vpop.xlane.xlu0 %2981 }
 0x901   :  { %v4025_v53 = vpop.eup %4024  ;;  %4034 = vrsqrt.f32 %v3057_v55  ;;  %v3058_v15 = vadd.f32 1e-05, %v3026_v1  ;;  %v3027_v4 = vmul.f32 0.0078125, %v2982_v51 }
 0x902   :  { %3221 = vst [vmem:[#allocation13 + $0x40] sm:$0xff] %v3189_v0  ;;  %v3190_v3 = vadd.f32 %v5754_v44, %v3152_v25  ;;  %v3153_v35 = vmul.f32 %v5748_v20, %v3115_v36  ;;  %v3116_v29 = vmul.f32 %v4025_v53, %v5637_v10  ;;  %v2984_v50 = vpop.xlane.xlu1 %2983 }
 0x903   :  { %v4027_v5 = vpop.eup %4026  ;;  %4036 = vrsqrt.f32 %v3058_v15  ;;  %v3059_v37 = vadd.f32 1e-05, %v3027_v4  ;;  %v3028_v8 = vmul.f32 0.0078125, %v2984_v50 }
 0x904   :  { %3222 = vst [vmem:[#allocation13 + $0x48] sm:$0xff] %v3190_v3  ;;  %v3191_v56 = vadd.f32 %v5754_v44, %v3153_v35  ;;  %v3154_v21 = vmul.f32 %v5748_v20, %v3116_v29  ;;  %v3117_v27 = vmul.f32 %v4027_v5, %v5642_v33 }
 0x905   :  { %v4029_v11 = vpop.eup %4028  ;;  %4038 = vrsqrt.f32 %v3059_v37  ;;  %v3060_v42 = vadd.f32 1e-05, %v3028_v8 }
 0x906   :  { %3223 = vst [vmem:[#allocation13 + $0x50] sm:$0xff] %v3191_v56  ;;  %v3192_v9 = vadd.f32 %v5754_v44, %v3154_v21  ;;  %v3155_v10 = vmul.f32 %v5748_v20, %v3117_v27  ;;  %v3118_v49 = vmul.f32 %v4029_v11, %v5647_v46 }
 0x907   :  { %v4031_v23 = vpop.eup %4030  ;;  %4040 = vrsqrt.f32 %v3060_v42 }
 0x908   :  { %3224 = vst [vmem:[#allocation13 + $0x58] sm:$0xff] %v3192_v9  ;;  %v3193_v24 = vadd.f32 %v5754_v44, %v3155_v10  ;;  %v3156_v19 = vmul.f32 %v5748_v20, %v3118_v49  ;;  %v3119_v63 = vmul.f32 %v4031_v23, %v5652_v26 }
 0x909   :  { %v4033_v33 = vpop.eup %4032 }
 0x90a   :  { %3225 = vst [vmem:[#allocation13 + $0x60] sm:$0xff] %v3193_v24  ;;  %v3194_v39 = vadd.f32 %v5754_v44, %v3156_v19  ;;  %v3157_v58 = vmul.f32 %v5748_v20, %v3119_v63  ;;  %v3120_v30 = vmul.f32 %v4033_v33, %v5657_v52 }
 0x90b   :  { %v4035_v32 = vpop.eup %4034 }
 0x90c   :  { %3226 = vst [vmem:[#allocation13 + $0x68] sm:$0xff] %v3194_v39  ;;  %v3195_v46 = vadd.f32 %v5754_v44, %v3157_v58  ;;  %v3158_v60 = vmul.f32 %v5748_v20, %v3120_v30  ;;  %v3121_v12 = vmul.f32 %v4035_v32, %v5662_v2 }
 0x90d   :  { %v4037_v59 = vpop.eup %4036 }
 0x90e   :  { %3227 = vst [vmem:[#allocation13 + $0x70] sm:$0xff] %v3195_v46  ;;  %v3196_v26 = vadd.f32 %v5754_v44, %v3158_v60  ;;  %v3159_v22 = vmul.f32 %v5748_v20, %v3121_v12  ;;  %v3122_v48 = vmul.f32 %v4037_v59, %v5667_v45 }
 0x90f   :  { %v4039_v18 = vpop.eup %4038 }
 0x910   :  { %3228 = vst [vmem:[#allocation13 + $0x78] sm:$0xff] %v3196_v26  ;;  %v3197_v52 = vadd.f32 %v5754_v44, %v3159_v22  ;;  %v3160_v41 = vmul.f32 %v5748_v20, %v3122_v48  ;;  %v3123_v17 = vmul.f32 %v4039_v18, %v5672_v43 }
 0x911   :  { %v4041_v34 = vpop.eup %4040 }
 0x912   :  { %3229 = vst [vmem:[#allocation13 + $0x80] sm:$0xff] %v3197_v52  ;;  %v3198_v2 = vadd.f32 %v5754_v44, %v3160_v41  ;;  %v3161_v54 = vmul.f32 %v5748_v20, %v3123_v17  ;;  %v3124_v55 = vmul.f32 %v4041_v34, %v5677_v28 }
 0x914   :  { %3230 = vst [vmem:[#allocation13 + $0x88] sm:$0xff] %v3198_v2  ;;  %v3199_v1 = vadd.f32 %v5754_v44, %v3161_v54  ;;  %v3162_v45 = vmul.f32 %v5748_v20, %v3124_v55 }
 0x916   :  { %3231 = vst [vmem:[#allocation13 + $0x90] sm:$0xff] %v3199_v1  ;;  %v3200_v0 = vadd.f32 %v5754_v44, %v3162_v45 }
 0x918   :  { %3232 = vst [vmem:[#allocation13 + $0x98] sm:$0xff] %v3200_v0 }
 0x943   :  { %v2986_v25 = vpop.xlane.xlu0 %2985 }
 0x944   :  { %v3029_v36 = vmul.f32 0.0078125, %v2986_v25 }
 0x945   :  { %v2988_v43 = vpop.xlane.xlu1 %2987 }
 0x946   :  { %v3061_v51 = vadd.f32 1e-05, %v3029_v36  ;;  %v3030_v53 = vmul.f32 0.0078125, %v2988_v43 }
 0x948   :  { %4042 = vrsqrt.f32 %v3061_v51  ;;  %v3062_v15 = vadd.f32 1e-05, %v3030_v53 }
 0x94a   :  { %4044 = vrsqrt.f32 %v3062_v15 }
 0x94b   :  { %v2990_v4 = vpop.xlane.xlu0 %2989 }
 0x94c   :  { %v3031_v3 = vmul.f32 0.0078125, %v2990_v4 }
 0x94d   :  { %v2992_v28 = vpop.xlane.xlu1 %2991 }
 0x94e   :  { %v3063_v35 = vadd.f32 1e-05, %v3031_v3  ;;  %v3032_v29 = vmul.f32 0.0078125, %v2992_v28 }
 0x950   :  { %4046 = vrsqrt.f32 %v3063_v35  ;;  %v3064_v50 = vadd.f32 1e-05, %v3032_v29 }
 0x952   :  { %v4043_v5 = vpop.eup %4042  ;;  %4048 = vrsqrt.f32 %v3064_v50 }
 0x953   :  { %v3125_v37 = vmul.f32 %v4043_v5, %v5686_v7  ;;  %v2994_v8 = vpop.xlane.xlu0 %2993 }
 0x954   :  { %v4045_v56 = vpop.eup %4044  ;;  %v3033_v21 = vmul.f32 0.0078125, %v2994_v8 }
 0x955   :  { %v3163_v27 = vmul.f32 %v5748_v20, %v3125_v37  ;;  %v3126_v11 = vmul.f32 %v4045_v56, %v5689_v31  ;;  %v2996_v42 = vpop.xlane.xlu1 %2995 }
 0x956   :  { %v3065_v9 = vadd.f32 1e-05, %v3033_v21  ;;  %v3034_v10 = vmul.f32 0.0078125, %v2996_v42 }
 0x957   :  { %v3201_v49 = vadd.f32 %v5754_v44, %v3163_v27  ;;  %v3164_v23 = vmul.f32 %v5748_v20, %v3126_v11 }
 0x958   :  { %4050 = vrsqrt.f32 %v3065_v9  ;;  %v3066_v24 = vadd.f32 1e-05, %v3034_v10 }
 0x959   :  { %3233 = vst [vmem:[#allocation13 + $0xa0] sm:$0xff] %v3201_v49  ;;  %v3202_v19 = vadd.f32 %v5754_v44, %v3164_v23 }
 0x95a   :  { %v4047_v7 = vpop.eup %4046  ;;  %4052 = vrsqrt.f32 %v3066_v24 }
 0x95b   :  { %3234 = vst [vmem:[#allocation13 + $0xa8] sm:$0xff] %v3202_v19  ;;  %v3127_v63 = vmul.f32 %v4047_v7, %v5696_v61  ;;  %v2998_v33 = vpop.xlane.xlu0 %2997 }
 0x95c   :  { %v4049_v39 = vpop.eup %4048  ;;  %v3035_v31 = vmul.f32 0.0078125, %v2998_v33 }
 0x95d   :  { %v3165_v58 = vmul.f32 %v5748_v20, %v3127_v63  ;;  %v3128_v30 = vmul.f32 %v4049_v39, %v5699_v14  ;;  %v3000_v32 = vpop.xlane.xlu1 %2999 }
 0x95e   :  { %v3067_v46 = vadd.f32 1e-05, %v3035_v31  ;;  %v3036_v60 = vmul.f32 0.0078125, %v3000_v32 }
 0x95f   :  { %v3203_v12 = vadd.f32 %v5754_v44, %v3165_v58  ;;  %v3166_v59 = vmul.f32 %v5748_v20, %v3128_v30 }
 0x960   :  { %4054 = vrsqrt.f32 %v3067_v46  ;;  %v3068_v26 = vadd.f32 1e-05, %v3036_v60 }
 0x961   :  { %3235 = vst [vmem:[#allocation13 + $0xb0] sm:$0xff] %v3203_v12  ;;  %v3204_v22 = vadd.f32 %v5754_v44, %v3166_v59 }
 0x962   :  { %v4051_v61 = vpop.eup %4050  ;;  %4056 = vrsqrt.f32 %v3068_v26 }
 0x963   :  { %3236 = vst [vmem:[#allocation13 + $0xb8] sm:$0xff] %v3204_v22  ;;  %v3129_v48 = vmul.f32 %v4051_v61, %v5706_v38 }
 0x964   :  { %v4053_v18 = vpop.eup %4052  ;;  %v3002_v52 = vpop.xlane.xlu0 %3001 }
 0x965   :  { %v3167_v14 = vmul.f32 %v5748_v20, %v3129_v48  ;;  %v3130_v41 = vmul.f32 %v4053_v18, %v5709_v13  ;;  %v3037_v17 = vmul.f32 0.0078125, %v3002_v52 }
 0x966   :  { %v3004_v34 = vpop.xlane.xlu1 %3003 }
 0x967   :  { %v3205_v2 = vadd.f32 %v5754_v44, %v3167_v14  ;;  %v3168_v54 = vmul.f32 %v5748_v20, %v3130_v41  ;;  %v3069_v55 = vadd.f32 1e-05, %v3037_v17  ;;  %v3038_v1 = vmul.f32 0.0078125, %v3004_v34 }
 0x969   :  { %3237 = vst [vmem:[#allocation13 + $0xc0] sm:$0xff] %v3205_v2  ;;  %v3206_v45 = vadd.f32 %v5754_v44, %v3168_v54  ;;  %4058 = vrsqrt.f32 %v3069_v55  ;;  %v3070_v0 = vadd.f32 1e-05, %v3038_v1 }
 0x96a   :  { %v4055_v38 = vpop.eup %4054 }
 0x96b   :  { %3238 = vst [vmem:[#allocation13 + $0xc8] sm:$0xff] %v3206_v45  ;;  %v3131_v25 = vmul.f32 %v4055_v38, %v5716_v40  ;;  %4060 = vrsqrt.f32 %v3070_v0 }
 0x96c   :  { %v4057_v36 = vpop.eup %4056  ;;  %v3006_v13 = vpop.xlane.xlu0 %3005 }
 0x96d   :  { %v3169_v43 = vmul.f32 %v5748_v20, %v3131_v25  ;;  %v3132_v51 = vmul.f32 %v4057_v36, %v5719_v16  ;;  %v3039_v53 = vmul.f32 0.0078125, %v3006_v13 }
 0x96e   :  { %v3008_v15 = vpop.xlane.xlu1 %3007 }
 0x96f   :  { %v3207_v4 = vadd.f32 %v5754_v44, %v3169_v43  ;;  %v3170_v3 = vmul.f32 %v5748_v20, %v3132_v51  ;;  %v3071_v28 = vadd.f32 1e-05, %v3039_v53  ;;  %v3040_v35 = vmul.f32 0.0078125, %v3008_v15 }
 0x971   :  { %3239 = vst [vmem:[#allocation13 + $0xd0] sm:$0xff] %v3207_v4  ;;  %v3208_v29 = vadd.f32 %v5754_v44, %v3170_v3  ;;  %4062 = vrsqrt.f32 %v3071_v28  ;;  %v3072_v40 = vadd.f32 1e-05, %v3040_v35 }
 0x973   :  { %v4059_v50 = vpop.eup %4058  ;;  %3240 = vst [vmem:[#allocation13 + $0xd8] sm:$0xff] %v3208_v29  ;;  %4064 = vrsqrt.f32 %v3072_v40 }
 0x974   :  { %v3133_v5 = vmul.f32 %v4059_v50, %v5726_v57 }
 0x975   :  { %v4061_v37 = vpop.eup %4060 }
 0x976   :  { %v3171_v16 = vmul.f32 %v5748_v20, %v3133_v5  ;;  %v3134_v8 = vmul.f32 %v4061_v37, %v5729_v62 }
 0x978   :  { %v3209_v56 = vadd.f32 %v5754_v44, %v3171_v16  ;;  %v3172_v21 = vmul.f32 %v5748_v20, %v3134_v8 }
 0x97a   :  { %3241 = vst [vmem:[#allocation13 + $0xe0] sm:$0xff] %v3209_v56  ;;  %v3210_v27 = vadd.f32 %v5754_v44, %v3172_v21 }
 0x97b   :  { %v4063_v11 = vpop.eup %4062 }
 0x97c   :  { %3242 = vst [vmem:[#allocation13 + $0xe8] sm:$0xff] %v3210_v27  ;;  %v3135_v42 = vmul.f32 %v4063_v11, %v5736_v47 }
 0x97d   :  { %v4065_v9 = vpop.eup %4064 }
 0x97e   :  { %v3173_v10 = vmul.f32 %v5748_v20, %v3135_v42  ;;  %v3136_v57 = vmul.f32 %v4065_v9, %v5739_v6 }
 0x980   :  { %v3211_v62 = vadd.f32 %v5754_v44, %v3173_v10  ;;  %v3174_v49 = vmul.f32 %v5748_v20, %v3136_v57 }
 0x982   :  { %3243 = vst [vmem:[#allocation13 + $0xf0] sm:$0xff] %v3211_v62  ;;  %v3212_v23 = vadd.f32 %v5754_v44, %v3174_v49 }
 0x984   :  { %3244 = vst [vmem:[#allocation13 + $0xf8] sm:$0xff] %v3212_v23 }
 0x985   :  { %4209 = shalt.err (!%p4206_p10)
}
 0x986   :  { %s4210_s0 = scalar_lea.hbm %s5879_s13, 4096 }
 0x987   :  { %p4211_p11 = scmp.ne.s32.totalorder %s5879_s13, %s4210_s0  ;;  %p4214_p12 = scmp.lt.u32.totalorder %s4210_s0, %s5879_s13 }
 0x989   :  { %p4216_p13 = pnand %p4214_p12, %p4211_p11 }
 0x98b   :  { %4219 = shalt.err (!%p4216_p13)
}
 0x98c   :  { %3256 = dma.vmem_to_hbm [thread:$0]  %s3251_s12, 4096, %s5879_s13, [#allocation4], %s4235_s26, %s4235_s26, %s4236_s17  }
 0x98d   :  { %4228 = dma.done.wait [#allocation4], 4096  }
 0x98e   :  { %4229 = vsyncadd [#allocation4], 4294963200 }
 0x98f   :  { %3260 = vsyncpa [#allocation3], 1 }
 0x990   :  { %3261 = vsyncpa [#allocation6], 1 }
 0x991   :  { %3262 = vsyncpa [#allocation9], 1 }
 0x992   :  { %3263 = vsyncpa [#allocation12], 1 }
 0x993   :  { %3264 = vsyncpa [#allocation4], 1 }

</bundles_post_ra>
